<compile_context>
chip_gen: v6e
topology: v6e:2x2x1
jax: 0.10.0
libtpu: 0.0.40
codegen_flags: <defaults>
</compile_context>

<pallas_src>
import numpy as np

import jax
import jax.numpy as jnp
from jax.experimental import pallas as pl
from jax.experimental.pallas import tpu as pltpu


_VMEM_LIMIT = 48 * 1024 * 1024   # resident weights ~10 MiB (x2 if buffered); safe on all gens


# ----------------------------------------------------------------------------
# The single fused kernel: conv stack + FC stack + dueling combine
# ----------------------------------------------------------------------------
def _fused_forward_kernel(x_ref, ns_ref,
                          s1_ref, w1_ref, b1_ref,
                          s2_ref, w2_ref, b2_ref,
                          s3_ref, w3_ref, b3_ref,
                          t_ref, wsp_ref, bsp_ref,
                          wns1_ref, bns1_ref,
                          wv2_ref, bv2_ref, wa2_ref, ba2_ref,
                          wv3_ref, bv3_ref, wa3_ref, ba3_ref,
                          wf_ref, bf_ref, o_ref):
    def dot(a, b):
        return jnp.dot(a, b, preferred_element_type=jnp.float32)

    def relu(t):
        return jnp.maximum(t, 0.0)

    def conv_band(x, s_ref, w_ref, b_ref):
        # x: (B*H_in, W_in*Cin) band.  For each vertical tap dh:
        #   S_dh (B*H_out, B*H_in): 0/1 row selection (H taps/pad/stride)
        #   W_dh (W_in*Cin, W_out*Cout): block-Toeplitz (W taps/pad/stride)
        acc = b_ref[...]                              # (1, W_out*Cout)
        for dh in range(s_ref.shape[0]):              # static, unrolled
            acc = acc + dot(dot(s_ref[dh], x), w_ref[dh])
        return relu(acc)                              # (B*H_out, W_out*Cout)

    # ---- conv stack (activations never leave VMEM) ----
    x = x_ref[...]                                    # (B*16, 16*Cin)
    y1 = conv_band(x, s1_ref, w1_ref, b1_ref)         # (B*16, 16*32)
    y2 = conv_band(y1, s2_ref, w2_ref, b2_ref)        # (B*16, 16*32)
    y3 = conv_band(y2, s3_ref, w3_ref, b3_ref)        # (B*8,   8*16)

    # ---- spatial FC (value|adv merged), flatten folded into w_sp rows ----
    lanes = y3.shape[1]                               # 128
    sp = bsp_ref[...]                                 # (1, 512)
    for ho in range(t_ref.shape[0]):                  # 8 output rows
        rows = dot(t_ref[ho], y3)                     # (B, 128): rows of ho
        sp = sp + dot(rows, wsp_ref[ho * lanes:(ho + 1) * lanes, :])
    sp = relu(sp)                                     # (B, 512) = [v_sp | a_sp]

    # ---- non-spatial FC stack (value|adv merged at layer 1) ----
    half = wv2_ref.shape[0]                           # 512
    ns = relu(dot(ns_ref[...], wns1_ref[...]) + bns1_ref[...])   # (B, 1024)
    v = relu(dot(ns[:, :half], wv2_ref[...]) + bv2_ref[...])     # (B, 512)
    a = relu(dot(ns[:, half:], wa2_ref[...]) + ba2_ref[...])     # (B, 512)
    v = relu(dot(v, wv3_ref[...]) + bv3_ref[...])                # (B, 256)
    a = relu(dot(a, wa3_ref[...]) + ba3_ref[...])                # (B, 256)

    # ---- merged final head + dueling combine ----
    cat = jnp.concatenate([sp, v, a], axis=1)                    # (B, 1024)
    va = dot(cat, wf_ref[...]) + bf_ref[...]                     # (B, 1+n_out)
    adv = va[:, 1:]
    o_ref[...] = va[:, 0:1] + adv - jnp.mean(adv, axis=1, keepdims=True)


def pallas_fused_forward(x_band, nonspatial, f):
    B = nonspatial.shape[0]
    n_out = f["b_final"].shape[1] - 1
    vmem = pl.BlockSpec(memory_space=pltpu.MemorySpace.VMEM)
    args = (x_band, nonspatial,
            f["s1"], f["w1"], f["b1"],
            f["s2"], f["w2"], f["b2"],
            f["s3"], f["w3"], f["b3"],
            f["t"], f["w_sp"], f["b_sp"],
            f["w_ns1"], f["b_ns1"],
            f["wv2"], f["bv2"], f["wa2"], f["ba2"],
            f["wv3"], f["bv3"], f["wa3"], f["ba3"],
            f["w_final"], f["b_final"])
    return pl.pallas_call(
        _fused_forward_kernel,
        out_shape=jax.ShapeDtypeStruct((B, n_out), jnp.float32),
        in_specs=[vmem] * len(args),
        out_specs=vmem,
        compiler_params=pltpu.CompilerParams(vmem_limit_bytes=_VMEM_LIMIT),
    )(*args)


def dueling_qnet_forward(fused, spatial_nchw, nonspatial):
    """Forward pass.  Only remaining XLA glue: one 4 KiB NCHW->band transpose."""
    B, C, H, W = spatial_nchw.shape
    x_band = jnp.transpose(spatial_nchw, (0, 2, 3, 1)).reshape(B * H, W * C)
    return pallas_fused_forward(x_band, nonspatial, fused)


# ----------------------------------------------------------------------------
# Host-side (one-time) parameter restructuring
# ----------------------------------------------------------------------------
def _band_conv_weight(w_oihw, stride, pad, w_in):
    """(Cout,Cin,kh,kw) -> (kh, W_in*Cin, W_out*Cout) block-Toeplitz weights."""
    w = np.asarray(w_oihw)
    cout, cin, kh, kw = w.shape
    w_out = (w_in + 2 * pad - kw) // stride + 1
    big = np.zeros((kh, w_in * cin, w_out * cout), np.float32)
    for dh in range(kh):
        for wo in range(w_out):
            for dw in range(kw):
                wi = stride * wo + dw - pad
                if 0 <= wi < w_in:
                    big[dh, wi * cin:(wi + 1) * cin,
                        wo * cout:(wo + 1) * cout] = w[:, :, dh, dw].T
    return jnp.asarray(big)


def _row_select(batch, h_in, h_out, kh, stride, pad):
    """(kh, B*H_out, B*H_in) 0/1 matrices: pick input row stride*ho+dh-pad."""
    s = np.zeros((kh, batch * h_out, batch * h_in), np.float32)
    for dh in range(kh):
        for b in range(batch):
            for ho in range(h_out):
                hi = stride * ho + dh - pad
                if 0 <= hi < h_in:
                    s[dh, b * h_out + ho, b * h_in + hi] = 1.0
    return jnp.asarray(s)


def _row_spread(batch, h):
    """(h, B, B*h) 0/1 matrices: T[ho] @ Y picks row (b, ho) for every b."""
    t = np.zeros((h, batch, batch * h), np.float32)
    for ho in range(h):
        for b in range(batch):
            t[ho, b, b * h + ho] = 1.0
    return jnp.asarray(t)


def make_fused_params(params, batch):
    f = {}
    # conv stack as banded matmuls (H handled by S, W handled by the band)
    f["s1"] = _row_select(batch, 16, 16, kh=5, stride=1, pad=2)
    f["w1"] = _band_conv_weight(params["conv1_w"], stride=1, pad=2, w_in=16)
    f["b1"] = jnp.tile(params["conv1_b"], 16).reshape(1, -1)
    f["s2"] = _row_select(batch, 16, 16, kh=3, stride=1, pad=1)
    f["w2"] = _band_conv_weight(params["conv2_w"], stride=1, pad=1, w_in=16)
    f["b2"] = jnp.tile(params["conv2_b"], 16).reshape(1, -1)
    f["s3"] = _row_select(batch, 16, 8, kh=3, stride=2, pad=1)
    f["w3"] = _band_conv_weight(params["conv3_w"], stride=2, pad=1, w_in=16)
    f["b3"] = jnp.tile(params["conv3_b"], 8).reshape(1, -1)
    f["t"] = _row_spread(batch, 8)

    # spatial FC: fold kernel flatten order (ho, wo, co) -> torch (co, ho, wo)
    i = np.arange(16 * 8 * 8)
    ho, wo, co = i // 128, (i // 16) % 8, i % 16
    perm = jnp.asarray(co * 64 + ho * 8 + wo)
    f["w_sp"] = jnp.concatenate([params["value_sp_fc_w"][perm],
                                 params["adv_sp_fc_w"][perm]], axis=1)   # (1024, 512)
    f["b_sp"] = jnp.concatenate([params["value_sp_fc_b"],
                                 params["adv_sp_fc_b"]], axis=1)

    f["w_ns1"] = jnp.concatenate([params["value_nonsp_fc1_w"],
                                  params["adv_nonsp_fc1_w"]], axis=1)    # (n_dims, 1024)
    f["b_ns1"] = jnp.concatenate([params["value_nonsp_fc1_b"],
                                  params["adv_nonsp_fc1_b"]], axis=1)
    f["wv2"] = params["value_nonsp_fc2_w"]; f["bv2"] = params["value_nonsp_fc2_b"]
    f["wa2"] = params["adv_nonsp_fc2_w"];   f["ba2"] = params["adv_nonsp_fc2_b"]
    f["wv3"] = params["value_nonsp_fc3_w"]; f["bv3"] = params["value_nonsp_fc3_b"]
    f["wa3"] = params["adv_nonsp_fc3_w"];   f["ba3"] = params["adv_nonsp_fc3_b"]

    # merged final head: [v_sp | a_sp | v | a] (B,1024) @ (1024, 1+n_out)
    n_out = params["adv_final_fc_w"].shape[1]
    wvf = np.asarray(params["value_final_fc_w"])      # (512, 1)
    waf = np.asarray(params["adv_final_fc_w"])        # (512, n_out)
    wf = np.zeros((1024, 1 + n_out), np.float32)
    wf[0:256, 0:1] = wvf[:256]        # value_final rows for value_sp
    wf[256:512, 1:] = waf[:256]       # adv_final rows for adv_sp
    wf[512:768, 0:1] = wvf[256:]      # value_final rows for value_nonsp
    wf[768:1024, 1:] = waf[256:]      # adv_final rows for adv_nonsp
    f["w_final"] = jnp.asarray(wf)
    f["b_final"] = jnp.concatenate([params["value_final_fc_b"],
                                    params["adv_final_fc_b"]], axis=1)   # (1, 1+n_out)
    return f


# ----------------------------------------------------------------------------
# Parameters (deterministic synthetic init; shapes from the nn.Module)
# ----------------------------------------------------------------------------
def init_params(key, n_channels, n_dims, n_out):
    keys = iter(jax.random.split(key, 26))

    def w(shape, scale=0.05):
        return scale * jax.random.normal(next(keys), shape, dtype=jnp.float32)

    p = {}
    p["conv1_w"] = w((32, n_channels, 5, 5)); p["conv1_b"] = w((32,))
    p["conv2_w"] = w((32, 32, 3, 3));         p["conv2_b"] = w((32,))
    p["conv3_w"] = w((16, 32, 3, 3));         p["conv3_b"] = w((16,))

    def lin(name, k_in, k_out):
        # stored as (in, out), i.e. transposed relative to torch's (out, in)
        p[name + "_w"] = w((k_in, k_out))
        p[name + "_b"] = w((1, k_out))

    lin("value_sp_fc", 16 * 8 * 8, 256)
    lin("value_nonsp_fc1", n_dims, 512)
    lin("value_nonsp_fc2", 512, 512)
    lin("value_nonsp_fc3", 512, 256)
    lin("value_final_fc", 512, 1)
    lin("adv_sp_fc", 16 * 8 * 8, 256)
    lin("adv_nonsp_fc1", n_dims, 512)
    lin("adv_nonsp_fc2", 512, 512)
    lin("adv_nonsp_fc3", 512, 256)
    lin("adv_final_fc", 512, n_out)
    return p


# ----------------------------------------------------------------------------
# Pure-JAX reference (for correctness check)
# ----------------------------------------------------------------------------
def reference_forward(params, spatial_nchw, nonspatial):
    def conv(x, w, b, stride, pad):
        y = jax.lax.conv_general_dilated(
            x, w, window_strides=(stride, stride),
            padding=((pad, pad), (pad, pad)),
            dimension_numbers=("NCHW", "OIHW", "NCHW"))
        return jax.nn.relu(y + b.reshape(1, -1, 1, 1))

    x = conv(spatial_nchw, params["conv1_w"], params["conv1_b"], 1, 2)
    x = conv(x, params["conv2_w"], params["conv2_b"], 1, 1)
    x = conv(x, params["conv3_w"], params["conv3_b"], 2, 1)
    flat = x.reshape(x.shape[0], -1)

    def lin(name, inp, relu=True):
        y = inp @ params[name + "_w"] + params[name + "_b"]
        return jax.nn.relu(y) if relu else y

    v = jnp.concatenate([lin("value_sp_fc", flat),
                         lin("value_nonsp_fc3",
                             lin("value_nonsp_fc2",
                                 lin("value_nonsp_fc1", nonspatial)))], axis=1)
    a = jnp.concatenate([lin("adv_sp_fc", flat),
                         lin("adv_nonsp_fc3",
                             lin("adv_nonsp_fc2",
                                 lin("adv_nonsp_fc1", nonspatial)))], axis=1)
    value = lin("value_final_fc", v, relu=False)
    adv = lin("adv_final_fc", a, relu=False)
    return value + (adv - adv.mean(axis=1, keepdims=True))


# ----------------------------------------------------------------------------
if __name__ == "__main__":
    B, n_channels, n_dims, n_out = 2, 4, 32, 8

    key = jax.random.PRNGKey(0)
    k_params, k_sp, k_ns = jax.random.split(key, 3)
    params = init_params(k_params, n_channels, n_dims, n_out)
    fused = make_fused_params(params, batch=B)

    spatial = jax.random.normal(k_sp, (B, n_channels, 16, 16), dtype=jnp.float32)
    nonspatial = jax.random.normal(k_ns, (B, n_dims), dtype=jnp.float32)

    fwd = jax.jit(dueling_qnet_forward)
    out = jax.block_until_ready(fwd(fused, spatial, nonspatial))

    ref = reference_forward(params, spatial, nonspatial)
    assert out.shape == (B, n_out), out.shape
    assert jnp.allclose(out, ref, rtol=2e-3, atol=2e-3), "Pallas output != JAX reference"

    print("KERNEL_OK")
</pallas_src>

<mosaic_0001>
module attributes {stable_mosaic.version = 11 : i64} {
  func.func @_fused_forward_kernel(%arg0: memref<32x64xf32, #tpu.memory_space<vmem>>, %arg1: memref<2x32xf32, #tpu.memory_space<vmem>>, %arg2: memref<5x32x32xf32, #tpu.memory_space<vmem>>, %arg3: memref<5x64x512xf32, #tpu.memory_space<vmem>>, %arg4: memref<1x512xf32, #tpu.memory_space<vmem>>, %arg5: memref<3x32x32xf32, #tpu.memory_space<vmem>>, %arg6: memref<3x512x512xf32, #tpu.memory_space<vmem>>, %arg7: memref<1x512xf32, #tpu.memory_space<vmem>>, %arg8: memref<3x16x32xf32, #tpu.memory_space<vmem>>, %arg9: memref<3x512x128xf32, #tpu.memory_space<vmem>>, %arg10: memref<1x128xf32, #tpu.memory_space<vmem>>, %arg11: memref<8x2x16xf32, #tpu.memory_space<vmem>>, %arg12: memref<1024x512xf32, #tpu.memory_space<vmem>>, %arg13: memref<1x512xf32, #tpu.memory_space<vmem>>, %arg14: memref<32x1024xf32, #tpu.memory_space<vmem>>, %arg15: memref<1x1024xf32, #tpu.memory_space<vmem>>, %arg16: memref<512x512xf32, #tpu.memory_space<vmem>>, %arg17: memref<1x512xf32, #tpu.memory_space<vmem>>, %arg18: memref<512x512xf32, #tpu.memory_space<vmem>>, %arg19: memref<1x512xf32, #tpu.memory_space<vmem>>, %arg20: memref<512x256xf32, #tpu.memory_space<vmem>>, %arg21: memref<1x256xf32, #tpu.memory_space<vmem>>, %arg22: memref<512x256xf32, #tpu.memory_space<vmem>>, %arg23: memref<1x256xf32, #tpu.memory_space<vmem>>, %arg24: memref<1024x9xf32, #tpu.memory_space<vmem>>, %arg25: memref<1x9xf32, #tpu.memory_space<vmem>>, %arg26: memref<2x8xf32, #tpu.memory_space<vmem>>) attributes {dimension_semantics = [], scalar_prefetch = 0 : i64, scratch_operands = 0 : i64, tpu.core_type = #tpu.core_type<tc>} {
    %c0 = arith.constant 0 : index
    %c0_0 = arith.constant 0 : index
    %0 = vector.load %arg0[%c0, %c0_0] : memref<32x64xf32, #tpu.memory_space<vmem>>, vector<32x64xf32>
    %c0_1 = arith.constant 0 : index
    %c0_2 = arith.constant 0 : index
    %1 = vector.load %arg4[%c0_1, %c0_2] : memref<1x512xf32, #tpu.memory_space<vmem>>, vector<1x512xf32>
    %c0_3 = arith.constant 0 : index
    %c0_4 = arith.constant 0 : index
    %c0_5 = arith.constant 0 : index
    %2 = vector.load %arg2[%c0_3, %c0_4, %c0_5] : memref<5x32x32xf32, #tpu.memory_space<vmem>>, vector<1x32x32xf32>
    %3 = vector.shape_cast %2 : vector<1x32x32xf32> to vector<32x32xf32>
    %cst = arith.constant dense<0.000000e+00> : vector<32x64xf32>
    %4 = tpu.matmul %3, %0, %cst {dimension_numbers = #tpu.dot_dimension_numbers<[1], [0], [0], [1], [0, 0, 1, 1], [], []>} : vector<32x32xf32>, vector<32x64xf32>, vector<32x64xf32> -> vector<32x64xf32>
    %c0_6 = arith.constant 0 : index
    %c0_7 = arith.constant 0 : index
    %c0_8 = arith.constant 0 : index
    %5 = vector.load %arg3[%c0_6, %c0_7, %c0_8] : memref<5x64x512xf32, #tpu.memory_space<vmem>>, vector<1x64x512xf32>
    %6 = vector.shape_cast %5 : vector<1x64x512xf32> to vector<64x512xf32>
    %cst_9 = arith.constant dense<0.000000e+00> : vector<32x512xf32>
    %7 = tpu.matmul %4, %6, %cst_9 {dimension_numbers = #tpu.dot_dimension_numbers<[1], [0], [0], [1], [0, 0, 1, 1], [], []>} : vector<32x64xf32>, vector<64x512xf32>, vector<32x512xf32> -> vector<32x512xf32>
    %8 = vector.broadcast %1 : vector<1x512xf32> to vector<32x512xf32>
    %9 = arith.addf %8, %7 : vector<32x512xf32>
    %c1 = arith.constant 1 : index
    %c0_10 = arith.constant 0 : index
    %c0_11 = arith.constant 0 : index
    %10 = vector.load %arg2[%c1, %c0_10, %c0_11] : memref<5x32x32xf32, #tpu.memory_space<vmem>>, vector<1x32x32xf32>
    %11 = vector.shape_cast %10 : vector<1x32x32xf32> to vector<32x32xf32>
    %cst_12 = arith.constant dense<0.000000e+00> : vector<32x64xf32>
    %12 = tpu.matmul %11, %0, %cst_12 {dimension_numbers = #tpu.dot_dimension_numbers<[1], [0], [0], [1], [0, 0, 1, 1], [], []>} : vector<32x32xf32>, vector<32x64xf32>, vector<32x64xf32> -> vector<32x64xf32>
    %c1_13 = arith.constant 1 : index
    %c0_14 = arith.constant 0 : index
    %c0_15 = arith.constant 0 : index
    %13 = vector.load %arg3[%c1_13, %c0_14, %c0_15] : memref<5x64x512xf32, #tpu.memory_space<vmem>>, vector<1x64x512xf32>
    %14 = vector.shape_cast %13 : vector<1x64x512xf32> to vector<64x512xf32>
    %cst_16 = arith.constant dense<0.000000e+00> : vector<32x512xf32>
    %15 = tpu.matmul %12, %14, %cst_16 {dimension_numbers = #tpu.dot_dimension_numbers<[1], [0], [0], [1], [0, 0, 1, 1], [], []>} : vector<32x64xf32>, vector<64x512xf32>, vector<32x512xf32> -> vector<32x512xf32>
    %16 = arith.addf %9, %15 : vector<32x512xf32>
    %c2 = arith.constant 2 : index
    %c0_17 = arith.constant 0 : index
    %c0_18 = arith.constant 0 : index
    %17 = vector.load %arg2[%c2, %c0_17, %c0_18] : memref<5x32x32xf32, #tpu.memory_space<vmem>>, vector<1x32x32xf32>
    %18 = vector.shape_cast %17 : vector<1x32x32xf32> to vector<32x32xf32>
    %cst_19 = arith.constant dense<0.000000e+00> : vector<32x64xf32>
    %19 = tpu.matmul %18, %0, %cst_19 {dimension_numbers = #tpu.dot_dimension_numbers<[1], [0], [0], [1], [0, 0, 1, 1], [], []>} : vector<32x32xf32>, vector<32x64xf32>, vector<32x64xf32> -> vector<32x64xf32>
    %c2_20 = arith.constant 2 : index
    %c0_21 = arith.constant 0 : index
    %c0_22 = arith.constant 0 : index
    %20 = vector.load %arg3[%c2_20, %c0_21, %c0_22] : memref<5x64x512xf32, #tpu.memory_space<vmem>>, vector<1x64x512xf32>
    %21 = vector.shape_cast %20 : vector<1x64x512xf32> to vector<64x512xf32>
    %cst_23 = arith.constant dense<0.000000e+00> : vector<32x512xf32>
    %22 = tpu.matmul %19, %21, %cst_23 {dimension_numbers = #tpu.dot_dimension_numbers<[1], [0], [0], [1], [0, 0, 1, 1], [], []>} : vector<32x64xf32>, vector<64x512xf32>, vector<32x512xf32> -> vector<32x512xf32>
    %23 = arith.addf %16, %22 : vector<32x512xf32>
    %c3 = arith.constant 3 : index
    %c0_24 = arith.constant 0 : index
    %c0_25 = arith.constant 0 : index
    %24 = vector.load %arg2[%c3, %c0_24, %c0_25] : memref<5x32x32xf32, #tpu.memory_space<vmem>>, vector<1x32x32xf32>
    %25 = vector.shape_cast %24 : vector<1x32x32xf32> to vector<32x32xf32>
    %cst_26 = arith.constant dense<0.000000e+00> : vector<32x64xf32>
    %26 = tpu.matmul %25, %0, %cst_26 {dimension_numbers = #tpu.dot_dimension_numbers<[1], [0], [0], [1], [0, 0, 1, 1], [], []>} : vector<32x32xf32>, vector<32x64xf32>, vector<32x64xf32> -> vector<32x64xf32>
    %c3_27 = arith.constant 3 : index
    %c0_28 = arith.constant 0 : index
    %c0_29 = arith.constant 0 : index
    %27 = vector.load %arg3[%c3_27, %c0_28, %c0_29] : memref<5x64x512xf32, #tpu.memory_space<vmem>>, vector<1x64x512xf32>
    %28 = vector.shape_cast %27 : vector<1x64x512xf32> to vector<64x512xf32>
    %cst_30 = arith.constant dense<0.000000e+00> : vector<32x512xf32>
    %29 = tpu.matmul %26, %28, %cst_30 {dimension_numbers = #tpu.dot_dimension_numbers<[1], [0], [0], [1], [0, 0, 1, 1], [], []>} : vector<32x64xf32>, vector<64x512xf32>, vector<32x512xf32> -> vector<32x512xf32>
    %30 = arith.addf %23, %29 : vector<32x512xf32>
    %c4 = arith.constant 4 : index
    %c0_31 = arith.constant 0 : index
    %c0_32 = arith.constant 0 : index
    %31 = vector.load %arg2[%c4, %c0_31, %c0_32] : memref<5x32x32xf32, #tpu.memory_space<vmem>>, vector<1x32x32xf32>
    %32 = vector.shape_cast %31 : vector<1x32x32xf32> to vector<32x32xf32>
    %cst_33 = arith.constant dense<0.000000e+00> : vector<32x64xf32>
    %33 = tpu.matmul %32, %0, %cst_33 {dimension_numbers = #tpu.dot_dimension_numbers<[1], [0], [0], [1], [0, 0, 1, 1], [], []>} : vector<32x32xf32>, vector<32x64xf32>, vector<32x64xf32> -> vector<32x64xf32>
    %c4_34 = arith.constant 4 : index
    %c0_35 = arith.constant 0 : index
    %c0_36 = arith.constant 0 : index
    %34 = vector.load %arg3[%c4_34, %c0_35, %c0_36] : memref<5x64x512xf32, #tpu.memory_space<vmem>>, vector<1x64x512xf32>
    %35 = vector.shape_cast %34 : vector<1x64x512xf32> to vector<64x512xf32>
    %cst_37 = arith.constant dense<0.000000e+00> : vector<32x512xf32>
    %36 = tpu.matmul %33, %35, %cst_37 {dimension_numbers = #tpu.dot_dimension_numbers<[1], [0], [0], [1], [0, 0, 1, 1], [], []>} : vector<32x64xf32>, vector<64x512xf32>, vector<32x512xf32> -> vector<32x512xf32>
    %37 = arith.addf %30, %36 : vector<32x512xf32>
    %cst_38 = arith.constant 0.000000e+00 : f32
    %38 = vector.broadcast %cst_38 : f32 to vector<32x512xf32>
    %39 = arith.maximumf %37, %38 : vector<32x512xf32>
    %c0_39 = arith.constant 0 : index
    %c0_40 = arith.constant 0 : index
    %40 = vector.load %arg7[%c0_39, %c0_40] : memref<1x512xf32, #tpu.memory_space<vmem>>, vector<1x512xf32>
    %c0_41 = arith.constant 0 : index
    %c0_42 = arith.constant 0 : index
    %c0_43 = arith.constant 0 : index
    %41 = vector.load %arg5[%c0_41, %c0_42, %c0_43] : memref<3x32x32xf32, #tpu.memory_space<vmem>>, vector<1x32x32xf32>
    %42 = vector.shape_cast %41 : vector<1x32x32xf32> to vector<32x32xf32>
    %cst_44 = arith.constant dense<0.000000e+00> : vector<32x512xf32>
    %43 = tpu.matmul %42, %39, %cst_44 {dimension_numbers = #tpu.dot_dimension_numbers<[1], [0], [0], [1], [0, 0, 1, 1], [], []>} : vector<32x32xf32>, vector<32x512xf32>, vector<32x512xf32> -> vector<32x512xf32>
    %c0_45 = arith.constant 0 : index
    %c0_46 = arith.constant 0 : index
    %c0_47 = arith.constant 0 : index
    %44 = vector.load %arg6[%c0_45, %c0_46, %c0_47] : memref<3x512x512xf32, #tpu.memory_space<vmem>>, vector<1x512x512xf32>
    %45 = vector.shape_cast %44 : vector<1x512x512xf32> to vector<512x512xf32>
    %cst_48 = arith.constant dense<0.000000e+00> : vector<32x512xf32>
    %46 = tpu.matmul %43, %45, %cst_48 {dimension_numbers = #tpu.dot_dimension_numbers<[1], [0], [0], [1], [0, 0, 1, 1], [], []>} : vector<32x512xf32>, vector<512x512xf32>, vector<32x512xf32> -> vector<32x512xf32>
    %47 = vector.broadcast %40 : vector<1x512xf32> to vector<32x512xf32>
    %48 = arith.addf %47, %46 : vector<32x512xf32>
    %c1_49 = arith.constant 1 : index
    %c0_50 = arith.constant 0 : index
    %c0_51 = arith.constant 0 : index
    %49 = vector.load %arg5[%c1_49, %c0_50, %c0_51] : memref<3x32x32xf32, #tpu.memory_space<vmem>>, vector<1x32x32xf32>
    %50 = vector.shape_cast %49 : vector<1x32x32xf32> to vector<32x32xf32>
    %cst_52 = arith.constant dense<0.000000e+00> : vector<32x512xf32>
    %51 = tpu.matmul %50, %39, %cst_52 {dimension_numbers = #tpu.dot_dimension_numbers<[1], [0], [0], [1], [0, 0, 1, 1], [], []>} : vector<32x32xf32>, vector<32x512xf32>, vector<32x512xf32> -> vector<32x512xf32>
    %c1_53 = arith.constant 1 : index
    %c0_54 = arith.constant 0 : index
    %c0_55 = arith.constant 0 : index
    %52 = vector.load %arg6[%c1_53, %c0_54, %c0_55] : memref<3x512x512xf32, #tpu.memory_space<vmem>>, vector<1x512x512xf32>
    %53 = vector.shape_cast %52 : vector<1x512x512xf32> to vector<512x512xf32>
    %cst_56 = arith.constant dense<0.000000e+00> : vector<32x512xf32>
    %54 = tpu.matmul %51, %53, %cst_56 {dimension_numbers = #tpu.dot_dimension_numbers<[1], [0], [0], [1], [0, 0, 1, 1], [], []>} : vector<32x512xf32>, vector<512x512xf32>, vector<32x512xf32> -> vector<32x512xf32>
    %55 = arith.addf %48, %54 : vector<32x512xf32>
    %c2_57 = arith.constant 2 : index
    %c0_58 = arith.constant 0 : index
    %c0_59 = arith.constant 0 : index
    %56 = vector.load %arg5[%c2_57, %c0_58, %c0_59] : memref<3x32x32xf32, #tpu.memory_space<vmem>>, vector<1x32x32xf32>
    %57 = vector.shape_cast %56 : vector<1x32x32xf32> to vector<32x32xf32>
    %cst_60 = arith.constant dense<0.000000e+00> : vector<32x512xf32>
    %58 = tpu.matmul %57, %39, %cst_60 {dimension_numbers = #tpu.dot_dimension_numbers<[1], [0], [0], [1], [0, 0, 1, 1], [], []>} : vector<32x32xf32>, vector<32x512xf32>, vector<32x512xf32> -> vector<32x512xf32>
    %c2_61 = arith.constant 2 : index
    %c0_62 = arith.constant 0 : index
    %c0_63 = arith.constant 0 : index
    %59 = vector.load %arg6[%c2_61, %c0_62, %c0_63] : memref<3x512x512xf32, #tpu.memory_space<vmem>>, vector<1x512x512xf32>
    %60 = vector.shape_cast %59 : vector<1x512x512xf32> to vector<512x512xf32>
    %cst_64 = arith.constant dense<0.000000e+00> : vector<32x512xf32>
    %61 = tpu.matmul %58, %60, %cst_64 {dimension_numbers = #tpu.dot_dimension_numbers<[1], [0], [0], [1], [0, 0, 1, 1], [], []>} : vector<32x512xf32>, vector<512x512xf32>, vector<32x512xf32> -> vector<32x512xf32>
    %62 = arith.addf %55, %61 : vector<32x512xf32>
    %cst_65 = arith.constant 0.000000e+00 : f32
    %63 = vector.broadcast %cst_65 : f32 to vector<32x512xf32>
    %64 = arith.maximumf %62, %63 : vector<32x512xf32>
    %c0_66 = arith.constant 0 : index
    %c0_67 = arith.constant 0 : index
    %65 = vector.load %arg10[%c0_66, %c0_67] : memref<1x128xf32, #tpu.memory_space<vmem>>, vector<1x128xf32>
    %c0_68 = arith.constant 0 : index
    %c0_69 = arith.constant 0 : index
    %c0_70 = arith.constant 0 : index
    %66 = vector.load %arg8[%c0_68, %c0_69, %c0_70] : memref<3x16x32xf32, #tpu.memory_space<vmem>>, vector<1x16x32xf32>
    %67 = vector.shape_cast %66 : vector<1x16x32xf32> to vector<16x32xf32>
    %cst_71 = arith.constant dense<0.000000e+00> : vector<16x512xf32>
    %68 = tpu.matmul %67, %64, %cst_71 {dimension_numbers = #tpu.dot_dimension_numbers<[1], [0], [0], [1], [0, 0, 1, 1], [], []>} : vector<16x32xf32>, vector<32x512xf32>, vector<16x512xf32> -> vector<16x512xf32>
    %c0_72 = arith.constant 0 : index
    %c0_73 = arith.constant 0 : index
    %c0_74 = arith.constant 0 : index
    %69 = vector.load %arg9[%c0_72, %c0_73, %c0_74] : memref<3x512x128xf32, #tpu.memory_space<vmem>>, vector<1x512x128xf32>
    %70 = vector.shape_cast %69 : vector<1x512x128xf32> to vector<512x128xf32>
    %cst_75 = arith.constant dense<0.000000e+00> : vector<16x128xf32>
    %71 = tpu.matmul %68, %70, %cst_75 {dimension_numbers = #tpu.dot_dimension_numbers<[1], [0], [0], [1], [0, 0, 1, 1], [], []>} : vector<16x512xf32>, vector<512x128xf32>, vector<16x128xf32> -> vector<16x128xf32>
    %72 = vector.broadcast %65 : vector<1x128xf32> to vector<16x128xf32>
    %73 = arith.addf %72, %71 : vector<16x128xf32>
    %c1_76 = arith.constant 1 : index
    %c0_77 = arith.constant 0 : index
    %c0_78 = arith.constant 0 : index
    %74 = vector.load %arg8[%c1_76, %c0_77, %c0_78] : memref<3x16x32xf32, #tpu.memory_space<vmem>>, vector<1x16x32xf32>
    %75 = vector.shape_cast %74 : vector<1x16x32xf32> to vector<16x32xf32>
    %cst_79 = arith.constant dense<0.000000e+00> : vector<16x512xf32>
    %76 = tpu.matmul %75, %64, %cst_79 {dimension_numbers = #tpu.dot_dimension_numbers<[1], [0], [0], [1], [0, 0, 1, 1], [], []>} : vector<16x32xf32>, vector<32x512xf32>, vector<16x512xf32> -> vector<16x512xf32>
    %c1_80 = arith.constant 1 : index
    %c0_81 = arith.constant 0 : index
    %c0_82 = arith.constant 0 : index
    %77 = vector.load %arg9[%c1_80, %c0_81, %c0_82] : memref<3x512x128xf32, #tpu.memory_space<vmem>>, vector<1x512x128xf32>
    %78 = vector.shape_cast %77 : vector<1x512x128xf32> to vector<512x128xf32>
    %cst_83 = arith.constant dense<0.000000e+00> : vector<16x128xf32>
    %79 = tpu.matmul %76, %78, %cst_83 {dimension_numbers = #tpu.dot_dimension_numbers<[1], [0], [0], [1], [0, 0, 1, 1], [], []>} : vector<16x512xf32>, vector<512x128xf32>, vector<16x128xf32> -> vector<16x128xf32>
    %80 = arith.addf %73, %79 : vector<16x128xf32>
    %c2_84 = arith.constant 2 : index
    %c0_85 = arith.constant 0 : index
    %c0_86 = arith.constant 0 : index
    %81 = vector.load %arg8[%c2_84, %c0_85, %c0_86] : memref<3x16x32xf32, #tpu.memory_space<vmem>>, vector<1x16x32xf32>
    %82 = vector.shape_cast %81 : vector<1x16x32xf32> to vector<16x32xf32>
    %cst_87 = arith.constant dense<0.000000e+00> : vector<16x512xf32>
    %83 = tpu.matmul %82, %64, %cst_87 {dimension_numbers = #tpu.dot_dimension_numbers<[1], [0], [0], [1], [0, 0, 1, 1], [], []>} : vector<16x32xf32>, vector<32x512xf32>, vector<16x512xf32> -> vector<16x512xf32>
    %c2_88 = arith.constant 2 : index
    %c0_89 = arith.constant 0 : index
    %c0_90 = arith.constant 0 : index
    %84 = vector.load %arg9[%c2_88, %c0_89, %c0_90] : memref<3x512x128xf32, #tpu.memory_space<vmem>>, vector<1x512x128xf32>
    %85 = vector.shape_cast %84 : vector<1x512x128xf32> to vector<512x128xf32>
    %cst_91 = arith.constant dense<0.000000e+00> : vector<16x128xf32>
    %86 = tpu.matmul %83, %85, %cst_91 {dimension_numbers = #tpu.dot_dimension_numbers<[1], [0], [0], [1], [0, 0, 1, 1], [], []>} : vector<16x512xf32>, vector<512x128xf32>, vector<16x128xf32> -> vector<16x128xf32>
    %87 = arith.addf %80, %86 : vector<16x128xf32>
    %cst_92 = arith.constant 0.000000e+00 : f32
    %88 = vector.broadcast %cst_92 : f32 to vector<16x128xf32>
    %89 = arith.maximumf %87, %88 : vector<16x128xf32>
    %c0_93 = arith.constant 0 : index
    %c0_94 = arith.constant 0 : index
    %90 = vector.load %arg13[%c0_93, %c0_94] : memref<1x512xf32, #tpu.memory_space<vmem>>, vector<1x512xf32>
    %c0_95 = arith.constant 0 : index
    %c0_96 = arith.constant 0 : index
    %c0_97 = arith.constant 0 : index
    %91 = vector.load %arg11[%c0_95, %c0_96, %c0_97] : memref<8x2x16xf32, #tpu.memory_space<vmem>>, vector<1x2x16xf32>
    %92 = vector.shape_cast %91 : vector<1x2x16xf32> to vector<2x16xf32>
    %cst_98 = arith.constant dense<0.000000e+00> : vector<2x128xf32>
    %93 = tpu.matmul %92, %89, %cst_98 {dimension_numbers = #tpu.dot_dimension_numbers<[1], [0], [0], [1], [0, 0, 1, 1], [], []>} : vector<2x16xf32>, vector<16x128xf32>, vector<2x128xf32> -> vector<2x128xf32>
    %c0_99 = arith.constant 0 : index
    %c0_100 = arith.constant 0 : index
    %94 = vector.load %arg12[%c0_99, %c0_100] : memref<1024x512xf32, #tpu.memory_space<vmem>>, vector<128x512xf32>
    %cst_101 = arith.constant dense<0.000000e+00> : vector<2x512xf32>
    %95 = tpu.matmul %93, %94, %cst_101 {dimension_numbers = #tpu.dot_dimension_numbers<[1], [0], [0], [1], [0, 0, 1, 1], [], []>} : vector<2x128xf32>, vector<128x512xf32>, vector<2x512xf32> -> vector<2x512xf32>
    %96 = vector.broadcast %90 : vector<1x512xf32> to vector<2x512xf32>
    %97 = arith.addf %96, %95 : vector<2x512xf32>
    %c1_102 = arith.constant 1 : index
    %c0_103 = arith.constant 0 : index
    %c0_104 = arith.constant 0 : index
    %98 = vector.load %arg11[%c1_102, %c0_103, %c0_104] : memref<8x2x16xf32, #tpu.memory_space<vmem>>, vector<1x2x16xf32>
    %99 = vector.shape_cast %98 : vector<1x2x16xf32> to vector<2x16xf32>
    %cst_105 = arith.constant dense<0.000000e+00> : vector<2x128xf32>
    %100 = tpu.matmul %99, %89, %cst_105 {dimension_numbers = #tpu.dot_dimension_numbers<[1], [0], [0], [1], [0, 0, 1, 1], [], []>} : vector<2x16xf32>, vector<16x128xf32>, vector<2x128xf32> -> vector<2x128xf32>
    %c128 = arith.constant 128 : index
    %c0_106 = arith.constant 0 : index
    %101 = vector.load %arg12[%c128, %c0_106] : memref<1024x512xf32, #tpu.memory_space<vmem>>, vector<128x512xf32>
    %cst_107 = arith.constant dense<0.000000e+00> : vector<2x512xf32>
    %102 = tpu.matmul %100, %101, %cst_107 {dimension_numbers = #tpu.dot_dimension_numbers<[1], [0], [0], [1], [0, 0, 1, 1], [], []>} : vector<2x128xf32>, vector<128x512xf32>, vector<2x512xf32> -> vector<2x512xf32>
    %103 = arith.addf %97, %102 : vector<2x512xf32>
    %c2_108 = arith.constant 2 : index
    %c0_109 = arith.constant 0 : index
    %c0_110 = arith.constant 0 : index
    %104 = vector.load %arg11[%c2_108, %c0_109, %c0_110] : memref<8x2x16xf32, #tpu.memory_space<vmem>>, vector<1x2x16xf32>
    %105 = vector.shape_cast %104 : vector<1x2x16xf32> to vector<2x16xf32>
    %cst_111 = arith.constant dense<0.000000e+00> : vector<2x128xf32>
    %106 = tpu.matmul %105, %89, %cst_111 {dimension_numbers = #tpu.dot_dimension_numbers<[1], [0], [0], [1], [0, 0, 1, 1], [], []>} : vector<2x16xf32>, vector<16x128xf32>, vector<2x128xf32> -> vector<2x128xf32>
    %c256 = arith.constant 256 : index
    %c0_112 = arith.constant 0 : index
    %107 = vector.load %arg12[%c256, %c0_112] : memref<1024x512xf32, #tpu.memory_space<vmem>>, vector<128x512xf32>
    %cst_113 = arith.constant dense<0.000000e+00> : vector<2x512xf32>
    %108 = tpu.matmul %106, %107, %cst_113 {dimension_numbers = #tpu.dot_dimension_numbers<[1], [0], [0], [1], [0, 0, 1, 1], [], []>} : vector<2x128xf32>, vector<128x512xf32>, vector<2x512xf32> -> vector<2x512xf32>
    %109 = arith.addf %103, %108 : vector<2x512xf32>
    %c3_114 = arith.constant 3 : index
    %c0_115 = arith.constant 0 : index
    %c0_116 = arith.constant 0 : index
    %110 = vector.load %arg11[%c3_114, %c0_115, %c0_116] : memref<8x2x16xf32, #tpu.memory_space<vmem>>, vector<1x2x16xf32>
    %111 = vector.shape_cast %110 : vector<1x2x16xf32> to vector<2x16xf32>
    %cst_117 = arith.constant dense<0.000000e+00> : vector<2x128xf32>
    %112 = tpu.matmul %111, %89, %cst_117 {dimension_numbers = #tpu.dot_dimension_numbers<[1], [0], [0], [1], [0, 0, 1, 1], [], []>} : vector<2x16xf32>, vector<16x128xf32>, vector<2x128xf32> -> vector<2x128xf32>
    %c384 = arith.constant 384 : index
    %c0_118 = arith.constant 0 : index
    %113 = vector.load %arg12[%c384, %c0_118] : memref<1024x512xf32, #tpu.memory_space<vmem>>, vector<128x512xf32>
    %cst_119 = arith.constant dense<0.000000e+00> : vector<2x512xf32>
    %114 = tpu.matmul %112, %113, %cst_119 {dimension_numbers = #tpu.dot_dimension_numbers<[1], [0], [0], [1], [0, 0, 1, 1], [], []>} : vector<2x128xf32>, vector<128x512xf32>, vector<2x512xf32> -> vector<2x512xf32>
    %115 = arith.addf %109, %114 : vector<2x512xf32>
    %c4_120 = arith.constant 4 : index
    %c0_121 = arith.constant 0 : index
    %c0_122 = arith.constant 0 : index
    %116 = vector.load %arg11[%c4_120, %c0_121, %c0_122] : memref<8x2x16xf32, #tpu.memory_space<vmem>>, vector<1x2x16xf32>
    %117 = vector.shape_cast %116 : vector<1x2x16xf32> to vector<2x16xf32>
    %cst_123 = arith.constant dense<0.000000e+00> : vector<2x128xf32>
    %118 = tpu.matmul %117, %89, %cst_123 {dimension_numbers = #tpu.dot_dimension_numbers<[1], [0], [0], [1], [0, 0, 1, 1], [], []>} : vector<2x16xf32>, vector<16x128xf32>, vector<2x128xf32> -> vector<2x128xf32>
    %c512 = arith.constant 512 : index
    %c0_124 = arith.constant 0 : index
    %119 = vector.load %arg12[%c512, %c0_124] : memref<1024x512xf32, #tpu.memory_space<vmem>>, vector<128x512xf32>
    %cst_125 = arith.constant dense<0.000000e+00> : vector<2x512xf32>
    %120 = tpu.matmul %118, %119, %cst_125 {dimension_numbers = #tpu.dot_dimension_numbers<[1], [0], [0], [1], [0, 0, 1, 1], [], []>} : vector<2x128xf32>, vector<128x512xf32>, vector<2x512xf32> -> vector<2x512xf32>
    %121 = arith.addf %115, %120 : vector<2x512xf32>
    %c5 = arith.constant 5 : index
    %c0_126 = arith.constant 0 : index
    %c0_127 = arith.constant 0 : index
    %122 = vector.load %arg11[%c5, %c0_126, %c0_127] : memref<8x2x16xf32, #tpu.memory_space<vmem>>, vector<1x2x16xf32>
    %123 = vector.shape_cast %122 : vector<1x2x16xf32> to vector<2x16xf32>
    %cst_128 = arith.constant dense<0.000000e+00> : vector<2x128xf32>
    %124 = tpu.matmul %123, %89, %cst_128 {dimension_numbers = #tpu.dot_dimension_numbers<[1], [0], [0], [1], [0, 0, 1, 1], [], []>} : vector<2x16xf32>, vector<16x128xf32>, vector<2x128xf32> -> vector<2x128xf32>
    %c640 = arith.constant 640 : index
    %c0_129 = arith.constant 0 : index
    %125 = vector.load %arg12[%c640, %c0_129] : memref<1024x512xf32, #tpu.memory_space<vmem>>, vector<128x512xf32>
    %cst_130 = arith.constant dense<0.000000e+00> : vector<2x512xf32>
    %126 = tpu.matmul %124, %125, %cst_130 {dimension_numbers = #tpu.dot_dimension_numbers<[1], [0], [0], [1], [0, 0, 1, 1], [], []>} : vector<2x128xf32>, vector<128x512xf32>, vector<2x512xf32> -> vector<2x512xf32>
    %127 = arith.addf %121, %126 : vector<2x512xf32>
    %c6 = arith.constant 6 : index
    %c0_131 = arith.constant 0 : index
    %c0_132 = arith.constant 0 : index
    %128 = vector.load %arg11[%c6, %c0_131, %c0_132] : memref<8x2x16xf32, #tpu.memory_space<vmem>>, vector<1x2x16xf32>
    %129 = vector.shape_cast %128 : vector<1x2x16xf32> to vector<2x16xf32>
    %cst_133 = arith.constant dense<0.000000e+00> : vector<2x128xf32>
    %130 = tpu.matmul %129, %89, %cst_133 {dimension_numbers = #tpu.dot_dimension_numbers<[1], [0], [0], [1], [0, 0, 1, 1], [], []>} : vector<2x16xf32>, vector<16x128xf32>, vector<2x128xf32> -> vector<2x128xf32>
    %c768 = arith.constant 768 : index
    %c0_134 = arith.constant 0 : index
    %131 = vector.load %arg12[%c768, %c0_134] : memref<1024x512xf32, #tpu.memory_space<vmem>>, vector<128x512xf32>
    %cst_135 = arith.constant dense<0.000000e+00> : vector<2x512xf32>
    %132 = tpu.matmul %130, %131, %cst_135 {dimension_numbers = #tpu.dot_dimension_numbers<[1], [0], [0], [1], [0, 0, 1, 1], [], []>} : vector<2x128xf32>, vector<128x512xf32>, vector<2x512xf32> -> vector<2x512xf32>
    %133 = arith.addf %127, %132 : vector<2x512xf32>
    %c7 = arith.constant 7 : index
    %c0_136 = arith.constant 0 : index
    %c0_137 = arith.constant 0 : index
    %134 = vector.load %arg11[%c7, %c0_136, %c0_137] : memref<8x2x16xf32, #tpu.memory_space<vmem>>, vector<1x2x16xf32>
    %135 = vector.shape_cast %134 : vector<1x2x16xf32> to vector<2x16xf32>
    %cst_138 = arith.constant dense<0.000000e+00> : vector<2x128xf32>
    %136 = tpu.matmul %135, %89, %cst_138 {dimension_numbers = #tpu.dot_dimension_numbers<[1], [0], [0], [1], [0, 0, 1, 1], [], []>} : vector<2x16xf32>, vector<16x128xf32>, vector<2x128xf32> -> vector<2x128xf32>
    %c896 = arith.constant 896 : index
    %c0_139 = arith.constant 0 : index
    %137 = vector.load %arg12[%c896, %c0_139] : memref<1024x512xf32, #tpu.memory_space<vmem>>, vector<128x512xf32>
    %cst_140 = arith.constant dense<0.000000e+00> : vector<2x512xf32>
    %138 = tpu.matmul %136, %137, %cst_140 {dimension_numbers = #tpu.dot_dimension_numbers<[1], [0], [0], [1], [0, 0, 1, 1], [], []>} : vector<2x128xf32>, vector<128x512xf32>, vector<2x512xf32> -> vector<2x512xf32>
    %139 = arith.addf %133, %138 : vector<2x512xf32>
    %cst_141 = arith.constant 0.000000e+00 : f32
    %140 = vector.broadcast %cst_141 : f32 to vector<2x512xf32>
    %141 = arith.maximumf %139, %140 : vector<2x512xf32>
    %c0_142 = arith.constant 0 : index
    %c0_143 = arith.constant 0 : index
    %142 = vector.load %arg1[%c0_142, %c0_143] : memref<2x32xf32, #tpu.memory_space<vmem>>, vector<2x32xf32>
    %c0_144 = arith.constant 0 : index
    %c0_145 = arith.constant 0 : index
    %143 = vector.load %arg14[%c0_144, %c0_145] : memref<32x1024xf32, #tpu.memory_space<vmem>>, vector<32x1024xf32>
    %cst_146 = arith.constant dense<0.000000e+00> : vector<2x1024xf32>
    %144 = tpu.matmul %142, %143, %cst_146 {dimension_numbers = #tpu.dot_dimension_numbers<[1], [0], [0], [1], [0, 0, 1, 1], [], []>} : vector<2x32xf32>, vector<32x1024xf32>, vector<2x1024xf32> -> vector<2x1024xf32>
    %c0_147 = arith.constant 0 : index
    %c0_148 = arith.constant 0 : index
    %145 = vector.load %arg15[%c0_147, %c0_148] : memref<1x1024xf32, #tpu.memory_space<vmem>>, vector<1x1024xf32>
    %146 = vector.broadcast %145 : vector<1x1024xf32> to vector<2x1024xf32>
    %147 = arith.addf %144, %146 : vector<2x1024xf32>
    %cst_149 = arith.constant 0.000000e+00 : f32
    %148 = vector.broadcast %cst_149 : f32 to vector<2x1024xf32>
    %149 = arith.maximumf %147, %148 : vector<2x1024xf32>
    %150 = vector.extract_strided_slice %149 {offsets = [0, 0], sizes = [2, 512], strides = [1, 1]} : vector<2x1024xf32> to vector<2x512xf32>
    %c0_150 = arith.constant 0 : index
    %c0_151 = arith.constant 0 : index
    %151 = vector.load %arg16[%c0_150, %c0_151] : memref<512x512xf32, #tpu.memory_space<vmem>>, vector<512x512xf32>
    %cst_152 = arith.constant dense<0.000000e+00> : vector<2x512xf32>
    %152 = tpu.matmul %150, %151, %cst_152 {dimension_numbers = #tpu.dot_dimension_numbers<[1], [0], [0], [1], [0, 0, 1, 1], [], []>} : vector<2x512xf32>, vector<512x512xf32>, vector<2x512xf32> -> vector<2x512xf32>
    %c0_153 = arith.constant 0 : index
    %c0_154 = arith.constant 0 : index
    %153 = vector.load %arg17[%c0_153, %c0_154] : memref<1x512xf32, #tpu.memory_space<vmem>>, vector<1x512xf32>
    %154 = vector.broadcast %153 : vector<1x512xf32> to vector<2x512xf32>
    %155 = arith.addf %152, %154 : vector<2x512xf32>
    %cst_155 = arith.constant 0.000000e+00 : f32
    %156 = vector.broadcast %cst_155 : f32 to vector<2x512xf32>
    %157 = arith.maximumf %155, %156 : vector<2x512xf32>
    %158 = vector.extract_strided_slice %149 {offsets = [0, 512], sizes = [2, 512], strides = [1, 1]} : vector<2x1024xf32> to vector<2x512xf32>
    %c0_156 = arith.constant 0 : index
    %c0_157 = arith.constant 0 : index
    %159 = vector.load %arg18[%c0_156, %c0_157] : memref<512x512xf32, #tpu.memory_space<vmem>>, vector<512x512xf32>
    %cst_158 = arith.constant dense<0.000000e+00> : vector<2x512xf32>
    %160 = tpu.matmul %158, %159, %cst_158 {dimension_numbers = #tpu.dot_dimension_numbers<[1], [0], [0], [1], [0, 0, 1, 1], [], []>} : vector<2x512xf32>, vector<512x512xf32>, vector<2x512xf32> -> vector<2x512xf32>
    %c0_159 = arith.constant 0 : index
    %c0_160 = arith.constant 0 : index
    %161 = vector.load %arg19[%c0_159, %c0_160] : memref<1x512xf32, #tpu.memory_space<vmem>>, vector<1x512xf32>
    %162 = vector.broadcast %161 : vector<1x512xf32> to vector<2x512xf32>
    %163 = arith.addf %160, %162 : vector<2x512xf32>
    %cst_161 = arith.constant 0.000000e+00 : f32
    %164 = vector.broadcast %cst_161 : f32 to vector<2x512xf32>
    %165 = arith.maximumf %163, %164 : vector<2x512xf32>
    %c0_162 = arith.constant 0 : index
    %c0_163 = arith.constant 0 : index
    %166 = vector.load %arg20[%c0_162, %c0_163] : memref<512x256xf32, #tpu.memory_space<vmem>>, vector<512x256xf32>
    %cst_164 = arith.constant dense<0.000000e+00> : vector<2x256xf32>
    %167 = tpu.matmul %157, %166, %cst_164 {dimension_numbers = #tpu.dot_dimension_numbers<[1], [0], [0], [1], [0, 0, 1, 1], [], []>} : vector<2x512xf32>, vector<512x256xf32>, vector<2x256xf32> -> vector<2x256xf32>
    %c0_165 = arith.constant 0 : index
    %c0_166 = arith.constant 0 : index
    %168 = vector.load %arg21[%c0_165, %c0_166] : memref<1x256xf32, #tpu.memory_space<vmem>>, vector<1x256xf32>
    %169 = vector.broadcast %168 : vector<1x256xf32> to vector<2x256xf32>
    %170 = arith.addf %167, %169 : vector<2x256xf32>
    %cst_167 = arith.constant 0.000000e+00 : f32
    %171 = vector.broadcast %cst_167 : f32 to vector<2x256xf32>
    %172 = arith.maximumf %170, %171 : vector<2x256xf32>
    %c0_168 = arith.constant 0 : index
    %c0_169 = arith.constant 0 : index
    %173 = vector.load %arg22[%c0_168, %c0_169] : memref<512x256xf32, #tpu.memory_space<vmem>>, vector<512x256xf32>
    %cst_170 = arith.constant dense<0.000000e+00> : vector<2x256xf32>
    %174 = tpu.matmul %165, %173, %cst_170 {dimension_numbers = #tpu.dot_dimension_numbers<[1], [0], [0], [1], [0, 0, 1, 1], [], []>} : vector<2x512xf32>, vector<512x256xf32>, vector<2x256xf32> -> vector<2x256xf32>
    %c0_171 = arith.constant 0 : index
    %c0_172 = arith.constant 0 : index
    %175 = vector.load %arg23[%c0_171, %c0_172] : memref<1x256xf32, #tpu.memory_space<vmem>>, vector<1x256xf32>
    %176 = vector.broadcast %175 : vector<1x256xf32> to vector<2x256xf32>
    %177 = arith.addf %174, %176 : vector<2x256xf32>
    %cst_173 = arith.constant 0.000000e+00 : f32
    %178 = vector.broadcast %cst_173 : f32 to vector<2x256xf32>
    %179 = arith.maximumf %177, %178 : vector<2x256xf32>
    %180 = tpu.concatenate %141, %172, %179 in 1 : vector<2x512xf32>, vector<2x256xf32>, vector<2x256xf32> -> vector<2x1024xf32>
    %c0_174 = arith.constant 0 : index
    %c0_175 = arith.constant 0 : index
    %181 = vector.load %arg24[%c0_174, %c0_175] : memref<1024x9xf32, #tpu.memory_space<vmem>>, vector<1024x9xf32>
    %cst_176 = arith.constant dense<0.000000e+00> : vector<2x9xf32>
    %182 = tpu.matmul %180, %181, %cst_176 {dimension_numbers = #tpu.dot_dimension_numbers<[1], [0], [0], [1], [0, 0, 1, 1], [], []>} : vector<2x1024xf32>, vector<1024x9xf32>, vector<2x9xf32> -> vector<2x9xf32>
    %c0_177 = arith.constant 0 : index
    %c0_178 = arith.constant 0 : index
    %183 = vector.load %arg25[%c0_177, %c0_178] : memref<1x9xf32, #tpu.memory_space<vmem>>, vector<1x9xf32>
    %184 = vector.broadcast %183 : vector<1x9xf32> to vector<2x9xf32>
    %185 = arith.addf %182, %184 : vector<2x9xf32>
    %186 = vector.extract_strided_slice %185 {offsets = [0, 1], sizes = [2, 8], strides = [1, 1]} : vector<2x9xf32> to vector<2x8xf32>
    %187 = vector.extract_strided_slice %185 {offsets = [0, 0], sizes = [2, 1], strides = [1, 1]} : vector<2x9xf32> to vector<2x1xf32>
    %188 = vector.broadcast %187 : vector<2x1xf32> to vector<2x8xf32>
    %189 = arith.addf %188, %186 : vector<2x8xf32>
    %cst_179 = arith.constant dense<0.000000e+00> : vector<2xf32>
    %190 = vector.multi_reduction <add>, %186, %cst_179 [1] : vector<2x8xf32> to vector<2xf32>
    %191 = vector.shape_cast %190 : vector<2xf32> to vector<2x1xf32>
    %cst_180 = arith.constant 8.000000e+00 : f32
    %192 = vector.broadcast %cst_180 : f32 to vector<2x1xf32>
    %193 = arith.divf %191, %192 : vector<2x1xf32>
    %194 = vector.broadcast %193 : vector<2x1xf32> to vector<2x8xf32>
    %195 = arith.subf %189, %194 : vector<2x8xf32>
    %c0_181 = arith.constant 0 : index
    %c0_182 = arith.constant 0 : index
    %196 = vector.load %arg26[%c0_181, %c0_182] : memref<2x8xf32, #tpu.memory_space<vmem>>, vector<2x8xf32>
    tpu.vector_store %arg26[%c0_181, %c0_182], %195 {strides = array<i32>} : memref<2x8xf32, #tpu.memory_space<vmem>>, vector<2x8xf32>,
    return
  }
}

</mosaic_0001>

<bundles_post_ra>
// kernel: dueling_qnet_forward.1
= control target key start
LH: loop header
LB: loop body
LE: loop exit
PB: predicated region body
PF: predicated region fallthrough
CT: control target
= control target key end

     0   :  { %s13748_s0 = inlined_call_operand.vmem [shape: f32[32,64], index: 0, kind: input, shape index: {}]   ;;  %s13749_s1 = inlined_call_operand.hbm [shape: f32[2,32], index: 1, kind: input, shape index: {}]   ;;  %s13750_s2 = inlined_call_operand.hbm [shape: f32[5,32,32], index: 2, kind: input, shape index: {}]   ;;  %s13751_s3 = inlined_call_operand.hbm [shape: f32[5,64,512], index: 3, kind: input, shape index: {}]   ;;  %s13752_s4 = inlined_call_operand.hbm [shape: f32[1,512], index: 4, kind: input, shape index: {}]   ;;  %s13753_s5 = inlined_call_operand.hbm [shape: f32[3,32,32], index: 5, kind: input, shape index: {}]   ;;  %s13754_s6 = inlined_call_operand.hbm [shape: f32[3,512,512], index: 6, kind: input, shape index: {}]   ;;  %s13755_s7 = inlined_call_operand.hbm [shape: f32[1,512], index: 7, kind: input, shape index: {}]   ;;  %s13756_s8 = inlined_call_operand.hbm [shape: f32[3,16,32], index: 8, kind: input, shape index: {}]   ;;  %s13757_s9 = inlined_call_operand.hbm [shape: f32[3,512,128], index: 9, kind: input, shape index: {}]   ;;  %s13758_s10 = inlined_call_operand.hbm [shape: f32[1,128], index: 10, kind: input, shape index: {}]   ;;  %s13759_s11 = inlined_call_operand.hbm [shape: f32[8,2,16], index: 11, kind: input, shape index: {}]   ;;  %s13760_s12 = inlined_call_operand.hbm [shape: f32[1024,512], index: 12, kind: input, shape index: {}]   ;;  %s13761_s13 = inlined_call_operand.hbm [shape: f32[1,512], index: 13, kind: input, shape index: {}]   ;;  %s13762_s14 = inlined_call_operand.hbm [shape: f32[32,1024], index: 14, kind: input, shape index: {}]   ;;  %s13763_s15 = inlined_call_operand.hbm [shape: f32[1,1024], index: 15, kind: input, shape index: {}]   ;;  %s13764_s16 = inlined_call_operand.hbm [shape: f32[512,512], index: 16, kind: input, shape index: {}]   ;;  %s13765_s17 = inlined_call_operand.hbm [shape: f32[1,512], index: 17, kind: input, shape index: {}]   ;;  %s13766_s18 = inlined_call_operand.hbm [shape: f32[512,512], index: 18, kind: input, shape index: {}]   ;;  %s13767_s19 = inlined_call_operand.hbm [shape: f32[1,512], index: 19, kind: input, shape index: {}]   ;;  %s13768_s20 = inlined_call_operand.hbm [shape: f32[512,256], index: 20, kind: input, shape index: {}]   ;;  %s13769_s21 = inlined_call_operand.hbm [shape: f32[1,256], index: 21, kind: input, shape index: {}]   ;;  %s13770_s22 = inlined_call_operand.hbm [shape: f32[512,256], index: 22, kind: input, shape index: {}]   ;;  %s13771_s23 = inlined_call_operand.hbm [shape: f32[1,256], index: 23, kind: input, shape index: {}]   ;;  %s13772_s24 = inlined_call_operand.vmem [shape: f32[1024,9], index: 24, kind: input, shape index: {}]   ;;  %s13773_s25 = inlined_call_operand.hbm [shape: f32[1,9], index: 25, kind: input, shape index: {}]   ;;  %s13774_s26 = inlined_call_operand.hbm [shape: f32[2,8], index: 26, kind: output, shape index: {}]  }
   0x1   :  { %13789 = sst [smem:[#allocation67_spill]] %s13748_s0 }
   0x2   :  { %13790 = sst [smem:[#allocation68_spill]] %s13749_s1 }
   0x3   :  { %13791 = sst [smem:[#allocation69_spill]] %s13750_s2 }
   0x4   :  { %13792 = sst [smem:[#allocation70_spill]] %s13751_s3 }
   0x5   :  { %13793 = sst [smem:[#allocation71_spill]] %s13752_s4 }
   0x6   :  { %13794 = sst [smem:[#allocation72_spill]] %s13753_s5 }
   0x7   :  { %13795 = sst [smem:[#allocation73_spill]] %s13754_s6 }
   0x8   :  { %13796 = sst [smem:[#allocation74_spill]] %s13755_s7 }
   0x9   :  { %13797 = sst [smem:[#allocation75_spill]] %s13756_s8 }
   0xa   :  { %13798 = sst [smem:[#allocation76_spill]] %s13757_s9 }
   0xb   :  { %13799 = sst [smem:[#allocation77_spill]] %s13758_s10 }
   0xc   :  { %13800 = sst [smem:[#allocation78_spill]] %s13772_s24 }
   0xd   :  { %13801 = sst [smem:[#allocation79_spill]] %s13774_s26 }
   0xe   :  { %31 = vsyncpa [#allocation3], 0 }
   0xf   :  { %32 = vsyncpa [#allocation6], 0 }
  0x10   :  { %33 = vsyncpa [#allocation9], 0 }
  0x11   :  { %34 = vsyncpa [#allocation12], 0 }
  0x12   :  { %35 = vsyncpa [#allocation15], 0 }
  0x13   :  { %36 = vsyncpa [#allocation18], 0 }
  0x14   :  { %37 = vsyncpa [#allocation21], 0 }
  0x15   :  { %38 = vsyncpa [#allocation24], 0 }
  0x16   :  { %39 = vsyncpa [#allocation27], 0 }
  0x17   :  { %40 = vsyncpa [#allocation30], 0 }
  0x18   :  { %41 = vsyncpa [#allocation33], 0 }
  0x19   :  { %42 = vsyncpa [#allocation36], 0 }
  0x1a   :  { %43 = vsyncpa [#allocation39], 0 }
  0x1b   :  { %44 = vsyncpa [#allocation4], 0  ;;  %s11866_s27 = smov [#allocation5]  }
  0x1c   :  { %s62_s3 = sshll.u32 %s11866_s27, 4  ;;  %s63_s3 = int_to_ptr.vmem [resolvable:$true] %s62_s3 }
  0x1d   :  { %s11346_s7 = scalar_lea.vmem %s63_s3, 2560  ;;  %p11351_p1 = scmp.lt.s32.totalorder %s63_s3, %s63_s3 }
  0x1e   :  { %p11347_p0 = scmp.ne.s32.totalorder %s63_s3, %s11346_s7  ;;  %p11352_p2 = scmp.lt.s32.totalorder %s11346_s7, %s11346_s7 }
  0x20   :  { %p11353_p3 = por %p11352_p2, %p11351_p1 }
  0x22   :  { %p11354_p4 = pnand %p11353_p3, %p11347_p0 }
  0x24   :  { %11357 = shalt.err (!%p11354_p4)
}
  0x25   :  { %s11867_s28 = smov 128   ;;  %s11868_s8 = smov 8  }
  0x26   :  { %s13802_s0 = sld [smem:[#allocation69_spill]]  ;;  %s11869_s9 = smov [#allocation8]  }
  0x27   :  { %s87_s30 = sshll.u32 %s11869_s9, 4  ;;  %s88_s30 = int_to_ptr.vmem [resolvable:$true] %s87_s30 }
  0x28   :  { %s11366_s2 = scalar_lea.vmem %s88_s30, 64  ;;  %p11371_p6 = scmp.lt.s32.totalorder %s88_s30, %s88_s30 }
  0x29   :  { %p11367_p5 = scmp.ne.s32.totalorder %s88_s30, %s11366_s2  ;;  %p11372_p7 = scmp.lt.s32.totalorder %s11366_s2, %s11366_s2 }
  0x2b   :  { %p11373_p8 = por %p11372_p7, %p11371_p6 }
  0x2c   :  { %68 = dma.hbm_to_vmem [thread:$0]  %s13802_s0, 2560, %s63_s3, [#allocation6], %s11867_s28, %s11867_s28, %s11868_s8  }
  0x2d   :  { %p11374_p9 = pnand %p11373_p8, %p11367_p5 }
  0x2f   :  { %11377 = shalt.err (!%p11374_p9)
}
  0x30   :  { %s13803_s6 = sld [smem:[#allocation71_spill]]  ;;  %s11870_s1 = smov [#allocation11]  }
  0x31   :  { %s108_s27 = sshll.u32 %s11870_s1, 4  ;;  %s11871_s7 = smov [#allocation14]   ;;  %s109_s27 = int_to_ptr.vmem [resolvable:$true] %s108_s27 }
  0x32   :  { %s130_s26 = sshll.u32 %s11871_s7, 4  ;;  %s11386_s3 = scalar_lea.vmem %s109_s27, 98304  ;;  %s131_s26 = int_to_ptr.vmem [resolvable:$true] %s130_s26 }
  0x33   :  { %p11387_p10 = scmp.ne.s32.totalorder %s109_s27, %s11386_s3  ;;  %p11391_p11 = scmp.lt.s32.totalorder %s109_s27, %s109_s27 }
  0x34   :  { %p11392_p12 = scmp.lt.s32.totalorder %s11386_s3, %s11386_s3 }
  0x36   :  { %90 = dma.hbm_to_vmem [thread:$0]  %s13803_s6, 64, %s88_s30, [#allocation9]  }
  0x37   :  { %p11393_p13 = por %p11392_p12, %p11391_p11 }
  0x39   :  { %p11394_p0 = pnand %p11393_p13, %p11387_p10 }
  0x3b   :  { %11397 = shalt.err (!%p11394_p0)
}
  0x3c   :  { %s11872_s4 = smov 512   ;;  %s11873_s29 = smov 32  }
  0x3d   :  { %s13804_s30 = sld [smem:[#allocation73_spill]]  ;;  %s11406_s2 = scalar_lea.vmem %s131_s26, 768 }
  0x3e   :  { %p11407_p1 = scmp.ne.s32.totalorder %s131_s26, %s11406_s2  ;;  %p11411_p2 = scmp.lt.s32.totalorder %s131_s26, %s131_s26 }
  0x3f   :  { %p11412_p3 = scmp.lt.s32.totalorder %s11406_s2, %s11406_s2 }
  0x41   :  { %p11413_p4 = por %p11412_p3, %p11411_p2 }
  0x43   :  { %114 = dma.hbm_to_vmem [thread:$0]  %s13804_s30, 98304, %s109_s27, [#allocation12], %s11872_s4, %s11872_s4, %s11873_s29  }
  0x44   :  { %p11414_p5 = pnand %p11413_p4, %p11407_p1 }
  0x46   :  { %11417 = shalt.err (!%p11414_p5)
}
  0x47   :  { %s13805_s6 = sld [smem:[#allocation75_spill]]  ;;  %s11874_s1 = smov [#allocation17]  }
  0x48   :  { %s155_s7 = sshll.u32 %s11874_s1, 4  ;;  %s11875_s3 = smov [#allocation20]   ;;  %s156_s7 = int_to_ptr.vmem [resolvable:$true] %s155_s7 }
  0x49   :  { %s176_s24 = sshll.u32 %s11875_s3, 4  ;;  %s11426_s27 = scalar_lea.vmem %s156_s7, 16  ;;  %s177_s24 = int_to_ptr.vmem [resolvable:$true] %s176_s24 }
  0x4a   :  { %p11427_p6 = scmp.ne.s32.totalorder %s156_s7, %s11426_s27  ;;  %s11430_s0 = scalar_lea.vmem %s156_s7, 32 }
  0x4b   :  { %p11431_p7 = scmp.lt.s32.totalorder %s156_s7, %s156_s7  ;;  %p11432_p8 = scmp.lt.s32.totalorder %s11430_s0, %s11426_s27 }
  0x4d   :  { %136 = dma.hbm_to_vmem [thread:$0]  %s13805_s6, 768, %s131_s26, [#allocation15], %s11867_s28, %s11867_s28, %s11868_s8  }
  0x4e   :  { %p11433_p9 = por %p11432_p8, %p11431_p7 }
  0x50   :  { %p11434_p10 = pnand %p11433_p9, %p11427_p6 }
  0x52   :  { %11437 = shalt.err (!%p11434_p10)
}
  0x53   :  { %s13806_s2 = sld [smem:[#allocation77_spill]]  ;;  %s11446_s5 = scalar_lea.vmem %s177_s24, 65536 }
  0x54   :  { %p11447_p11 = scmp.ne.s32.totalorder %s177_s24, %s11446_s5  ;;  %p11451_p12 = scmp.lt.s32.totalorder %s177_s24, %s177_s24 }
  0x55   :  { %p11452_p13 = scmp.lt.s32.totalorder %s11446_s5, %s11446_s5 }
  0x57   :  { %p11453_p0 = por %p11452_p13, %p11451_p12 }
  0x59   :  { %158 = dma.hbm_to_vmem [thread:$0]  %s13806_s2, 16, %s156_s7, [#allocation18]  }
  0x5a   :  { %p11454_p1 = pnand %p11453_p0, %p11447_p11 }
  0x5c   :  { %11457 = shalt.err (!%p11454_p1)
}
  0x5d   :  { %182 = dma.hbm_to_vmem [thread:$0]  %s13760_s12, 65536, %s177_s24, [#allocation21], %s11872_s4, %s11872_s4, %s11873_s29  }
  0x5e   :  { %s11876_s6 = smov [#allocation23]  }
  0x5f   :  { %s198_s1 = sshll.u32 %s11876_s6, 4  ;;  %s199_s1 = int_to_ptr.vmem [resolvable:$true] %s198_s1 }
  0x60   :  { %s11466_s3 = scalar_lea.vmem %s199_s1, 4096  ;;  %p11471_p3 = scmp.lt.s32.totalorder %s199_s1, %s199_s1 }
  0x61   :  { %p11467_p2 = scmp.ne.s32.totalorder %s199_s1, %s11466_s3  ;;  %p11472_p4 = scmp.lt.s32.totalorder %s11466_s3, %s11466_s3 }
  0x63   :  { %p11473_p5 = por %p11472_p4, %p11471_p3 }
  0x65   :  { %p11474_p6 = pnand %p11473_p5, %p11467_p2 }
  0x67   :  { %11477 = shalt.err (!%p11474_p6)
}
  0x68   :  { %s11877_s7 = smov 1024   ;;  %s11878_s27 = smov 64  }
  0x69   :  { %204 = dma.hbm_to_vmem [thread:$0]  %s13762_s14, 4096, %s199_s1, [#allocation24], %s11877_s7, %s11877_s7, %s11878_s27  }
  0x6a   :  { %s11879_s30 = smov [#allocation26]   ;;  %s11880_s12 = smov [#allocation29]  }
  0x6b   :  { %s220_s2 = sshll.u32 %s11879_s30, 4  ;;  %s242_s24 = sshll.u32 %s11880_s12, 4  ;;  %s221_s2 = int_to_ptr.vmem [resolvable:$true] %s220_s2  ;;  %s243_s24 = int_to_ptr.vmem [resolvable:$true] %s242_s24 }
  0x6c   :  { %s11486_s5 = scalar_lea.vmem %s221_s2, 32768  ;;  %p11491_p8 = scmp.lt.s32.totalorder %s221_s2, %s221_s2 }
  0x6d   :  { %p11487_p7 = scmp.ne.s32.totalorder %s221_s2, %s11486_s5  ;;  %p11492_p9 = scmp.lt.s32.totalorder %s11486_s5, %s11486_s5 }
  0x6f   :  { %p11493_p10 = por %p11492_p9, %p11491_p8 }
  0x71   :  { %p11494_p11 = pnand %p11493_p10, %p11487_p7 }
  0x73   :  { %11497 = shalt.err (!%p11494_p11)
}
  0x74   :  { %226 = dma.hbm_to_vmem [thread:$0]  %s13764_s16, 32768, %s221_s2, [#allocation27], %s11872_s4, %s11872_s4, %s11873_s29  }
  0x75   :  { %s11506_s14 = scalar_lea.vmem %s243_s24, 32768  ;;  %p11511_p13 = scmp.lt.s32.totalorder %s243_s24, %s243_s24 }
  0x76   :  { %p11507_p12 = scmp.ne.s32.totalorder %s243_s24, %s11506_s14  ;;  %p11512_p0 = scmp.lt.s32.totalorder %s11506_s14, %s11506_s14 }
  0x78   :  { %p11513_p1 = por %p11512_p0, %p11511_p13 }
  0x7a   :  { %p11514_p2 = pnand %p11513_p1, %p11507_p12 }
  0x7c   :  { %11517 = shalt.err (!%p11514_p2)
}
  0x7d   :  { %248 = dma.hbm_to_vmem [thread:$0]  %s13766_s18, 32768, %s243_s24, [#allocation30], %s11872_s4, %s11872_s4, %s11873_s29  }
  0x7e   :  { %s11881_s3 = smov [#allocation32]  }
  0x7f   :  { %s264_s7 = sshll.u32 %s11881_s3, 4  ;;  %s265_s7 = int_to_ptr.vmem [resolvable:$true] %s264_s7 }
  0x80   :  { %s11526_s27 = scalar_lea.vmem %s265_s7, 16384  ;;  %p11531_p4 = scmp.lt.s32.totalorder %s265_s7, %s265_s7 }
  0x81   :  { %p11527_p3 = scmp.ne.s32.totalorder %s265_s7, %s11526_s27  ;;  %p11532_p5 = scmp.lt.s32.totalorder %s11526_s27, %s11526_s27 }
  0x83   :  { %p11533_p6 = por %p11532_p5, %p11531_p4 }
  0x85   :  { %p11534_p7 = pnand %p11533_p6, %p11527_p3 }
  0x87   :  { %11537 = shalt.err (!%p11534_p7)
}
  0x88   :  { %s11882_s16 = smov 256   ;;  %s11883_s0 = smov 16  }
  0x89   :  { %270 = dma.hbm_to_vmem [thread:$0]  %s13768_s20, 16384, %s265_s7, [#allocation33], %s11882_s16, %s11882_s16, %s11883_s0  }
  0x8a   :  { %s11884_s2 = smov [#allocation35]   ;;  %s11885_s5 = smov [#allocation2]  }
  0x8b   :  { %s286_s12 = sshll.u32 %s11884_s2, 4  ;;  %s53_s18 = sshll.u32 %s11885_s5, 4  ;;  %s287_s12 = int_to_ptr.vmem [resolvable:$true] %s286_s12  ;;  %s54_s18 = int_to_ptr.vmem [resolvable:$true] %s53_s18 }
  0x8c   :  { %s11546_s24 = scalar_lea.vmem %s287_s12, 16384  ;;  %p11551_p9 = scmp.lt.s32.totalorder %s287_s12, %s287_s12 }
  0x8d   :  { %p11547_p8 = scmp.ne.s32.totalorder %s287_s12, %s11546_s24  ;;  %p11552_p10 = scmp.lt.s32.totalorder %s11546_s24, %s11546_s24 }
  0x8f   :  { %p11553_p11 = por %p11552_p10, %p11551_p9 }
  0x91   :  { %p11554_p12 = pnand %p11553_p11, %p11547_p8 }
  0x93   :  { %11557 = shalt.err (!%p11554_p12)
}
  0x94   :  { %292 = dma.hbm_to_vmem [thread:$0]  %s13770_s22, 16384, %s287_s12, [#allocation36], %s11882_s16, %s11882_s16, %s11883_s0  }
  0x95   :  { %s11566_s14 = scalar_lea.vmem %s54_s18, 32  ;;  %p11571_p0 = scmp.lt.s32.totalorder %s54_s18, %s54_s18 }
  0x96   :  { %p11567_p13 = scmp.ne.s32.totalorder %s54_s18, %s11566_s14  ;;  %p11572_p1 = scmp.lt.s32.totalorder %s11566_s14, %s11566_s14 }
  0x98   :  { %p11573_p2 = por %p11572_p1, %p11571_p0 }
  0x9a   :  { %p11574_p3 = pnand %p11573_p2, %p11567_p13 }
  0x9c   :  { %11577 = shalt.err (!%p11574_p3)
}
  0x9d   :  { %s13807_s1 = sld [smem:[#allocation68_spill]]  ;;  %s11886_s3 = smov [#allocation7]  }
  0x9e   :  { %s74_s7 = sshll.u32 %s11886_s3, 4  ;;  %s11887_s27 = smov [#allocation10]   ;;  %s75_s7 = int_to_ptr.vmem [resolvable:$true] %s74_s7 }
  0x9f   :  { %s96_s9 = sshll.u32 %s11887_s27, 4  ;;  %s11586_s30 = scalar_lea.vmem %s75_s7, 20480  ;;  %s97_s9 = int_to_ptr.vmem [resolvable:$true] %s96_s9 }
  0xa0   :  { %p11587_p4 = scmp.ne.s32.totalorder %s75_s7, %s11586_s30  ;;  %p11591_p5 = scmp.lt.s32.totalorder %s75_s7, %s75_s7 }
  0xa1   :  { %p11592_p6 = scmp.lt.s32.totalorder %s11586_s30, %s11586_s30 }
  0xa3   :  { %56 = dma.hbm_to_vmem [thread:$0]  %s13807_s1, 32, %s54_s18, [#allocation3]  }
  0xa4   :  { %p11593_p7 = por %p11592_p6, %p11591_p5 }
  0xa6   :  { %p11594_p8 = pnand %p11593_p7, %p11587_p4 }
  0xa8   :  { %11597 = shalt.err (!%p11594_p8)
}
  0xa9   :  { %s13808_s0 = sld [smem:[#allocation70_spill]]  ;;  %s11606_s2 = scalar_lea.vmem %s97_s9, 1536 }
  0xaa   :  { %p11607_p9 = scmp.ne.s32.totalorder %s97_s9, %s11606_s2  ;;  %p11611_p10 = scmp.lt.s32.totalorder %s97_s9, %s97_s9 }
  0xab   :  { %p11612_p11 = scmp.lt.s32.totalorder %s11606_s2, %s11606_s2 }
  0xad   :  { %p11613_p12 = por %p11612_p11, %p11611_p10 }
  0xaf   :  { %80 = dma.hbm_to_vmem [thread:$0]  %s13808_s0, 20480, %s75_s7, [#allocation6], %s11872_s4, %s11872_s4, %s11873_s29  }
  0xb0   :  { %p11614_p13 = pnand %p11613_p12, %p11607_p9 }
  0xb2   :  { %11617 = shalt.err (!%p11614_p13)
}
  0xb3   :  { %s13809_s18 = sld [smem:[#allocation72_spill]]  ;;  %s11888_s24 = smov [#allocation13]  }
  0xb4   :  { %s121_s26 = sshll.u32 %s11888_s24, 4  ;;  %s11889_s10 = smov [#allocation16]   ;;  %s122_s26 = int_to_ptr.vmem [resolvable:$true] %s121_s26 }
  0xb5   :  { %s142_s14 = sshll.u32 %s11889_s10, 4  ;;  %s11626_s4 = scalar_lea.vmem %s122_s26, 64  ;;  %s143_s14 = int_to_ptr.vmem [resolvable:$true] %s142_s14 }
  0xb6   :  { %p11627_p0 = scmp.ne.s32.totalorder %s122_s26, %s11626_s4  ;;  %p11631_p1 = scmp.lt.s32.totalorder %s122_s26, %s122_s26 }
  0xb7   :  { %p11632_p2 = scmp.lt.s32.totalorder %s11626_s4, %s11626_s4 }
  0xb9   :  { %102 = dma.hbm_to_vmem [thread:$0]  %s13809_s18, 1536, %s97_s9, [#allocation9], %s11867_s28, %s11867_s28, %s11868_s8  }
  0xba   :  { %p11633_p3 = por %p11632_p2, %p11631_p1 }
  0xbc   :  { %p11634_p4 = pnand %p11633_p3, %p11627_p0 }
  0xbe   :  { %11637 = shalt.err (!%p11634_p4)
}
  0xbf   :  { %s13810_s1 = sld [smem:[#allocation74_spill]]  ;;  %s11646_s3 = scalar_lea.vmem %s143_s14, 24576 }
  0xc0   :  { %p11647_p5 = scmp.ne.s32.totalorder %s143_s14, %s11646_s3  ;;  %p11651_p6 = scmp.lt.s32.totalorder %s143_s14, %s143_s14 }
  0xc1   :  { %p11652_p7 = scmp.lt.s32.totalorder %s11646_s3, %s11646_s3 }
  0xc3   :  { %p11653_p8 = por %p11652_p7, %p11651_p6 }
  0xc5   :  { %124 = dma.hbm_to_vmem [thread:$0]  %s13810_s1, 64, %s122_s26, [#allocation12]  }
  0xc6   :  { %p11654_p9 = pnand %p11653_p8, %p11647_p5 }
  0xc8   :  { %11657 = shalt.err (!%p11654_p9)
}
  0xc9   :  { %s13811_s9 = sld [smem:[#allocation76_spill]]  ;;  %s11890_s30 = smov [#allocation19]  }
  0xca   :  { %s164_s22 = sshll.u32 %s11890_s30, 4  ;;  %s11891_s16 = smov [#allocation22]   ;;  %s165_s22 = int_to_ptr.vmem [resolvable:$true] %s164_s22 }
  0xcb   :  { %s189_s0 = sshll.u32 %s11891_s16, 4  ;;  %s11666_s2 = scalar_lea.vmem %s165_s22, 256  ;;  %s190_s0 = int_to_ptr.vmem [resolvable:$true] %s189_s0 }
  0xcc   :  { %p11667_p10 = scmp.ne.s32.totalorder %s165_s22, %s11666_s2  ;;  %p11671_p11 = scmp.lt.s32.totalorder %s165_s22, %s165_s22 }
  0xcd   :  { %p11672_p12 = scmp.lt.s32.totalorder %s11666_s2, %s11666_s2 }
  0xcf   :  { %148 = dma.hbm_to_vmem [thread:$0]  %s13811_s9, 24576, %s143_s14, [#allocation15], %s11867_s28, %s11867_s28, %s11868_s8  }
  0xd0   :  { %p11673_p13 = por %p11672_p12, %p11671_p11 }
  0xd2   :  { %p11674_p0 = pnand %p11673_p13, %p11667_p10 }
  0xd4   :  { %11677 = shalt.err (!%p11674_p0)
}
  0xd5   :  { %s11892_s12 = smov 2   ;;  %s11686_s28 = scalar_lea.vmem %s190_s0, 64 }
  0xd6   :  { %170 = dma.hbm_to_vmem [thread:$0]  %s13759_s11, 256, %s165_s22, [#allocation18], %s11873_s29, %s11873_s29, %s11892_s12  }
  0xd7   :  { %p11687_p1 = scmp.ne.s32.totalorder %s190_s0, %s11686_s28  ;;  %p11691_p2 = scmp.lt.s32.totalorder %s190_s0, %s190_s0 }
  0xd8   :  { %p11692_p3 = scmp.lt.s32.totalorder %s11686_s28, %s11686_s28 }
  0xda   :  { %p11693_p4 = por %p11692_p3, %p11691_p2 }
  0xdc   :  { %p11694_p5 = pnand %p11693_p4, %p11687_p1 }
  0xde   :  { %11697 = shalt.err (!%p11694_p5)
}
  0xdf   :  { %192 = dma.hbm_to_vmem [thread:$0]  %s13761_s13, 64, %s190_s0, [#allocation21]  }
  0xe0   :  { %s11893_s26 = smov [#allocation25]   ;;  %s11894_s14 = smov [#allocation28]  }
  0xe1   :  { %s211_s10 = sshll.u32 %s11893_s26, 4  ;;  %s233_s4 = sshll.u32 %s11894_s14, 4  ;;  %s212_s10 = int_to_ptr.vmem [resolvable:$true] %s211_s10  ;;  %s234_s4 = int_to_ptr.vmem [resolvable:$true] %s233_s4 }
  0xe2   :  { %s11706_s20 = scalar_lea.vmem %s212_s10, 128  ;;  %p11711_p7 = scmp.lt.s32.totalorder %s212_s10, %s212_s10 }
  0xe3   :  { %p11707_p6 = scmp.ne.s32.totalorder %s212_s10, %s11706_s20  ;;  %p11712_p8 = scmp.lt.s32.totalorder %s11706_s20, %s11706_s20 }
  0xe5   :  { %p11713_p9 = por %p11712_p8, %p11711_p7 }
  0xe7   :  { %p11714_p10 = pnand %p11713_p9, %p11707_p6 }
  0xe9   :  { %11717 = shalt.err (!%p11714_p10)
}
  0xea   :  { %214 = dma.hbm_to_vmem [thread:$0]  %s13763_s15, 128, %s212_s10, [#allocation24]  }
  0xeb   :  { %s11726_s6 = scalar_lea.vmem %s234_s4, 64  ;;  %p11731_p12 = scmp.lt.s32.totalorder %s234_s4, %s234_s4 }
  0xec   :  { %p11727_p11 = scmp.ne.s32.totalorder %s234_s4, %s11726_s6  ;;  %p11732_p13 = scmp.lt.s32.totalorder %s11726_s6, %s11726_s6 }
  0xee   :  { %p11733_p0 = por %p11732_p13, %p11731_p12 }
  0xf0   :  { %p11734_p1 = pnand %p11733_p0, %p11727_p11 }
  0xf2   :  { %11737 = shalt.err (!%p11734_p1)
}
  0xf3   :  { %236 = dma.hbm_to_vmem [thread:$0]  %s13765_s17, 64, %s234_s4, [#allocation27]  }
  0xf4   :  { %s11895_s3 = smov [#allocation31]   ;;  %s11896_s27 = smov [#allocation34]  }
  0xf5   :  { %s255_s7 = sshll.u32 %s11895_s3, 4  ;;  %s277_s9 = sshll.u32 %s11896_s27, 4  ;;  %s256_s7 = int_to_ptr.vmem [resolvable:$true] %s255_s7  ;;  %s278_s9 = int_to_ptr.vmem [resolvable:$true] %s277_s9 }
  0xf6   :  { %s11746_s30 = scalar_lea.vmem %s256_s7, 64  ;;  %p11751_p3 = scmp.lt.s32.totalorder %s256_s7, %s256_s7 }
  0xf7   :  { %p11747_p2 = scmp.ne.s32.totalorder %s256_s7, %s11746_s30  ;;  %p11752_p4 = scmp.lt.s32.totalorder %s11746_s30, %s11746_s30 }
  0xf9   :  { %p11753_p5 = por %p11752_p4, %p11751_p3 }
  0xfb   :  { %p11754_p6 = pnand %p11753_p5, %p11747_p2 }
  0xfd   :  { %11757 = shalt.err (!%p11754_p6)
}
  0xfe   :  { %258 = dma.hbm_to_vmem [thread:$0]  %s13767_s19, 64, %s256_s7, [#allocation30]  }
  0xff   :  { %s11766_s16 = scalar_lea.vmem %s278_s9, 32  ;;  %p11771_p8 = scmp.lt.s32.totalorder %s278_s9, %s278_s9 }
 0x100   :  { %p11767_p7 = scmp.ne.s32.totalorder %s278_s9, %s11766_s16  ;;  %p11772_p9 = scmp.lt.s32.totalorder %s11766_s16, %s11766_s16 }
 0x102   :  { %p11773_p10 = por %p11772_p9, %p11771_p8 }
 0x104   :  { %p11774_p11 = pnand %p11773_p10, %p11767_p7 }
 0x106   :  { %11777 = shalt.err (!%p11774_p11)
}
 0x107   :  { %280 = dma.hbm_to_vmem [thread:$0]  %s13769_s21, 32, %s278_s9, [#allocation33]  }
 0x108   :  { %s11897_s2 = smov [#allocation37]   ;;  %s11898_s5 = smov [#allocation38]  }
 0x109   :  { %s299_s12 = sshll.u32 %s11897_s2, 4  ;;  %s311_s18 = sshll.u32 %s11898_s5, 4  ;;  %s300_s12 = int_to_ptr.vmem [resolvable:$true] %s299_s12  ;;  %s312_s18 = int_to_ptr.vmem [resolvable:$true] %s311_s18 }
 0x10a   :  { %s11786_s28 = scalar_lea.vmem %s300_s12, 32  ;;  %p11791_p13 = scmp.lt.s32.totalorder %s300_s12, %s300_s12 }
 0x10b   :  { %p11787_p12 = scmp.ne.s32.totalorder %s300_s12, %s11786_s28  ;;  %p11792_p0 = scmp.lt.s32.totalorder %s11786_s28, %s11786_s28 }
 0x10d   :  { %p11793_p1 = por %p11792_p0, %p11791_p13 }
 0x10f   :  { %p11794_p2 = pnand %p11793_p1, %p11787_p12 }
 0x111   :  { %11797 = shalt.err (!%p11794_p2)
}
 0x112   :  { %302 = dma.hbm_to_vmem [thread:$0]  %s13771_s23, 32, %s300_s12, [#allocation36]  }
 0x113   :  { %s11806_s24 = scalar_lea.vmem %s312_s18, 16  ;;  %s11810_s21 = scalar_lea.vmem %s312_s18, 32 }
 0x114   :  { %p11807_p3 = scmp.ne.s32.totalorder %s312_s18, %s11806_s24  ;;  %p11811_p4 = scmp.lt.s32.totalorder %s312_s18, %s312_s18 }
 0x115   :  { %p11812_p5 = scmp.lt.s32.totalorder %s11810_s21, %s11806_s24 }
 0x117   :  { %p11813_p6 = por %p11812_p5, %p11811_p4 }
 0x119   :  { %p11814_p7 = pnand %p11813_p6, %p11807_p3 }
 0x11b   :  { %11817 = shalt.err (!%p11814_p7)
}
 0x11c   :  { %314 = dma.hbm_to_vmem [thread:$0]  %s13773_s25, 16, %s312_s18, [#allocation39]  }
 0x11d   :  { %11838 = dma.done.wait [#allocation3], 32  }
 0x11e   :  { %11839 = vsyncadd [#allocation3], 4294967264 }
 0x11f   :  { %11840 = dma.done.wait [#allocation6], 23040  }
 0x120   :  { %11841 = vsyncadd [#allocation6], 4294944256 }
 0x121   :  { %11842 = dma.done.wait [#allocation9], 1600  }
 0x122   :  { %11843 = vsyncadd [#allocation9], 4294965696 }
 0x123   :  { %11844 = dma.done.wait [#allocation12], 98368  }
 0x124   :  { %11845 = vsyncadd [#allocation12], 4294868928 }
 0x125   :  { %11846 = dma.done.wait [#allocation15], 25344  }
 0x126   :  { %11847 = vsyncadd [#allocation15], 4294941952 }
 0x127   :  { %11848 = dma.done.wait [#allocation18], 272  }
 0x128   :  { %11849 = vsyncadd [#allocation18], 4294967024 }
 0x129   :  { %11850 = dma.done.wait [#allocation21], 65600  }
 0x12a   :  { %11851 = vsyncadd [#allocation21], 4294901696 }
 0x12b   :  { %11852 = dma.done.wait [#allocation24], 4224  }
 0x12c   :  { %11853 = vsyncadd [#allocation24], 4294963072 }
 0x12d   :  { %11854 = dma.done.wait [#allocation27], 32832  }
 0x12e   :  { %11855 = vsyncadd [#allocation27], 4294934464 }
 0x12f   :  { %11856 = dma.done.wait [#allocation30], 32832  }
 0x130   :  { %11857 = vsyncadd [#allocation30], 4294934464 }
 0x131   :  { %11858 = dma.done.wait [#allocation33], 16416  }
 0x132   :  { %11859 = vsyncadd [#allocation33], 4294950880 }
 0x133   :  { %11860 = dma.done.wait [#allocation36], 16416  }
 0x134   :  { %11861 = vsyncadd [#allocation36], 4294950880 }
 0x135   :  { %11862 = dma.done.wait [#allocation39], 16  }
 0x136   :  { %11863 = vsyncadd [#allocation39], 4294967280  ;;  %vm396_vm0 = vcmask 261120   ;;  %s13812_s14 = sld [smem:[#allocation67_spill]]  ;;  %v392_v2 = vld [vmem:[#allocation5] sm:$0xff]  ;;  %v523_v4 = vld [vmem:[#allocation7 + $0xe8] sm:$0xff] }
 0x137   :  { %11178 = vmatprep.mubr.msk.f32.mxu0 %vm396_vm0, %v392_v2  ;;  %555 = vmatprep.subr.mxu1 %v523_v4  ;;  %v522_v5 = vld [vmem:[#allocation7 + $0xe0] sm:$0xff]  ;;  %v519_v7 = vld [vmem:[#allocation7 + $0xc8] sm:$0xff]  ;;  %v525_v11 = vld [vmem:[#allocation7 + $0xf8] sm:$0xff]  ;;  %v13777_v40 = vmov 0.0   ;;  %vm526_vm1 = vcmask 523264   ;;  %vm11900_vm2 = vmmov 0  }
 0x138   :  { %556 = vmatpush1.msra.mxu1 %v522_v5  ;;  %v518_v8 = vld [vmem:[#allocation7 + $0xc0] sm:$0xff]  ;;  %v515_v9 = vld [vmem:[#allocation7 + $0xa8] sm:$0xff]  ;;  %v394_v13 = vld [vmem:[#allocation5 + $0x10] sm:$0xff]  ;;  %603 = vmatprep.mubr.f32.mxu1 %v13777_v40  ;;  %vm5791_vm3 = vcmask 130048   ;;  %s13840_s7 = sld [smem:[#allocation78_spill]]  ;;  %vm10589_vm4 = vcmask 58368  }
 0x139   :  { %557 = vmatprep.subr.mxu1 %v519_v7  ;;  %v393_v10 = vld [vmem:[#allocation5 + $0x8] sm:$0xff]  ;;  %v514_v12 = vld [vmem:[#allocation7 + $0xa0] sm:$0xff]  ;;  %v524_v14 = vld [vmem:[#allocation7 + $0xf0] sm:$0xff]  ;;  %s11903_s8 = smov [#allocation40]  }
 0x13a   :  { %558 = vmatpush1.msra.mxu1 %v518_v8  ;;  %v521_v15 = vld [vmem:[#allocation7 + $0xd8] sm:$0xff]  ;;  %v511_v16 = vld [vmem:[#allocation7 + $0x88] sm:$0xff]  ;;  %v520_v17 = vld [vmem:[#allocation7 + $0xd0] sm:$0xff]  ;;  %s10607_s24 = sshll.u32 %s11903_s8, 4  ;;  %s10608_s24 = int_to_ptr.vmem [resolvable:$true] %s10607_s24 }
 0x13b   :  { %559 = vmatprep.subr.mxu1 %v515_v9  ;;  %v510_v18 = vld [vmem:[#allocation7 + $0x80] sm:$0xff]  ;;  %v395_v19 = vld [vmem:[#allocation5 + $0x18] sm:$0xff]  ;;  %v516_v21 = vld [vmem:[#allocation7 + $0xb0] sm:$0xff]  ;;  %s11818_s21 = scalar_lea.vmem %s10608_s24, 32  ;;  %p11823_p9 = scmp.lt.s32.totalorder %s10608_s24, %s10608_s24 }
 0x13c   :  { %v12143_v0 = vld [vmem:[%s13812_s14 + $0x18] sm:$0xff]  ;;  %v12148_v1 = vld [vmem:[%s13812_s14 + $0x10] sm:$0xff]  ;;  %v12155_v3 = vld [vmem:[%s13812_s14 + $0x8] sm:$0xff]  ;;  %560 = vmatpush1.msra.mxu1 %v514_v12  ;;  %p11819_p8 = scmp.ne.s32.totalorder %s10608_s24, %s11818_s21  ;;  %p11824_p10 = scmp.lt.s32.totalorder %s11818_s21, %s11818_s21 }
 0x13d   :  { %11170 = vmatprep.subr.mxu0 %v12143_v0  ;;  %v12163_v6 = vld [vmem:[%s13812_s14] sm:$0xff]  ;;  %561 = vmatprep.subr.mxu1 %v511_v16  ;;  %v507_v22 = vld [vmem:[#allocation7 + $0x68] sm:$0xff]  ;;  %v512_v25 = vld [vmem:[#allocation7 + $0x90] sm:$0xff] }
 0x13e   :  { %11171 = vmatpush3.msra.mxu0 %v12143_v0  ;;  %v517_v20 = vld [vmem:[#allocation7 + $0xb8] sm:$0xff]  ;;  %562 = vmatpush1.msra.mxu1 %v510_v18  ;;  %v506_v24 = vld [vmem:[#allocation7 + $0x60] sm:$0xff]  ;;  %v503_v26 = vld [vmem:[#allocation7 + $0x48] sm:$0xff]  ;;  %p11825_p11 = por %p11824_p10, %p11823_p9 }
 0x13f   :  { %11172 = vmatprep.subr.mxu0 %v12148_v1  ;;  %v513_v23 = vld [vmem:[#allocation7 + $0x98] sm:$0xff]  ;;  %563 = vmatprep.subr.mxu1 %v507_v22  ;;  %v502_v28 = vld [vmem:[#allocation7 + $0x40] sm:$0xff]  ;;  %v508_v29 = vld [vmem:[#allocation7 + $0x70] sm:$0xff] }
 0x140   :  { %11173 = vmatpush3.msra.mxu0 %v12148_v1  ;;  %v509_v27 = vld [vmem:[#allocation7 + $0x78] sm:$0xff]  ;;  %564 = vmatpush1.msra.mxu1 %v506_v24  ;;  %v499_v30 = vld [vmem:[#allocation7 + $0x28] sm:$0xff]  ;;  %v504_v32 = vld [vmem:[#allocation7 + $0x50] sm:$0xff]  ;;  %p11826_p12 = pnand %p11825_p11, %p11819_p8 }
 0x141   :  { %11174 = vmatprep.subr.mxu0 %v12155_v3  ;;  %565 = vmatprep.subr.mxu1 %v503_v26  ;;  %v505_v31 = vld [vmem:[#allocation7 + $0x58] sm:$0xff]  ;;  %v498_v34 = vld [vmem:[#allocation7 + $0x20] sm:$0xff]  ;;  %v500_v35 = vld [vmem:[#allocation7 + $0x30] sm:$0xff] }
 0x142   :  { %11175 = vmatpush3.msra.mxu0 %v12155_v3  ;;  %566 = vmatpush1.msra.mxu1 %v502_v28  ;;  %v501_v33 = vld [vmem:[#allocation7 + $0x38] sm:$0xff]  ;;  %v495_v36 = vld [vmem:[#allocation7 + $0x8] sm:$0xff]  ;;  %v494_v38 = vld [vmem:[#allocation7] sm:$0xff] }
 0x143   :  { %11176 = vmatprep.subr.mxu0 %v12163_v6  ;;  %567 = vmatprep.subr.mxu1 %v499_v30  ;;  %v497_v37 = vld [vmem:[#allocation7 + $0x18] sm:$0xff]  ;;  %v496_v39 = vld [vmem:[#allocation7 + $0x10] sm:$0xff]  ;;  %v755_v45 = vld [vmem:[#allocation5 + $0x20] sm:$0xff] }
 0x144   :  { %11177 = vmatpush3.msra.mxu0 %v12163_v6  ;;  %568 = vmatpush1.msra.mxu1 %v498_v34  ;;  %v756_v46 = vld [vmem:[#allocation5 + $0x28] sm:$0xff]  ;;  %v757_v47 = vld [vmem:[#allocation5 + $0x30] sm:$0xff]  ;;  %v758_v48 = vld [vmem:[#allocation5 + $0x38] sm:$0xff] }
 0x145   :  { %11179 = vmatmul.mubr.msk.f32.vlgmr.msra.gmra.mxu0 %vm396_vm0, %v393_v10  ;;  %644 = vmatprep.subr.mxu0 %v525_v11  ;;  %v886_v49 = vld [vmem:[#allocation7 + $0x1e8] sm:$0xff]  ;;  %v888_v50 = vld [vmem:[#allocation7 + $0x1f8] sm:$0xff]  ;;  %v885_v51 = vld [vmem:[#allocation7 + $0x1e0] sm:$0xff] }
 0x146   :  { %11181 = vmatprep.mubr.msk.f32.mxu0 %vm396_vm0, %v394_v13  ;;  %645 = vmatpush1.msra.mxu0 %v524_v14  ;;  %v887_v52 = vld [vmem:[#allocation7 + $0x1f0] sm:$0xff]  ;;  %v882_v53 = vld [vmem:[#allocation7 + $0x1c8] sm:$0xff]  ;;  %v884_v54 = vld [vmem:[#allocation7 + $0x1d8] sm:$0xff] }
 0x147   :  { %646 = vmatprep.subr.mxu0 %v521_v15  ;;  %569 = vmatprep.subr.mxu1 %v495_v36  ;;  %v881_v55 = vld [vmem:[#allocation7 + $0x1c0] sm:$0xff]  ;;  %v883_v56 = vld [vmem:[#allocation7 + $0x1d0] sm:$0xff]  ;;  %v878_v57 = vld [vmem:[#allocation7 + $0x1a8] sm:$0xff] }
 0x148   :  { %647 = vmatpush1.msra.mxu0 %v520_v17  ;;  %570 = vmatpush1.msra.mxu1 %v494_v38  ;;  %v880_v58 = vld [vmem:[#allocation7 + $0x1b8] sm:$0xff]  ;;  %v877_v59 = vld [vmem:[#allocation7 + $0x1a0] sm:$0xff]  ;;  %v879_v60 = vld [vmem:[#allocation7 + $0x1b0] sm:$0xff] }
 0x149   :  { %11182 = vmatmul.mubr.msk.f32.gmra.mxu0 %vm396_vm0, %v395_v19  ;;  %648 = vmatprep.subr.mxu0 %v517_v20  ;;  %v874_v61 = vld [vmem:[#allocation7 + $0x188] sm:$0xff]  ;;  %v876_v62 = vld [vmem:[#allocation7 + $0x198] sm:$0xff]  ;;  %v873_v63 = vld [vmem:[#allocation7 + $0x180] sm:$0xff] }
 0x14a   :  { %649 = vmatpush1.msra.mxu0 %v516_v21  ;;  %692 = vmatprep.mubr.f32.mxu0 %v13777_v40  ;;  %v875_v2 = vld [vmem:[#allocation7 + $0x190] sm:$0xff]  ;;  %v870_v4 = vld [vmem:[#allocation7 + $0x168] sm:$0xff]  ;;  %v872_v5 = vld [vmem:[#allocation7 + $0x178] sm:$0xff] }
 0x14b   :  { %650 = vmatprep.subr.mxu0 %v513_v23  ;;  %11184 = vmatprep.subr.mxu1 %v12143_v0  ;;  %v869_v7 = vld [vmem:[#allocation7 + $0x160] sm:$0xff]  ;;  %v871_v8 = vld [vmem:[#allocation7 + $0x170] sm:$0xff]  ;;  %v866_v9 = vld [vmem:[#allocation7 + $0x148] sm:$0xff] }
 0x14c   :  { %651 = vmatpush1.msra.mxu0 %v512_v25  ;;  %v868_v10 = vld [vmem:[#allocation7 + $0x158] sm:$0xff]  ;;  %v865_v11 = vld [vmem:[#allocation7 + $0x140] sm:$0xff]  ;;  %v867_v12 = vld [vmem:[#allocation7 + $0x150] sm:$0xff] }
 0x14d   :  { %652 = vmatprep.subr.mxu0 %v509_v27  ;;  %v862_v13 = vld [vmem:[#allocation7 + $0x128] sm:$0xff]  ;;  %v864_v14 = vld [vmem:[#allocation7 + $0x138] sm:$0xff]  ;;  %v861_v15 = vld [vmem:[#allocation7 + $0x120] sm:$0xff] }
 0x14e   :  { %653 = vmatpush1.msra.mxu0 %v508_v29  ;;  %v863_v16 = vld [vmem:[#allocation7 + $0x130] sm:$0xff]  ;;  %v858_v17 = vld [vmem:[#allocation7 + $0x108] sm:$0xff]  ;;  %v860_v18 = vld [vmem:[#allocation7 + $0x118] sm:$0xff] }
 0x14f   :  { %654 = vmatprep.subr.mxu0 %v505_v31  ;;  %v857_v19 = vld [vmem:[#allocation7 + $0x100] sm:$0xff]  ;;  %v859_v20 = vld [vmem:[#allocation7 + $0x110] sm:$0xff]  ;;  %v1097_v34 = vld [vmem:[#allocation5 + $0x48] sm:$0xff] }
 0x150   :  { %655 = vmatpush1.msra.mxu0 %v504_v32  ;;  %v1099_v36 = vld [vmem:[#allocation5 + $0x58] sm:$0xff] }
 0x151   :  { %656 = vmatprep.subr.mxu0 %v501_v33  ;;  %v1096_v33 = vld [vmem:[#allocation5 + $0x40] sm:$0xff]  ;;  %v1229_v38 = vld [vmem:[#allocation7 + $0x2f8] sm:$0xff] }
 0x152   :  { %657 = vmatpush1.msra.mxu0 %v500_v35  ;;  %v1098_v35 = vld [vmem:[#allocation5 + $0x50] sm:$0xff] }
 0x153   :  { %658 = vmatprep.subr.mxu0 %v497_v37  ;;  %v1227_v37 = vld [vmem:[#allocation7 + $0x2e8] sm:$0xff] }
 0x154   :  { %659 = vmatpush1.msra.mxu0 %v496_v39  ;;  %v1226_v39 = vld [vmem:[#allocation7 + $0x2e0] sm:$0xff] }
 0x155   :  { %917 = vmatprep.subr.mxu0 %v886_v49  ;;  %v1220_v49 = vld [vmem:[#allocation7 + $0x2b0] sm:$0xff] }
 0x205   :  { %v11180_v41 = vpop.f32.mrf.mxu0 }
 0x207   :  { %v475_v42 = vpop.f32.mrf.mxu0 }
 0x208   :  { %10632 = vmatmul.mubr.msk.f32.vlgmr.msra.gmra.mxu1 %vm526_vm1, %v475_v42  ;;  %10636 = vmatmul.mubr.msk.f32.vlgmr.msra.gmra.mxu0 %vm526_vm1, %v475_v42  ;;  %v1223_v42 = vld [vmem:[#allocation7 + $0x2c8] sm:$0xff] }
 0x209   :  { %609 = vmatprep.mubr.f32.mxu1 %v13777_v40  ;;  %698 = vmatprep.mubr.f32.mxu0 %v13777_v40  ;;  %v11183_v43 = vpop.f32.mrf.mxu0 }
 0x20a   :  { %11185 = vmatpush3.msra.mxu1 %v12143_v0  ;;  %918 = vmatpush1.msra.mxu0 %v885_v51  ;;  %v1217_v51 = vld [vmem:[#allocation7 + $0x298] sm:$0xff] }
 0x20b   :  { %11186 = vmatprep.subr.mxu1 %v12148_v1  ;;  %v485_v44 = vpop.f32.mrf.mxu0  ;;  %919 = vmatprep.subr.mxu0 %v882_v53  ;;  %v1216_v53 = vld [vmem:[#allocation7 + $0x290] sm:$0xff] }
 0x20c   :  { %10633 = vmatmul.mubr.msk.f32.gmra.mxu1 %vm526_vm1, %v11180_v41  ;;  %10637 = vmatmul.mubr.msk.f32.gmra.mxu0 %vm526_vm1, %v11180_v41  ;;  %v1228_v41 = vld [vmem:[#allocation7 + $0x2f0] sm:$0xff] }
 0x20d   :  { %615 = vmatprep.mubr.f32.mxu1 %v13777_v40  ;;  %704 = vmatprep.mubr.f32.mxu0 %v13777_v40 }
 0x20e   :  { %11187 = vmatpush3.msra.mxu1 %v12148_v1  ;;  %920 = vmatpush1.msra.mxu0 %v881_v55  ;;  %v1213_v55 = vld [vmem:[#allocation7 + $0x278] sm:$0xff] }
 0x20f   :  { %11188 = vmatprep.subr.mxu1 %v12155_v3  ;;  %921 = vmatprep.subr.mxu0 %v878_v57  ;;  %v1212_v57 = vld [vmem:[#allocation7 + $0x270] sm:$0xff] }
 0x210   :  { %10634 = vmatmul.mubr.msk.f32.gmra.mxu1 %vm526_vm1, %v485_v44  ;;  %10638 = vmatmul.mubr.msk.f32.gmra.mxu0 %vm526_vm1, %v485_v44  ;;  %v1222_v44 = vld [vmem:[#allocation7 + $0x2c0] sm:$0xff] }
 0x211   :  { %621 = vmatprep.mubr.f32.mxu1 %v13777_v40  ;;  %710 = vmatprep.mubr.f32.mxu0 %v13777_v40 }
 0x212   :  { %11189 = vmatpush3.msra.mxu1 %v12155_v3  ;;  %922 = vmatpush1.msra.mxu0 %v877_v59  ;;  %v1209_v59 = vld [vmem:[#allocation7 + $0x258] sm:$0xff] }
 0x213   :  { %11190 = vmatprep.subr.mxu1 %v12163_v6  ;;  %923 = vmatprep.subr.mxu0 %v874_v61  ;;  %v1208_v61 = vld [vmem:[#allocation7 + $0x250] sm:$0xff] }
 0x214   :  { %10635 = vmatmul.mubr.msk.f32.gmra.mxu1 %vm526_vm1, %v11183_v43  ;;  %10639 = vmatmul.mubr.msk.f32.gmra.mxu0 %vm526_vm1, %v11183_v43  ;;  %v1225_v43 = vld [vmem:[#allocation7 + $0x2d8] sm:$0xff] }
 0x215   :  { %11191 = vmatpush3.msra.mxu1 %v12163_v6  ;;  %11192 = vmatprep.mubr.msk.f32.mxu1 %vm396_vm0, %v755_v45  ;;  %v1224_v45 = vld [vmem:[#allocation7 + $0x2d0] sm:$0xff] }
 0x216   :  { %965 = vmatprep.mubr.f32.mxu0 %v13777_v40  ;;  %1006 = vmatprep.subr.mxu1 %v888_v50  ;;  %v1215_v50 = vld [vmem:[#allocation7 + $0x288] sm:$0xff] }
 0x217   :  { %924 = vmatpush1.msra.mxu0 %v873_v63  ;;  %v1205_v63 = vld [vmem:[#allocation7 + $0x238] sm:$0xff] }
 0x218   :  { %11193 = vmatmul.mubr.msk.f32.vlgmr.msra.gmra.mxu1 %vm396_vm0, %v756_v46  ;;  %925 = vmatprep.subr.mxu0 %v870_v4  ;;  %v1219_v46 = vld [vmem:[#allocation7 + $0x2a8] sm:$0xff]  ;;  %v1204_v4 = vld [vmem:[#allocation7 + $0x230] sm:$0xff] }
 0x219   :  { %11195 = vmatprep.mubr.msk.f32.mxu1 %vm396_vm0, %v757_v47  ;;  %1007 = vmatpush1.msra.mxu1 %v887_v52  ;;  %v1221_v47 = vld [vmem:[#allocation7 + $0x2b8] sm:$0xff]  ;;  %v1214_v52 = vld [vmem:[#allocation7 + $0x280] sm:$0xff] }
 0x21a   :  { %1008 = vmatprep.subr.mxu1 %v884_v54  ;;  %926 = vmatpush1.msra.mxu0 %v869_v7  ;;  %v1211_v54 = vld [vmem:[#allocation7 + $0x268] sm:$0xff]  ;;  %v1201_v7 = vld [vmem:[#allocation7 + $0x218] sm:$0xff] }
 0x21b   :  { %1009 = vmatpush1.msra.mxu1 %v883_v56  ;;  %927 = vmatprep.subr.mxu0 %v866_v9  ;;  %v1210_v56 = vld [vmem:[#allocation7 + $0x260] sm:$0xff]  ;;  %v1200_v9 = vld [vmem:[#allocation7 + $0x210] sm:$0xff] }
 0x21c   :  { %11196 = vmatmul.mubr.msk.f32.gmra.mxu1 %vm396_vm0, %v758_v48  ;;  %1010 = vmatprep.subr.mxu1 %v880_v58  ;;  %v1218_v48 = vld [vmem:[#allocation7 + $0x2a0] sm:$0xff]  ;;  %v1207_v58 = vld [vmem:[#allocation7 + $0x248] sm:$0xff] }
 0x21d   :  { %1054 = vmatprep.mubr.f32.mxu1 %v13777_v40  ;;  %1011 = vmatpush1.msra.mxu1 %v879_v60  ;;  %v1206_v60 = vld [vmem:[#allocation7 + $0x240] sm:$0xff] }
 0x21e   :  { %1012 = vmatprep.subr.mxu1 %v876_v62  ;;  %928 = vmatpush1.msra.mxu0 %v865_v11  ;;  %v1203_v62 = vld [vmem:[#allocation7 + $0x228] sm:$0xff] }
 0x21f   :  { %1013 = vmatpush1.msra.mxu1 %v875_v2  ;;  %929 = vmatprep.subr.mxu0 %v862_v13  ;;  %v1202_v2 = vld [vmem:[#allocation7 + $0x220] sm:$0xff] }
 0x220   :  { %1014 = vmatprep.subr.mxu1 %v872_v5  ;;  %930 = vmatpush1.msra.mxu0 %v861_v15  ;;  %v1199_v5 = vld [vmem:[#allocation7 + $0x208] sm:$0xff] }
 0x221   :  { %1015 = vmatpush1.msra.mxu1 %v871_v8  ;;  %931 = vmatprep.subr.mxu0 %v858_v17  ;;  %v1198_v8 = vld [vmem:[#allocation7 + $0x200] sm:$0xff] }
 0x222   :  { %1016 = vmatprep.subr.mxu1 %v868_v10  ;;  %932 = vmatpush1.msra.mxu0 %v857_v19 }
 0x223   :  { %1017 = vmatpush1.msra.mxu1 %v867_v12  ;;  %11198 = vmatprep.subr.mxu0 %v12143_v0 }
 0x224   :  { %1018 = vmatprep.subr.mxu1 %v864_v14  ;;  %v718_v14 = vlaneseq }
 0x225   :  { %1019 = vmatpush1.msra.mxu1 %v863_v16 }
 0x226   :  { %1020 = vmatprep.subr.mxu1 %v860_v18  ;;  %v12251_v16 = vshrl.u32 %v718_v14, 7  ;;  %v1569_v14 = vld [vmem:[#allocation7 + $0x3f0] sm:$0xff] }
 0x227   :  { %1021 = vmatpush1.msra.mxu1 %v859_v20  ;;  %v12261_v20 = vld [vmem:[#allocation8] sm:$0xf] }
 0x228   :  { %1258 = vmatprep.subr.mxu1 %v1227_v37  ;;  %13813 = vst [vmem:[#allocation55_spill] sm:$0xff] %v12251_v16  ;;  %v12256_v18 = vsub.s32 0, %v12251_v16  ;;  %v12259_v19 = vsub.s32 2, %v12251_v16 }
 0x22a   :  { %13814 = vst [vmem:[#allocation56_spill] sm:$0xff] %v12256_v18  ;;  %13815 = vst [vmem:[#allocation57_spill] sm:$0xff] %v12259_v19 }
 0x2c8   :  { %v12203_v21 = vpop.f32.mrf.mxu1  ;;  %v694_v10 = vpop.f32.mrf.mxu0 }
 0x2ca   :  { %v12205_v22 = vpop.f32.mrf.mxu1  ;;  %v12247_v11 = vpop.f32.mrf.mxu0 }
 0x2cc   :  { %v12207_v23 = vpop.f32.mrf.mxu1  ;;  %v700_v12 = vpop.f32.mrf.mxu0 }
 0x2ce   :  { %v12209_v24 = vpop.f32.mrf.mxu1  ;;  %v12249_v13 = vpop.f32.mrf.mxu0 }
 0x2d0   :  { %v12211_v25 = vpop.f32.mrf.mxu1  ;;  %v706_v15 = vpop.f32.mrf.mxu0 }
 0x2d2   :  { %v12213_v26 = vpop.f32.mrf.mxu1  ;;  %v12253_v17 = vpop.f32.mrf.mxu0 }
 0x2d4   :  { %v12215_v27 = vpop.f32.mrf.mxu1 }
 0x2d6   :  { %v12217_v28 = vpop.f32.mrf.mxu1 }
 0x2d8   :  { %v11194_v29 = vpop.f32.mrf.mxu1 }
 0x2da   :  { %v837_v30 = vpop.f32.mrf.mxu1 }
 0x2db   :  { %10644 = vmatmul.mubr.msk.f32.vlgmr.msra.gmra.mxu0 %vm526_vm1, %v837_v30  ;;  %10648 = vmatmul.mubr.msk.f32.vlgmr.msra.gmra.mxu1 %vm526_vm1, %v837_v30  ;;  %v721_v30 = vrot.slane %v12261_v20, %v12256_v18 }
 0x2dc   :  { %971 = vmatprep.mubr.f32.mxu0 %v13777_v40  ;;  %1060 = vmatprep.mubr.f32.mxu1 %v13777_v40  ;;  %v11197_v31 = vpop.f32.mrf.mxu1 }
 0x2dd   :  { %11199 = vmatpush3.msra.mxu0 %v12143_v0  ;;  %1259 = vmatpush1.msra.mxu1 %v1226_v39 }
 0x2de   :  { %11200 = vmatprep.subr.mxu0 %v12148_v1  ;;  %v847_v32 = vpop.f32.mrf.mxu1  ;;  %1260 = vmatprep.subr.mxu1 %v1223_v42  ;;  %v742_v42 = vadd.f32 %v721_v30, %v12207_v23 }
 0x2df   :  { %10645 = vmatmul.mubr.msk.f32.gmra.mxu0 %vm526_vm1, %v11194_v29  ;;  %10649 = vmatmul.mubr.msk.f32.gmra.mxu1 %vm526_vm1, %v11194_v29  ;;  %v712_v29 = vpop.f32.mrf.mxu0 }
 0x2e0   :  { %977 = vmatprep.mubr.f32.mxu0 %v13777_v40  ;;  %1066 = vmatprep.mubr.f32.mxu1 %v13777_v40 }
 0x2e1   :  { %11201 = vmatpush3.msra.mxu0 %v12148_v1  ;;  %1261 = vmatpush1.msra.mxu1 %v1222_v44 }
 0x2e2   :  { %11202 = vmatprep.subr.mxu0 %v12155_v3  ;;  %1262 = vmatprep.subr.mxu1 %v1219_v46 }
 0x2e3   :  { %10646 = vmatmul.mubr.msk.f32.gmra.mxu0 %vm526_vm1, %v847_v32  ;;  %10650 = vmatmul.mubr.msk.f32.gmra.mxu1 %vm526_vm1, %v847_v32  ;;  %v12267_v32 = vpop.f32.mrf.mxu0 }
 0x2e4   :  { %983 = vmatprep.mubr.f32.mxu0 %v13777_v40  ;;  %1072 = vmatprep.mubr.f32.mxu1 %v13777_v40 }
 0x2e5   :  { %11203 = vmatpush3.msra.mxu0 %v12155_v3  ;;  %1263 = vmatpush1.msra.mxu1 %v1218_v48 }
 0x2e6   :  { %11204 = vmatprep.subr.mxu0 %v12163_v6  ;;  %1264 = vmatprep.subr.mxu1 %v1215_v50 }
 0x2e7   :  { %10647 = vmatmul.mubr.msk.f32.gmra.mxu0 %vm526_vm1, %v11197_v31  ;;  %10651 = vmatmul.mubr.msk.f32.gmra.mxu1 %vm526_vm1, %v11197_v31  ;;  %v729_v31 = vrot.slane %v12261_v20, %v12259_v19 }
 0x2e8   :  { %11205 = vmatpush3.msra.mxu0 %v12163_v6  ;;  %11206 = vmatprep.mubr.msk.f32.mxu0 %vm396_vm0, %v1096_v33  ;;  %v738_v33 = vadd.f32 %v721_v30, %v12203_v21 }
 0x2e9   :  { %1306 = vmatprep.mubr.f32.mxu1 %v13777_v40  ;;  %1347 = vmatprep.subr.mxu0 %v1229_v38  ;;  %v748_v50 = vadd.f32 %v729_v31, %v706_v15  ;;  %v1564_v15 = vld [vmem:[#allocation7 + $0x3c8] sm:$0xff] }
 0x2ea   :  { %1265 = vmatpush1.msra.mxu1 %v1214_v52 }
 0x2eb   :  { %11207 = vmatmul.mubr.msk.f32.vlgmr.msra.gmra.mxu0 %vm396_vm0, %v1097_v34  ;;  %1266 = vmatprep.subr.mxu1 %v1211_v54  ;;  %v740_v34 = vadd.f32 %v729_v31, %v694_v10  ;;  %v1570_v10 = vld [vmem:[#allocation7 + $0x3f8] sm:$0xff] }
 0x2ec   :  { %11209 = vmatprep.mubr.msk.f32.mxu0 %vm396_vm0, %v1098_v35  ;;  %1348 = vmatpush1.msra.mxu0 %v1228_v41 }
 0x2ed   :  { %1349 = vmatprep.subr.mxu0 %v1225_v43  ;;  %1267 = vmatpush1.msra.mxu1 %v1210_v56  ;;  %v744_v43 = vadd.f32 %v729_v31, %v700_v12  ;;  %v750_v56 = vadd.f32 %v721_v30, %v12215_v27  ;;  %v1567_v12 = vld [vmem:[#allocation7 + $0x3e0] sm:$0xff] }
 0x2ee   :  { %1350 = vmatpush1.msra.mxu0 %v1224_v45  ;;  %1268 = vmatprep.subr.mxu1 %v1207_v58 }
 0x2ef   :  { %11210 = vmatmul.mubr.msk.f32.gmra.mxu0 %vm396_vm0, %v1099_v36  ;;  %1351 = vmatprep.subr.mxu0 %v1221_v47 }
 0x2f0   :  { %1395 = vmatprep.mubr.f32.mxu0 %v13777_v40  ;;  %1352 = vmatpush1.msra.mxu0 %v1220_v49  ;;  %v746_v49 = vadd.f32 %v721_v30, %v12211_v25  ;;  %v1563_v30 = vld [vmem:[#allocation7 + $0x3c0] sm:$0xff] }
 0x2f1   :  { %1353 = vmatprep.subr.mxu0 %v1217_v51  ;;  %1269 = vmatpush1.msra.mxu1 %v1206_v60 }
 0x2f2   :  { %1354 = vmatpush1.msra.mxu0 %v1216_v53  ;;  %1270 = vmatprep.subr.mxu1 %v1203_v62 }
 0x2f3   :  { %1355 = vmatprep.subr.mxu0 %v1213_v55  ;;  %1271 = vmatpush1.msra.mxu1 %v1202_v2 }
 0x2f4   :  { %1356 = vmatpush1.msra.mxu0 %v1212_v57  ;;  %1272 = vmatprep.subr.mxu1 %v1199_v5  ;;  %v752_v57 = vadd.f32 %v729_v31, %v712_v29  ;;  %v1438_v5 = vld [vmem:[#allocation5 + $0x68] sm:$0xff]  ;;  %v1566_v29 = vld [vmem:[#allocation7 + $0x3d8] sm:$0xff]  ;;  %v1565_v31 = vld [vmem:[#allocation7 + $0x3d0] sm:$0xff] }
 0x2f5   :  { %1357 = vmatprep.subr.mxu0 %v1209_v59  ;;  %1273 = vmatpush1.msra.mxu1 %v1198_v8  ;;  %v1440_v8 = vld [vmem:[#allocation5 + $0x78] sm:$0xff] }
 0x2f6   :  { %1358 = vmatpush1.msra.mxu0 %v1208_v61  ;;  %11212 = vmatprep.subr.mxu1 %v12143_v0 }
 0x2f7   :  { %1359 = vmatprep.subr.mxu0 %v1205_v63 }
 0x2f8   :  { %1360 = vmatpush1.msra.mxu0 %v1204_v4  ;;  %v1437_v4 = vld [vmem:[#allocation5 + $0x60] sm:$0xff] }
 0x2f9   :  { %1361 = vmatprep.subr.mxu0 %v1201_v7  ;;  %v1439_v7 = vld [vmem:[#allocation5 + $0x70] sm:$0xff] }
 0x2fa   :  { %1362 = vmatpush1.msra.mxu0 %v1200_v9  ;;  %v1568_v9 = vld [vmem:[#allocation7 + $0x3e8] sm:$0xff] }
 0x2fb   :  { %1599 = vmatprep.subr.mxu0 %v1568_v9 }
 0x39b   :  { %v967_v35 = vpop.f32.mrf.mxu0  ;;  %v1056_v36 = vpop.f32.mrf.mxu1 }
 0x39c   :  { %v12270_v37 = vadd.f32 %v967_v35, %v738_v33  ;;  %v12272_v38 = vadd.f32 %v1056_v36, %v740_v34  ;;  %v1560_v33 = vld [vmem:[#allocation7 + $0x3a8] sm:$0xff]  ;;  %v1562_v34 = vld [vmem:[#allocation7 + $0x3b8] sm:$0xff]  ;;  %v1559_v35 = vld [vmem:[#allocation7 + $0x3a0] sm:$0xff] }
 0x39d   :  { %v12274_v39 = vpop.f32.mrf.mxu0  ;;  %v12276_v41 = vpop.f32.mrf.mxu1  ;;  %v1561_v36 = vld [vmem:[#allocation7 + $0x3b0] sm:$0xff] }
 0x39f   :  { %v973_v44 = vpop.f32.mrf.mxu0  ;;  %v1062_v45 = vpop.f32.mrf.mxu1 }
 0x3a0   :  { %v12279_v46 = vadd.f32 %v973_v44, %v742_v42  ;;  %v12281_v47 = vadd.f32 %v1062_v45, %v744_v43  ;;  %v1556_v42 = vld [vmem:[#allocation7 + $0x388] sm:$0xff]  ;;  %v1558_v43 = vld [vmem:[#allocation7 + $0x398] sm:$0xff]  ;;  %v1555_v44 = vld [vmem:[#allocation7 + $0x380] sm:$0xff] }
 0x3a1   :  { %v12283_v21 = vpop.f32.mrf.mxu0  ;;  %v12285_v48 = vpop.f32.mrf.mxu1  ;;  %v1557_v45 = vld [vmem:[#allocation7 + $0x390] sm:$0xff] }
 0x3a3   :  { %v979_v51 = vpop.f32.mrf.mxu0  ;;  %v1068_v52 = vpop.f32.mrf.mxu1 }
 0x3a4   :  { %v12288_v53 = vadd.f32 %v979_v51, %v746_v49  ;;  %v12290_v54 = vadd.f32 %v1068_v52, %v748_v50  ;;  %v1552_v49 = vld [vmem:[#allocation7 + $0x368] sm:$0xff]  ;;  %v1554_v50 = vld [vmem:[#allocation7 + $0x378] sm:$0xff]  ;;  %v1551_v51 = vld [vmem:[#allocation7 + $0x360] sm:$0xff] }
 0x3a5   :  { %v12292_v23 = vpop.f32.mrf.mxu0  ;;  %v12294_v55 = vpop.f32.mrf.mxu1  ;;  %v1553_v52 = vld [vmem:[#allocation7 + $0x370] sm:$0xff] }
 0x3a7   :  { %v985_v58 = vpop.f32.mrf.mxu0  ;;  %v1074_v59 = vpop.f32.mrf.mxu1 }
 0x3a8   :  { %v12297_v60 = vadd.f32 %v985_v58, %v750_v56  ;;  %v12299_v61 = vadd.f32 %v1074_v59, %v752_v57  ;;  %v1548_v56 = vld [vmem:[#allocation7 + $0x348] sm:$0xff]  ;;  %v1550_v57 = vld [vmem:[#allocation7 + $0x358] sm:$0xff]  ;;  %v1547_v58 = vld [vmem:[#allocation7 + $0x340] sm:$0xff] }
 0x3a9   :  { %v12301_v25 = vpop.f32.mrf.mxu0  ;;  %v1549_v59 = vld [vmem:[#allocation7 + $0x350] sm:$0xff]  ;;  %v12331_v9 = vpop.f32.mrf.mxu1 }
 0x3ab   :  { %v11208_v62 = vpop.f32.mrf.mxu0 }
 0x3ad   :  { %v1178_v63 = vpop.f32.mrf.mxu0 }
 0x3ae   :  { %10656 = vmatmul.mubr.msk.f32.vlgmr.msra.gmra.mxu1 %vm526_vm1, %v1178_v63  ;;  %10660 = vmatmul.mubr.msk.f32.vlgmr.msra.gmra.mxu0 %vm526_vm1, %v1178_v63  ;;  %v1546_v63 = vld [vmem:[#allocation7 + $0x338] sm:$0xff] }
 0x3af   :  { %1312 = vmatprep.mubr.f32.mxu1 %v13777_v40  ;;  %1401 = vmatprep.mubr.f32.mxu0 %v13777_v40  ;;  %v11211_v27 = vpop.f32.mrf.mxu0 }
 0x3b0   :  { %11213 = vmatpush3.msra.mxu1 %v12143_v0  ;;  %1600 = vmatpush1.msra.mxu0 %v1567_v12 }
 0x3b1   :  { %11214 = vmatprep.subr.mxu1 %v12148_v1  ;;  %v1188_v2 = vpop.f32.mrf.mxu0  ;;  %1601 = vmatprep.subr.mxu0 %v1564_v15 }
 0x3b2   :  { %10657 = vmatmul.mubr.msk.f32.gmra.mxu1 %vm526_vm1, %v11208_v62  ;;  %10661 = vmatmul.mubr.msk.f32.gmra.mxu0 %vm526_vm1, %v11208_v62  ;;  %v1544_v62 = vld [vmem:[#allocation7 + $0x328] sm:$0xff] }
 0x3b3   :  { %1318 = vmatprep.mubr.f32.mxu1 %v13777_v40  ;;  %1407 = vmatprep.mubr.f32.mxu0 %v13777_v40 }
 0x3b4   :  { %11215 = vmatpush3.msra.mxu1 %v12148_v1  ;;  %1602 = vmatpush1.msra.mxu0 %v1563_v30 }
 0x3b5   :  { %11216 = vmatprep.subr.mxu1 %v12155_v3  ;;  %1603 = vmatprep.subr.mxu0 %v1560_v33 }
 0x3b6   :  { %10658 = vmatmul.mubr.msk.f32.gmra.mxu1 %vm526_vm1, %v1188_v2  ;;  %10662 = vmatmul.mubr.msk.f32.gmra.mxu0 %vm526_vm1, %v1188_v2  ;;  %v1545_v2 = vld [vmem:[#allocation7 + $0x330] sm:$0xff] }
 0x3b7   :  { %1324 = vmatprep.mubr.f32.mxu1 %v13777_v40  ;;  %1413 = vmatprep.mubr.f32.mxu0 %v13777_v40 }
 0x3b8   :  { %11217 = vmatpush3.msra.mxu1 %v12155_v3  ;;  %1604 = vmatpush1.msra.mxu0 %v1559_v35 }
 0x3b9   :  { %11218 = vmatprep.subr.mxu1 %v12163_v6  ;;  %1605 = vmatprep.subr.mxu0 %v1556_v42 }
 0x3ba   :  { %10659 = vmatmul.mubr.msk.f32.gmra.mxu1 %vm526_vm1, %v11211_v27  ;;  %10663 = vmatmul.mubr.msk.f32.gmra.mxu0 %vm526_vm1, %v11211_v27  ;;  %v1543_v27 = vld [vmem:[#allocation7 + $0x320] sm:$0xff] }
 0x3bb   :  { %11219 = vmatpush3.msra.mxu1 %v12163_v6  ;;  %11220 = vmatprep.mubr.msk.f32.mxu1 %vm396_vm0, %v1437_v4  ;;  %v1540_v4 = vld [vmem:[#allocation7 + $0x308] sm:$0xff] }
 0x3bc   :  { %1647 = vmatprep.mubr.f32.mxu0 %v13777_v40  ;;  %1688 = vmatprep.subr.mxu1 %v1570_v10 }
 0x3bd   :  { %1606 = vmatpush1.msra.mxu0 %v1555_v44 }
 0x3be   :  { %11221 = vmatmul.mubr.msk.f32.vlgmr.msra.gmra.mxu1 %vm396_vm0, %v1438_v5  ;;  %1607 = vmatprep.subr.mxu0 %v1552_v49  ;;  %v1542_v5 = vld [vmem:[#allocation7 + $0x318] sm:$0xff] }
 0x3bf   :  { %11223 = vmatprep.mubr.msk.f32.mxu1 %vm396_vm0, %v1439_v7  ;;  %1689 = vmatpush1.msra.mxu1 %v1569_v14  ;;  %v1539_v7 = vld [vmem:[#allocation7 + $0x300] sm:$0xff] }
 0x3c0   :  { %1690 = vmatprep.subr.mxu1 %v1566_v29  ;;  %1608 = vmatpush1.msra.mxu0 %v1551_v51 }
 0x3c1   :  { %1691 = vmatpush1.msra.mxu1 %v1565_v31  ;;  %1609 = vmatprep.subr.mxu0 %v1548_v56 }
 0x3c2   :  { %11224 = vmatmul.mubr.msk.f32.gmra.mxu1 %vm396_vm0, %v1440_v8  ;;  %1692 = vmatprep.subr.mxu1 %v1562_v34  ;;  %v1541_v8 = vld [vmem:[#allocation7 + $0x310] sm:$0xff] }
 0x3c3   :  { %1736 = vmatprep.mubr.f32.mxu1 %v13777_v40  ;;  %1693 = vmatpush1.msra.mxu1 %v1561_v36 }
 0x3c4   :  { %1694 = vmatprep.subr.mxu1 %v1558_v43  ;;  %1610 = vmatpush1.msra.mxu0 %v1547_v58  ;;  %v1911_v58 = vld [vmem:[#allocation7 + $0x4f8] sm:$0xff] }
 0x3c5   :  { %1695 = vmatpush1.msra.mxu1 %v1557_v45  ;;  %1611 = vmatprep.subr.mxu0 %v1544_v62  ;;  %v1905_v62 = vld [vmem:[#allocation7 + $0x4c8] sm:$0xff] }
 0x3c6   :  { %1696 = vmatprep.subr.mxu1 %v1554_v50  ;;  %1612 = vmatpush1.msra.mxu0 %v1543_v27  ;;  %v1904_v27 = vld [vmem:[#allocation7 + $0x4c0] sm:$0xff] }
 0x3c7   :  { %1697 = vmatpush1.msra.mxu1 %v1553_v52  ;;  %1613 = vmatprep.subr.mxu0 %v1540_v4  ;;  %v1901_v4 = vld [vmem:[#allocation7 + $0x4a8] sm:$0xff] }
 0x3c8   :  { %1698 = vmatprep.subr.mxu1 %v1550_v57  ;;  %1614 = vmatpush1.msra.mxu0 %v1539_v7  ;;  %v1909_v57 = vld [vmem:[#allocation7 + $0x4e8] sm:$0xff]  ;;  %v1900_v7 = vld [vmem:[#allocation7 + $0x4a0] sm:$0xff] }
 0x3c9   :  { %1699 = vmatpush1.msra.mxu1 %v1549_v59  ;;  %11226 = vmatprep.subr.mxu0 %v12143_v0  ;;  %v1910_v59 = vld [vmem:[#allocation7 + $0x4f0] sm:$0xff] }
 0x3ca   :  { %1700 = vmatprep.subr.mxu1 %v1546_v63  ;;  %v1907_v63 = vld [vmem:[#allocation7 + $0x4d8] sm:$0xff] }
 0x3cb   :  { %1701 = vmatpush1.msra.mxu1 %v1545_v2  ;;  %v1906_v2 = vld [vmem:[#allocation7 + $0x4d0] sm:$0xff] }
 0x3cc   :  { %1702 = vmatprep.subr.mxu1 %v1542_v5  ;;  %v1903_v5 = vld [vmem:[#allocation7 + $0x4b8] sm:$0xff] }
 0x3cd   :  { %1703 = vmatpush1.msra.mxu1 %v1541_v8  ;;  %v1902_v8 = vld [vmem:[#allocation7 + $0x4b0] sm:$0xff] }
 0x3ce   :  { %1940 = vmatprep.subr.mxu1 %v1909_v57  ;;  %v1881_v57 = vld [vmem:[#allocation7 + $0x408] sm:$0xff] }
 0x46e   :  { %v1308_v10 = vpop.f32.mrf.mxu1  ;;  %v1397_v12 = vpop.f32.mrf.mxu0 }
 0x46f   :  { %v12334_v14 = vadd.f32 %v1308_v10, %v12270_v37  ;;  %v12337_v15 = vadd.f32 %v1397_v12, %v12272_v38  ;;  %v1897_v10 = vld [vmem:[#allocation7 + $0x488] sm:$0xff]  ;;  %v1899_v12 = vld [vmem:[#allocation7 + $0x498] sm:$0xff] }
 0x470   :  { %v12339_v29 = vpop.f32.mrf.mxu1  ;;  %v12341_v30 = vpop.f32.mrf.mxu0 }
 0x472   :  { %v1314_v31 = vpop.f32.mrf.mxu1  ;;  %v1403_v33 = vpop.f32.mrf.mxu0 }
 0x473   :  { %v12344_v34 = vadd.f32 %v1314_v31, %v12279_v46  ;;  %v12347_v35 = vadd.f32 %v1403_v33, %v12281_v47  ;;  %v1896_v31 = vld [vmem:[#allocation7 + $0x480] sm:$0xff]  ;;  %v1898_v33 = vld [vmem:[#allocation7 + $0x490] sm:$0xff] }
 0x474   :  { %v12349_v36 = vpop.f32.mrf.mxu1  ;;  %v12351_v42 = vpop.f32.mrf.mxu0 }
 0x476   :  { %v1320_v37 = vpop.f32.mrf.mxu1  ;;  %v1409_v43 = vpop.f32.mrf.mxu0 }
 0x477   :  { %v12354_v38 = vadd.f32 %v1320_v37, %v12288_v53  ;;  %v12357_v44 = vadd.f32 %v1409_v43, %v12290_v54  ;;  %v1893_v37 = vld [vmem:[#allocation7 + $0x468] sm:$0xff]  ;;  %v1895_v43 = vld [vmem:[#allocation7 + $0x478] sm:$0xff] }
 0x478   :  { %v12359_v45 = vpop.f32.mrf.mxu1  ;;  %v12361_v49 = vpop.f32.mrf.mxu0 }
 0x47a   :  { %v1326_v46 = vpop.f32.mrf.mxu1  ;;  %v1415_v50 = vpop.f32.mrf.mxu0 }
 0x47b   :  { %v12364_v47 = vadd.f32 %v1326_v46, %v12297_v60  ;;  %v12367_v51 = vadd.f32 %v1415_v50, %v12299_v61  ;;  %v1780_v61 = vld [vmem:[#allocation5 + $0x90] sm:$0xff]  ;;  %v1892_v46 = vld [vmem:[#allocation7 + $0x460] sm:$0xff] }
 0x47c   :  { %v12369_v52 = vpop.f32.mrf.mxu1  ;;  %v1894_v50 = vld [vmem:[#allocation7 + $0x470] sm:$0xff] }
 0x47e   :  { %v11222_v56 = vpop.f32.mrf.mxu1 }
 0x480   :  { %v1519_v53 = vpop.f32.mrf.mxu1 }
 0x481   :  { %10668 = vmatmul.mubr.msk.f32.vlgmr.msra.gmra.mxu0 %vm526_vm1, %v1519_v53  ;;  %10672 = vmatmul.mubr.msk.f32.vlgmr.msra.gmra.mxu1 %vm526_vm1, %v1519_v53  ;;  %v1891_v53 = vld [vmem:[#allocation7 + $0x458] sm:$0xff] }
 0x482   :  { %1653 = vmatprep.mubr.f32.mxu0 %v13777_v40  ;;  %1742 = vmatprep.mubr.f32.mxu1 %v13777_v40  ;;  %v11225_v54 = vpop.f32.mrf.mxu1 }
 0x483   :  { %11227 = vmatpush3.msra.mxu0 %v12143_v0  ;;  %v1778_v0 = vld [vmem:[#allocation5 + $0x80] sm:$0xff] }
 0x484   :  { %11228 = vmatprep.subr.mxu0 %v12148_v1  ;;  %v1529_v60 = vpop.f32.mrf.mxu1 }
 0x485   :  { %10669 = vmatmul.mubr.msk.f32.gmra.mxu0 %vm526_vm1, %v11222_v56  ;;  %10673 = vmatmul.mubr.msk.f32.gmra.mxu1 %vm526_vm1, %v11222_v56  ;;  %v1889_v56 = vld [vmem:[#allocation7 + $0x448] sm:$0xff] }
 0x486   :  { %1659 = vmatprep.mubr.f32.mxu0 %v13777_v40  ;;  %1748 = vmatprep.mubr.f32.mxu1 %v13777_v40 }
 0x487   :  { %11229 = vmatpush3.msra.mxu0 %v12148_v1  ;;  %v1779_v1 = vld [vmem:[#allocation5 + $0x88] sm:$0xff] }
 0x488   :  { %11230 = vmatprep.subr.mxu0 %v12155_v3 }
 0x489   :  { %10670 = vmatmul.mubr.msk.f32.gmra.mxu0 %vm526_vm1, %v1529_v60  ;;  %10674 = vmatmul.mubr.msk.f32.gmra.mxu1 %vm526_vm1, %v1529_v60  ;;  %v1890_v60 = vld [vmem:[#allocation7 + $0x450] sm:$0xff] }
 0x48a   :  { %1665 = vmatprep.mubr.f32.mxu0 %v13777_v40  ;;  %1754 = vmatprep.mubr.f32.mxu1 %v13777_v40 }
 0x48b   :  { %11231 = vmatpush3.msra.mxu0 %v12155_v3  ;;  %v1781_v3 = vld [vmem:[#allocation5 + $0x98] sm:$0xff] }
 0x48c   :  { %11232 = vmatprep.subr.mxu0 %v12163_v6 }
 0x48d   :  { %10671 = vmatmul.mubr.msk.f32.gmra.mxu0 %vm526_vm1, %v11225_v54  ;;  %10675 = vmatmul.mubr.msk.f32.gmra.mxu1 %vm526_vm1, %v11225_v54  ;;  %v1888_v54 = vld [vmem:[#allocation7 + $0x440] sm:$0xff] }
 0x48e   :  { %11233 = vmatpush3.msra.mxu0 %v12163_v6  ;;  %11234 = vmatprep.mubr.msk.f32.mxu0 %vm396_vm0, %v1778_v0  ;;  %v1908_v6 = vld [vmem:[#allocation7 + $0x4e0] sm:$0xff]  ;;  %v1885_v0 = vld [vmem:[#allocation7 + $0x428] sm:$0xff] }
 0x48f   :  { %1988 = vmatprep.mubr.f32.mxu1 %v13777_v40  ;;  %2029 = vmatprep.subr.mxu0 %v1911_v58  ;;  %v1883_v58 = vld [vmem:[#allocation7 + $0x418] sm:$0xff] }
 0x490   :  { %1941 = vmatpush1.msra.mxu1 %v1908_v6  ;;  %v1880_v6 = vld [vmem:[#allocation7 + $0x400] sm:$0xff] }
 0x491   :  { %11235 = vmatmul.mubr.msk.f32.vlgmr.msra.gmra.mxu0 %vm396_vm0, %v1779_v1  ;;  %1942 = vmatprep.subr.mxu1 %v1905_v62  ;;  %v1887_v1 = vld [vmem:[#allocation7 + $0x438] sm:$0xff]  ;;  %v12398_v62 = vpop.f32.mrf.mxu0 }
 0x492   :  { %11237 = vmatprep.mubr.msk.f32.mxu0 %vm396_vm0, %v1780_v61  ;;  %2030 = vmatpush1.msra.mxu0 %v1910_v59  ;;  %v1884_v61 = vld [vmem:[#allocation7 + $0x420] sm:$0xff]  ;;  %v1882_v59 = vld [vmem:[#allocation7 + $0x410] sm:$0xff] }
 0x493   :  { %2031 = vmatprep.subr.mxu0 %v1907_v63  ;;  %1943 = vmatpush1.msra.mxu1 %v1904_v27 }
 0x494   :  { %2032 = vmatpush1.msra.mxu0 %v1906_v2  ;;  %1944 = vmatprep.subr.mxu1 %v1901_v4 }
 0x495   :  { %11238 = vmatmul.mubr.msk.f32.gmra.mxu0 %vm396_vm0, %v1781_v3  ;;  %2033 = vmatprep.subr.mxu0 %v1903_v5  ;;  %v1886_v3 = vld [vmem:[#allocation7 + $0x430] sm:$0xff] }
 0x496   :  { %2077 = vmatprep.mubr.f32.mxu0 %v13777_v40  ;;  %1945 = vmatpush1.msra.mxu1 %v1900_v7 }
 0x497   :  { %2034 = vmatpush1.msra.mxu0 %v1902_v8  ;;  %1946 = vmatprep.subr.mxu1 %v1897_v10 }
 0x498   :  { %2035 = vmatprep.subr.mxu0 %v1899_v12  ;;  %1947 = vmatpush1.msra.mxu1 %v1896_v31 }
 0x499   :  { %2036 = vmatpush1.msra.mxu0 %v1898_v33  ;;  %1948 = vmatprep.subr.mxu1 %v1893_v37 }
 0x49a   :  { %2037 = vmatprep.subr.mxu0 %v1895_v43  ;;  %1949 = vmatpush1.msra.mxu1 %v1892_v46 }
 0x49b   :  { %2038 = vmatpush1.msra.mxu0 %v1894_v50  ;;  %1950 = vmatprep.subr.mxu1 %v1889_v56 }
 0x49c   :  { %2039 = vmatprep.subr.mxu0 %v1891_v53  ;;  %1951 = vmatpush1.msra.mxu1 %v1888_v54 }
 0x49d   :  { %2040 = vmatpush1.msra.mxu0 %v1890_v60  ;;  %1952 = vmatprep.subr.mxu1 %v1885_v0  ;;  %v12441_v0 = vsub.s32 1, %v12251_v16 }
 0x49e   :  { %2041 = vmatprep.subr.mxu0 %v1887_v1  ;;  %1953 = vmatpush1.msra.mxu1 %v1884_v61  ;;  %v12444_v1 = vsub.s32 3, %v12251_v16 }
 0x49f   :  { %2042 = vmatpush1.msra.mxu0 %v1886_v3  ;;  %1954 = vmatprep.subr.mxu1 %v1881_v57  ;;  %13816 = vst [vmem:[#allocation58_spill] sm:$0xff] %v12441_v0 }
 0x4a0   :  { %2043 = vmatprep.subr.mxu0 %v1883_v58  ;;  %1955 = vmatpush1.msra.mxu1 %v1880_v6  ;;  %13817 = vst [vmem:[#allocation59_spill] sm:$0xff] %v12444_v1  ;;  %v725_v58 = vrot.slane %v12261_v20, %v12441_v0  ;;  %v733_v6 = vrot.slane %v12261_v20, %v12444_v1 }
 0x4a1   :  { %2044 = vmatpush1.msra.mxu0 %v1882_v59 }
 0x4a2   :  { %v747_v16 = vadd.f32 %v725_v58, %v12213_v26  ;;  %v749_v20 = vadd.f32 %v733_v6, %v12253_v17  ;;  %v751_v1 = vadd.f32 %v725_v58, %v12217_v28  ;;  %v753_v0 = vadd.f32 %v733_v6, %v12267_v32 }
 0x4a4   :  { %v1090_v26 = vadd.f32 %v12294_v55, %v749_v20  ;;  %v1092_v17 = vadd.f32 %v12301_v25, %v751_v1  ;;  %v1094_v28 = vadd.f32 %v12331_v9, %v753_v0 }
 0x4a6   :  { %v1435_v55 = vadd.f32 %v12398_v62, %v1094_v28  ;;  %v2517_v28 = vld [vmem:[#allocation11 + $0x5e0] sm:$0xff] }
 0x541   :  { %v1649_v63 = vpop.f32.mrf.mxu0 }
 0x542   :  { %v12401_v27 = vadd.f32 %v1649_v63, %v12334_v14 }
 0x543   :  { %v12403_v2 = vpop.f32.mrf.mxu0 }
 0x545   :  { %v1655_v4 = vpop.f32.mrf.mxu0 }
 0x546   :  { %v12406_v5 = vadd.f32 %v1655_v4, %v12344_v34 }
 0x547   :  { %v12408_v7 = vpop.f32.mrf.mxu0 }
 0x549   :  { %v1661_v8 = vpop.f32.mrf.mxu0 }
 0x54a   :  { %v12411_v10 = vadd.f32 %v1661_v8, %v12354_v38 }
 0x54b   :  { %v12413_v12 = vpop.f32.mrf.mxu0 }
 0x54d   :  { %v1667_v31 = vpop.f32.mrf.mxu0 }
 0x54e   :  { %v12416_v33 = vadd.f32 %v1667_v31, %v12364_v47  ;;  %v1738_v47 = vpop.f32.mrf.mxu1  ;;  %v739_v31 = vadd.f32 %v725_v58, %v12205_v22 }
 0x54f   :  { %v12418_v14 = vpop.f32.mrf.mxu0  ;;  %v1763_v25 = vadd.f32 %v1738_v47, %v12337_v15 }
 0x550   :  { %v12436_v46 = vpop.f32.mrf.mxu1  ;;  %v1080_v19 = vadd.f32 %v12274_v39, %v739_v31 }
 0x551   :  { %v11236_v37 = vpop.f32.mrf.mxu0 }
 0x552   :  { %v12438_v50 = vpop.f32.mrf.mxu1  ;;  %v1421_v32 = vadd.f32 %v12339_v29, %v1080_v19 }
 0x553   :  { %v1860_v43 = vpop.f32.mrf.mxu0 }
 0x554   :  { %10680 = vmatmul.mubr.msk.f32.vlgmr.msra.gmra.mxu1 %vm526_vm1, %v1860_v43  ;;  %10684 = vmatmul.mubr.msk.f32.vlgmr.msra.gmra.mxu0 %vm526_vm1, %v1860_v43  ;;  %v1746_v56 = vpop.f32.mrf.mxu1  ;;  %v743_v43 = vadd.f32 %v725_v58, %v12209_v24  ;;  %v1762_v19 = vadd.f32 %v12403_v2, %v1421_v32  ;;  %v13820_v32 = vmov 0.0  }
 0x555   :  { %1994 = vmatprep.mubr.f32.mxu1 %v13777_v40  ;;  %2083 = vmatprep.mubr.f32.mxu0 %v13777_v40  ;;  %v11239_v34 = vpop.f32.mrf.mxu0 }
 0x556   :  { %v1750_v53 = vpop.f32.mrf.mxu1 }
 0x557   :  { %v1870_v38 = vpop.f32.mrf.mxu0 }
 0x558   :  { %10681 = vmatmul.mubr.msk.f32.gmra.mxu1 %vm526_vm1, %v11236_v37  ;;  %10685 = vmatmul.mubr.msk.f32.gmra.mxu0 %vm526_vm1, %v11236_v37  ;;  %v1752_v54 = vpop.f32.mrf.mxu1  ;;  %v741_v37 = vadd.f32 %v733_v6, %v12247_v11  ;;  %v1084_v11 = vadd.f32 %v12283_v21, %v743_v43 }
 0x559   :  { %2000 = vmatprep.mubr.f32.mxu1 %v13777_v40  ;;  %2089 = vmatprep.mubr.f32.mxu0 %v13777_v40 }
 0x55a   :  { %v1756_v60 = vpop.f32.mrf.mxu1  ;;  %v1082_v22 = vadd.f32 %v12276_v41, %v741_v37  ;;  %v1425_v41 = vadd.f32 %v12349_v36, %v1084_v11 }
 0x55b   :  { %v1775_v29 = vadd.f32 %v1756_v60, %v12367_v51 }
 0x55c   :  { %10682 = vmatmul.mubr.msk.f32.gmra.mxu1 %vm526_vm1, %v1870_v38  ;;  %10686 = vmatmul.mubr.msk.f32.gmra.mxu0 %vm526_vm1, %v1870_v38  ;;  %v1758_v61 = vpop.f32.mrf.mxu1  ;;  %v1423_v39 = vadd.f32 %v12341_v30, %v1082_v22  ;;  %v1766_v9 = vadd.f32 %v12408_v7, %v1425_v41  ;;  %v2386_v41 = vld [vmem:[#allocation11 + $0x1c8] sm:$0xff] }
 0x55d   :  { %2006 = vmatprep.mubr.f32.mxu1 %v13777_v40  ;;  %2095 = vmatprep.mubr.f32.mxu0 %v13777_v40 }
 0x55e   :  { %v1764_v60 = vadd.f32 %v12436_v46, %v1423_v39  ;;  %v2136_v39 = vld [vmem:[#allocation10 + $0x8] sm:$0xff] }
 0x560   :  { %10683 = vmatmul.mubr.msk.f32.gmra.mxu1 %vm526_vm1, %v11239_v34  ;;  %10687 = vmatmul.mubr.msk.f32.gmra.mxu0 %vm526_vm1, %v11239_v34  ;;  %v745_v34 = vadd.f32 %v733_v6, %v12249_v13 }
 0x561   :  { %2215 = vmatprep.mubr.f32.mxu1 %v13777_v40  ;;  %2304 = vmatprep.mubr.f32.mxu0 %v13777_v40 }
 0x562   :  { %v1086_v24 = vadd.f32 %v12285_v48, %v745_v34 }
 0x564   :  { %v1427_v21 = vadd.f32 %v12351_v42, %v1086_v24  ;;  %v2135_v24 = vld [vmem:[#allocation10] sm:$0xff] }
 0x566   :  { %v1768_v1 = vadd.f32 %v1746_v56, %v1427_v21  ;;  %v2514_v21 = vld [vmem:[#allocation11 + $0x5c8] sm:$0xff] }
 0x614   :  { %v12446_v3 = vpop.f32.mrf.mxu1  ;;  %v12448_v57 = vpop.f32.mrf.mxu0 }
 0x615   :  { %13818 = vst [vmem:[#allocation60_spill] sm:$0xff] %v12448_v57  ;;  %v1088_v57 = vadd.f32 %v12292_v23, %v747_v16  ;;  %v1431_v16 = vadd.f32 %v12361_v49, %v1090_v26  ;;  %v1433_v23 = vadd.f32 %v12369_v52, %v1092_v17  ;;  %v1776_v49 = vadd.f32 %v1758_v61, %v1435_v55  ;;  %v2518_v26 = vld [vmem:[#allocation11 + $0x5e8] sm:$0xff]  ;;  %v2389_v17 = vld [vmem:[#allocation11 + $0x1e0] sm:$0xff] }
 0x616   :  { %v12454_v59 = vpop.f32.mrf.mxu1  ;;  %v12456_v63 = vpop.f32.mrf.mxu0  ;;  %v1771_v52 = vadd.f32 %v1750_v53, %v12357_v44  ;;  %v2381_v55 = vld [vmem:[#allocation11 + $0x1a0] sm:$0xff] }
 0x617   :  { %v1429_v6 = vadd.f32 %v12359_v45, %v1088_v57  ;;  %v1772_v0 = vadd.f32 %v1752_v54, %v1431_v16  ;;  %v1774_v45 = vadd.f32 %v12418_v14, %v1433_v23  ;;  %v2103_v46 = vadd.f32 %v12454_v59, %v1762_v19  ;;  %v2382_v16 = vld [vmem:[#allocation11 + $0x1a8] sm:$0xff]  ;;  %v2138_v19 = vld [vmem:[#allocation10 + $0x18] sm:$0xff] }
 0x618   :  { %v1996_v4 = vpop.f32.mrf.mxu1  ;;  %v2085_v8 = vpop.f32.mrf.mxu0  ;;  %v2510_v23 = vld [vmem:[#allocation11 + $0x5a8] sm:$0xff] }
 0x619   :  { %v1770_v42 = vadd.f32 %v12413_v12, %v1429_v6  ;;  %v1767_v12 = vadd.f32 %v12438_v50, %v12347_v35  ;;  %v2106_v53 = vadd.f32 %v1996_v4, %v12406_v5  ;;  %v2105_v35 = vadd.f32 %v12456_v63, %v1764_v60  ;;  %v2137_v6 = vld [vmem:[#allocation10 + $0x10] sm:$0xff]  ;;  %v2361_v60 = vld [vmem:[#allocation11 + $0x100] sm:$0xff] }
 0x61a   :  { %v1998_v38 = vpop.f32.mrf.mxu1  ;;  %v2087_v40 = vpop.f32.mrf.mxu0 }
 0x61b   :  { %v2107_v56 = vadd.f32 %v1998_v38, %v1766_v9  ;;  %v2109_v61 = vadd.f32 %v2087_v40, %v1768_v1  ;;  %v2108_v37 = vadd.f32 %v2085_v8, %v1767_v12  ;;  %v2102_v40 = vadd.f32 %v12446_v3, %v12401_v27  ;;  %v2378_v9 = vld [vmem:[#allocation11 + $0x188] sm:$0xff]  ;;  %v2489_v12 = vld [vmem:[#allocation11 + $0x500] sm:$0xff] }
 0x61c   :  { %v2002_v18 = vpop.f32.mrf.mxu1  ;;  %v2091_v13 = vpop.f32.mrf.mxu0  ;;  %v13819_v5 = vld [vmem:[#allocation60_spill] sm:$0xff]  ;;  %v12526_v38 = vmax.f32 %v2106_v53, 0.0  ;;  %v12532_v3 = vmax.f32 %v2103_v46, 0.0  ;;  %v12534_v20 = vmax.f32 %v2105_v35, 0.0  ;;  %v2353_v46 = vld [vmem:[#allocation11 + $0xc0] sm:$0xff] }
 0x61d   :  { %v2110_v14 = vadd.f32 %v2002_v18, %v12411_v10  ;;  %v2112_v54 = vadd.f32 %v2091_v13, %v1771_v52  ;;  %v2104_v10 = vadd.f32 %v13819_v5, %v1763_v25  ;;  %v12520_v59 = vmax.f32 %v2107_v56, 0.0  ;;  %v2390_v13 = vld [vmem:[#allocation11 + $0x1e8] sm:$0xff]  ;;  %v2509_v25 = vld [vmem:[#allocation11 + $0x5a0] sm:$0xff] }
 0x61e   :  { %v2004_v58 = vpop.f32.mrf.mxu1  ;;  %v2093_v48 = vpop.f32.mrf.mxu0  ;;  %v12522_v63 = vmax.f32 %v2109_v61, 0.0  ;;  %v12528_v27 = vmax.f32 %v2108_v37, 0.0  ;;  %v12538_v22 = vmax.f32 %v2102_v40, 0.0  ;;  %v2370_v1 = vld [vmem:[#allocation11 + $0x148] sm:$0xff]  ;;  %v2357_v56 = vld [vmem:[#allocation11 + $0xe0] sm:$0xff] }
 0x61f   :  { %v2111_v57 = vadd.f32 %v2004_v58, %v1770_v42  ;;  %v2113_v7 = vadd.f32 %v2093_v48, %v1772_v0  ;;  %v12514_v4 = vmax.f32 %v2110_v14, 0.0  ;;  %v12516_v8 = vmax.f32 %v2112_v54, 0.0  ;;  %v2385_v58 = vld [vmem:[#allocation11 + $0x1c0] sm:$0xff]  ;;  %v2374_v42 = vld [vmem:[#allocation11 + $0x168] sm:$0xff] }
 0x620   :  { %v2008_v30 = vpop.f32.mrf.mxu1  ;;  %v2097_v36 = vpop.f32.mrf.mxu0  ;;  %v12540_v11 = vmax.f32 %v2104_v10, 0.0  ;;  %v2513_v48 = vld [vmem:[#allocation11 + $0x5c0] sm:$0xff]  ;;  %v2502_v0 = vld [vmem:[#allocation11 + $0x568] sm:$0xff] }
 0x621   :  { %v2114_v62 = vadd.f32 %v2008_v30, %v12416_v33  ;;  %v2116_v15 = vadd.f32 %v2097_v36, %v1775_v29  ;;  %v12505_v50 = vmax.f32 %v2111_v57, 0.0  ;;  %v12507_v18 = vmax.f32 %v2113_v7, 0.0  ;;  %v2506_v29 = vld [vmem:[#allocation11 + $0x588] sm:$0xff]  ;;  %v2377_v30 = vld [vmem:[#allocation11 + $0x180] sm:$0xff] }
 0x622   :  { %v2010_v47 = vpop.f32.mrf.mxu1  ;;  %v2099_v2 = vpop.f32.mrf.mxu0  ;;  %v2505_v36 = vld [vmem:[#allocation11 + $0x580] sm:$0xff]  ;;  %v2498_v52 = vld [vmem:[#allocation11 + $0x548] sm:$0xff] }
 0x623   :  { %v2115_v31 = vadd.f32 %v2010_v47, %v1774_v45  ;;  %v2117_v51 = vadd.f32 %v2099_v2, %v1776_v49  ;;  %v12499_v43 = vmax.f32 %v2114_v62, 0.0  ;;  %v12501_v34 = vmax.f32 %v2116_v15, 0.0  ;;  %v2373_v45 = vld [vmem:[#allocation11 + $0x160] sm:$0xff]  ;;  %v2366_v47 = vld [vmem:[#allocation11 + $0x128] sm:$0xff] }
 0x624   :  { %v2501_v49 = vld [vmem:[#allocation11 + $0x560] sm:$0xff]  ;;  %v2494_v2 = vld [vmem:[#allocation11 + $0x528] sm:$0xff] }
 0x625   :  { %v12494_v44 = vmax.f32 %v2115_v31, 0.0  ;;  %v12496_v33 = vmax.f32 %v2117_v51, 0.0  ;;  %v2369_v62 = vld [vmem:[#allocation11 + $0x140] sm:$0xff]  ;;  %v2362_v31 = vld [vmem:[#allocation11 + $0x108] sm:$0xff] }
 0x626   :  { %v2497_v15 = vld [vmem:[#allocation11 + $0x540] sm:$0xff]  ;;  %v2490_v51 = vld [vmem:[#allocation11 + $0x508] sm:$0xff] }
 0x627   :  { %2175 = vmatprep.subr.mxu1 %v12494_v44  ;;  %2264 = vmatprep.subr.mxu0 %v12496_v33  ;;  %v2365_v57 = vld [vmem:[#allocation11 + $0x120] sm:$0xff]  ;;  %v2358_v14 = vld [vmem:[#allocation11 + $0xe8] sm:$0xff] }
 0x628   :  { %2176 = vmatpush1.msra.mxu1 %v12499_v43  ;;  %2265 = vmatpush1.msra.mxu0 %v12501_v34  ;;  %v2493_v7 = vld [vmem:[#allocation11 + $0x520] sm:$0xff]  ;;  %v2486_v54 = vld [vmem:[#allocation11 + $0x4e8] sm:$0xff] }
 0x629   :  { %2177 = vmatprep.subr.mxu1 %v12505_v50  ;;  %2266 = vmatprep.subr.mxu0 %v12507_v18  ;;  %v2485_v61 = vld [vmem:[#allocation11 + $0x4e0] sm:$0xff]  ;;  %v2354_v53 = vld [vmem:[#allocation11 + $0xc8] sm:$0xff] }
 0x62a   :  { %2178 = vmatpush1.msra.mxu1 %v12514_v4  ;;  %2267 = vmatpush1.msra.mxu0 %v12516_v8  ;;  %v2482_v37 = vld [vmem:[#allocation11 + $0x4c8] sm:$0xff]  ;;  %v2481_v35 = vld [vmem:[#allocation11 + $0x4c0] sm:$0xff] }
 0x62b   :  { %2179 = vmatprep.subr.mxu1 %v12520_v59  ;;  %2268 = vmatprep.subr.mxu0 %v12522_v63  ;;  %v2350_v40 = vld [vmem:[#allocation11 + $0xa8] sm:$0xff]  ;;  %v2349_v10 = vld [vmem:[#allocation11 + $0xa0] sm:$0xff] }
 0x62c   :  { %2180 = vmatpush1.msra.mxu1 %v12526_v38  ;;  %2269 = vmatpush1.msra.mxu0 %v12528_v27  ;;  %v2478_v5 = vld [vmem:[#allocation11 + $0x4a8] sm:$0xff] }
 0x62d   :  { %2181 = vmatprep.subr.mxu1 %v12532_v3  ;;  %2270 = vmatprep.subr.mxu0 %v12534_v20 }
 0x62e   :  { %2182 = vmatpush1.msra.mxu1 %v12538_v22  ;;  %2271 = vmatpush1.msra.mxu0 %v12540_v11 }
 0x62f   :  { %10688 = vmatmul.mubr.msk.f32.vlgmr.msra.gmra.mxu1 %vm396_vm0, %v2135_v24  ;;  %10692 = vmatmul.mubr.msk.f32.vlgmr.msra.gmra.mxu0 %vm396_vm0, %v2135_v24  ;;  %v2477_v24 = vld [vmem:[#allocation11 + $0x4a0] sm:$0xff] }
 0x630   :  { %2221 = vmatprep.mubr.f32.mxu1 %v13820_v32  ;;  %2310 = vmatprep.mubr.f32.mxu0 %v13820_v32 }
 0x631   :  { %2585 = vmatprep.subr.mxu1 %v2390_v13  ;;  %2674 = vmatprep.subr.mxu0 %v2518_v26  ;;  %v2346_v13 = vld [vmem:[#allocation11 + $0x88] sm:$0xff] }
 0x632   :  { %2586 = vmatpush1.msra.mxu1 %v2389_v17  ;;  %2675 = vmatpush1.msra.mxu0 %v2517_v28  ;;  %v2474_v26 = vld [vmem:[#allocation11 + $0x488] sm:$0xff]  ;;  %v2345_v17 = vld [vmem:[#allocation11 + $0x80] sm:$0xff] }
 0x633   :  { %10689 = vmatmul.mubr.msk.f32.gmra.mxu1 %vm396_vm0, %v2136_v39  ;;  %10693 = vmatmul.mubr.msk.f32.gmra.mxu0 %vm396_vm0, %v2136_v39  ;;  %v2473_v28 = vld [vmem:[#allocation11 + $0x480] sm:$0xff]  ;;  %v2342_v39 = vld [vmem:[#allocation11 + $0x68] sm:$0xff] }
 0x634   :  { %2227 = vmatprep.mubr.f32.mxu1 %v13820_v32  ;;  %2316 = vmatprep.mubr.f32.mxu0 %v13820_v32 }
 0x635   :  { %2587 = vmatprep.subr.mxu1 %v2386_v41  ;;  %2676 = vmatprep.subr.mxu0 %v2514_v21  ;;  %v2470_v41 = vld [vmem:[#allocation11 + $0x468] sm:$0xff]  ;;  %v2341_v21 = vld [vmem:[#allocation11 + $0x60] sm:$0xff] }
 0x636   :  { %2588 = vmatpush1.msra.mxu1 %v2385_v58  ;;  %2677 = vmatpush1.msra.mxu0 %v2513_v48  ;;  %v2469_v58 = vld [vmem:[#allocation11 + $0x460] sm:$0xff]  ;;  %v2338_v48 = vld [vmem:[#allocation11 + $0x48] sm:$0xff] }
 0x637   :  { %10690 = vmatmul.mubr.msk.f32.gmra.mxu1 %vm396_vm0, %v2137_v6  ;;  %10694 = vmatmul.mubr.msk.f32.gmra.mxu0 %vm396_vm0, %v2137_v6  ;;  %v2466_v6 = vld [vmem:[#allocation11 + $0x448] sm:$0xff] }
 0x638   :  { %2233 = vmatprep.mubr.f32.mxu1 %v13820_v32  ;;  %2322 = vmatprep.mubr.f32.mxu0 %v13820_v32 }
 0x639   :  { %2589 = vmatprep.subr.mxu1 %v2382_v16  ;;  %2678 = vmatprep.subr.mxu0 %v2510_v23  ;;  %v2337_v16 = vld [vmem:[#allocation11 + $0x40] sm:$0xff] }
 0x63a   :  { %2590 = vmatpush1.msra.mxu1 %v2381_v55  ;;  %2679 = vmatpush1.msra.mxu0 %v2509_v25  ;;  %v2465_v23 = vld [vmem:[#allocation11 + $0x440] sm:$0xff]  ;;  %v2334_v55 = vld [vmem:[#allocation11 + $0x28] sm:$0xff] }
 0x63b   :  { %10691 = vmatmul.mubr.msk.f32.gmra.mxu1 %vm396_vm0, %v2138_v19  ;;  %10695 = vmatmul.mubr.msk.f32.gmra.mxu0 %vm396_vm0, %v2138_v19  ;;  %v2462_v25 = vld [vmem:[#allocation11 + $0x428] sm:$0xff]  ;;  %v2333_v19 = vld [vmem:[#allocation11 + $0x20] sm:$0xff] }
 0x63c   :  { %2591 = vmatprep.subr.mxu1 %v2378_v9  ;;  %2680 = vmatprep.subr.mxu0 %v2506_v29  ;;  %v2461_v9 = vld [vmem:[#allocation11 + $0x420] sm:$0xff]  ;;  %v2330_v29 = vld [vmem:[#allocation11 + $0x8] sm:$0xff] }
 0x63d   :  { %2592 = vmatpush1.msra.mxu1 %v2377_v30  ;;  %2681 = vmatpush1.msra.mxu0 %v2505_v36  ;;  %v2458_v30 = vld [vmem:[#allocation11 + $0x408] sm:$0xff]  ;;  %v2329_v36 = vld [vmem:[#allocation11] sm:$0xff] }
 0x63e   :  { %2593 = vmatprep.subr.mxu1 %v2374_v42  ;;  %2682 = vmatprep.subr.mxu0 %v2502_v0  ;;  %v2457_v42 = vld [vmem:[#allocation11 + $0x400] sm:$0xff]  ;;  %v2454_v0 = vld [vmem:[#allocation11 + $0x3e8] sm:$0xff] }
 0x63f   :  { %2594 = vmatpush1.msra.mxu1 %v2373_v45  ;;  %2683 = vmatpush1.msra.mxu0 %v2501_v49  ;;  %v2582_v45 = vld [vmem:[#allocation11 + $0x7e8] sm:$0xff]  ;;  %v2453_v49 = vld [vmem:[#allocation11 + $0x3e0] sm:$0xff] }
 0x640   :  { %2595 = vmatprep.subr.mxu1 %v2370_v1  ;;  %2684 = vmatprep.subr.mxu0 %v2498_v52  ;;  %v2581_v1 = vld [vmem:[#allocation11 + $0x7e0] sm:$0xff]  ;;  %v2450_v52 = vld [vmem:[#allocation11 + $0x3c8] sm:$0xff] }
 0x641   :  { %2596 = vmatpush1.msra.mxu1 %v2369_v62  ;;  %2685 = vmatpush1.msra.mxu0 %v2497_v15  ;;  %v2578_v62 = vld [vmem:[#allocation11 + $0x7c8] sm:$0xff]  ;;  %v2449_v15 = vld [vmem:[#allocation11 + $0x3c0] sm:$0xff] }
 0x642   :  { %2597 = vmatprep.subr.mxu1 %v2366_v47  ;;  %2686 = vmatprep.subr.mxu0 %v2494_v2  ;;  %v2577_v47 = vld [vmem:[#allocation11 + $0x7c0] sm:$0xff]  ;;  %v2446_v2 = vld [vmem:[#allocation11 + $0x3a8] sm:$0xff] }
 0x643   :  { %2598 = vmatpush1.msra.mxu1 %v2365_v57  ;;  %2687 = vmatpush1.msra.mxu0 %v2493_v7  ;;  %v2574_v57 = vld [vmem:[#allocation11 + $0x7a8] sm:$0xff]  ;;  %v2445_v7 = vld [vmem:[#allocation11 + $0x3a0] sm:$0xff] }
 0x644   :  { %2599 = vmatprep.subr.mxu1 %v2362_v31  ;;  %2688 = vmatprep.subr.mxu0 %v2490_v51  ;;  %v2573_v31 = vld [vmem:[#allocation11 + $0x7a0] sm:$0xff]  ;;  %v2442_v51 = vld [vmem:[#allocation11 + $0x388] sm:$0xff] }
 0x645   :  { %2600 = vmatpush1.msra.mxu1 %v2361_v60  ;;  %2689 = vmatpush1.msra.mxu0 %v2489_v12  ;;  %v2570_v60 = vld [vmem:[#allocation11 + $0x788] sm:$0xff]  ;;  %v2441_v12 = vld [vmem:[#allocation11 + $0x380] sm:$0xff] }
 0x646   :  { %2601 = vmatprep.subr.mxu1 %v2358_v14  ;;  %2690 = vmatprep.subr.mxu0 %v2486_v54  ;;  %v2569_v14 = vld [vmem:[#allocation11 + $0x780] sm:$0xff]  ;;  %v2438_v54 = vld [vmem:[#allocation11 + $0x368] sm:$0xff] }
 0x647   :  { %2602 = vmatpush1.msra.mxu1 %v2357_v56  ;;  %2691 = vmatpush1.msra.mxu0 %v2485_v61  ;;  %v2566_v56 = vld [vmem:[#allocation11 + $0x768] sm:$0xff]  ;;  %v2437_v61 = vld [vmem:[#allocation11 + $0x360] sm:$0xff] }
 0x648   :  { %2603 = vmatprep.subr.mxu1 %v2354_v53  ;;  %2692 = vmatprep.subr.mxu0 %v2482_v37  ;;  %v2565_v53 = vld [vmem:[#allocation11 + $0x760] sm:$0xff]  ;;  %v2434_v37 = vld [vmem:[#allocation11 + $0x348] sm:$0xff] }
 0x649   :  { %2604 = vmatpush1.msra.mxu1 %v2353_v46  ;;  %2693 = vmatpush1.msra.mxu0 %v2481_v35  ;;  %v2562_v46 = vld [vmem:[#allocation11 + $0x748] sm:$0xff]  ;;  %v2433_v35 = vld [vmem:[#allocation11 + $0x340] sm:$0xff] }
 0x64a   :  { %2605 = vmatprep.subr.mxu1 %v2350_v40  ;;  %2694 = vmatprep.subr.mxu0 %v2478_v5  ;;  %v2561_v40 = vld [vmem:[#allocation11 + $0x740] sm:$0xff]  ;;  %v2430_v5 = vld [vmem:[#allocation11 + $0x328] sm:$0xff] }
 0x64b   :  { %2606 = vmatpush1.msra.mxu1 %v2349_v10  ;;  %2695 = vmatpush1.msra.mxu0 %v2477_v24  ;;  %v2558_v10 = vld [vmem:[#allocation11 + $0x728] sm:$0xff]  ;;  %v2429_v24 = vld [vmem:[#allocation11 + $0x320] sm:$0xff] }
 0x64c   :  { %2607 = vmatprep.subr.mxu1 %v2346_v13  ;;  %2696 = vmatprep.subr.mxu0 %v2474_v26  ;;  %v2557_v13 = vld [vmem:[#allocation11 + $0x720] sm:$0xff]  ;;  %v2426_v26 = vld [vmem:[#allocation11 + $0x308] sm:$0xff] }
 0x64d   :  { %2608 = vmatpush1.msra.mxu1 %v2345_v17  ;;  %2697 = vmatpush1.msra.mxu0 %v2473_v28  ;;  %v2554_v17 = vld [vmem:[#allocation11 + $0x708] sm:$0xff]  ;;  %v2425_v28 = vld [vmem:[#allocation11 + $0x300] sm:$0xff] }
 0x64e   :  { %2609 = vmatprep.subr.mxu1 %v2342_v39  ;;  %2698 = vmatprep.subr.mxu0 %v2470_v41  ;;  %v2553_v39 = vld [vmem:[#allocation11 + $0x700] sm:$0xff]  ;;  %v2422_v41 = vld [vmem:[#allocation11 + $0x2e8] sm:$0xff] }
 0x64f   :  { %2610 = vmatpush1.msra.mxu1 %v2341_v21  ;;  %2699 = vmatpush1.msra.mxu0 %v2469_v58  ;;  %v2550_v21 = vld [vmem:[#allocation11 + $0x6e8] sm:$0xff]  ;;  %v2421_v58 = vld [vmem:[#allocation11 + $0x2e0] sm:$0xff] }
 0x650   :  { %2611 = vmatprep.subr.mxu1 %v2338_v48  ;;  %2700 = vmatprep.subr.mxu0 %v2466_v6  ;;  %v2549_v48 = vld [vmem:[#allocation11 + $0x6e0] sm:$0xff]  ;;  %v2418_v6 = vld [vmem:[#allocation11 + $0x2c8] sm:$0xff] }
 0x651   :  { %2612 = vmatpush1.msra.mxu1 %v2337_v16  ;;  %2701 = vmatpush1.msra.mxu0 %v2465_v23  ;;  %v2546_v16 = vld [vmem:[#allocation11 + $0x6c8] sm:$0xff]  ;;  %v2417_v23 = vld [vmem:[#allocation11 + $0x2c0] sm:$0xff] }
 0x652   :  { %2613 = vmatprep.subr.mxu1 %v2334_v55  ;;  %2702 = vmatprep.subr.mxu0 %v2462_v25  ;;  %v2545_v55 = vld [vmem:[#allocation11 + $0x6c0] sm:$0xff]  ;;  %v2414_v25 = vld [vmem:[#allocation11 + $0x2a8] sm:$0xff] }
 0x653   :  { %2614 = vmatpush1.msra.mxu1 %v2333_v19  ;;  %2703 = vmatpush1.msra.mxu0 %v2461_v9  ;;  %v2542_v19 = vld [vmem:[#allocation11 + $0x6a8] sm:$0xff]  ;;  %v2413_v9 = vld [vmem:[#allocation11 + $0x2a0] sm:$0xff] }
 0x654   :  { %2615 = vmatprep.subr.mxu1 %v2330_v29  ;;  %2704 = vmatprep.subr.mxu0 %v2458_v30  ;;  %v2541_v29 = vld [vmem:[#allocation11 + $0x6a0] sm:$0xff]  ;;  %v2410_v30 = vld [vmem:[#allocation11 + $0x288] sm:$0xff] }
 0x655   :  { %2616 = vmatpush1.msra.mxu1 %v2329_v36  ;;  %2705 = vmatpush1.msra.mxu0 %v2457_v42  ;;  %v2538_v36 = vld [vmem:[#allocation11 + $0x688] sm:$0xff]  ;;  %v2409_v42 = vld [vmem:[#allocation11 + $0x280] sm:$0xff] }
 0x656   :  { %2617 = vmatprep.subr.mxu1 %v2454_v0  ;;  %2706 = vmatprep.subr.mxu0 %v2582_v45  ;;  %v2537_v0 = vld [vmem:[#allocation11 + $0x680] sm:$0xff]  ;;  %v2406_v45 = vld [vmem:[#allocation11 + $0x268] sm:$0xff] }
 0x657   :  { %2618 = vmatpush2.msra.mxu1 %v2453_v49  ;;  %2707 = vmatpush2.msra.mxu0 %v2581_v1  ;;  %v2534_v49 = vld [vmem:[#allocation11 + $0x668] sm:$0xff]  ;;  %v2405_v1 = vld [vmem:[#allocation11 + $0x260] sm:$0xff] }
 0x658   :  { %2619 = vmatprep.subr.mxu1 %v2450_v52  ;;  %2708 = vmatprep.subr.mxu0 %v2578_v62  ;;  %v2533_v52 = vld [vmem:[#allocation11 + $0x660] sm:$0xff]  ;;  %v2402_v62 = vld [vmem:[#allocation11 + $0x248] sm:$0xff] }
 0x659   :  { %2620 = vmatpush2.msra.mxu1 %v2449_v15  ;;  %2709 = vmatpush2.msra.mxu0 %v2577_v47  ;;  %v2530_v15 = vld [vmem:[#allocation11 + $0x648] sm:$0xff]  ;;  %v2401_v47 = vld [vmem:[#allocation11 + $0x240] sm:$0xff] }
 0x65a   :  { %2621 = vmatprep.subr.mxu1 %v2446_v2  ;;  %2710 = vmatprep.subr.mxu0 %v2574_v57  ;;  %v2529_v2 = vld [vmem:[#allocation11 + $0x640] sm:$0xff]  ;;  %v2398_v57 = vld [vmem:[#allocation11 + $0x228] sm:$0xff] }
 0x65b   :  { %2622 = vmatpush2.msra.mxu1 %v2445_v7  ;;  %2711 = vmatpush2.msra.mxu0 %v2573_v31  ;;  %v2526_v7 = vld [vmem:[#allocation11 + $0x628] sm:$0xff]  ;;  %v2397_v31 = vld [vmem:[#allocation11 + $0x220] sm:$0xff] }
 0x65c   :  { %2623 = vmatprep.subr.mxu1 %v2442_v51  ;;  %2712 = vmatprep.subr.mxu0 %v2570_v60  ;;  %v2525_v51 = vld [vmem:[#allocation11 + $0x620] sm:$0xff]  ;;  %v2394_v60 = vld [vmem:[#allocation11 + $0x208] sm:$0xff] }
 0x65d   :  { %2624 = vmatpush2.msra.mxu1 %v2441_v12  ;;  %2713 = vmatpush2.msra.mxu0 %v2569_v14  ;;  %v2522_v12 = vld [vmem:[#allocation11 + $0x608] sm:$0xff]  ;;  %v2393_v14 = vld [vmem:[#allocation11 + $0x200] sm:$0xff] }
 0x65e   :  { %2625 = vmatprep.subr.mxu1 %v2438_v54  ;;  %2714 = vmatprep.subr.mxu0 %v2566_v56  ;;  %v2521_v54 = vld [vmem:[#allocation11 + $0x600] sm:$0xff]  ;;  %v2392_v56 = vld [vmem:[#allocation11 + $0x1f8] sm:$0xff] }
 0x65f   :  { %2626 = vmatpush2.msra.mxu1 %v2437_v61  ;;  %2715 = vmatpush2.msra.mxu0 %v2565_v53  ;;  %v2520_v61 = vld [vmem:[#allocation11 + $0x5f8] sm:$0xff] }
 0x660   :  { %2627 = vmatprep.subr.mxu1 %v2434_v37  ;;  %2716 = vmatprep.subr.mxu0 %v2562_v46 }
 0x661   :  { %2628 = vmatpush2.msra.mxu1 %v2433_v35  ;;  %2717 = vmatpush2.msra.mxu0 %v2561_v40  ;;  %v2391_v40 = vld [vmem:[#allocation11 + $0x1f0] sm:$0xff] }
 0x662   :  { %2629 = vmatprep.subr.mxu1 %v2430_v5  ;;  %2718 = vmatprep.subr.mxu0 %v2558_v10  ;;  %v2519_v5 = vld [vmem:[#allocation11 + $0x5f0] sm:$0xff]  ;;  %v2388_v10 = vld [vmem:[#allocation11 + $0x1d8] sm:$0xff] }
 0x663   :  { %2630 = vmatpush2.msra.mxu1 %v2429_v24  ;;  %2719 = vmatpush2.msra.mxu0 %v2557_v13  ;;  %v2516_v24 = vld [vmem:[#allocation11 + $0x5d8] sm:$0xff] }
 0x664   :  { %2631 = vmatprep.subr.mxu1 %v2426_v26  ;;  %2720 = vmatprep.subr.mxu0 %v2554_v17  ;;  %v2387_v17 = vld [vmem:[#allocation11 + $0x1d0] sm:$0xff] }
 0x665   :  { %2632 = vmatpush2.msra.mxu1 %v2425_v28  ;;  %2721 = vmatpush2.msra.mxu0 %v2553_v39  ;;  %v2515_v28 = vld [vmem:[#allocation11 + $0x5d0] sm:$0xff] }
 0x666   :  { %2633 = vmatprep.subr.mxu1 %v2422_v41  ;;  %2722 = vmatprep.subr.mxu0 %v2550_v21  ;;  %v2384_v21 = vld [vmem:[#allocation11 + $0x1b8] sm:$0xff] }
 0x667   :  { %2634 = vmatpush2.msra.mxu1 %v2421_v58  ;;  %2723 = vmatpush2.msra.mxu0 %v2549_v48  ;;  %v2512_v58 = vld [vmem:[#allocation11 + $0x5b8] sm:$0xff] }
 0x668   :  { %2635 = vmatprep.subr.mxu1 %v2418_v6  ;;  %2724 = vmatprep.subr.mxu0 %v2546_v16  ;;  %v2383_v16 = vld [vmem:[#allocation11 + $0x1b0] sm:$0xff] }
 0x669   :  { %2636 = vmatpush2.msra.mxu1 %v2417_v23  ;;  %2725 = vmatpush2.msra.mxu0 %v2545_v55  ;;  %v2511_v23 = vld [vmem:[#allocation11 + $0x5b0] sm:$0xff]  ;;  %v2380_v55 = vld [vmem:[#allocation11 + $0x198] sm:$0xff] }
 0x66a   :  { %2637 = vmatprep.subr.mxu1 %v2414_v25  ;;  %2726 = vmatprep.subr.mxu0 %v2542_v19  ;;  %v2508_v25 = vld [vmem:[#allocation11 + $0x598] sm:$0xff] }
 0x66b   :  { %2638 = vmatpush2.msra.mxu1 %v2413_v9  ;;  %2727 = vmatpush2.msra.mxu0 %v2541_v29  ;;  %v2379_v29 = vld [vmem:[#allocation11 + $0x190] sm:$0xff] }
 0x66c   :  { %2639 = vmatprep.subr.mxu1 %v2410_v30  ;;  %2728 = vmatprep.subr.mxu0 %v2538_v36  ;;  %v2507_v30 = vld [vmem:[#allocation11 + $0x590] sm:$0xff]  ;;  %v2376_v36 = vld [vmem:[#allocation11 + $0x178] sm:$0xff] }
 0x66d   :  { %2640 = vmatpush2.msra.mxu1 %v2409_v42  ;;  %2729 = vmatpush2.msra.mxu0 %v2537_v0  ;;  %v2504_v42 = vld [vmem:[#allocation11 + $0x578] sm:$0xff] }
 0x66e   :  { %2641 = vmatprep.subr.mxu1 %v2406_v45  ;;  %2730 = vmatprep.subr.mxu0 %v2534_v49  ;;  %v2375_v49 = vld [vmem:[#allocation11 + $0x170] sm:$0xff] }
 0x66f   :  { %2642 = vmatpush2.msra.mxu1 %v2405_v1  ;;  %2731 = vmatpush2.msra.mxu0 %v2533_v52  ;;  %v2503_v1 = vld [vmem:[#allocation11 + $0x570] sm:$0xff]  ;;  %v2372_v52 = vld [vmem:[#allocation11 + $0x158] sm:$0xff] }
 0x670   :  { %2643 = vmatprep.subr.mxu1 %v2402_v62  ;;  %2732 = vmatprep.subr.mxu0 %v2530_v15  ;;  %v2500_v62 = vld [vmem:[#allocation11 + $0x558] sm:$0xff]  ;;  %v2371_v15 = vld [vmem:[#allocation11 + $0x150] sm:$0xff] }
 0x671   :  { %2644 = vmatpush2.msra.mxu1 %v2401_v47  ;;  %2733 = vmatpush2.msra.mxu0 %v2529_v2  ;;  %v2499_v47 = vld [vmem:[#allocation11 + $0x550] sm:$0xff] }
 0x672   :  { %2645 = vmatprep.subr.mxu1 %v2398_v57  ;;  %2734 = vmatprep.subr.mxu0 %v2526_v7  ;;  %v2368_v7 = vld [vmem:[#allocation11 + $0x138] sm:$0xff] }
 0x673   :  { %2646 = vmatpush2.msra.mxu1 %v2397_v31  ;;  %2735 = vmatpush2.msra.mxu0 %v2525_v51  ;;  %v2496_v31 = vld [vmem:[#allocation11 + $0x538] sm:$0xff]  ;;  %v2367_v51 = vld [vmem:[#allocation11 + $0x130] sm:$0xff] }
 0x674   :  { %2647 = vmatprep.subr.mxu1 %v2394_v60  ;;  %2736 = vmatprep.subr.mxu0 %v2522_v12  ;;  %v2495_v60 = vld [vmem:[#allocation11 + $0x530] sm:$0xff]  ;;  %v2364_v12 = vld [vmem:[#allocation11 + $0x118] sm:$0xff] }
 0x675   :  { %2648 = vmatpush2.msra.mxu1 %v2393_v14  ;;  %2737 = vmatpush2.msra.mxu0 %v2521_v54  ;;  %v2492_v14 = vld [vmem:[#allocation11 + $0x518] sm:$0xff]  ;;  %v2363_v54 = vld [vmem:[#allocation11 + $0x110] sm:$0xff] }
 0x676   :  { %2763 = vmatprep.subr.mxu1 %v2392_v56  ;;  %2852 = vmatprep.subr.mxu0 %v2520_v61  ;;  %v2491_v56 = vld [vmem:[#allocation11 + $0x510] sm:$0xff]  ;;  %v2360_v61 = vld [vmem:[#allocation11 + $0xf8] sm:$0xff] }
 0x6ef   :  { %v12562_v53 = vpop.f32.mrf.mxu1  ;;  %v12564_v37 = vpop.f32.mrf.mxu0 }
 0x6f1   :  { %v12566_v46 = vpop.f32.mrf.mxu1  ;;  %v12568_v35 = vpop.f32.mrf.mxu0 }
 0x6f2   :  { %2649 = vmatprep.mubr.f32.mxu1 %v12566_v46  ;;  %2738 = vmatprep.mubr.f32.mxu0 %v12568_v35 }
 0x6f3   :  { %v12572_v13 = vpop.f32.mrf.mxu1  ;;  %v12574_v26 = vpop.f32.mrf.mxu0  ;;  %2650 = vmatmul.mubr.f32.vlgmr.msra.gmra.mxu1 %v12562_v53  ;;  %2739 = vmatmul.mubr.f32.vlgmr.msra.gmra.mxu0 %v12564_v37 }
 0x6f4   :  { %2764 = vmatpush1.msra.mxu1 %v2391_v40  ;;  %2853 = vmatpush1.msra.mxu0 %v2519_v5  ;;  %v2488_v40 = vld [vmem:[#allocation11 + $0x4f8] sm:$0xff]  ;;  %v2359_v5 = vld [vmem:[#allocation11 + $0xf0] sm:$0xff] }
 0x6f5   :  { %2765 = vmatprep.subr.mxu1 %v2388_v10  ;;  %2854 = vmatprep.subr.mxu0 %v2516_v24  ;;  %v12578_v39 = vpop.f32.mrf.mxu1  ;;  %v12580_v41 = vpop.f32.mrf.mxu0  ;;  %v2487_v10 = vld [vmem:[#allocation11 + $0x4f0] sm:$0xff]  ;;  %v2356_v24 = vld [vmem:[#allocation11 + $0xd8] sm:$0xff] }
 0x6f6   :  { %2766 = vmatpush1.msra.mxu1 %v2387_v17  ;;  %2855 = vmatpush1.msra.mxu0 %v2515_v28  ;;  %v2484_v17 = vld [vmem:[#allocation11 + $0x4d8] sm:$0xff]  ;;  %v2355_v28 = vld [vmem:[#allocation11 + $0xd0] sm:$0xff] }
 0x6f7   :  { %2655 = vmatprep.mubr.f32.mxu1 %v12578_v39  ;;  %2744 = vmatprep.mubr.f32.mxu0 %v12580_v41  ;;  %v12584_v48 = vpop.f32.mrf.mxu1  ;;  %v12586_v6 = vpop.f32.mrf.mxu0 }
 0x6f8   :  { %2767 = vmatprep.subr.mxu1 %v2384_v21  ;;  %2856 = vmatprep.subr.mxu0 %v2512_v58  ;;  %v2483_v21 = vld [vmem:[#allocation11 + $0x4d0] sm:$0xff]  ;;  %v2352_v58 = vld [vmem:[#allocation11 + $0xb8] sm:$0xff] }
 0x6f9   :  { %2656 = vmatmul.mubr.f32.gmra.mxu1 %v12572_v13  ;;  %2745 = vmatmul.mubr.f32.gmra.mxu0 %v12574_v26  ;;  %v12590_v19 = vpop.f32.mrf.mxu1  ;;  %v12592_v9 = vpop.f32.mrf.mxu0 }
 0x6fa   :  { %2768 = vmatpush1.msra.mxu1 %v2383_v16  ;;  %2857 = vmatpush1.msra.mxu0 %v2511_v23  ;;  %v2480_v16 = vld [vmem:[#allocation11 + $0x4b8] sm:$0xff]  ;;  %v2479_v23 = vld [vmem:[#allocation11 + $0x4b0] sm:$0xff] }
 0x6fb   :  { %2769 = vmatprep.subr.mxu1 %v2380_v55  ;;  %2858 = vmatprep.subr.mxu0 %v2508_v25  ;;  %v12594_v0 = vpop.f32.mrf.mxu1  ;;  %v12596_v45 = vpop.f32.mrf.mxu0  ;;  %v2476_v55 = vld [vmem:[#allocation11 + $0x498] sm:$0xff]  ;;  %v2347_v25 = vld [vmem:[#allocation11 + $0x90] sm:$0xff] }
 0x6fc   :  { %2770 = vmatpush1.msra.mxu1 %v2379_v29  ;;  %2859 = vmatpush1.msra.mxu0 %v2507_v30  ;;  %v2475_v29 = vld [vmem:[#allocation11 + $0x490] sm:$0xff]  ;;  %v2344_v30 = vld [vmem:[#allocation11 + $0x78] sm:$0xff] }
 0x6fd   :  { %2661 = vmatprep.mubr.f32.mxu1 %v12590_v19  ;;  %2750 = vmatprep.mubr.f32.mxu0 %v12592_v9  ;;  %v12602_v2 = vpop.f32.mrf.mxu1  ;;  %v12604_v57 = vpop.f32.mrf.mxu0 }
 0x6fe   :  { %2771 = vmatprep.subr.mxu1 %v2376_v36  ;;  %2860 = vmatprep.subr.mxu0 %v2504_v42  ;;  %v2472_v36 = vld [vmem:[#allocation11 + $0x478] sm:$0xff]  ;;  %v2343_v42 = vld [vmem:[#allocation11 + $0x70] sm:$0xff] }
 0x6ff   :  { %2662 = vmatmul.mubr.f32.gmra.mxu1 %v12584_v48  ;;  %2751 = vmatmul.mubr.f32.gmra.mxu0 %v12586_v6 }
 0x700   :  { %2772 = vmatpush1.msra.mxu1 %v2375_v49  ;;  %2861 = vmatpush1.msra.mxu0 %v2503_v1  ;;  %v2471_v49 = vld [vmem:[#allocation11 + $0x470] sm:$0xff]  ;;  %v2340_v1 = vld [vmem:[#allocation11 + $0x58] sm:$0xff] }
 0x701   :  { %2773 = vmatprep.subr.mxu1 %v2372_v52  ;;  %2862 = vmatprep.subr.mxu0 %v2500_v62  ;;  %v2468_v52 = vld [vmem:[#allocation11 + $0x458] sm:$0xff]  ;;  %v2339_v62 = vld [vmem:[#allocation11 + $0x50] sm:$0xff] }
 0x702   :  { %2774 = vmatpush1.msra.mxu1 %v2371_v15  ;;  %2863 = vmatpush1.msra.mxu0 %v2499_v47  ;;  %v2467_v15 = vld [vmem:[#allocation11 + $0x450] sm:$0xff]  ;;  %v2336_v47 = vld [vmem:[#allocation11 + $0x38] sm:$0xff] }
 0x703   :  { %2667 = vmatprep.mubr.f32.mxu1 %v12602_v2  ;;  %2756 = vmatprep.mubr.f32.mxu0 %v12604_v57 }
 0x704   :  { %2775 = vmatprep.subr.mxu1 %v2368_v7  ;;  %2864 = vmatprep.subr.mxu0 %v2496_v31  ;;  %v2464_v7 = vld [vmem:[#allocation11 + $0x438] sm:$0xff]  ;;  %v2335_v31 = vld [vmem:[#allocation11 + $0x30] sm:$0xff] }
 0x705   :  { %2668 = vmatmul.mubr.f32.gmra.mxu1 %v12594_v0  ;;  %2757 = vmatmul.mubr.f32.gmra.mxu0 %v12596_v45 }
 0x706   :  { %2776 = vmatpush1.msra.mxu1 %v2367_v51  ;;  %2865 = vmatpush1.msra.mxu0 %v2495_v60  ;;  %v2463_v51 = vld [vmem:[#allocation11 + $0x430] sm:$0xff]  ;;  %v2332_v60 = vld [vmem:[#allocation11 + $0x18] sm:$0xff] }
 0x707   :  { %2777 = vmatprep.subr.mxu1 %v2364_v12  ;;  %2827 = vmatprep.mubr.f32.mxu1 %v12566_v46  ;;  %v2351_v46 = vld [vmem:[#allocation11 + $0xb0] sm:$0xff]  ;;  %v2460_v12 = vld [vmem:[#allocation11 + $0x418] sm:$0xff] }
 0x708   :  { %2866 = vmatprep.subr.mxu0 %v2492_v14  ;;  %2916 = vmatprep.mubr.f32.mxu0 %v12568_v35  ;;  %v2348_v35 = vld [vmem:[#allocation11 + $0x98] sm:$0xff]  ;;  %v2331_v14 = vld [vmem:[#allocation11 + $0x10] sm:$0xff] }
 0x709   :  { %2778 = vmatpush1.msra.mxu1 %v2363_v54  ;;  %2867 = vmatpush1.msra.mxu0 %v2491_v56  ;;  %v2459_v54 = vld [vmem:[#allocation11 + $0x410] sm:$0xff]  ;;  %v2456_v56 = vld [vmem:[#allocation11 + $0x3f8] sm:$0xff] }
 0x70a   :  { %2779 = vmatprep.subr.mxu1 %v2360_v61  ;;  %2868 = vmatprep.subr.mxu0 %v2488_v40  ;;  %v2584_v61 = vld [vmem:[#allocation11 + $0x7f8] sm:$0xff]  ;;  %v2455_v40 = vld [vmem:[#allocation11 + $0x3f0] sm:$0xff] }
 0x70b   :  { %2780 = vmatpush1.msra.mxu1 %v2359_v5  ;;  %2869 = vmatpush1.msra.mxu0 %v2487_v10  ;;  %v2583_v5 = vld [vmem:[#allocation11 + $0x7f0] sm:$0xff]  ;;  %v2452_v10 = vld [vmem:[#allocation11 + $0x3d8] sm:$0xff] }
 0x70c   :  { %2781 = vmatprep.subr.mxu1 %v2356_v24  ;;  %2870 = vmatprep.subr.mxu0 %v2484_v17  ;;  %v2580_v24 = vld [vmem:[#allocation11 + $0x7d8] sm:$0xff]  ;;  %v2451_v17 = vld [vmem:[#allocation11 + $0x3d0] sm:$0xff] }
 0x70d   :  { %2782 = vmatpush1.msra.mxu1 %v2355_v28  ;;  %2871 = vmatpush1.msra.mxu0 %v2483_v21  ;;  %v2579_v28 = vld [vmem:[#allocation11 + $0x7d0] sm:$0xff]  ;;  %v2448_v21 = vld [vmem:[#allocation11 + $0x3b8] sm:$0xff] }
 0x70e   :  { %2783 = vmatprep.subr.mxu1 %v2352_v58  ;;  %2872 = vmatprep.subr.mxu0 %v2480_v16  ;;  %v2576_v58 = vld [vmem:[#allocation11 + $0x7b8] sm:$0xff]  ;;  %v2447_v16 = vld [vmem:[#allocation11 + $0x3b0] sm:$0xff] }
 0x70f   :  { %2784 = vmatpush1.msra.mxu1 %v2351_v46  ;;  %2873 = vmatpush1.msra.mxu0 %v2479_v23  ;;  %v2575_v46 = vld [vmem:[#allocation11 + $0x7b0] sm:$0xff]  ;;  %v2444_v23 = vld [vmem:[#allocation11 + $0x398] sm:$0xff] }
 0x710   :  { %2785 = vmatprep.subr.mxu1 %v2348_v35  ;;  %2874 = vmatprep.subr.mxu0 %v2476_v55  ;;  %v2572_v35 = vld [vmem:[#allocation11 + $0x798] sm:$0xff]  ;;  %v2443_v55 = vld [vmem:[#allocation11 + $0x390] sm:$0xff] }
 0x711   :  { %2786 = vmatpush1.msra.mxu1 %v2347_v25  ;;  %2875 = vmatpush1.msra.mxu0 %v2475_v29  ;;  %v2571_v25 = vld [vmem:[#allocation11 + $0x790] sm:$0xff]  ;;  %v2440_v29 = vld [vmem:[#allocation11 + $0x378] sm:$0xff] }
 0x712   :  { %2787 = vmatprep.subr.mxu1 %v2344_v30  ;;  %2876 = vmatprep.subr.mxu0 %v2472_v36  ;;  %v2568_v30 = vld [vmem:[#allocation11 + $0x778] sm:$0xff]  ;;  %v2439_v36 = vld [vmem:[#allocation11 + $0x370] sm:$0xff] }
 0x713   :  { %2788 = vmatpush1.msra.mxu1 %v2343_v42  ;;  %2877 = vmatpush1.msra.mxu0 %v2471_v49  ;;  %v2567_v42 = vld [vmem:[#allocation11 + $0x770] sm:$0xff]  ;;  %v2436_v49 = vld [vmem:[#allocation11 + $0x358] sm:$0xff] }
 0x714   :  { %2789 = vmatprep.subr.mxu1 %v2340_v1  ;;  %2878 = vmatprep.subr.mxu0 %v2468_v52  ;;  %v2564_v1 = vld [vmem:[#allocation11 + $0x758] sm:$0xff]  ;;  %v2435_v52 = vld [vmem:[#allocation11 + $0x350] sm:$0xff] }
 0x715   :  { %2790 = vmatpush1.msra.mxu1 %v2339_v62  ;;  %2879 = vmatpush1.msra.mxu0 %v2467_v15  ;;  %v2563_v62 = vld [vmem:[#allocation11 + $0x750] sm:$0xff]  ;;  %v2432_v15 = vld [vmem:[#allocation11 + $0x338] sm:$0xff] }
 0x716   :  { %2791 = vmatprep.subr.mxu1 %v2336_v47  ;;  %2880 = vmatprep.subr.mxu0 %v2464_v7  ;;  %v2560_v47 = vld [vmem:[#allocation11 + $0x738] sm:$0xff]  ;;  %v2431_v7 = vld [vmem:[#allocation11 + $0x330] sm:$0xff] }
 0x717   :  { %2792 = vmatpush1.msra.mxu1 %v2335_v31  ;;  %2881 = vmatpush1.msra.mxu0 %v2463_v51  ;;  %v2559_v31 = vld [vmem:[#allocation11 + $0x730] sm:$0xff]  ;;  %v2428_v51 = vld [vmem:[#allocation11 + $0x318] sm:$0xff] }
 0x718   :  { %2793 = vmatprep.subr.mxu1 %v2332_v60  ;;  %2882 = vmatprep.subr.mxu0 %v2460_v12  ;;  %v2556_v60 = vld [vmem:[#allocation11 + $0x718] sm:$0xff]  ;;  %v2427_v12 = vld [vmem:[#allocation11 + $0x310] sm:$0xff] }
 0x719   :  { %2794 = vmatpush1.msra.mxu1 %v2331_v14  ;;  %2883 = vmatpush1.msra.mxu0 %v2459_v54  ;;  %v2555_v14 = vld [vmem:[#allocation11 + $0x710] sm:$0xff]  ;;  %v2424_v54 = vld [vmem:[#allocation11 + $0x2f8] sm:$0xff] }
 0x71a   :  { %2795 = vmatprep.subr.mxu1 %v2456_v56  ;;  %2884 = vmatprep.subr.mxu0 %v2584_v61  ;;  %v2552_v56 = vld [vmem:[#allocation11 + $0x6f8] sm:$0xff]  ;;  %v2423_v61 = vld [vmem:[#allocation11 + $0x2f0] sm:$0xff] }
 0x71b   :  { %2796 = vmatpush2.msra.mxu1 %v2455_v40  ;;  %2885 = vmatpush2.msra.mxu0 %v2583_v5  ;;  %v2551_v40 = vld [vmem:[#allocation11 + $0x6f0] sm:$0xff]  ;;  %v2420_v5 = vld [vmem:[#allocation11 + $0x2d8] sm:$0xff] }
 0x71c   :  { %2797 = vmatprep.subr.mxu1 %v2452_v10  ;;  %2886 = vmatprep.subr.mxu0 %v2580_v24  ;;  %v2548_v10 = vld [vmem:[#allocation11 + $0x6d8] sm:$0xff]  ;;  %v2419_v24 = vld [vmem:[#allocation11 + $0x2d0] sm:$0xff] }
 0x71d   :  { %2798 = vmatpush2.msra.mxu1 %v2451_v17  ;;  %2887 = vmatpush2.msra.mxu0 %v2579_v28  ;;  %v2547_v17 = vld [vmem:[#allocation11 + $0x6d0] sm:$0xff]  ;;  %v2416_v28 = vld [vmem:[#allocation11 + $0x2b8] sm:$0xff] }
 0x71e   :  { %2799 = vmatprep.subr.mxu1 %v2448_v21  ;;  %2888 = vmatprep.subr.mxu0 %v2576_v58  ;;  %v2544_v21 = vld [vmem:[#allocation11 + $0x6b8] sm:$0xff]  ;;  %v2415_v58 = vld [vmem:[#allocation11 + $0x2b0] sm:$0xff] }
 0x71f   :  { %2800 = vmatpush2.msra.mxu1 %v2447_v16  ;;  %2889 = vmatpush2.msra.mxu0 %v2575_v46  ;;  %v2543_v16 = vld [vmem:[#allocation11 + $0x6b0] sm:$0xff]  ;;  %v2412_v46 = vld [vmem:[#allocation11 + $0x298] sm:$0xff] }
 0x720   :  { %2801 = vmatprep.subr.mxu1 %v2444_v23  ;;  %2890 = vmatprep.subr.mxu0 %v2572_v35  ;;  %v2540_v23 = vld [vmem:[#allocation11 + $0x698] sm:$0xff]  ;;  %v2411_v35 = vld [vmem:[#allocation11 + $0x290] sm:$0xff] }
 0x721   :  { %2802 = vmatpush2.msra.mxu1 %v2443_v55  ;;  %2891 = vmatpush2.msra.mxu0 %v2571_v25  ;;  %v2539_v55 = vld [vmem:[#allocation11 + $0x690] sm:$0xff]  ;;  %v2408_v25 = vld [vmem:[#allocation11 + $0x278] sm:$0xff] }
 0x722   :  { %2803 = vmatprep.subr.mxu1 %v2440_v29  ;;  %2892 = vmatprep.subr.mxu0 %v2568_v30  ;;  %v2536_v29 = vld [vmem:[#allocation11 + $0x678] sm:$0xff]  ;;  %v2407_v30 = vld [vmem:[#allocation11 + $0x270] sm:$0xff] }
 0x723   :  { %2804 = vmatpush2.msra.mxu1 %v2439_v36  ;;  %2893 = vmatpush2.msra.mxu0 %v2567_v42  ;;  %v2535_v36 = vld [vmem:[#allocation11 + $0x670] sm:$0xff]  ;;  %v2404_v42 = vld [vmem:[#allocation11 + $0x258] sm:$0xff] }
 0x724   :  { %2805 = vmatprep.subr.mxu1 %v2436_v49  ;;  %2894 = vmatprep.subr.mxu0 %v2564_v1  ;;  %v2532_v49 = vld [vmem:[#allocation11 + $0x658] sm:$0xff]  ;;  %v2403_v1 = vld [vmem:[#allocation11 + $0x250] sm:$0xff] }
 0x725   :  { %2806 = vmatpush2.msra.mxu1 %v2435_v52  ;;  %2895 = vmatpush2.msra.mxu0 %v2563_v62  ;;  %v2531_v52 = vld [vmem:[#allocation11 + $0x650] sm:$0xff]  ;;  %v2400_v62 = vld [vmem:[#allocation11 + $0x238] sm:$0xff] }
 0x726   :  { %2807 = vmatprep.subr.mxu1 %v2432_v15  ;;  %2896 = vmatprep.subr.mxu0 %v2560_v47  ;;  %v2528_v15 = vld [vmem:[#allocation11 + $0x638] sm:$0xff]  ;;  %v2399_v47 = vld [vmem:[#allocation11 + $0x230] sm:$0xff] }
 0x727   :  { %2808 = vmatpush2.msra.mxu1 %v2431_v7  ;;  %2897 = vmatpush2.msra.mxu0 %v2559_v31  ;;  %v2527_v7 = vld [vmem:[#allocation11 + $0x630] sm:$0xff]  ;;  %v2396_v31 = vld [vmem:[#allocation11 + $0x218] sm:$0xff] }
 0x728   :  { %2809 = vmatprep.subr.mxu1 %v2428_v51  ;;  %2898 = vmatprep.subr.mxu0 %v2556_v60  ;;  %v2524_v51 = vld [vmem:[#allocation11 + $0x618] sm:$0xff]  ;;  %v2395_v60 = vld [vmem:[#allocation11 + $0x210] sm:$0xff] }
 0x729   :  { %2810 = vmatpush2.msra.mxu1 %v2427_v12  ;;  %2899 = vmatpush2.msra.mxu0 %v2555_v14  ;;  %v2523_v12 = vld [vmem:[#allocation11 + $0x610] sm:$0xff]  ;;  %v3354_v14 = vld [vmem:[#allocation11 + $0xda0] sm:$0xff] }
 0x72a   :  { %2811 = vmatprep.subr.mxu1 %v2424_v54  ;;  %2900 = vmatprep.subr.mxu0 %v2552_v56  ;;  %v3223_v54 = vld [vmem:[#allocation11 + $0x988] sm:$0xff] }
 0x72b   :  { %2812 = vmatpush2.msra.mxu1 %v2423_v61  ;;  %2901 = vmatpush2.msra.mxu0 %v2551_v40  ;;  %v3351_v56 = vld [vmem:[#allocation11 + $0xd88] sm:$0xff]  ;;  %v2982_v61 = vld [vmem:[#allocation10 + $0x38] sm:$0xff]  ;;  %v3222_v40 = vld [vmem:[#allocation11 + $0x980] sm:$0xff] }
 0x72c   :  { %2813 = vmatprep.subr.mxu1 %v2420_v5  ;;  %2902 = vmatprep.subr.mxu0 %v2548_v10  ;;  %v3350_v5 = vld [vmem:[#allocation11 + $0xd80] sm:$0xff]  ;;  %v3219_v10 = vld [vmem:[#allocation11 + $0x968] sm:$0xff] }
 0x72d   :  { %2814 = vmatpush2.msra.mxu1 %v2419_v24  ;;  %2903 = vmatpush2.msra.mxu0 %v2547_v17  ;;  %v3347_v24 = vld [vmem:[#allocation11 + $0xd68] sm:$0xff]  ;;  %v3218_v17 = vld [vmem:[#allocation11 + $0x960] sm:$0xff] }
 0x72e   :  { %2815 = vmatprep.subr.mxu1 %v2416_v28  ;;  %2904 = vmatprep.subr.mxu0 %v2544_v21  ;;  %v3346_v28 = vld [vmem:[#allocation11 + $0xd60] sm:$0xff]  ;;  %v3215_v21 = vld [vmem:[#allocation11 + $0x948] sm:$0xff] }
 0x72f   :  { %2816 = vmatpush2.msra.mxu1 %v2415_v58  ;;  %2905 = vmatpush2.msra.mxu0 %v2543_v16  ;;  %v3343_v58 = vld [vmem:[#allocation11 + $0xd48] sm:$0xff]  ;;  %v3214_v16 = vld [vmem:[#allocation11 + $0x940] sm:$0xff] }
 0x730   :  { %2817 = vmatprep.subr.mxu1 %v2412_v46  ;;  %2906 = vmatprep.subr.mxu0 %v2540_v23  ;;  %v3342_v46 = vld [vmem:[#allocation11 + $0xd40] sm:$0xff]  ;;  %v3211_v23 = vld [vmem:[#allocation11 + $0x928] sm:$0xff] }
 0x731   :  { %2818 = vmatpush2.msra.mxu1 %v2411_v35  ;;  %2907 = vmatpush2.msra.mxu0 %v2539_v55  ;;  %v3339_v35 = vld [vmem:[#allocation11 + $0xd28] sm:$0xff]  ;;  %v3210_v55 = vld [vmem:[#allocation11 + $0x920] sm:$0xff] }
 0x732   :  { %2819 = vmatprep.subr.mxu1 %v2408_v25  ;;  %2908 = vmatprep.subr.mxu0 %v2536_v29  ;;  %v3338_v25 = vld [vmem:[#allocation11 + $0xd20] sm:$0xff]  ;;  %v3207_v29 = vld [vmem:[#allocation11 + $0x908] sm:$0xff] }
 0x733   :  { %2820 = vmatpush2.msra.mxu1 %v2407_v30  ;;  %2909 = vmatpush2.msra.mxu0 %v2535_v36  ;;  %v3335_v30 = vld [vmem:[#allocation11 + $0xd08] sm:$0xff]  ;;  %v3206_v36 = vld [vmem:[#allocation11 + $0x900] sm:$0xff] }
 0x734   :  { %2821 = vmatprep.subr.mxu1 %v2404_v42  ;;  %2910 = vmatprep.subr.mxu0 %v2532_v49  ;;  %v3334_v42 = vld [vmem:[#allocation11 + $0xd00] sm:$0xff]  ;;  %v3203_v49 = vld [vmem:[#allocation11 + $0x8e8] sm:$0xff] }
 0x735   :  { %2822 = vmatpush2.msra.mxu1 %v2403_v1  ;;  %2911 = vmatpush2.msra.mxu0 %v2531_v52  ;;  %v3331_v1 = vld [vmem:[#allocation11 + $0xce8] sm:$0xff]  ;;  %v3202_v52 = vld [vmem:[#allocation11 + $0x8e0] sm:$0xff] }
 0x736   :  { %2823 = vmatprep.subr.mxu1 %v2400_v62  ;;  %2912 = vmatprep.subr.mxu0 %v2528_v15  ;;  %v3330_v62 = vld [vmem:[#allocation11 + $0xce0] sm:$0xff]  ;;  %v3199_v15 = vld [vmem:[#allocation11 + $0x8c8] sm:$0xff] }
 0x737   :  { %2824 = vmatpush2.msra.mxu1 %v2399_v47  ;;  %2913 = vmatpush2.msra.mxu0 %v2527_v7  ;;  %v3327_v47 = vld [vmem:[#allocation11 + $0xcc8] sm:$0xff]  ;;  %v3198_v7 = vld [vmem:[#allocation11 + $0x8c0] sm:$0xff] }
 0x738   :  { %2825 = vmatprep.subr.mxu1 %v2396_v31  ;;  %2914 = vmatprep.subr.mxu0 %v2524_v51  ;;  %v3326_v31 = vld [vmem:[#allocation11 + $0xcc0] sm:$0xff]  ;;  %v3195_v51 = vld [vmem:[#allocation11 + $0x8a8] sm:$0xff] }
 0x739   :  { %2826 = vmatpush2.msra.mxu1 %v2395_v60  ;;  %2915 = vmatpush2.msra.mxu0 %v2523_v12  ;;  %v3323_v60 = vld [vmem:[#allocation11 + $0xca8] sm:$0xff]  ;;  %v3194_v12 = vld [vmem:[#allocation11 + $0x8a0] sm:$0xff] }
 0x73a   :  { %2828 = vmatmul.mubr.f32.vlgmr.msra.gmra.mxu1 %v12562_v53  ;;  %2917 = vmatmul.mubr.f32.vlgmr.msra.gmra.mxu0 %v12564_v37  ;;  %v3235_v53 = vld [vmem:[#allocation11 + $0x9e8] sm:$0xff] }
 0x73b   :  { %3019 = vmatprep.subr.mxu1 %v12494_v44  ;;  %3108 = vmatprep.subr.mxu0 %v12496_v33  ;;  %v3363_v37 = vld [vmem:[#allocation11 + $0xde8] sm:$0xff] }
 0x73c   :  { %2833 = vmatprep.mubr.f32.mxu1 %v12578_v39  ;;  %2922 = vmatprep.mubr.f32.mxu0 %v12580_v41  ;;  %v3362_v39 = vld [vmem:[#allocation11 + $0xde0] sm:$0xff]  ;;  %v3231_v41 = vld [vmem:[#allocation11 + $0x9c8] sm:$0xff] }
 0x73d   :  { %3020 = vmatpush1.msra.mxu1 %v12499_v43  ;;  %3109 = vmatpush1.msra.mxu0 %v12501_v34 }
 0x73e   :  { %3021 = vmatprep.subr.mxu1 %v12505_v50  ;;  %3110 = vmatprep.subr.mxu0 %v12507_v18 }
 0x73f   :  { %3022 = vmatpush1.msra.mxu1 %v12514_v4  ;;  %3111 = vmatpush1.msra.mxu0 %v12516_v8 }
 0x740   :  { %2834 = vmatmul.mubr.f32.gmra.mxu1 %v12572_v13  ;;  %2923 = vmatmul.mubr.f32.gmra.mxu0 %v12574_v26  ;;  %v2979_v13 = vld [vmem:[#allocation10 + $0x20] sm:$0xff] }
 0x741   :  { %3023 = vmatprep.subr.mxu1 %v12520_v59  ;;  %3112 = vmatprep.subr.mxu0 %v12522_v63  ;;  %v3234_v26 = vld [vmem:[#allocation11 + $0x9e0] sm:$0xff] }
 0x742   :  { %2839 = vmatprep.mubr.f32.mxu1 %v12590_v19  ;;  %2928 = vmatprep.mubr.f32.mxu0 %v12592_v9  ;;  %v3230_v19 = vld [vmem:[#allocation11 + $0x9c0] sm:$0xff] }
 0x743   :  { %3024 = vmatpush1.msra.mxu1 %v12526_v38  ;;  %3113 = vmatpush1.msra.mxu0 %v12528_v27  ;;  %v3358_v9 = vld [vmem:[#allocation11 + $0xdc0] sm:$0xff] }
 0x744   :  { %3025 = vmatprep.subr.mxu1 %v12532_v3  ;;  %3114 = vmatprep.subr.mxu0 %v12534_v20 }
 0x745   :  { %3026 = vmatpush1.msra.mxu1 %v12538_v22  ;;  %3115 = vmatpush1.msra.mxu0 %v12540_v11 }
 0x746   :  { %2840 = vmatmul.mubr.f32.gmra.mxu1 %v12584_v48  ;;  %2929 = vmatmul.mubr.f32.gmra.mxu0 %v12586_v6  ;;  %v3359_v48 = vld [vmem:[#allocation11 + $0xdc8] sm:$0xff] }
 0x747   :  { %2845 = vmatprep.mubr.f32.mxu1 %v12602_v2  ;;  %2934 = vmatprep.mubr.f32.mxu0 %v12604_v57  ;;  %v2980_v6 = vld [vmem:[#allocation10 + $0x28] sm:$0xff]  ;;  %v2981_v2 = vld [vmem:[#allocation10 + $0x30] sm:$0xff]  ;;  %v3226_v57 = vld [vmem:[#allocation11 + $0x9a0] sm:$0xff] }
 0x748   :  { %3430 = vmatprep.subr.mxu1 %v3235_v53  ;;  %3519 = vmatprep.subr.mxu0 %v3363_v37  ;;  %v3322_v53 = vld [vmem:[#allocation11 + $0xca0] sm:$0xff]  ;;  %v3191_v37 = vld [vmem:[#allocation11 + $0x888] sm:$0xff] }
 0x74a   :  { %2846 = vmatmul.mubr.f32.gmra.mxu1 %v12594_v0  ;;  %2935 = vmatmul.mubr.f32.gmra.mxu0 %v12596_v45  ;;  %v3227_v0 = vld [vmem:[#allocation11 + $0x9a8] sm:$0xff] }
 0x74b   :  { %3059 = vmatprep.mubr.f32.mxu1 %v13820_v32  ;;  %3148 = vmatprep.mubr.f32.mxu0 %v13820_v32  ;;  %v3355_v45 = vld [vmem:[#allocation11 + $0xda8] sm:$0xff] }
 0x74e   :  { %10696 = vmatmul.mubr.msk.f32.vlgmr.msra.gmra.mxu1 %vm396_vm0, %v2979_v13  ;;  %10700 = vmatmul.mubr.msk.f32.vlgmr.msra.gmra.mxu0 %vm396_vm0, %v2979_v13  ;;  %v3319_v13 = vld [vmem:[#allocation11 + $0xc88] sm:$0xff] }
 0x74f   :  { %3065 = vmatprep.mubr.f32.mxu1 %v13820_v32  ;;  %3154 = vmatprep.mubr.f32.mxu0 %v13820_v32 }
 0x750   :  { %3431 = vmatpush1.msra.mxu1 %v3234_v26  ;;  %3520 = vmatpush1.msra.mxu0 %v3362_v39  ;;  %v3190_v26 = vld [vmem:[#allocation11 + $0x880] sm:$0xff] }
 0x751   :  { %3432 = vmatprep.subr.mxu1 %v3231_v41  ;;  %3521 = vmatprep.subr.mxu0 %v3359_v48  ;;  %v3318_v39 = vld [vmem:[#allocation11 + $0xc80] sm:$0xff]  ;;  %v3187_v41 = vld [vmem:[#allocation11 + $0x868] sm:$0xff] }
 0x752   :  { %10697 = vmatmul.mubr.msk.f32.gmra.mxu1 %vm396_vm0, %v2980_v6  ;;  %10701 = vmatmul.mubr.msk.f32.gmra.mxu0 %vm396_vm0, %v2980_v6  ;;  %v3315_v48 = vld [vmem:[#allocation11 + $0xc68] sm:$0xff]  ;;  %v3186_v6 = vld [vmem:[#allocation11 + $0x860] sm:$0xff] }
 0x753   :  { %3071 = vmatprep.mubr.f32.mxu1 %v13820_v32  ;;  %3160 = vmatprep.mubr.f32.mxu0 %v13820_v32 }
 0x754   :  { %3433 = vmatpush1.msra.mxu1 %v3230_v19  ;;  %3522 = vmatpush1.msra.mxu0 %v3358_v9  ;;  %v3314_v19 = vld [vmem:[#allocation11 + $0xc60] sm:$0xff]  ;;  %v3183_v9 = vld [vmem:[#allocation11 + $0x848] sm:$0xff] }
 0x755   :  { %3434 = vmatprep.subr.mxu1 %v3227_v0  ;;  %3523 = vmatprep.subr.mxu0 %v3355_v45  ;;  %v3311_v0 = vld [vmem:[#allocation11 + $0xc48] sm:$0xff]  ;;  %v3182_v45 = vld [vmem:[#allocation11 + $0x840] sm:$0xff] }
 0x756   :  { %10698 = vmatmul.mubr.msk.f32.gmra.mxu1 %vm396_vm0, %v2981_v2  ;;  %10702 = vmatmul.mubr.msk.f32.gmra.mxu0 %vm396_vm0, %v2981_v2  ;;  %v3310_v2 = vld [vmem:[#allocation11 + $0xc40] sm:$0xff] }
 0x757   :  { %3077 = vmatprep.mubr.f32.mxu1 %v13820_v32  ;;  %3166 = vmatprep.mubr.f32.mxu0 %v13820_v32 }
 0x758   :  { %3435 = vmatpush1.msra.mxu1 %v3226_v57  ;;  %3524 = vmatpush1.msra.mxu0 %v3354_v14  ;;  %v3179_v57 = vld [vmem:[#allocation11 + $0x828] sm:$0xff] }
 0x759   :  { %3436 = vmatprep.subr.mxu1 %v3223_v54  ;;  %3525 = vmatprep.subr.mxu0 %v3351_v56  ;;  %v3307_v14 = vld [vmem:[#allocation11 + $0xc28] sm:$0xff]  ;;  %v3178_v54 = vld [vmem:[#allocation11 + $0x820] sm:$0xff] }
 0x75a   :  { %10699 = vmatmul.mubr.msk.f32.gmra.mxu1 %vm396_vm0, %v2982_v61  ;;  %10703 = vmatmul.mubr.msk.f32.gmra.mxu0 %vm396_vm0, %v2982_v61  ;;  %v3306_v56 = vld [vmem:[#allocation11 + $0xc20] sm:$0xff]  ;;  %v3175_v61 = vld [vmem:[#allocation11 + $0x808] sm:$0xff] }
 0x75b   :  { %3437 = vmatpush1.msra.mxu1 %v3222_v40  ;;  %3526 = vmatpush1.msra.mxu0 %v3350_v5  ;;  %v3303_v40 = vld [vmem:[#allocation11 + $0xc08] sm:$0xff]  ;;  %v3174_v5 = vld [vmem:[#allocation11 + $0x800] sm:$0xff] }
 0x75c   :  { %3438 = vmatprep.subr.mxu1 %v3219_v10  ;;  %3527 = vmatprep.subr.mxu0 %v3347_v24  ;;  %v3302_v10 = vld [vmem:[#allocation11 + $0xc00] sm:$0xff]  ;;  %v3299_v24 = vld [vmem:[#allocation11 + $0xbe8] sm:$0xff] }
 0x75d   :  { %3439 = vmatpush1.msra.mxu1 %v3218_v17  ;;  %3528 = vmatpush1.msra.mxu0 %v3346_v28  ;;  %v3427_v17 = vld [vmem:[#allocation11 + $0xfe8] sm:$0xff]  ;;  %v3298_v28 = vld [vmem:[#allocation11 + $0xbe0] sm:$0xff] }
 0x75e   :  { %3440 = vmatprep.subr.mxu1 %v3215_v21  ;;  %3529 = vmatprep.subr.mxu0 %v3343_v58  ;;  %v3426_v21 = vld [vmem:[#allocation11 + $0xfe0] sm:$0xff]  ;;  %v3295_v58 = vld [vmem:[#allocation11 + $0xbc8] sm:$0xff] }
 0x75f   :  { %3441 = vmatpush1.msra.mxu1 %v3214_v16  ;;  %3530 = vmatpush1.msra.mxu0 %v3342_v46  ;;  %v3423_v16 = vld [vmem:[#allocation11 + $0xfc8] sm:$0xff]  ;;  %v3294_v46 = vld [vmem:[#allocation11 + $0xbc0] sm:$0xff] }
 0x760   :  { %3442 = vmatprep.subr.mxu1 %v3211_v23  ;;  %3531 = vmatprep.subr.mxu0 %v3339_v35  ;;  %v3422_v23 = vld [vmem:[#allocation11 + $0xfc0] sm:$0xff]  ;;  %v3291_v35 = vld [vmem:[#allocation11 + $0xba8] sm:$0xff] }
 0x761   :  { %3443 = vmatpush1.msra.mxu1 %v3210_v55  ;;  %3532 = vmatpush1.msra.mxu0 %v3338_v25  ;;  %v3419_v55 = vld [vmem:[#allocation11 + $0xfa8] sm:$0xff]  ;;  %v3290_v25 = vld [vmem:[#allocation11 + $0xba0] sm:$0xff] }
 0x762   :  { %3444 = vmatprep.subr.mxu1 %v3207_v29  ;;  %3533 = vmatprep.subr.mxu0 %v3335_v30  ;;  %v3418_v29 = vld [vmem:[#allocation11 + $0xfa0] sm:$0xff]  ;;  %v3287_v30 = vld [vmem:[#allocation11 + $0xb88] sm:$0xff] }
 0x763   :  { %3445 = vmatpush1.msra.mxu1 %v3206_v36  ;;  %3534 = vmatpush1.msra.mxu0 %v3334_v42  ;;  %v3415_v36 = vld [vmem:[#allocation11 + $0xf88] sm:$0xff]  ;;  %v3286_v42 = vld [vmem:[#allocation11 + $0xb80] sm:$0xff] }
 0x764   :  { %3446 = vmatprep.subr.mxu1 %v3203_v49  ;;  %3535 = vmatprep.subr.mxu0 %v3331_v1  ;;  %v3414_v49 = vld [vmem:[#allocation11 + $0xf80] sm:$0xff]  ;;  %v3283_v1 = vld [vmem:[#allocation11 + $0xb68] sm:$0xff] }
 0x765   :  { %3447 = vmatpush1.msra.mxu1 %v3202_v52  ;;  %3536 = vmatpush1.msra.mxu0 %v3330_v62  ;;  %v3411_v52 = vld [vmem:[#allocation11 + $0xf68] sm:$0xff]  ;;  %v3282_v62 = vld [vmem:[#allocation11 + $0xb60] sm:$0xff] }
 0x766   :  { %3448 = vmatprep.subr.mxu1 %v3199_v15  ;;  %3537 = vmatprep.subr.mxu0 %v3327_v47  ;;  %v3410_v15 = vld [vmem:[#allocation11 + $0xf60] sm:$0xff]  ;;  %v3279_v47 = vld [vmem:[#allocation11 + $0xb48] sm:$0xff] }
 0x767   :  { %3449 = vmatpush1.msra.mxu1 %v3198_v7  ;;  %3538 = vmatpush1.msra.mxu0 %v3326_v31  ;;  %v3407_v7 = vld [vmem:[#allocation11 + $0xf48] sm:$0xff]  ;;  %v3278_v31 = vld [vmem:[#allocation11 + $0xb40] sm:$0xff] }
 0x768   :  { %3450 = vmatprep.subr.mxu1 %v3195_v51  ;;  %3539 = vmatprep.subr.mxu0 %v3323_v60  ;;  %v3406_v51 = vld [vmem:[#allocation11 + $0xf40] sm:$0xff]  ;;  %v3275_v60 = vld [vmem:[#allocation11 + $0xb28] sm:$0xff] }
 0x769   :  { %3451 = vmatpush1.msra.mxu1 %v3194_v12  ;;  %3540 = vmatpush1.msra.mxu0 %v3322_v53  ;;  %v3403_v12 = vld [vmem:[#allocation11 + $0xf28] sm:$0xff]  ;;  %v3274_v53 = vld [vmem:[#allocation11 + $0xb20] sm:$0xff] }
 0x76a   :  { %3452 = vmatprep.subr.mxu1 %v3191_v37  ;;  %3541 = vmatprep.subr.mxu0 %v3319_v13  ;;  %v3402_v37 = vld [vmem:[#allocation11 + $0xf20] sm:$0xff]  ;;  %v3271_v13 = vld [vmem:[#allocation11 + $0xb08] sm:$0xff] }
 0x76b   :  { %3453 = vmatpush1.msra.mxu1 %v3190_v26  ;;  %3542 = vmatpush1.msra.mxu0 %v3318_v39  ;;  %v3399_v26 = vld [vmem:[#allocation11 + $0xf08] sm:$0xff]  ;;  %v3270_v39 = vld [vmem:[#allocation11 + $0xb00] sm:$0xff] }
 0x76c   :  { %3454 = vmatprep.subr.mxu1 %v3187_v41  ;;  %3543 = vmatprep.subr.mxu0 %v3315_v48  ;;  %v3398_v41 = vld [vmem:[#allocation11 + $0xf00] sm:$0xff]  ;;  %v3267_v48 = vld [vmem:[#allocation11 + $0xae8] sm:$0xff] }
 0x76d   :  { %3455 = vmatpush1.msra.mxu1 %v3186_v6  ;;  %3544 = vmatpush1.msra.mxu0 %v3314_v19  ;;  %v3395_v6 = vld [vmem:[#allocation11 + $0xee8] sm:$0xff]  ;;  %v3266_v19 = vld [vmem:[#allocation11 + $0xae0] sm:$0xff] }
 0x76e   :  { %3456 = vmatprep.subr.mxu1 %v3183_v9  ;;  %3545 = vmatprep.subr.mxu0 %v3311_v0  ;;  %v3394_v9 = vld [vmem:[#allocation11 + $0xee0] sm:$0xff]  ;;  %v3263_v0 = vld [vmem:[#allocation11 + $0xac8] sm:$0xff] }
 0x76f   :  { %3457 = vmatpush1.msra.mxu1 %v3182_v45  ;;  %3546 = vmatpush1.msra.mxu0 %v3310_v2  ;;  %v3391_v45 = vld [vmem:[#allocation11 + $0xec8] sm:$0xff]  ;;  %v3262_v2 = vld [vmem:[#allocation11 + $0xac0] sm:$0xff] }
 0x770   :  { %3458 = vmatprep.subr.mxu1 %v3179_v57  ;;  %3547 = vmatprep.subr.mxu0 %v3307_v14  ;;  %v3390_v57 = vld [vmem:[#allocation11 + $0xec0] sm:$0xff]  ;;  %v3259_v14 = vld [vmem:[#allocation11 + $0xaa8] sm:$0xff] }
 0x771   :  { %3459 = vmatpush1.msra.mxu1 %v3178_v54  ;;  %3548 = vmatpush1.msra.mxu0 %v3306_v56  ;;  %v3387_v54 = vld [vmem:[#allocation11 + $0xea8] sm:$0xff]  ;;  %v3258_v56 = vld [vmem:[#allocation11 + $0xaa0] sm:$0xff] }
 0x772   :  { %3460 = vmatprep.subr.mxu1 %v3175_v61  ;;  %3549 = vmatprep.subr.mxu0 %v3303_v40  ;;  %v3386_v61 = vld [vmem:[#allocation11 + $0xea0] sm:$0xff]  ;;  %v3255_v40 = vld [vmem:[#allocation11 + $0xa88] sm:$0xff] }
 0x773   :  { %3461 = vmatpush1.msra.mxu1 %v3174_v5  ;;  %3550 = vmatpush1.msra.mxu0 %v3302_v10  ;;  %v3383_v5 = vld [vmem:[#allocation11 + $0xe88] sm:$0xff]  ;;  %v3254_v10 = vld [vmem:[#allocation11 + $0xa80] sm:$0xff] }
 0x774   :  { %3462 = vmatprep.subr.mxu1 %v3299_v24  ;;  %3551 = vmatprep.subr.mxu0 %v3427_v17  ;;  %v3382_v24 = vld [vmem:[#allocation11 + $0xe80] sm:$0xff]  ;;  %v3251_v17 = vld [vmem:[#allocation11 + $0xa68] sm:$0xff] }
 0x775   :  { %3463 = vmatpush2.msra.mxu1 %v3298_v28  ;;  %3552 = vmatpush2.msra.mxu0 %v3426_v21  ;;  %v3379_v28 = vld [vmem:[#allocation11 + $0xe68] sm:$0xff]  ;;  %v3250_v21 = vld [vmem:[#allocation11 + $0xa60] sm:$0xff] }
 0x776   :  { %3464 = vmatprep.subr.mxu1 %v3295_v58  ;;  %3553 = vmatprep.subr.mxu0 %v3423_v16  ;;  %v3378_v58 = vld [vmem:[#allocation11 + $0xe60] sm:$0xff]  ;;  %v3247_v16 = vld [vmem:[#allocation11 + $0xa48] sm:$0xff] }
 0x777   :  { %3465 = vmatpush2.msra.mxu1 %v3294_v46  ;;  %3554 = vmatpush2.msra.mxu0 %v3422_v23  ;;  %v3375_v46 = vld [vmem:[#allocation11 + $0xe48] sm:$0xff]  ;;  %v3246_v23 = vld [vmem:[#allocation11 + $0xa40] sm:$0xff] }
 0x778   :  { %3466 = vmatprep.subr.mxu1 %v3291_v35  ;;  %3555 = vmatprep.subr.mxu0 %v3419_v55  ;;  %v3374_v35 = vld [vmem:[#allocation11 + $0xe40] sm:$0xff]  ;;  %v3243_v55 = vld [vmem:[#allocation11 + $0xa28] sm:$0xff] }
 0x779   :  { %3467 = vmatpush2.msra.mxu1 %v3290_v25  ;;  %3556 = vmatpush2.msra.mxu0 %v3418_v29  ;;  %v3371_v25 = vld [vmem:[#allocation11 + $0xe28] sm:$0xff]  ;;  %v3242_v29 = vld [vmem:[#allocation11 + $0xa20] sm:$0xff] }
 0x77a   :  { %3468 = vmatprep.subr.mxu1 %v3287_v30  ;;  %3557 = vmatprep.subr.mxu0 %v3415_v36  ;;  %v3370_v30 = vld [vmem:[#allocation11 + $0xe20] sm:$0xff]  ;;  %v3239_v36 = vld [vmem:[#allocation11 + $0xa08] sm:$0xff] }
 0x77b   :  { %3469 = vmatpush2.msra.mxu1 %v3286_v42  ;;  %3558 = vmatpush2.msra.mxu0 %v3414_v49  ;;  %v3367_v42 = vld [vmem:[#allocation11 + $0xe08] sm:$0xff]  ;;  %v3238_v49 = vld [vmem:[#allocation11 + $0xa00] sm:$0xff] }
 0x77c   :  { %3470 = vmatprep.subr.mxu1 %v3283_v1  ;;  %3559 = vmatprep.subr.mxu0 %v3411_v52  ;;  %v3366_v1 = vld [vmem:[#allocation11 + $0xe00] sm:$0xff]  ;;  %v3237_v52 = vld [vmem:[#allocation11 + $0x9f8] sm:$0xff] }
 0x77d   :  { %3471 = vmatpush2.msra.mxu1 %v3282_v62  ;;  %3560 = vmatpush2.msra.mxu0 %v3410_v15  ;;  %v3365_v62 = vld [vmem:[#allocation11 + $0xdf8] sm:$0xff] }
 0x77e   :  { %3472 = vmatprep.subr.mxu1 %v3279_v47  ;;  %3561 = vmatprep.subr.mxu0 %v3407_v7 }
 0x77f   :  { %3473 = vmatpush2.msra.mxu1 %v3278_v31  ;;  %3562 = vmatpush2.msra.mxu0 %v3406_v51 }
 0x780   :  { %3474 = vmatprep.subr.mxu1 %v3275_v60  ;;  %3563 = vmatprep.subr.mxu0 %v3403_v12 }
 0x781   :  { %3475 = vmatpush2.msra.mxu1 %v3274_v53  ;;  %3564 = vmatpush2.msra.mxu0 %v3402_v37 }
 0x782   :  { %3476 = vmatprep.subr.mxu1 %v3271_v13  ;;  %3565 = vmatprep.subr.mxu0 %v3399_v26 }
 0x783   :  { %3477 = vmatpush2.msra.mxu1 %v3270_v39  ;;  %3566 = vmatpush2.msra.mxu0 %v3398_v41 }
 0x784   :  { %3478 = vmatprep.subr.mxu1 %v3267_v48  ;;  %3567 = vmatprep.subr.mxu0 %v3395_v6 }
 0x785   :  { %3479 = vmatpush2.msra.mxu1 %v3266_v19  ;;  %3568 = vmatpush2.msra.mxu0 %v3394_v9 }
 0x786   :  { %3480 = vmatprep.subr.mxu1 %v3263_v0  ;;  %3569 = vmatprep.subr.mxu0 %v3391_v45 }
 0x787   :  { %3481 = vmatpush2.msra.mxu1 %v3262_v2  ;;  %3570 = vmatpush2.msra.mxu0 %v3390_v57 }
 0x788   :  { %3482 = vmatprep.subr.mxu1 %v3259_v14  ;;  %3571 = vmatprep.subr.mxu0 %v3387_v54 }
 0x789   :  { %3483 = vmatpush2.msra.mxu1 %v3258_v56  ;;  %3572 = vmatpush2.msra.mxu0 %v3386_v61 }
 0x78a   :  { %3484 = vmatprep.subr.mxu1 %v3255_v40  ;;  %3573 = vmatprep.subr.mxu0 %v3383_v5 }
 0x78b   :  { %3485 = vmatpush2.msra.mxu1 %v3254_v10  ;;  %3574 = vmatpush2.msra.mxu0 %v3382_v24 }
 0x78c   :  { %3486 = vmatprep.subr.mxu1 %v3251_v17  ;;  %3575 = vmatprep.subr.mxu0 %v3379_v28 }
 0x78d   :  { %3487 = vmatpush2.msra.mxu1 %v3250_v21  ;;  %3576 = vmatpush2.msra.mxu0 %v3378_v58 }
 0x78e   :  { %3488 = vmatprep.subr.mxu1 %v3247_v16  ;;  %3577 = vmatprep.subr.mxu0 %v3375_v46 }
 0x78f   :  { %3489 = vmatpush2.msra.mxu1 %v3246_v23  ;;  %3578 = vmatpush2.msra.mxu0 %v3374_v35 }
 0x790   :  { %3490 = vmatprep.subr.mxu1 %v3243_v55  ;;  %3579 = vmatprep.subr.mxu0 %v3371_v25 }
 0x791   :  { %3491 = vmatpush2.msra.mxu1 %v3242_v29  ;;  %3580 = vmatpush2.msra.mxu0 %v3370_v30 }
 0x792   :  { %3492 = vmatprep.subr.mxu1 %v3239_v36  ;;  %3581 = vmatprep.subr.mxu0 %v3367_v42 }
 0x793   :  { %3493 = vmatpush2.msra.mxu1 %v3238_v49  ;;  %3582 = vmatpush2.msra.mxu0 %v3366_v1  ;;  %v3236_v1 = vld [vmem:[#allocation11 + $0x9f0] sm:$0xff] }
 0x794   :  { %3608 = vmatprep.subr.mxu1 %v3237_v52  ;;  %3697 = vmatprep.subr.mxu0 %v3365_v62  ;;  %v3364_v52 = vld [vmem:[#allocation11 + $0xdf0] sm:$0xff]  ;;  %v3233_v62 = vld [vmem:[#allocation11 + $0x9d8] sm:$0xff] }
 0x7b3   :  { %v2651_v15 = vpop.f32.mrf.mxu1  ;;  %v2740_v47 = vpop.f32.mrf.mxu0 }
 0x7b4   :  { %v12658_v7 = vadd.f32 %v2740_v47, %v2651_v15  ;;  %v3361_v15 = vld [vmem:[#allocation11 + $0xdd8] sm:$0xff] }
 0x7b5   :  { %v12660_v31 = vpop.f32.mrf.mxu1  ;;  %v12662_v51 = vpop.f32.mrf.mxu0 }
 0x7b9   :  { %v2657_v60 = vpop.f32.mrf.mxu1  ;;  %v2746_v12 = vpop.f32.mrf.mxu0 }
 0x7ba   :  { %v12664_v53 = vadd.f32 %v2746_v12, %v2657_v60  ;;  %v3232_v12 = vld [vmem:[#allocation11 + $0x9d0] sm:$0xff] }
 0x7bb   :  { %v12666_v37 = vpop.f32.mrf.mxu1  ;;  %v12668_v13 = vpop.f32.mrf.mxu0 }
 0x7bf   :  { %v2663_v26 = vpop.f32.mrf.mxu1  ;;  %v2752_v39 = vpop.f32.mrf.mxu0 }
 0x7c0   :  { %v12670_v41 = vadd.f32 %v2752_v39, %v2663_v26  ;;  %v3360_v26 = vld [vmem:[#allocation11 + $0xdd0] sm:$0xff] }
 0x7c1   :  { %v12672_v48 = vpop.f32.mrf.mxu1  ;;  %v12674_v6 = vpop.f32.mrf.mxu0 }
 0x7c5   :  { %v2669_v19 = vpop.f32.mrf.mxu1  ;;  %v2758_v9 = vpop.f32.mrf.mxu0 }
 0x7c6   :  { %v12676_v0 = vadd.f32 %v2758_v9, %v2669_v19  ;;  %v3229_v9 = vld [vmem:[#allocation11 + $0x9b8] sm:$0xff] }
 0x7c7   :  { %v12678_v45 = vpop.f32.mrf.mxu1  ;;  %v12680_v2 = vpop.f32.mrf.mxu0 }
 0x7fa   :  { %v2829_v57 = vpop.f32.mrf.mxu1  ;;  %v2918_v14 = vpop.f32.mrf.mxu0 }
 0x7fb   :  { %v12682_v54 = vadd.f32 %v2918_v14, %v2829_v57  ;;  %v3357_v57 = vld [vmem:[#allocation11 + $0xdb8] sm:$0xff] }
 0x7fc   :  { %v12684_v56 = vpop.f32.mrf.mxu1  ;;  %v12686_v61 = vpop.f32.mrf.mxu0 }
 0x7fd   :  { %13821 = vst [vmem:[#allocation60_spill] sm:$0xff] %v12684_v56  ;;  %13822 = vst [vmem:[#allocation61_spill] sm:$0xff] %v12686_v61  ;;  %v3348_v61 = vld [vmem:[#allocation11 + $0xd70] sm:$0xff]  ;;  %v3213_v56 = vld [vmem:[#allocation11 + $0x938] sm:$0xff] }
 0x800   :  { %v2835_v40 = vpop.f32.mrf.mxu1  ;;  %v2924_v5 = vpop.f32.mrf.mxu0 }
 0x801   :  { %v12688_v10 = vadd.f32 %v2924_v5, %v2835_v40  ;;  %v3228_v5 = vld [vmem:[#allocation11 + $0x9b0] sm:$0xff] }
 0x802   :  { %v12690_v24 = vpop.f32.mrf.mxu1  ;;  %v12692_v17 = vpop.f32.mrf.mxu0 }
 0x803   :  { %13823 = vst [vmem:[#allocation62_spill] sm:$0xff] %v12690_v24  ;;  %13824 = vst [vmem:[#allocation63_spill] sm:$0xff] %v12692_v17  ;;  %v3341_v17 = vld [vmem:[#allocation11 + $0xd38] sm:$0xff] }
 0x804   :  { %v3201_v24 = vld [vmem:[#allocation11 + $0x8d8] sm:$0xff] }
 0x806   :  { %v2841_v28 = vpop.f32.mrf.mxu1  ;;  %v2930_v21 = vpop.f32.mrf.mxu0 }
 0x807   :  { %v12694_v58 = vadd.f32 %v2930_v21, %v2841_v28  ;;  %v3356_v28 = vld [vmem:[#allocation11 + $0xdb0] sm:$0xff]  ;;  %v3225_v21 = vld [vmem:[#allocation11 + $0x998] sm:$0xff] }
 0x808   :  { %v12696_v16 = vpop.f32.mrf.mxu1  ;;  %v12698_v46 = vpop.f32.mrf.mxu0 }
 0x809   :  { %13825 = vst [vmem:[#allocation64_spill] sm:$0xff] %v12698_v46  ;;  %v3321_v46 = vld [vmem:[#allocation11 + $0xc98] sm:$0xff] }
 0x80a   :  { %v2847_v23 = vpop.f32.mrf.mxu1  ;;  %v2936_v35 = vpop.f32.mrf.mxu0 }
 0x80b   :  { %v12700_v55 = vadd.f32 %v2936_v35, %v2847_v23  ;;  %v3353_v23 = vld [vmem:[#allocation11 + $0xd98] sm:$0xff] }
 0x80c   :  { %v12702_v25 = vpop.f32.mrf.mxu1  ;;  %v12704_v29 = vpop.f32.mrf.mxu0 }
 0x80d   :  { %13826 = vst [vmem:[#allocation65_spill] sm:$0xff] %v12702_v25  ;;  %13827 = vst [vmem:[#allocation66_spill] sm:$0xff] %v12704_v29  ;;  %v3329_v29 = vld [vmem:[#allocation11 + $0xcd8] sm:$0xff] }
 0x80e   :  { %v12706_v30 = vpop.f32.mrf.mxu1  ;;  %v12708_v36 = vpop.f32.mrf.mxu0  ;;  %v3325_v25 = vld [vmem:[#allocation11 + $0xcb8] sm:$0xff] }
 0x810   :  { %v12710_v42 = vpop.f32.mrf.mxu1  ;;  %v12712_v49 = vpop.f32.mrf.mxu0 }
 0x811   :  { %3494 = vmatprep.mubr.f32.mxu1 %v12710_v42  ;;  %3583 = vmatprep.mubr.f32.mxu0 %v12712_v49 }
 0x812   :  { %v12716_v47 = vpop.f32.mrf.mxu1  ;;  %v12718_v60 = vpop.f32.mrf.mxu0  ;;  %3495 = vmatmul.mubr.f32.vlgmr.msra.gmra.mxu1 %v12706_v30  ;;  %3584 = vmatmul.mubr.f32.vlgmr.msra.gmra.mxu0 %v12708_v36 }
 0x813   :  { %3609 = vmatpush1.msra.mxu1 %v3236_v1  ;;  %3698 = vmatpush1.msra.mxu0 %v3364_v52  ;;  %v3224_v52 = vld [vmem:[#allocation11 + $0x990] sm:$0xff] }
 0x814   :  { %3610 = vmatprep.subr.mxu1 %v3233_v62  ;;  %3699 = vmatprep.subr.mxu0 %v3361_v15  ;;  %v12722_v39 = vpop.f32.mrf.mxu1  ;;  %v12724_v19 = vpop.f32.mrf.mxu0  ;;  %v3352_v62 = vld [vmem:[#allocation11 + $0xd90] sm:$0xff]  ;;  %v3221_v15 = vld [vmem:[#allocation11 + $0x978] sm:$0xff] }
 0x815   :  { %3611 = vmatpush1.msra.mxu1 %v3232_v12  ;;  %3700 = vmatpush1.msra.mxu0 %v3360_v26  ;;  %v3349_v12 = vld [vmem:[#allocation11 + $0xd78] sm:$0xff] }
 0x816   :  { %3500 = vmatprep.mubr.f32.mxu1 %v12722_v39  ;;  %3589 = vmatprep.mubr.f32.mxu0 %v12724_v19  ;;  %v12728_v14 = vpop.f32.mrf.mxu1  ;;  %v12730_v40 = vpop.f32.mrf.mxu0 }
 0x817   :  { %3612 = vmatprep.subr.mxu1 %v3229_v9  ;;  %3701 = vmatprep.subr.mxu0 %v3357_v57  ;;  %v3220_v57 = vld [vmem:[#allocation11 + $0x970] sm:$0xff] }
 0x818   :  { %3501 = vmatmul.mubr.f32.gmra.mxu1 %v12716_v47  ;;  %3590 = vmatmul.mubr.f32.gmra.mxu0 %v12718_v60  ;;  %v12734_v35 = vpop.f32.mrf.mxu1  ;;  %v12736_v1 = vpop.f32.mrf.mxu0 }
 0x819   :  { %3613 = vmatpush1.msra.mxu1 %v3228_v5  ;;  %3702 = vmatpush1.msra.mxu0 %v3356_v28  ;;  %v3217_v5 = vld [vmem:[#allocation11 + $0x958] sm:$0xff] }
 0x81a   :  { %3614 = vmatprep.subr.mxu1 %v3225_v21  ;;  %3703 = vmatprep.subr.mxu0 %v3353_v23  ;;  %v12738_v26 = vpop.f32.mrf.mxu1  ;;  %v12740_v9 = vpop.f32.mrf.mxu0  ;;  %v3345_v28 = vld [vmem:[#allocation11 + $0xd58] sm:$0xff]  ;;  %v3216_v21 = vld [vmem:[#allocation11 + $0x950] sm:$0xff] }
 0x81b   :  { %3615 = vmatpush1.msra.mxu1 %v3224_v52  ;;  %3704 = vmatpush1.msra.mxu0 %v3352_v62  ;;  %v3344_v23 = vld [vmem:[#allocation11 + $0xd50] sm:$0xff] }
 0x81c   :  { %3506 = vmatprep.mubr.f32.mxu1 %v12734_v35  ;;  %3595 = vmatprep.mubr.f32.mxu0 %v12736_v1  ;;  %v12746_v52 = vpop.f32.mrf.mxu1  ;;  %v12748_v62 = vpop.f32.mrf.mxu0 }
 0x81d   :  { %3616 = vmatprep.subr.mxu1 %v3221_v15  ;;  %3705 = vmatprep.subr.mxu0 %v3349_v12  ;;  %v3212_v15 = vld [vmem:[#allocation11 + $0x930] sm:$0xff] }
 0x81e   :  { %3507 = vmatmul.mubr.f32.gmra.mxu1 %v12728_v14  ;;  %3596 = vmatmul.mubr.f32.gmra.mxu0 %v12730_v40  ;;  %v3340_v12 = vld [vmem:[#allocation11 + $0xd30] sm:$0xff] }
 0x81f   :  { %3617 = vmatpush1.msra.mxu1 %v3220_v57  ;;  %3706 = vmatpush1.msra.mxu0 %v3348_v61  ;;  %v3209_v57 = vld [vmem:[#allocation11 + $0x918] sm:$0xff] }
 0x820   :  { %3618 = vmatprep.subr.mxu1 %v3217_v5  ;;  %3707 = vmatprep.subr.mxu0 %v3345_v28  ;;  %v3337_v61 = vld [vmem:[#allocation11 + $0xd18] sm:$0xff]  ;;  %v3208_v5 = vld [vmem:[#allocation11 + $0x910] sm:$0xff] }
 0x821   :  { %3619 = vmatpush1.msra.mxu1 %v3216_v21  ;;  %3708 = vmatpush1.msra.mxu0 %v3344_v23  ;;  %v3336_v28 = vld [vmem:[#allocation11 + $0xd10] sm:$0xff]  ;;  %v3205_v21 = vld [vmem:[#allocation11 + $0x8f8] sm:$0xff] }
 0x822   :  { %3512 = vmatprep.mubr.f32.mxu1 %v12746_v52  ;;  %3601 = vmatprep.mubr.f32.mxu0 %v12748_v62  ;;  %v3333_v23 = vld [vmem:[#allocation11 + $0xcf8] sm:$0xff] }
 0x823   :  { %3620 = vmatprep.subr.mxu1 %v3213_v56  ;;  %3709 = vmatprep.subr.mxu0 %v3341_v17  ;;  %v3204_v56 = vld [vmem:[#allocation11 + $0x8f0] sm:$0xff] }
 0x824   :  { %3513 = vmatmul.mubr.f32.gmra.mxu1 %v12738_v26  ;;  %3602 = vmatmul.mubr.f32.gmra.mxu0 %v12740_v9  ;;  %v3332_v17 = vld [vmem:[#allocation11 + $0xcf0] sm:$0xff] }
 0x825   :  { %3621 = vmatpush1.msra.mxu1 %v3212_v15  ;;  %3710 = vmatpush1.msra.mxu0 %v3340_v12  ;;  %v3200_v15 = vld [vmem:[#allocation11 + $0x8d0] sm:$0xff] }
 0x826   :  { %3622 = vmatprep.subr.mxu1 %v3209_v57  ;;  %3672 = vmatprep.mubr.f32.mxu1 %v12710_v42  ;;  %v3328_v12 = vld [vmem:[#allocation11 + $0xcd0] sm:$0xff]  ;;  %v3197_v57 = vld [vmem:[#allocation11 + $0x8b8] sm:$0xff] }
 0x827   :  { %3711 = vmatprep.subr.mxu0 %v3337_v61  ;;  %3761 = vmatprep.mubr.f32.mxu0 %v12712_v49  ;;  %v3196_v42 = vld [vmem:[#allocation11 + $0x8b0] sm:$0xff]  ;;  %v3193_v49 = vld [vmem:[#allocation11 + $0x898] sm:$0xff] }
 0x828   :  { %3623 = vmatpush1.msra.mxu1 %v3208_v5  ;;  %3712 = vmatpush1.msra.mxu0 %v3336_v28  ;;  %v3324_v61 = vld [vmem:[#allocation11 + $0xcb0] sm:$0xff] }
 0x829   :  { %3624 = vmatprep.subr.mxu1 %v3205_v21  ;;  %3713 = vmatprep.subr.mxu0 %v3333_v23  ;;  %v3192_v5 = vld [vmem:[#allocation11 + $0x890] sm:$0xff]  ;;  %v3189_v21 = vld [vmem:[#allocation11 + $0x878] sm:$0xff] }
 0x82a   :  { %3625 = vmatpush1.msra.mxu1 %v3204_v56  ;;  %3714 = vmatpush1.msra.mxu0 %v3332_v17  ;;  %v3320_v28 = vld [vmem:[#allocation11 + $0xc90] sm:$0xff]  ;;  %v3317_v23 = vld [vmem:[#allocation11 + $0xc78] sm:$0xff] }
 0x82b   :  { %3626 = vmatprep.subr.mxu1 %v3201_v24  ;;  %3715 = vmatprep.subr.mxu0 %v3329_v29  ;;  %v3188_v56 = vld [vmem:[#allocation11 + $0x870] sm:$0xff]  ;;  %v3185_v24 = vld [vmem:[#allocation11 + $0x858] sm:$0xff] }
 0x82c   :  { %3627 = vmatpush1.msra.mxu1 %v3200_v15  ;;  %3716 = vmatpush1.msra.mxu0 %v3328_v12  ;;  %v3316_v17 = vld [vmem:[#allocation11 + $0xc70] sm:$0xff]  ;;  %v3313_v29 = vld [vmem:[#allocation11 + $0xc58] sm:$0xff] }
 0x82d   :  { %3628 = vmatprep.subr.mxu1 %v3197_v57  ;;  %3717 = vmatprep.subr.mxu0 %v3325_v25  ;;  %v3184_v15 = vld [vmem:[#allocation11 + $0x850] sm:$0xff]  ;;  %v3181_v25 = vld [vmem:[#allocation11 + $0x838] sm:$0xff] }
 0x82e   :  { %3629 = vmatpush1.msra.mxu1 %v3196_v42  ;;  %3718 = vmatpush1.msra.mxu0 %v3324_v61  ;;  %v3312_v12 = vld [vmem:[#allocation11 + $0xc50] sm:$0xff]  ;;  %v3309_v57 = vld [vmem:[#allocation11 + $0xc38] sm:$0xff] }
 0x82f   :  { %3630 = vmatprep.subr.mxu1 %v3193_v49  ;;  %3719 = vmatprep.subr.mxu0 %v3321_v46  ;;  %v3180_v42 = vld [vmem:[#allocation11 + $0x830] sm:$0xff]  ;;  %v3177_v46 = vld [vmem:[#allocation11 + $0x818] sm:$0xff] }
 0x830   :  { %3631 = vmatpush1.msra.mxu1 %v3192_v5  ;;  %3720 = vmatpush1.msra.mxu0 %v3320_v28  ;;  %v3308_v61 = vld [vmem:[#allocation11 + $0xc30] sm:$0xff]  ;;  %v3305_v49 = vld [vmem:[#allocation11 + $0xc18] sm:$0xff] }
 0x831   :  { %3632 = vmatprep.subr.mxu1 %v3189_v21  ;;  %3721 = vmatprep.subr.mxu0 %v3317_v23  ;;  %v3176_v5 = vld [vmem:[#allocation11 + $0x810] sm:$0xff]  ;;  %v3301_v21 = vld [vmem:[#allocation11 + $0xbf8] sm:$0xff] }
 0x832   :  { %3633 = vmatpush1.msra.mxu1 %v3188_v56  ;;  %3722 = vmatpush1.msra.mxu0 %v3316_v17  ;;  %v3304_v28 = vld [vmem:[#allocation11 + $0xc10] sm:$0xff]  ;;  %v3429_v23 = vld [vmem:[#allocation11 + $0xff8] sm:$0xff] }
 0x833   :  { %3634 = vmatprep.subr.mxu1 %v3185_v24  ;;  %3723 = vmatprep.subr.mxu0 %v3313_v29  ;;  %v3300_v56 = vld [vmem:[#allocation11 + $0xbf0] sm:$0xff]  ;;  %v3297_v24 = vld [vmem:[#allocation11 + $0xbd8] sm:$0xff] }
 0x834   :  { %3635 = vmatpush1.msra.mxu1 %v3184_v15  ;;  %3724 = vmatpush1.msra.mxu0 %v3312_v12  ;;  %v3428_v17 = vld [vmem:[#allocation11 + $0xff0] sm:$0xff]  ;;  %v3425_v29 = vld [vmem:[#allocation11 + $0xfd8] sm:$0xff] }
 0x835   :  { %3636 = vmatprep.subr.mxu1 %v3181_v25  ;;  %3725 = vmatprep.subr.mxu0 %v3309_v57  ;;  %v3296_v15 = vld [vmem:[#allocation11 + $0xbd0] sm:$0xff]  ;;  %v3293_v25 = vld [vmem:[#allocation11 + $0xbb8] sm:$0xff] }
 0x836   :  { %3637 = vmatpush1.msra.mxu1 %v3180_v42  ;;  %3726 = vmatpush1.msra.mxu0 %v3308_v61  ;;  %v3424_v12 = vld [vmem:[#allocation11 + $0xfd0] sm:$0xff]  ;;  %v3421_v57 = vld [vmem:[#allocation11 + $0xfb8] sm:$0xff] }
 0x837   :  { %3638 = vmatprep.subr.mxu1 %v3177_v46  ;;  %3727 = vmatprep.subr.mxu0 %v3305_v49  ;;  %v3292_v42 = vld [vmem:[#allocation11 + $0xbb0] sm:$0xff]  ;;  %v3289_v46 = vld [vmem:[#allocation11 + $0xb98] sm:$0xff] }
 0x838   :  { %3639 = vmatpush1.msra.mxu1 %v3176_v5  ;;  %3728 = vmatpush1.msra.mxu0 %v3304_v28  ;;  %v3420_v61 = vld [vmem:[#allocation11 + $0xfb0] sm:$0xff]  ;;  %v3417_v49 = vld [vmem:[#allocation11 + $0xf98] sm:$0xff] }
 0x839   :  { %3640 = vmatprep.subr.mxu1 %v3301_v21  ;;  %3729 = vmatprep.subr.mxu0 %v3429_v23  ;;  %v3288_v5 = vld [vmem:[#allocation11 + $0xb90] sm:$0xff]  ;;  %v3285_v21 = vld [vmem:[#allocation11 + $0xb78] sm:$0xff] }
 0x83a   :  { %3641 = vmatpush2.msra.mxu1 %v3300_v56  ;;  %3730 = vmatpush2.msra.mxu0 %v3428_v17  ;;  %v3416_v28 = vld [vmem:[#allocation11 + $0xf90] sm:$0xff]  ;;  %v3413_v23 = vld [vmem:[#allocation11 + $0xf78] sm:$0xff] }
 0x83b   :  { %3642 = vmatprep.subr.mxu1 %v3297_v24  ;;  %3731 = vmatprep.subr.mxu0 %v3425_v29  ;;  %v3284_v56 = vld [vmem:[#allocation11 + $0xb70] sm:$0xff]  ;;  %v3281_v24 = vld [vmem:[#allocation11 + $0xb58] sm:$0xff] }
 0x83c   :  { %3643 = vmatpush2.msra.mxu1 %v3296_v15  ;;  %3732 = vmatpush2.msra.mxu0 %v3424_v12  ;;  %v3412_v17 = vld [vmem:[#allocation11 + $0xf70] sm:$0xff]  ;;  %v3409_v29 = vld [vmem:[#allocation11 + $0xf58] sm:$0xff] }
 0x83d   :  { %3644 = vmatprep.subr.mxu1 %v3293_v25  ;;  %3733 = vmatprep.subr.mxu0 %v3421_v57  ;;  %v3280_v15 = vld [vmem:[#allocation11 + $0xb50] sm:$0xff]  ;;  %v3277_v25 = vld [vmem:[#allocation11 + $0xb38] sm:$0xff] }
 0x83e   :  { %3645 = vmatpush2.msra.mxu1 %v3292_v42  ;;  %3734 = vmatpush2.msra.mxu0 %v3420_v61  ;;  %v3408_v12 = vld [vmem:[#allocation11 + $0xf50] sm:$0xff]  ;;  %v3405_v57 = vld [vmem:[#allocation11 + $0xf38] sm:$0xff] }
 0x83f   :  { %3646 = vmatprep.subr.mxu1 %v3289_v46  ;;  %3735 = vmatprep.subr.mxu0 %v3417_v49  ;;  %v3276_v42 = vld [vmem:[#allocation11 + $0xb30] sm:$0xff]  ;;  %v3273_v46 = vld [vmem:[#allocation11 + $0xb18] sm:$0xff] }
 0x840   :  { %3647 = vmatpush2.msra.mxu1 %v3288_v5  ;;  %3736 = vmatpush2.msra.mxu0 %v3416_v28  ;;  %v3404_v61 = vld [vmem:[#allocation11 + $0xf30] sm:$0xff]  ;;  %v3401_v49 = vld [vmem:[#allocation11 + $0xf18] sm:$0xff] }
 0x841   :  { %3648 = vmatprep.subr.mxu1 %v3285_v21  ;;  %3737 = vmatprep.subr.mxu0 %v3413_v23  ;;  %v3272_v5 = vld [vmem:[#allocation11 + $0xb10] sm:$0xff]  ;;  %v3269_v21 = vld [vmem:[#allocation11 + $0xaf8] sm:$0xff] }
 0x842   :  { %3649 = vmatpush2.msra.mxu1 %v3284_v56  ;;  %3738 = vmatpush2.msra.mxu0 %v3412_v17  ;;  %v3400_v28 = vld [vmem:[#allocation11 + $0xf10] sm:$0xff]  ;;  %v3397_v23 = vld [vmem:[#allocation11 + $0xef8] sm:$0xff] }
 0x843   :  { %3650 = vmatprep.subr.mxu1 %v3281_v24  ;;  %3739 = vmatprep.subr.mxu0 %v3409_v29  ;;  %v3268_v56 = vld [vmem:[#allocation11 + $0xaf0] sm:$0xff]  ;;  %v3265_v24 = vld [vmem:[#allocation11 + $0xad8] sm:$0xff] }
 0x844   :  { %3651 = vmatpush2.msra.mxu1 %v3280_v15  ;;  %3740 = vmatpush2.msra.mxu0 %v3408_v12  ;;  %v3396_v17 = vld [vmem:[#allocation11 + $0xef0] sm:$0xff]  ;;  %v3393_v29 = vld [vmem:[#allocation11 + $0xed8] sm:$0xff] }
 0x845   :  { %3652 = vmatprep.subr.mxu1 %v3277_v25  ;;  %3741 = vmatprep.subr.mxu0 %v3405_v57  ;;  %v3264_v15 = vld [vmem:[#allocation11 + $0xad0] sm:$0xff]  ;;  %v3261_v25 = vld [vmem:[#allocation11 + $0xab8] sm:$0xff] }
 0x846   :  { %3653 = vmatpush2.msra.mxu1 %v3276_v42  ;;  %3742 = vmatpush2.msra.mxu0 %v3404_v61  ;;  %v3392_v12 = vld [vmem:[#allocation11 + $0xed0] sm:$0xff]  ;;  %v3389_v57 = vld [vmem:[#allocation11 + $0xeb8] sm:$0xff] }
 0x847   :  { %3654 = vmatprep.subr.mxu1 %v3273_v46  ;;  %3743 = vmatprep.subr.mxu0 %v3401_v49  ;;  %v3260_v42 = vld [vmem:[#allocation11 + $0xab0] sm:$0xff]  ;;  %v3257_v46 = vld [vmem:[#allocation11 + $0xa98] sm:$0xff] }
 0x848   :  { %3655 = vmatpush2.msra.mxu1 %v3272_v5  ;;  %3744 = vmatpush2.msra.mxu0 %v3400_v28  ;;  %v3388_v61 = vld [vmem:[#allocation11 + $0xeb0] sm:$0xff]  ;;  %v3385_v49 = vld [vmem:[#allocation11 + $0xe98] sm:$0xff] }
 0x849   :  { %3656 = vmatprep.subr.mxu1 %v3269_v21  ;;  %3745 = vmatprep.subr.mxu0 %v3397_v23  ;;  %v3256_v5 = vld [vmem:[#allocation11 + $0xa90] sm:$0xff]  ;;  %v3253_v21 = vld [vmem:[#allocation11 + $0xa78] sm:$0xff] }
 0x84a   :  { %3657 = vmatpush2.msra.mxu1 %v3268_v56  ;;  %3746 = vmatpush2.msra.mxu0 %v3396_v17  ;;  %v3384_v28 = vld [vmem:[#allocation11 + $0xe90] sm:$0xff]  ;;  %v3381_v23 = vld [vmem:[#allocation11 + $0xe78] sm:$0xff] }
 0x84b   :  { %3658 = vmatprep.subr.mxu1 %v3265_v24  ;;  %3747 = vmatprep.subr.mxu0 %v3393_v29  ;;  %v3252_v56 = vld [vmem:[#allocation11 + $0xa70] sm:$0xff]  ;;  %v3249_v24 = vld [vmem:[#allocation11 + $0xa58] sm:$0xff] }
 0x84c   :  { %3659 = vmatpush2.msra.mxu1 %v3264_v15  ;;  %3748 = vmatpush2.msra.mxu0 %v3392_v12  ;;  %v3380_v17 = vld [vmem:[#allocation11 + $0xe70] sm:$0xff]  ;;  %v3377_v29 = vld [vmem:[#allocation11 + $0xe58] sm:$0xff] }
 0x84d   :  { %3660 = vmatprep.subr.mxu1 %v3261_v25  ;;  %3749 = vmatprep.subr.mxu0 %v3389_v57  ;;  %v3248_v15 = vld [vmem:[#allocation11 + $0xa50] sm:$0xff]  ;;  %v3245_v25 = vld [vmem:[#allocation11 + $0xa38] sm:$0xff] }
 0x84e   :  { %3661 = vmatpush2.msra.mxu1 %v3260_v42  ;;  %3750 = vmatpush2.msra.mxu0 %v3388_v61  ;;  %v3376_v12 = vld [vmem:[#allocation11 + $0xe50] sm:$0xff]  ;;  %v3373_v57 = vld [vmem:[#allocation11 + $0xe38] sm:$0xff] }
 0x84f   :  { %3662 = vmatprep.subr.mxu1 %v3257_v46  ;;  %3751 = vmatprep.subr.mxu0 %v3385_v49  ;;  %v3244_v42 = vld [vmem:[#allocation11 + $0xa30] sm:$0xff]  ;;  %v3241_v46 = vld [vmem:[#allocation11 + $0xa18] sm:$0xff] }
 0x850   :  { %3663 = vmatpush2.msra.mxu1 %v3256_v5  ;;  %3752 = vmatpush2.msra.mxu0 %v3384_v28  ;;  %v3372_v61 = vld [vmem:[#allocation11 + $0xe30] sm:$0xff]  ;;  %v3369_v49 = vld [vmem:[#allocation11 + $0xe18] sm:$0xff] }
 0x851   :  { %3664 = vmatprep.subr.mxu1 %v3253_v21  ;;  %3753 = vmatprep.subr.mxu0 %v3381_v23  ;;  %v3240_v5 = vld [vmem:[#allocation11 + $0xa10] sm:$0xff]  ;;  %v4034_v21 = vld [vmem:[#allocation11 + $0x1120] sm:$0xff] }
 0x852   :  { %3665 = vmatpush2.msra.mxu1 %v3252_v56  ;;  %3754 = vmatpush2.msra.mxu0 %v3380_v17  ;;  %v3368_v28 = vld [vmem:[#allocation11 + $0xe10] sm:$0xff]  ;;  %v4162_v23 = vld [vmem:[#allocation11 + $0x1520] sm:$0xff]  ;;  %v4031_v56 = vld [vmem:[#allocation11 + $0x1108] sm:$0xff] }
 0x853   :  { %3666 = vmatprep.subr.mxu1 %v3249_v24  ;;  %3755 = vmatprep.subr.mxu0 %v3377_v29  ;;  %v4159_v17 = vld [vmem:[#allocation11 + $0x1508] sm:$0xff]  ;;  %v4030_v24 = vld [vmem:[#allocation11 + $0x1100] sm:$0xff] }
 0x854   :  { %3667 = vmatpush2.msra.mxu1 %v3248_v15  ;;  %3756 = vmatpush2.msra.mxu0 %v3376_v12  ;;  %v4158_v29 = vld [vmem:[#allocation11 + $0x1500] sm:$0xff]  ;;  %v4027_v15 = vld [vmem:[#allocation11 + $0x10e8] sm:$0xff] }
 0x855   :  { %3668 = vmatprep.subr.mxu1 %v3245_v25  ;;  %3757 = vmatprep.subr.mxu0 %v3373_v57  ;;  %v4155_v12 = vld [vmem:[#allocation11 + $0x14e8] sm:$0xff]  ;;  %v4026_v25 = vld [vmem:[#allocation11 + $0x10e0] sm:$0xff] }
 0x856   :  { %3669 = vmatpush2.msra.mxu1 %v3244_v42  ;;  %3758 = vmatpush2.msra.mxu0 %v3372_v61  ;;  %v4154_v57 = vld [vmem:[#allocation11 + $0x14e0] sm:$0xff]  ;;  %v4023_v42 = vld [vmem:[#allocation11 + $0x10c8] sm:$0xff] }
 0x857   :  { %3670 = vmatprep.subr.mxu1 %v3241_v46  ;;  %3759 = vmatprep.subr.mxu0 %v3369_v49  ;;  %v4151_v61 = vld [vmem:[#allocation11 + $0x14c8] sm:$0xff]  ;;  %v4022_v46 = vld [vmem:[#allocation11 + $0x10c0] sm:$0xff] }
 0x858   :  { %3671 = vmatpush2.msra.mxu1 %v3240_v5  ;;  %3760 = vmatpush2.msra.mxu0 %v3368_v28  ;;  %v4150_v49 = vld [vmem:[#allocation11 + $0x14c0] sm:$0xff]  ;;  %v4019_v5 = vld [vmem:[#allocation11 + $0x10a8] sm:$0xff] }
 0x859   :  { %3673 = vmatmul.mubr.f32.vlgmr.msra.gmra.mxu1 %v12706_v30  ;;  %3762 = vmatmul.mubr.f32.vlgmr.msra.gmra.mxu0 %v12708_v36  ;;  %v4175_v30 = vld [vmem:[#allocation11 + $0x1588] sm:$0xff]  ;;  %v3806_v36 = vld [vmem:[#allocation10 + $0x58] sm:$0xff] }
 0x85a   :  { %3843 = vmatprep.subr.mxu1 %v12494_v44  ;;  %3932 = vmatprep.subr.mxu0 %v12496_v33  ;;  %v4059_v44 = vld [vmem:[#allocation11 + $0x11e8] sm:$0xff] }
 0x85b   :  { %3678 = vmatprep.mubr.f32.mxu1 %v12722_v39  ;;  %3767 = vmatprep.mubr.f32.mxu0 %v12724_v19  ;;  %v4187_v33 = vld [vmem:[#allocation11 + $0x15e8] sm:$0xff] }
 0x85c   :  { %3844 = vmatpush1.msra.mxu1 %v12499_v43  ;;  %3933 = vmatpush1.msra.mxu0 %v12501_v34  ;;  %v3803_v43 = vld [vmem:[#allocation10 + $0x40] sm:$0xff]  ;;  %v4043_v39 = vld [vmem:[#allocation11 + $0x1168] sm:$0xff] }
 0x85d   :  { %3845 = vmatprep.subr.mxu1 %v12505_v50  ;;  %3934 = vmatprep.subr.mxu0 %v12507_v18  ;;  %v4058_v34 = vld [vmem:[#allocation11 + $0x11e0] sm:$0xff]  ;;  %v4055_v18 = vld [vmem:[#allocation11 + $0x11c8] sm:$0xff] }
 0x85e   :  { %3846 = vmatpush1.msra.mxu1 %v12514_v4  ;;  %3935 = vmatpush1.msra.mxu0 %v12516_v8  ;;  %v4186_v50 = vld [vmem:[#allocation11 + $0x15e0] sm:$0xff]  ;;  %v4183_v4 = vld [vmem:[#allocation11 + $0x15c8] sm:$0xff] }
 0x85f   :  { %3679 = vmatmul.mubr.f32.gmra.mxu1 %v12716_v47  ;;  %3768 = vmatmul.mubr.f32.gmra.mxu0 %v12718_v60  ;;  %v3804_v8 = vld [vmem:[#allocation10 + $0x48] sm:$0xff]  ;;  %v4046_v47 = vld [vmem:[#allocation11 + $0x1180] sm:$0xff] }
 0x860   :  { %3847 = vmatprep.subr.mxu1 %v12520_v59  ;;  %3936 = vmatprep.subr.mxu0 %v12522_v63  ;;  %v4054_v59 = vld [vmem:[#allocation11 + $0x11c0] sm:$0xff]  ;;  %v4171_v19 = vld [vmem:[#allocation11 + $0x1568] sm:$0xff] }
 0x861   :  { %3684 = vmatprep.mubr.f32.mxu1 %v12734_v35  ;;  %3773 = vmatprep.mubr.f32.mxu0 %v12736_v1  ;;  %v4182_v63 = vld [vmem:[#allocation11 + $0x15c0] sm:$0xff]  ;;  %v4039_v35 = vld [vmem:[#allocation11 + $0x1148] sm:$0xff] }
 0x862   :  { %3848 = vmatpush1.msra.mxu1 %v12526_v38  ;;  %3937 = vmatpush1.msra.mxu0 %v12528_v27  ;;  %v4051_v38 = vld [vmem:[#allocation11 + $0x11a8] sm:$0xff]  ;;  %v4174_v60 = vld [vmem:[#allocation11 + $0x1580] sm:$0xff] }
 0x863   :  { %3849 = vmatprep.subr.mxu1 %v12532_v3  ;;  %3938 = vmatprep.subr.mxu0 %v12534_v20  ;;  %v4179_v27 = vld [vmem:[#allocation11 + $0x15a8] sm:$0xff]  ;;  %v3805_v3 = vld [vmem:[#allocation10 + $0x50] sm:$0xff]  ;;  %v4050_v20 = vld [vmem:[#allocation11 + $0x11a0] sm:$0xff] }
 0x864   :  { %3850 = vmatpush1.msra.mxu1 %v12538_v22  ;;  %3939 = vmatpush1.msra.mxu0 %v12540_v11  ;;  %v4178_v22 = vld [vmem:[#allocation11 + $0x15a0] sm:$0xff]  ;;  %v4047_v11 = vld [vmem:[#allocation11 + $0x1188] sm:$0xff] }
 0x865   :  { %3685 = vmatmul.mubr.f32.gmra.mxu1 %v12728_v14  ;;  %3774 = vmatmul.mubr.f32.gmra.mxu0 %v12730_v40  ;;  %v4042_v14 = vld [vmem:[#allocation11 + $0x1160] sm:$0xff]  ;;  %v4167_v1 = vld [vmem:[#allocation11 + $0x1548] sm:$0xff] }
 0x866   :  { %3690 = vmatprep.mubr.f32.mxu1 %v12746_v52  ;;  %3779 = vmatprep.mubr.f32.mxu0 %v12748_v62  ;;  %v4170_v40 = vld [vmem:[#allocation11 + $0x1560] sm:$0xff]  ;;  %v4035_v52 = vld [vmem:[#allocation11 + $0x1128] sm:$0xff] }
 0x867   :  { %4254 = vmatprep.subr.mxu1 %v4059_v44  ;;  %4343 = vmatprep.subr.mxu0 %v4187_v33  ;;  %v4163_v62 = vld [vmem:[#allocation11 + $0x1528] sm:$0xff]  ;;  %v4018_v44 = vld [vmem:[#allocation11 + $0x10a0] sm:$0xff] }
 0x868   :  { %v4147_v28 = vld [vmem:[#allocation11 + $0x14a8] sm:$0xff]  ;;  %v4146_v33 = vld [vmem:[#allocation11 + $0x14a0] sm:$0xff] }
 0x869   :  { %3691 = vmatmul.mubr.f32.gmra.mxu1 %v12738_v26  ;;  %3780 = vmatmul.mubr.f32.gmra.mxu0 %v12740_v9  ;;  %v4038_v26 = vld [vmem:[#allocation11 + $0x1140] sm:$0xff] }
 0x86a   :  { %3883 = vmatprep.mubr.f32.mxu1 %v13820_v32  ;;  %3972 = vmatprep.mubr.f32.mxu0 %v13820_v32  ;;  %v4166_v9 = vld [vmem:[#allocation11 + $0x1540] sm:$0xff] }
 0x86d   :  { %10704 = vmatmul.mubr.msk.f32.vlgmr.msra.gmra.mxu1 %vm396_vm0, %v3803_v43  ;;  %10708 = vmatmul.mubr.msk.f32.vlgmr.msra.gmra.mxu0 %vm396_vm0, %v3803_v43  ;;  %v4015_v43 = vld [vmem:[#allocation11 + $0x1088] sm:$0xff] }
 0x86e   :  { %3889 = vmatprep.mubr.f32.mxu1 %v13820_v32  ;;  %3978 = vmatprep.mubr.f32.mxu0 %v13820_v32 }
 0x86f   :  { %4255 = vmatpush1.msra.mxu1 %v4058_v34  ;;  %4344 = vmatpush1.msra.mxu0 %v4186_v50  ;;  %v4143_v34 = vld [vmem:[#allocation11 + $0x1488] sm:$0xff]  ;;  %v4014_v50 = vld [vmem:[#allocation11 + $0x1080] sm:$0xff] }
 0x870   :  { %4256 = vmatprep.subr.mxu1 %v4055_v18  ;;  %4345 = vmatprep.subr.mxu0 %v4183_v4  ;;  %v4142_v18 = vld [vmem:[#allocation11 + $0x1480] sm:$0xff]  ;;  %v4011_v4 = vld [vmem:[#allocation11 + $0x1068] sm:$0xff] }
 0x871   :  { %10705 = vmatmul.mubr.msk.f32.gmra.mxu1 %vm396_vm0, %v3804_v8  ;;  %10709 = vmatmul.mubr.msk.f32.gmra.mxu0 %vm396_vm0, %v3804_v8  ;;  %v4139_v8 = vld [vmem:[#allocation11 + $0x1468] sm:$0xff] }
 0x872   :  { %3895 = vmatprep.mubr.f32.mxu1 %v13820_v32  ;;  %3984 = vmatprep.mubr.f32.mxu0 %v13820_v32 }
 0x873   :  { %4257 = vmatpush1.msra.mxu1 %v4054_v59  ;;  %4346 = vmatpush1.msra.mxu0 %v4182_v63  ;;  %v4010_v59 = vld [vmem:[#allocation11 + $0x1060] sm:$0xff] }
 0x874   :  { %4258 = vmatprep.subr.mxu1 %v4051_v38  ;;  %4347 = vmatprep.subr.mxu0 %v4179_v27  ;;  %v4138_v63 = vld [vmem:[#allocation11 + $0x1460] sm:$0xff]  ;;  %v4007_v38 = vld [vmem:[#allocation11 + $0x1048] sm:$0xff] }
 0x875   :  { %10706 = vmatmul.mubr.msk.f32.gmra.mxu1 %vm396_vm0, %v3805_v3  ;;  %10710 = vmatmul.mubr.msk.f32.gmra.mxu0 %vm396_vm0, %v3805_v3  ;;  %v4135_v27 = vld [vmem:[#allocation11 + $0x1448] sm:$0xff]  ;;  %v4006_v3 = vld [vmem:[#allocation11 + $0x1040] sm:$0xff] }
 0x876   :  { %3901 = vmatprep.mubr.f32.mxu1 %v13820_v32  ;;  %3990 = vmatprep.mubr.f32.mxu0 %v13820_v32 }
 0x877   :  { %4259 = vmatpush1.msra.mxu1 %v4050_v20  ;;  %4348 = vmatpush1.msra.mxu0 %v4178_v22  ;;  %v4134_v20 = vld [vmem:[#allocation11 + $0x1440] sm:$0xff]  ;;  %v4003_v22 = vld [vmem:[#allocation11 + $0x1028] sm:$0xff] }
 0x878   :  { %4260 = vmatprep.subr.mxu1 %v4047_v11  ;;  %4349 = vmatprep.subr.mxu0 %v4175_v30  ;;  %v4131_v11 = vld [vmem:[#allocation11 + $0x1428] sm:$0xff]  ;;  %v4002_v30 = vld [vmem:[#allocation11 + $0x1020] sm:$0xff] }
 0x879   :  { %10707 = vmatmul.mubr.msk.f32.gmra.mxu1 %vm396_vm0, %v3806_v36  ;;  %10711 = vmatmul.mubr.msk.f32.gmra.mxu0 %vm396_vm0, %v3806_v36  ;;  %v4130_v36 = vld [vmem:[#allocation11 + $0x1420] sm:$0xff] }
 0x87a   :  { %4261 = vmatpush1.msra.mxu1 %v4046_v47  ;;  %4350 = vmatpush1.msra.mxu0 %v4174_v60  ;;  %v3999_v47 = vld [vmem:[#allocation11 + $0x1008] sm:$0xff] }
 0x87b   :  { %4262 = vmatprep.subr.mxu1 %v4043_v39  ;;  %4351 = vmatprep.subr.mxu0 %v4171_v19  ;;  %v4127_v60 = vld [vmem:[#allocation11 + $0x1408] sm:$0xff]  ;;  %v3998_v39 = vld [vmem:[#allocation11 + $0x1000] sm:$0xff] }
 0x87c   :  { %4263 = vmatpush1.msra.mxu1 %v4042_v14  ;;  %4352 = vmatpush1.msra.mxu0 %v4170_v40  ;;  %v4126_v19 = vld [vmem:[#allocation11 + $0x1400] sm:$0xff]  ;;  %v4123_v14 = vld [vmem:[#allocation11 + $0x13e8] sm:$0xff] }
 0x87d   :  { %4264 = vmatprep.subr.mxu1 %v4039_v35  ;;  %4353 = vmatprep.subr.mxu0 %v4167_v1  ;;  %v4251_v40 = vld [vmem:[#allocation11 + $0x17e8] sm:$0xff]  ;;  %v4122_v35 = vld [vmem:[#allocation11 + $0x13e0] sm:$0xff] }
 0x87e   :  { %4265 = vmatpush1.msra.mxu1 %v4038_v26  ;;  %4354 = vmatpush1.msra.mxu0 %v4166_v9  ;;  %v4250_v1 = vld [vmem:[#allocation11 + $0x17e0] sm:$0xff]  ;;  %v4119_v26 = vld [vmem:[#allocation11 + $0x13c8] sm:$0xff] }
 0x87f   :  { %4266 = vmatprep.subr.mxu1 %v4035_v52  ;;  %4355 = vmatprep.subr.mxu0 %v4163_v62  ;;  %v4247_v9 = vld [vmem:[#allocation11 + $0x17c8] sm:$0xff]  ;;  %v4118_v52 = vld [vmem:[#allocation11 + $0x13c0] sm:$0xff] }
 0x880   :  { %4267 = vmatpush1.msra.mxu1 %v4034_v21  ;;  %4356 = vmatpush1.msra.mxu0 %v4162_v23  ;;  %v4246_v62 = vld [vmem:[#allocation11 + $0x17c0] sm:$0xff]  ;;  %v4115_v21 = vld [vmem:[#allocation11 + $0x13a8] sm:$0xff] }
 0x881   :  { %4268 = vmatprep.subr.mxu1 %v4031_v56  ;;  %4357 = vmatprep.subr.mxu0 %v4159_v17  ;;  %v4243_v23 = vld [vmem:[#allocation11 + $0x17a8] sm:$0xff]  ;;  %v4114_v56 = vld [vmem:[#allocation11 + $0x13a0] sm:$0xff] }
 0x882   :  { %4269 = vmatpush1.msra.mxu1 %v4030_v24  ;;  %4358 = vmatpush1.msra.mxu0 %v4158_v29  ;;  %v4242_v17 = vld [vmem:[#allocation11 + $0x17a0] sm:$0xff]  ;;  %v4111_v24 = vld [vmem:[#allocation11 + $0x1388] sm:$0xff] }
 0x883   :  { %4270 = vmatprep.subr.mxu1 %v4027_v15  ;;  %4359 = vmatprep.subr.mxu0 %v4155_v12  ;;  %v4239_v29 = vld [vmem:[#allocation11 + $0x1788] sm:$0xff]  ;;  %v4110_v15 = vld [vmem:[#allocation11 + $0x1380] sm:$0xff] }
 0x884   :  { %4271 = vmatpush1.msra.mxu1 %v4026_v25  ;;  %4360 = vmatpush1.msra.mxu0 %v4154_v57  ;;  %v4238_v12 = vld [vmem:[#allocation11 + $0x1780] sm:$0xff]  ;;  %v4107_v25 = vld [vmem:[#allocation11 + $0x1368] sm:$0xff] }
 0x885   :  { %4272 = vmatprep.subr.mxu1 %v4023_v42  ;;  %4361 = vmatprep.subr.mxu0 %v4151_v61  ;;  %v4235_v57 = vld [vmem:[#allocation11 + $0x1768] sm:$0xff]  ;;  %v4106_v42 = vld [vmem:[#allocation11 + $0x1360] sm:$0xff] }
 0x886   :  { %4273 = vmatpush1.msra.mxu1 %v4022_v46  ;;  %4362 = vmatpush1.msra.mxu0 %v4150_v49  ;;  %v4234_v61 = vld [vmem:[#allocation11 + $0x1760] sm:$0xff]  ;;  %v4103_v46 = vld [vmem:[#allocation11 + $0x1348] sm:$0xff] }
 0x887   :  { %4274 = vmatprep.subr.mxu1 %v4019_v5  ;;  %4363 = vmatprep.subr.mxu0 %v4147_v28  ;;  %v4231_v49 = vld [vmem:[#allocation11 + $0x1748] sm:$0xff]  ;;  %v4102_v5 = vld [vmem:[#allocation11 + $0x1340] sm:$0xff] }
 0x888   :  { %4275 = vmatpush1.msra.mxu1 %v4018_v44  ;;  %4364 = vmatpush1.msra.mxu0 %v4146_v33  ;;  %v4230_v28 = vld [vmem:[#allocation11 + $0x1740] sm:$0xff]  ;;  %v4099_v44 = vld [vmem:[#allocation11 + $0x1328] sm:$0xff] }
 0x889   :  { %4276 = vmatprep.subr.mxu1 %v4015_v43  ;;  %4365 = vmatprep.subr.mxu0 %v4143_v34  ;;  %v4227_v33 = vld [vmem:[#allocation11 + $0x1728] sm:$0xff]  ;;  %v4098_v43 = vld [vmem:[#allocation11 + $0x1320] sm:$0xff] }
 0x88a   :  { %4277 = vmatpush1.msra.mxu1 %v4014_v50  ;;  %4366 = vmatpush1.msra.mxu0 %v4142_v18  ;;  %v4226_v34 = vld [vmem:[#allocation11 + $0x1720] sm:$0xff]  ;;  %v4095_v50 = vld [vmem:[#allocation11 + $0x1308] sm:$0xff] }
 0x88b   :  { %4278 = vmatprep.subr.mxu1 %v4011_v4  ;;  %4367 = vmatprep.subr.mxu0 %v4139_v8  ;;  %v4223_v18 = vld [vmem:[#allocation11 + $0x1708] sm:$0xff]  ;;  %v4094_v4 = vld [vmem:[#allocation11 + $0x1300] sm:$0xff] }
 0x88c   :  { %4279 = vmatpush1.msra.mxu1 %v4010_v59  ;;  %4368 = vmatpush1.msra.mxu0 %v4138_v63  ;;  %v4222_v8 = vld [vmem:[#allocation11 + $0x1700] sm:$0xff]  ;;  %v4091_v59 = vld [vmem:[#allocation11 + $0x12e8] sm:$0xff] }
 0x88d   :  { %4280 = vmatprep.subr.mxu1 %v4007_v38  ;;  %4369 = vmatprep.subr.mxu0 %v4135_v27  ;;  %v4219_v63 = vld [vmem:[#allocation11 + $0x16e8] sm:$0xff]  ;;  %v4090_v38 = vld [vmem:[#allocation11 + $0x12e0] sm:$0xff] }
 0x88e   :  { %4281 = vmatpush1.msra.mxu1 %v4006_v3  ;;  %4370 = vmatpush1.msra.mxu0 %v4134_v20  ;;  %v4218_v27 = vld [vmem:[#allocation11 + $0x16e0] sm:$0xff]  ;;  %v4087_v3 = vld [vmem:[#allocation11 + $0x12c8] sm:$0xff] }
 0x88f   :  { %4282 = vmatprep.subr.mxu1 %v4003_v22  ;;  %4371 = vmatprep.subr.mxu0 %v4131_v11  ;;  %v4215_v20 = vld [vmem:[#allocation11 + $0x16c8] sm:$0xff]  ;;  %v4086_v22 = vld [vmem:[#allocation11 + $0x12c0] sm:$0xff] }
 0x890   :  { %4283 = vmatpush1.msra.mxu1 %v4002_v30  ;;  %4372 = vmatpush1.msra.mxu0 %v4130_v36  ;;  %v4214_v11 = vld [vmem:[#allocation11 + $0x16c0] sm:$0xff]  ;;  %v4083_v30 = vld [vmem:[#allocation11 + $0x12a8] sm:$0xff] }
 0x891   :  { %4284 = vmatprep.subr.mxu1 %v3999_v47  ;;  %4373 = vmatprep.subr.mxu0 %v4127_v60  ;;  %v4211_v36 = vld [vmem:[#allocation11 + $0x16a8] sm:$0xff]  ;;  %v4082_v47 = vld [vmem:[#allocation11 + $0x12a0] sm:$0xff] }
 0x892   :  { %4285 = vmatpush1.msra.mxu1 %v3998_v39  ;;  %4374 = vmatpush1.msra.mxu0 %v4126_v19  ;;  %v4210_v60 = vld [vmem:[#allocation11 + $0x16a0] sm:$0xff]  ;;  %v4079_v39 = vld [vmem:[#allocation11 + $0x1288] sm:$0xff] }
 0x893   :  { %4286 = vmatprep.subr.mxu1 %v4123_v14  ;;  %4375 = vmatprep.subr.mxu0 %v4251_v40  ;;  %v4207_v19 = vld [vmem:[#allocation11 + $0x1688] sm:$0xff]  ;;  %v4078_v14 = vld [vmem:[#allocation11 + $0x1280] sm:$0xff] }
 0x894   :  { %4287 = vmatpush2.msra.mxu1 %v4122_v35  ;;  %4376 = vmatpush2.msra.mxu0 %v4250_v1  ;;  %v4206_v40 = vld [vmem:[#allocation11 + $0x1680] sm:$0xff]  ;;  %v4075_v35 = vld [vmem:[#allocation11 + $0x1268] sm:$0xff] }
 0x895   :  { %4288 = vmatprep.subr.mxu1 %v4119_v26  ;;  %4377 = vmatprep.subr.mxu0 %v4247_v9  ;;  %v4203_v1 = vld [vmem:[#allocation11 + $0x1668] sm:$0xff]  ;;  %v4074_v26 = vld [vmem:[#allocation11 + $0x1260] sm:$0xff] }
 0x896   :  { %4289 = vmatpush2.msra.mxu1 %v4118_v52  ;;  %4378 = vmatpush2.msra.mxu0 %v4246_v62  ;;  %v4202_v9 = vld [vmem:[#allocation11 + $0x1660] sm:$0xff]  ;;  %v4071_v52 = vld [vmem:[#allocation11 + $0x1248] sm:$0xff] }
 0x897   :  { %4290 = vmatprep.subr.mxu1 %v4115_v21  ;;  %4379 = vmatprep.subr.mxu0 %v4243_v23  ;;  %v4199_v62 = vld [vmem:[#allocation11 + $0x1648] sm:$0xff]  ;;  %v4070_v21 = vld [vmem:[#allocation11 + $0x1240] sm:$0xff] }
 0x898   :  { %4291 = vmatpush2.msra.mxu1 %v4114_v56  ;;  %4380 = vmatpush2.msra.mxu0 %v4242_v17  ;;  %v4198_v23 = vld [vmem:[#allocation11 + $0x1640] sm:$0xff]  ;;  %v4067_v56 = vld [vmem:[#allocation11 + $0x1228] sm:$0xff] }
 0x899   :  { %4292 = vmatprep.subr.mxu1 %v4111_v24  ;;  %4381 = vmatprep.subr.mxu0 %v4239_v29  ;;  %v4195_v17 = vld [vmem:[#allocation11 + $0x1628] sm:$0xff]  ;;  %v4066_v24 = vld [vmem:[#allocation11 + $0x1220] sm:$0xff] }
 0x89a   :  { %4293 = vmatpush2.msra.mxu1 %v4110_v15  ;;  %4382 = vmatpush2.msra.mxu0 %v4238_v12  ;;  %v4194_v29 = vld [vmem:[#allocation11 + $0x1620] sm:$0xff]  ;;  %v4063_v15 = vld [vmem:[#allocation11 + $0x1208] sm:$0xff] }
 0x89b   :  { %4294 = vmatprep.subr.mxu1 %v4107_v25  ;;  %4383 = vmatprep.subr.mxu0 %v4235_v57  ;;  %v4191_v12 = vld [vmem:[#allocation11 + $0x1608] sm:$0xff]  ;;  %v4062_v25 = vld [vmem:[#allocation11 + $0x1200] sm:$0xff] }
 0x89c   :  { %4295 = vmatpush2.msra.mxu1 %v4106_v42  ;;  %4384 = vmatpush2.msra.mxu0 %v4234_v61  ;;  %v4190_v57 = vld [vmem:[#allocation11 + $0x1600] sm:$0xff]  ;;  %v4061_v42 = vld [vmem:[#allocation11 + $0x11f8] sm:$0xff] }
 0x89d   :  { %4296 = vmatprep.subr.mxu1 %v4103_v46  ;;  %4385 = vmatprep.subr.mxu0 %v4231_v49  ;;  %v4189_v61 = vld [vmem:[#allocation11 + $0x15f8] sm:$0xff]  ;;  %v12802_v46 = vld [vmem:[#allocation13] sm:$0xf]  ;;  %v13828_v49 = vld [vmem:[#allocation56_spill] sm:$0xff] }
 0x89e   :  { %4297 = vmatpush2.msra.mxu1 %v4102_v5  ;;  %4386 = vmatpush2.msra.mxu0 %v4230_v28  ;;  %v2945_v5 = vrot.slane %v12802_v46, %v13828_v49 }
 0x89f   :  { %4298 = vmatprep.subr.mxu1 %v4099_v44  ;;  %4387 = vmatprep.subr.mxu0 %v4227_v33 }
 0x8a0   :  { %4299 = vmatpush2.msra.mxu1 %v4098_v43  ;;  %4388 = vmatpush2.msra.mxu0 %v4226_v34  ;;  %v2962_v33 = vadd.f32 %v2945_v5, %v12658_v7 }
 0x8a1   :  { %4300 = vmatprep.subr.mxu1 %v4095_v50  ;;  %4389 = vmatprep.subr.mxu0 %v4223_v18 }
 0x8a2   :  { %4301 = vmatpush2.msra.mxu1 %v4094_v4  ;;  %4390 = vmatpush2.msra.mxu0 %v4222_v8 }
 0x8a3   :  { %4302 = vmatprep.subr.mxu1 %v4091_v59  ;;  %4391 = vmatprep.subr.mxu0 %v4219_v63  ;;  %v2966_v63 = vadd.f32 %v2945_v5, %v12664_v53 }
 0x8a4   :  { %4303 = vmatpush2.msra.mxu1 %v4090_v38  ;;  %4392 = vmatpush2.msra.mxu0 %v4218_v27 }
 0x8a5   :  { %4304 = vmatprep.subr.mxu1 %v4087_v3  ;;  %4393 = vmatprep.subr.mxu0 %v4215_v20 }
 0x8a6   :  { %4305 = vmatpush2.msra.mxu1 %v4086_v22  ;;  %4394 = vmatpush2.msra.mxu0 %v4214_v11 }
 0x8a7   :  { %4306 = vmatprep.subr.mxu1 %v4083_v30  ;;  %4395 = vmatprep.subr.mxu0 %v4211_v36  ;;  %v2970_v30 = vadd.f32 %v2945_v5, %v12670_v41 }
 0x8a8   :  { %4307 = vmatpush2.msra.mxu1 %v4082_v47  ;;  %4396 = vmatpush2.msra.mxu0 %v4210_v60 }
 0x8a9   :  { %4308 = vmatprep.subr.mxu1 %v4079_v39  ;;  %4397 = vmatprep.subr.mxu0 %v4207_v19 }
 0x8aa   :  { %4309 = vmatpush2.msra.mxu1 %v4078_v14  ;;  %4398 = vmatpush2.msra.mxu0 %v4206_v40  ;;  %v2974_v40 = vadd.f32 %v2945_v5, %v12676_v0 }
 0x8ab   :  { %4310 = vmatprep.subr.mxu1 %v4075_v35  ;;  %4399 = vmatprep.subr.mxu0 %v4203_v1 }
 0x8ac   :  { %4311 = vmatpush2.msra.mxu1 %v4074_v26  ;;  %4400 = vmatpush2.msra.mxu0 %v4202_v9 }
 0x8ad   :  { %4312 = vmatprep.subr.mxu1 %v4071_v52  ;;  %4401 = vmatprep.subr.mxu0 %v4199_v62  ;;  %v13829_v62 = vld [vmem:[#allocation57_spill] sm:$0xff] }
 0x8ae   :  { %4313 = vmatpush2.msra.mxu1 %v4070_v21  ;;  %4402 = vmatpush2.msra.mxu0 %v4198_v23  ;;  %v2953_v41 = vrot.slane %v12802_v46, %v13829_v62 }
 0x8af   :  { %4314 = vmatprep.subr.mxu1 %v4067_v56  ;;  %4403 = vmatprep.subr.mxu0 %v4195_v17 }
 0x8b0   :  { %4315 = vmatpush2.msra.mxu1 %v4066_v24  ;;  %4404 = vmatpush2.msra.mxu0 %v4194_v29  ;;  %v2964_v56 = vadd.f32 %v2953_v41, %v12682_v54 }
 0x8b1   :  { %4316 = vmatprep.subr.mxu1 %v4063_v15  ;;  %4405 = vmatprep.subr.mxu0 %v4191_v12 }
 0x8b2   :  { %4317 = vmatpush2.msra.mxu1 %v4062_v25  ;;  %4406 = vmatpush2.msra.mxu0 %v4190_v57  ;;  %v2968_v57 = vadd.f32 %v2953_v41, %v12688_v10 }
 0x8b3   :  { %4432 = vmatprep.subr.mxu1 %v4061_v42  ;;  %4521 = vmatprep.subr.mxu0 %v4189_v61 }
 0x8d2   :  { %v3496_v28 = vpop.f32.mrf.mxu1  ;;  %v3585_v44 = vpop.f32.mrf.mxu0 }
 0x8d3   :  { %v3586_v43 = vadd.f32 %v3585_v44, %v3496_v28 }
 0x8d4   :  { %v3498_v34 = vpop.f32.mrf.mxu1  ;;  %v3587_v50 = vpop.f32.mrf.mxu0 }
 0x8d5   :  { %v12807_v18 = vadd.f32 %v3586_v43, %v2962_v33  ;;  %v12809_v4 = vadd.f32 %v3587_v50, %v3498_v34  ;;  %v2972_v43 = vadd.f32 %v2953_v41, %v12694_v58 }
 0x8d8   :  { %v3502_v8 = vpop.f32.mrf.mxu1  ;;  %v3591_v59 = vpop.f32.mrf.mxu0 }
 0x8d9   :  { %v3592_v38 = vadd.f32 %v3591_v59, %v3502_v8 }
 0x8da   :  { %v3504_v27 = vpop.f32.mrf.mxu1  ;;  %v3593_v3 = vpop.f32.mrf.mxu0 }
 0x8db   :  { %v12812_v20 = vadd.f32 %v3592_v38, %v2966_v63  ;;  %v12814_v22 = vadd.f32 %v3593_v3, %v3504_v27  ;;  %v2976_v27 = vadd.f32 %v2953_v41, %v12700_v55  ;;  %v4057_v55 = vld [vmem:[#allocation11 + $0x11d8] sm:$0xff]  ;;  %v4056_v41 = vld [vmem:[#allocation11 + $0x11d0] sm:$0xff] }
 0x8de   :  { %v3508_v11 = vpop.f32.mrf.mxu1  ;;  %v3597_v7 = vpop.f32.mrf.mxu0 }
 0x8df   :  { %v3598_v36 = vadd.f32 %v3597_v7, %v3508_v11 }
 0x8e0   :  { %v3510_v47 = vpop.f32.mrf.mxu1  ;;  %v3599_v60 = vpop.f32.mrf.mxu0 }
 0x8e1   :  { %v12817_v39 = vadd.f32 %v3598_v36, %v2970_v30  ;;  %v12819_v19 = vadd.f32 %v3599_v60, %v3510_v47 }
 0x8e4   :  { %v3514_v14 = vpop.f32.mrf.mxu1  ;;  %v3603_v53 = vpop.f32.mrf.mxu0 }
 0x8e5   :  { %v3604_v35 = vadd.f32 %v3603_v53, %v3514_v14  ;;  %v4060_v53 = vld [vmem:[#allocation11 + $0x11f0] sm:$0xff] }
 0x8e6   :  { %v3516_v1 = vpop.f32.mrf.mxu1  ;;  %v3605_v26 = vpop.f32.mrf.mxu0 }
 0x8e7   :  { %v12822_v9 = vadd.f32 %v3604_v35, %v2974_v40  ;;  %v12824_v52 = vadd.f32 %v3605_v26, %v3516_v1  ;;  %v4188_v40 = vld [vmem:[#allocation11 + $0x15f0] sm:$0xff]  ;;  %v4185_v35 = vld [vmem:[#allocation11 + $0x15d8] sm:$0xff] }
 0x919   :  { %v3674_v21 = vpop.f32.mrf.mxu1  ;;  %v3763_v23 = vpop.f32.mrf.mxu0 }
 0x91a   :  { %v3764_v17 = vadd.f32 %v3763_v23, %v3674_v21  ;;  %v4184_v21 = vld [vmem:[#allocation11 + $0x15d0] sm:$0xff] }
 0x91b   :  { %v3676_v24 = vpop.f32.mrf.mxu1  ;;  %v3765_v29 = vpop.f32.mrf.mxu0 }
 0x91c   :  { %v12829_v15 = vadd.f32 %v3764_v17, %v2964_v56  ;;  %v12831_v0 = vadd.f32 %v3765_v29, %v3676_v24  ;;  %v4053_v17 = vld [vmem:[#allocation11 + $0x11b8] sm:$0xff] }
 0x91d   :  { %v4181_v24 = vld [vmem:[#allocation11 + $0x15b8] sm:$0xff] }
 0x91f   :  { %v3680_v12 = vpop.f32.mrf.mxu1  ;;  %v3769_v25 = vpop.f32.mrf.mxu0 }
 0x920   :  { %v3770_v42 = vadd.f32 %v3769_v25, %v3680_v12  ;;  %v4052_v25 = vld [vmem:[#allocation11 + $0x11b0] sm:$0xff] }
 0x921   :  { %v3682_v61 = vpop.f32.mrf.mxu1  ;;  %v3771_v5 = vpop.f32.mrf.mxu0 }
 0x922   :  { %v12834_v28 = vadd.f32 %v3770_v42, %v2968_v57  ;;  %v12836_v44 = vadd.f32 %v3771_v5, %v3682_v61  ;;  %v4180_v57 = vld [vmem:[#allocation11 + $0x15b0] sm:$0xff]  ;;  %v4049_v42 = vld [vmem:[#allocation11 + $0x1198] sm:$0xff] }
 0x923   :  { %v4177_v61 = vld [vmem:[#allocation11 + $0x1598] sm:$0xff] }
 0x925   :  { %v3686_v33 = vpop.f32.mrf.mxu1  ;;  %v3775_v54 = vpop.f32.mrf.mxu0 }
 0x926   :  { %v3776_v34 = vadd.f32 %v3775_v54, %v3686_v33  ;;  %v4048_v54 = vld [vmem:[#allocation11 + $0x1190] sm:$0xff] }
 0x927   :  { %v3688_v50 = vpop.f32.mrf.mxu1  ;;  %v3777_v8 = vpop.f32.mrf.mxu0 }
 0x928   :  { %v12839_v59 = vadd.f32 %v3776_v34, %v2972_v43  ;;  %v12841_v63 = vadd.f32 %v3777_v8, %v3688_v50  ;;  %v4176_v43 = vld [vmem:[#allocation11 + $0x1590] sm:$0xff]  ;;  %v4045_v34 = vld [vmem:[#allocation11 + $0x1178] sm:$0xff] }
 0x929   :  { %v3692_v38 = vpop.f32.mrf.mxu1  ;;  %v3781_v10 = vpop.f32.mrf.mxu0  ;;  %v4173_v50 = vld [vmem:[#allocation11 + $0x1578] sm:$0xff] }
 0x92a   :  { %v3782_v3 = vadd.f32 %v3781_v10, %v3692_v38  ;;  %v4044_v10 = vld [vmem:[#allocation11 + $0x1170] sm:$0xff] }
 0x92b   :  { %v3694_v11 = vpop.f32.mrf.mxu1  ;;  %v3783_v7 = vpop.f32.mrf.mxu0 }
 0x92c   :  { %v12844_v30 = vadd.f32 %v3782_v3, %v2976_v27  ;;  %v12846_v36 = vadd.f32 %v3783_v7, %v3694_v11  ;;  %v4172_v27 = vld [vmem:[#allocation11 + $0x1570] sm:$0xff]  ;;  %v4041_v3 = vld [vmem:[#allocation11 + $0x1158] sm:$0xff] }
 0x92d   :  { %v12848_v47 = vpop.f32.mrf.mxu1  ;;  %v12850_v58 = vpop.f32.mrf.mxu0  ;;  %v4169_v11 = vld [vmem:[#allocation11 + $0x1558] sm:$0xff]  ;;  %v4040_v7 = vld [vmem:[#allocation11 + $0x1150] sm:$0xff] }
 0x92f   :  { %v12852_v60 = vpop.f32.mrf.mxu1  ;;  %v12854_v14 = vpop.f32.mrf.mxu0 }
 0x930   :  { %4318 = vmatprep.mubr.f32.mxu1 %v12852_v60  ;;  %4407 = vmatprep.mubr.f32.mxu0 %v12854_v14 }
 0x931   :  { %v12858_v1 = vpop.f32.mrf.mxu1  ;;  %v12860_v26 = vpop.f32.mrf.mxu0  ;;  %4319 = vmatmul.mubr.f32.vlgmr.msra.gmra.mxu1 %v12848_v47  ;;  %4408 = vmatmul.mubr.f32.vlgmr.msra.gmra.mxu0 %v12850_v58 }
 0x932   :  { %4433 = vmatpush1.msra.mxu1 %v4060_v53  ;;  %4522 = vmatpush1.msra.mxu0 %v4188_v40  ;;  %v4168_v53 = vld [vmem:[#allocation11 + $0x1550] sm:$0xff] }
 0x933   :  { %4434 = vmatprep.subr.mxu1 %v4057_v55  ;;  %4523 = vmatprep.subr.mxu0 %v4185_v35  ;;  %v12864_v23 = vpop.f32.mrf.mxu1  ;;  %v12866_v56 = vpop.f32.mrf.mxu0  ;;  %v4037_v35 = vld [vmem:[#allocation11 + $0x1138] sm:$0xff] }
 0x934   :  { %4435 = vmatpush1.msra.mxu1 %v4056_v41  ;;  %4524 = vmatpush1.msra.mxu0 %v4184_v21  ;;  %v4165_v41 = vld [vmem:[#allocation11 + $0x1538] sm:$0xff]  ;;  %v4036_v21 = vld [vmem:[#allocation11 + $0x1130] sm:$0xff] }
 0x935   :  { %4324 = vmatprep.mubr.f32.mxu1 %v12864_v23  ;;  %4413 = vmatprep.mubr.f32.mxu0 %v12866_v56  ;;  %v12870_v29 = vpop.f32.mrf.mxu1  ;;  %v12872_v12 = vpop.f32.mrf.mxu0 }
 0x936   :  { %4436 = vmatprep.subr.mxu1 %v4053_v17  ;;  %4525 = vmatprep.subr.mxu0 %v4181_v24  ;;  %v4164_v17 = vld [vmem:[#allocation11 + $0x1530] sm:$0xff]  ;;  %v4033_v24 = vld [vmem:[#allocation11 + $0x1118] sm:$0xff] }
 0x937   :  { %4325 = vmatmul.mubr.f32.gmra.mxu1 %v12858_v1  ;;  %4414 = vmatmul.mubr.f32.gmra.mxu0 %v12860_v26  ;;  %v12876_v5 = vpop.f32.mrf.mxu1  ;;  %v12878_v33 = vpop.f32.mrf.mxu0 }
 0x938   :  { %4437 = vmatpush1.msra.mxu1 %v4052_v25  ;;  %4526 = vmatpush1.msra.mxu0 %v4180_v57  ;;  %v4161_v25 = vld [vmem:[#allocation11 + $0x1518] sm:$0xff]  ;;  %v4032_v57 = vld [vmem:[#allocation11 + $0x1110] sm:$0xff] }
 0x939   :  { %4438 = vmatprep.subr.mxu1 %v4049_v42  ;;  %4527 = vmatprep.subr.mxu0 %v4177_v61  ;;  %v12880_v8 = vpop.f32.mrf.mxu1  ;;  %v12882_v38 = vpop.f32.mrf.mxu0  ;;  %v4160_v42 = vld [vmem:[#allocation11 + $0x1510] sm:$0xff]  ;;  %v4029_v61 = vld [vmem:[#allocation11 + $0x10f8] sm:$0xff] }
 0x93a   :  { %4439 = vmatpush1.msra.mxu1 %v4048_v54  ;;  %4528 = vmatpush1.msra.mxu0 %v4176_v43  ;;  %v4157_v54 = vld [vmem:[#allocation11 + $0x14f8] sm:$0xff]  ;;  %v4028_v43 = vld [vmem:[#allocation11 + $0x10f0] sm:$0xff] }
 0x93b   :  { %4330 = vmatprep.mubr.f32.mxu1 %v12876_v5  ;;  %4419 = vmatprep.mubr.f32.mxu0 %v12878_v33  ;;  %v12888_v40 = vpop.f32.mrf.mxu1  ;;  %v12890_v55 = vpop.f32.mrf.mxu0 }
 0x93c   :  { %4440 = vmatprep.subr.mxu1 %v4045_v34  ;;  %4529 = vmatprep.subr.mxu0 %v4173_v50  ;;  %v4156_v34 = vld [vmem:[#allocation11 + $0x14f0] sm:$0xff]  ;;  %v4025_v50 = vld [vmem:[#allocation11 + $0x10d8] sm:$0xff] }
 0x93d   :  { %4331 = vmatmul.mubr.f32.gmra.mxu1 %v12870_v29  ;;  %4420 = vmatmul.mubr.f32.gmra.mxu0 %v12872_v12 }
 0x93e   :  { %4441 = vmatpush1.msra.mxu1 %v4044_v10  ;;  %4530 = vmatpush1.msra.mxu0 %v4172_v27  ;;  %v4153_v10 = vld [vmem:[#allocation11 + $0x14d8] sm:$0xff]  ;;  %v4024_v27 = vld [vmem:[#allocation11 + $0x10d0] sm:$0xff] }
 0x93f   :  { %4442 = vmatprep.subr.mxu1 %v4041_v3  ;;  %4531 = vmatprep.subr.mxu0 %v4169_v11  ;;  %v4152_v3 = vld [vmem:[#allocation11 + $0x14d0] sm:$0xff]  ;;  %v4021_v11 = vld [vmem:[#allocation11 + $0x10b8] sm:$0xff] }
 0x940   :  { %4443 = vmatpush1.msra.mxu1 %v4040_v7  ;;  %4532 = vmatpush1.msra.mxu0 %v4168_v53  ;;  %v4149_v7 = vld [vmem:[#allocation11 + $0x14b8] sm:$0xff]  ;;  %v4148_v53 = vld [vmem:[#allocation11 + $0x14b0] sm:$0xff] }
 0x941   :  { %4336 = vmatprep.mubr.f32.mxu1 %v12888_v40  ;;  %4425 = vmatprep.mubr.f32.mxu0 %v12890_v55 }
 0x942   :  { %4444 = vmatprep.subr.mxu1 %v4037_v35  ;;  %4533 = vmatprep.subr.mxu0 %v4165_v41  ;;  %v4145_v35 = vld [vmem:[#allocation11 + $0x1498] sm:$0xff]  ;;  %v4016_v41 = vld [vmem:[#allocation11 + $0x1090] sm:$0xff] }
 0x943   :  { %4337 = vmatmul.mubr.f32.gmra.mxu1 %v12880_v8  ;;  %4426 = vmatmul.mubr.f32.gmra.mxu0 %v12882_v38 }
 0x944   :  { %4445 = vmatpush1.msra.mxu1 %v4036_v21  ;;  %4534 = vmatpush1.msra.mxu0 %v4164_v17  ;;  %v4144_v21 = vld [vmem:[#allocation11 + $0x1490] sm:$0xff]  ;;  %v4013_v17 = vld [vmem:[#allocation11 + $0x1078] sm:$0xff] }
 0x945   :  { %4446 = vmatprep.subr.mxu1 %v4033_v24  ;;  %4496 = vmatprep.mubr.f32.mxu1 %v12852_v60  ;;  %v4020_v60 = vld [vmem:[#allocation11 + $0x10b0] sm:$0xff]  ;;  %v4141_v24 = vld [vmem:[#allocation11 + $0x1478] sm:$0xff] }
 0x946   :  { %4535 = vmatprep.subr.mxu0 %v4161_v25  ;;  %4585 = vmatprep.mubr.f32.mxu0 %v12854_v14  ;;  %v4017_v14 = vld [vmem:[#allocation11 + $0x1098] sm:$0xff]  ;;  %v4012_v25 = vld [vmem:[#allocation11 + $0x1070] sm:$0xff] }
 0x947   :  { %4447 = vmatpush1.msra.mxu1 %v4032_v57  ;;  %4536 = vmatpush1.msra.mxu0 %v4160_v42  ;;  %v4140_v57 = vld [vmem:[#allocation11 + $0x1470] sm:$0xff]  ;;  %v4009_v42 = vld [vmem:[#allocation11 + $0x1058] sm:$0xff] }
 0x948   :  { %4448 = vmatprep.subr.mxu1 %v4029_v61  ;;  %4537 = vmatprep.subr.mxu0 %v4157_v54  ;;  %v4137_v61 = vld [vmem:[#allocation11 + $0x1458] sm:$0xff]  ;;  %v4008_v54 = vld [vmem:[#allocation11 + $0x1050] sm:$0xff] }
 0x949   :  { %4449 = vmatpush1.msra.mxu1 %v4028_v43  ;;  %4538 = vmatpush1.msra.mxu0 %v4156_v34  ;;  %v4136_v43 = vld [vmem:[#allocation11 + $0x1450] sm:$0xff]  ;;  %v4005_v34 = vld [vmem:[#allocation11 + $0x1038] sm:$0xff] }
 0x94a   :  { %4450 = vmatprep.subr.mxu1 %v4025_v50  ;;  %4539 = vmatprep.subr.mxu0 %v4153_v10  ;;  %v4133_v50 = vld [vmem:[#allocation11 + $0x1438] sm:$0xff]  ;;  %v4004_v10 = vld [vmem:[#allocation11 + $0x1030] sm:$0xff] }
 0x94b   :  { %4451 = vmatpush1.msra.mxu1 %v4024_v27  ;;  %4540 = vmatpush1.msra.mxu0 %v4152_v3  ;;  %v4132_v27 = vld [vmem:[#allocation11 + $0x1430] sm:$0xff]  ;;  %v4001_v3 = vld [vmem:[#allocation11 + $0x1018] sm:$0xff] }
 0x94c   :  { %4452 = vmatprep.subr.mxu1 %v4021_v11  ;;  %4541 = vmatprep.subr.mxu0 %v4149_v7  ;;  %v4129_v11 = vld [vmem:[#allocation11 + $0x1418] sm:$0xff]  ;;  %v4000_v7 = vld [vmem:[#allocation11 + $0x1010] sm:$0xff] }
 0x94d   :  { %4453 = vmatpush1.msra.mxu1 %v4020_v60  ;;  %4542 = vmatpush1.msra.mxu0 %v4148_v53  ;;  %v4128_v60 = vld [vmem:[#allocation11 + $0x1410] sm:$0xff]  ;;  %v4125_v53 = vld [vmem:[#allocation11 + $0x13f8] sm:$0xff] }
 0x94e   :  { %4454 = vmatprep.subr.mxu1 %v4017_v14  ;;  %4543 = vmatprep.subr.mxu0 %v4145_v35  ;;  %v4253_v14 = vld [vmem:[#allocation11 + $0x17f8] sm:$0xff]  ;;  %v4124_v35 = vld [vmem:[#allocation11 + $0x13f0] sm:$0xff] }
 0x94f   :  { %4455 = vmatpush1.msra.mxu1 %v4016_v41  ;;  %4544 = vmatpush1.msra.mxu0 %v4144_v21  ;;  %v4252_v41 = vld [vmem:[#allocation11 + $0x17f0] sm:$0xff]  ;;  %v4121_v21 = vld [vmem:[#allocation11 + $0x13d8] sm:$0xff] }
 0x950   :  { %4456 = vmatprep.subr.mxu1 %v4013_v17  ;;  %4545 = vmatprep.subr.mxu0 %v4141_v24  ;;  %v4249_v17 = vld [vmem:[#allocation11 + $0x17d8] sm:$0xff]  ;;  %v4120_v24 = vld [vmem:[#allocation11 + $0x13d0] sm:$0xff] }
 0x951   :  { %4457 = vmatpush1.msra.mxu1 %v4012_v25  ;;  %4546 = vmatpush1.msra.mxu0 %v4140_v57  ;;  %v4248_v25 = vld [vmem:[#allocation11 + $0x17d0] sm:$0xff]  ;;  %v4117_v57 = vld [vmem:[#allocation11 + $0x13b8] sm:$0xff] }
 0x952   :  { %4458 = vmatprep.subr.mxu1 %v4009_v42  ;;  %4547 = vmatprep.subr.mxu0 %v4137_v61  ;;  %v4245_v42 = vld [vmem:[#allocation11 + $0x17b8] sm:$0xff]  ;;  %v4116_v61 = vld [vmem:[#allocation11 + $0x13b0] sm:$0xff] }
 0x953   :  { %4459 = vmatpush1.msra.mxu1 %v4008_v54  ;;  %4548 = vmatpush1.msra.mxu0 %v4136_v43  ;;  %v4244_v54 = vld [vmem:[#allocation11 + $0x17b0] sm:$0xff]  ;;  %v4113_v43 = vld [vmem:[#allocation11 + $0x1398] sm:$0xff] }
 0x954   :  { %4460 = vmatprep.subr.mxu1 %v4005_v34  ;;  %4549 = vmatprep.subr.mxu0 %v4133_v50  ;;  %v4241_v34 = vld [vmem:[#allocation11 + $0x1798] sm:$0xff]  ;;  %v4112_v50 = vld [vmem:[#allocation11 + $0x1390] sm:$0xff] }
 0x955   :  { %4461 = vmatpush1.msra.mxu1 %v4004_v10  ;;  %4550 = vmatpush1.msra.mxu0 %v4132_v27  ;;  %v4240_v10 = vld [vmem:[#allocation11 + $0x1790] sm:$0xff]  ;;  %v4109_v27 = vld [vmem:[#allocation11 + $0x1378] sm:$0xff] }
 0x956   :  { %4462 = vmatprep.subr.mxu1 %v4001_v3  ;;  %4551 = vmatprep.subr.mxu0 %v4129_v11  ;;  %v4237_v3 = vld [vmem:[#allocation11 + $0x1778] sm:$0xff]  ;;  %v4108_v11 = vld [vmem:[#allocation11 + $0x1370] sm:$0xff] }
 0x957   :  { %4463 = vmatpush1.msra.mxu1 %v4000_v7  ;;  %4552 = vmatpush1.msra.mxu0 %v4128_v60  ;;  %v4236_v7 = vld [vmem:[#allocation11 + $0x1770] sm:$0xff]  ;;  %v4105_v60 = vld [vmem:[#allocation11 + $0x1358] sm:$0xff] }
 0x958   :  { %4464 = vmatprep.subr.mxu1 %v4125_v53  ;;  %4553 = vmatprep.subr.mxu0 %v4253_v14  ;;  %v4233_v53 = vld [vmem:[#allocation11 + $0x1758] sm:$0xff]  ;;  %v4104_v14 = vld [vmem:[#allocation11 + $0x1350] sm:$0xff] }
 0x959   :  { %4465 = vmatpush2.msra.mxu1 %v4124_v35  ;;  %4554 = vmatpush2.msra.mxu0 %v4252_v41  ;;  %v4232_v35 = vld [vmem:[#allocation11 + $0x1750] sm:$0xff]  ;;  %v4101_v41 = vld [vmem:[#allocation11 + $0x1338] sm:$0xff] }
 0x95a   :  { %4466 = vmatprep.subr.mxu1 %v4121_v21  ;;  %4555 = vmatprep.subr.mxu0 %v4249_v17  ;;  %v4229_v21 = vld [vmem:[#allocation11 + $0x1738] sm:$0xff]  ;;  %v4100_v17 = vld [vmem:[#allocation11 + $0x1330] sm:$0xff] }
 0x95b   :  { %4467 = vmatpush2.msra.mxu1 %v4120_v24  ;;  %4556 = vmatpush2.msra.mxu0 %v4248_v25  ;;  %v4228_v24 = vld [vmem:[#allocation11 + $0x1730] sm:$0xff]  ;;  %v4097_v25 = vld [vmem:[#allocation11 + $0x1318] sm:$0xff] }
 0x95c   :  { %4468 = vmatprep.subr.mxu1 %v4117_v57  ;;  %4557 = vmatprep.subr.mxu0 %v4245_v42  ;;  %v4225_v57 = vld [vmem:[#allocation11 + $0x1718] sm:$0xff]  ;;  %v4096_v42 = vld [vmem:[#allocation11 + $0x1310] sm:$0xff] }
 0x95d   :  { %4469 = vmatpush2.msra.mxu1 %v4116_v61  ;;  %4558 = vmatpush2.msra.mxu0 %v4244_v54  ;;  %v4224_v61 = vld [vmem:[#allocation11 + $0x1710] sm:$0xff]  ;;  %v4093_v54 = vld [vmem:[#allocation11 + $0x12f8] sm:$0xff] }
 0x95e   :  { %4470 = vmatprep.subr.mxu1 %v4113_v43  ;;  %4559 = vmatprep.subr.mxu0 %v4241_v34  ;;  %v4221_v43 = vld [vmem:[#allocation11 + $0x16f8] sm:$0xff]  ;;  %v4092_v34 = vld [vmem:[#allocation11 + $0x12f0] sm:$0xff] }
 0x95f   :  { %4471 = vmatpush2.msra.mxu1 %v4112_v50  ;;  %4560 = vmatpush2.msra.mxu0 %v4240_v10  ;;  %v4220_v50 = vld [vmem:[#allocation11 + $0x16f0] sm:$0xff]  ;;  %v4089_v10 = vld [vmem:[#allocation11 + $0x12d8] sm:$0xff] }
 0x960   :  { %4472 = vmatprep.subr.mxu1 %v4109_v27  ;;  %4561 = vmatprep.subr.mxu0 %v4237_v3  ;;  %v4217_v27 = vld [vmem:[#allocation11 + $0x16d8] sm:$0xff]  ;;  %v4088_v3 = vld [vmem:[#allocation11 + $0x12d0] sm:$0xff] }
 0x961   :  { %4473 = vmatpush2.msra.mxu1 %v4108_v11  ;;  %4562 = vmatpush2.msra.mxu0 %v4236_v7  ;;  %v4216_v11 = vld [vmem:[#allocation11 + $0x16d0] sm:$0xff]  ;;  %v4085_v7 = vld [vmem:[#allocation11 + $0x12b8] sm:$0xff] }
 0x962   :  { %4474 = vmatprep.subr.mxu1 %v4105_v60  ;;  %4563 = vmatprep.subr.mxu0 %v4233_v53  ;;  %v4213_v60 = vld [vmem:[#allocation11 + $0x16b8] sm:$0xff]  ;;  %v4084_v53 = vld [vmem:[#allocation11 + $0x12b0] sm:$0xff] }
 0x963   :  { %4475 = vmatpush2.msra.mxu1 %v4104_v14  ;;  %4564 = vmatpush2.msra.mxu0 %v4232_v35  ;;  %v4212_v14 = vld [vmem:[#allocation11 + $0x16b0] sm:$0xff]  ;;  %v4081_v35 = vld [vmem:[#allocation11 + $0x1298] sm:$0xff] }
 0x964   :  { %4476 = vmatprep.subr.mxu1 %v4101_v41  ;;  %4565 = vmatprep.subr.mxu0 %v4229_v21  ;;  %v4209_v41 = vld [vmem:[#allocation11 + $0x1698] sm:$0xff]  ;;  %v4080_v21 = vld [vmem:[#allocation11 + $0x1290] sm:$0xff] }
 0x965   :  { %4477 = vmatpush2.msra.mxu1 %v4100_v17  ;;  %4566 = vmatpush2.msra.mxu0 %v4228_v24  ;;  %v4208_v17 = vld [vmem:[#allocation11 + $0x1690] sm:$0xff]  ;;  %v4077_v24 = vld [vmem:[#allocation11 + $0x1278] sm:$0xff] }
 0x966   :  { %4478 = vmatprep.subr.mxu1 %v4097_v25  ;;  %4567 = vmatprep.subr.mxu0 %v4225_v57  ;;  %v4205_v25 = vld [vmem:[#allocation11 + $0x1678] sm:$0xff]  ;;  %v4076_v57 = vld [vmem:[#allocation11 + $0x1270] sm:$0xff] }
 0x967   :  { %4479 = vmatpush2.msra.mxu1 %v4096_v42  ;;  %4568 = vmatpush2.msra.mxu0 %v4224_v61  ;;  %v4204_v42 = vld [vmem:[#allocation11 + $0x1670] sm:$0xff]  ;;  %v4073_v61 = vld [vmem:[#allocation11 + $0x1258] sm:$0xff] }
 0x968   :  { %4480 = vmatprep.subr.mxu1 %v4093_v54  ;;  %4569 = vmatprep.subr.mxu0 %v4221_v43  ;;  %v4201_v54 = vld [vmem:[#allocation11 + $0x1658] sm:$0xff]  ;;  %v4072_v43 = vld [vmem:[#allocation11 + $0x1250] sm:$0xff] }
 0x969   :  { %4481 = vmatpush2.msra.mxu1 %v4092_v34  ;;  %4570 = vmatpush2.msra.mxu0 %v4220_v50  ;;  %v4200_v34 = vld [vmem:[#allocation11 + $0x1650] sm:$0xff]  ;;  %v4069_v50 = vld [vmem:[#allocation11 + $0x1238] sm:$0xff] }
 0x96a   :  { %4482 = vmatprep.subr.mxu1 %v4089_v10  ;;  %4571 = vmatprep.subr.mxu0 %v4217_v27  ;;  %v4197_v10 = vld [vmem:[#allocation11 + $0x1638] sm:$0xff]  ;;  %v4068_v27 = vld [vmem:[#allocation11 + $0x1230] sm:$0xff] }
 0x96b   :  { %4483 = vmatpush2.msra.mxu1 %v4088_v3  ;;  %4572 = vmatpush2.msra.mxu0 %v4216_v11  ;;  %v4196_v3 = vld [vmem:[#allocation11 + $0x1630] sm:$0xff]  ;;  %v4065_v11 = vld [vmem:[#allocation11 + $0x1218] sm:$0xff] }
 0x96c   :  { %4484 = vmatprep.subr.mxu1 %v4085_v7  ;;  %4573 = vmatprep.subr.mxu0 %v4213_v60  ;;  %v4193_v7 = vld [vmem:[#allocation11 + $0x1618] sm:$0xff]  ;;  %v4064_v60 = vld [vmem:[#allocation11 + $0x1210] sm:$0xff] }
 0x96d   :  { %4485 = vmatpush2.msra.mxu1 %v4084_v53  ;;  %4574 = vmatpush2.msra.mxu0 %v4212_v14  ;;  %v4192_v53 = vld [vmem:[#allocation11 + $0x1610] sm:$0xff]  ;;  %v2749_v14 = vadd.f32 %v12668_v13, %v12666_v37 }
 0x96e   :  { %4486 = vmatprep.subr.mxu1 %v4081_v35  ;;  %4575 = vmatprep.subr.mxu0 %v4209_v41  ;;  %v13830_v35 = vld [vmem:[#allocation58_spill] sm:$0xff] }
 0x96f   :  { %4487 = vmatpush2.msra.mxu1 %v4080_v21  ;;  %4576 = vmatpush2.msra.mxu0 %v4208_v17  ;;  %v2949_v41 = vrot.slane %v12802_v46, %v13830_v35  ;;  %v2743_v21 = vadd.f32 %v12662_v51, %v12660_v31 }
 0x970   :  { %4488 = vmatprep.subr.mxu1 %v4077_v24  ;;  %4577 = vmatprep.subr.mxu0 %v4205_v25 }
 0x971   :  { %4489 = vmatpush2.msra.mxu1 %v4076_v57  ;;  %4578 = vmatpush2.msra.mxu0 %v4204_v42  ;;  %v2963_v46 = vadd.f32 %v2949_v41, %v2743_v21  ;;  %v4830_v21 = vld [vmem:[#allocation16 + $0xc8] sm:$0xff] }
 0x972   :  { %4490 = vmatprep.subr.mxu1 %v4073_v61  ;;  %4579 = vmatprep.subr.mxu0 %v4201_v54  ;;  %v2967_v54 = vadd.f32 %v2949_v41, %v2749_v14  ;;  %v4831_v14 = vld [vmem:[#allocation16 + $0xd0] sm:$0xff] }
 0x973   :  { %4491 = vmatpush2.msra.mxu1 %v4072_v43  ;;  %4580 = vmatpush2.msra.mxu0 %v4200_v34 }
 0x974   :  { %4492 = vmatprep.subr.mxu1 %v4069_v50  ;;  %4581 = vmatprep.subr.mxu0 %v4197_v10  ;;  %v3791_v51 = vadd.f32 %v12814_v22, %v2967_v54  ;;  %v4811_v54 = vld [vmem:[#allocation16 + $0x30] sm:$0xff] }
 0x975   :  { %4493 = vmatpush2.msra.mxu1 %v4068_v27  ;;  %4582 = vmatpush2.msra.mxu0 %v4196_v3 }
 0x976   :  { %4494 = vmatprep.subr.mxu1 %v4065_v11  ;;  %4583 = vmatprep.subr.mxu0 %v4193_v7  ;;  %v3787_v7 = vadd.f32 %v12809_v4, %v2963_v46  ;;  %v4807_v46 = vld [vmem:[#allocation16 + $0x10] sm:$0xff] }
 0x977   :  { %4495 = vmatpush2.msra.mxu1 %v4064_v60  ;;  %4584 = vmatpush2.msra.mxu0 %v4192_v53 }
 0x978   :  { %4497 = vmatmul.mubr.f32.vlgmr.msra.gmra.mxu1 %v12848_v47  ;;  %4586 = vmatmul.mubr.f32.vlgmr.msra.gmra.mxu0 %v12850_v58 }
 0x979   :  { %4502 = vmatprep.mubr.f32.mxu1 %v12864_v23  ;;  %4591 = vmatprep.mubr.f32.mxu0 %v12866_v56 }
 0x97c   :  { %4503 = vmatmul.mubr.f32.gmra.mxu1 %v12858_v1  ;;  %4592 = vmatmul.mubr.f32.gmra.mxu0 %v12860_v26 }
 0x97d   :  { %4508 = vmatprep.mubr.f32.mxu1 %v12876_v5  ;;  %4597 = vmatprep.mubr.f32.mxu0 %v12878_v33 }
 0x980   :  { %4509 = vmatmul.mubr.f32.gmra.mxu1 %v12870_v29  ;;  %4598 = vmatmul.mubr.f32.gmra.mxu0 %v12872_v12 }
 0x981   :  { %4514 = vmatprep.mubr.f32.mxu1 %v12888_v40  ;;  %4603 = vmatprep.mubr.f32.mxu0 %v12890_v55 }
 0x984   :  { %4515 = vmatmul.mubr.f32.gmra.mxu1 %v12880_v8  ;;  %4604 = vmatmul.mubr.f32.gmra.mxu0 %v12882_v38  ;;  %v2755_v8 = vadd.f32 %v12674_v6, %v12672_v48  ;;  %v2761_v38 = vadd.f32 %v12680_v2, %v12678_v45 }
 0x985   :  { %4715 = vmatprep.mubr.f32.mxu1 %v13820_v32  ;;  %4792 = vmatprep.mubr.f32.mxu0 %v13820_v32 }
 0x986   :  { %v2971_v25 = vadd.f32 %v2949_v41, %v2755_v8  ;;  %v2975_v57 = vadd.f32 %v2949_v41, %v2761_v38  ;;  %v4832_v8 = vld [vmem:[#allocation16 + $0xd8] sm:$0xff]  ;;  %v4815_v41 = vld [vmem:[#allocation16 + $0x50] sm:$0xff] }
 0x987   :  { %v4816_v38 = vld [vmem:[#allocation16 + $0x58] sm:$0xff] }
 0x988   :  { %v3795_v45 = vadd.f32 %v12819_v19, %v2971_v25  ;;  %v3799_v37 = vadd.f32 %v12824_v52, %v2975_v57  ;;  %v4813_v25 = vld [vmem:[#allocation16 + $0x40] sm:$0xff]  ;;  %v4828_v57 = vld [vmem:[#allocation16 + $0xb8] sm:$0xff] }
 0x9f1   :  { %v4320_v47 = vpop.f32.mrf.mxu1  ;;  %v4409_v58 = vpop.f32.mrf.mxu0 }
 0x9f2   :  { %v4410_v3 = vadd.f32 %v4409_v58, %v4320_v47  ;;  %v4836_v58 = vld [vmem:[#allocation16 + $0xf8] sm:$0xff] }
 0x9f3   :  { %v4322_v1 = vpop.f32.mrf.mxu1  ;;  %v4411_v26 = vpop.f32.mrf.mxu0 }
 0x9f4   :  { %v4412_v50 = vadd.f32 %v4411_v26, %v4322_v1  ;;  %v4610_v22 = vadd.f32 %v4410_v3, %v12807_v18  ;;  %v12954_v18 = vld [vmem:[#allocation14] sm:$0xff]  ;;  %v4820_v1 = vld [vmem:[#allocation16 + $0x78] sm:$0xff] }
 0x9f5   :  { %v4835_v26 = vld [vmem:[#allocation16 + $0xf0] sm:$0xff] }
 0x9f6   :  { %v12951_v47 = vmax.f32 %v4610_v22, 0.0 }
 0x9f7   :  { %v4326_v23 = vpop.f32.mrf.mxu1  ;;  %v4415_v56 = vpop.f32.mrf.mxu0 }
 0x9f8   :  { %v4416_v34 = vadd.f32 %v4415_v56, %v4326_v23  ;;  %v4611_v23 = vadd.f32 %v4412_v50, %v3787_v7  ;;  %v4805_v50 = vld [vmem:[#allocation16] sm:$0xff] }
 0x9f9   :  { %v4328_v29 = vpop.f32.mrf.mxu1  ;;  %v4417_v12 = vpop.f32.mrf.mxu0 }
 0x9fa   :  { %v4418_v13 = vadd.f32 %v4417_v12, %v4328_v29  ;;  %v4614_v52 = vadd.f32 %v4416_v34, %v12812_v20  ;;  %v12948_v20 = vmax.f32 %v4611_v23, 0.0  ;;  %v4819_v29 = vld [vmem:[#allocation16 + $0x70] sm:$0xff]  ;;  %v12961_v12 = vld [vmem:[#allocation14 + $0x8] sm:$0xff]  ;;  %v4822_v34 = vld [vmem:[#allocation16 + $0x88] sm:$0xff] }
 0x9fc   :  { %v4615_v60 = vadd.f32 %v4418_v13, %v3791_v51  ;;  %v12945_v4 = vmax.f32 %v4614_v52, 0.0  ;;  %v4808_v13 = vld [vmem:[#allocation16 + $0x18] sm:$0xff]  ;;  %v4821_v51 = vld [vmem:[#allocation16 + $0x80] sm:$0xff] }
 0x9fd   :  { %v4332_v5 = vpop.f32.mrf.mxu1  ;;  %v4421_v33 = vpop.f32.mrf.mxu0 }
 0x9fe   :  { %v4422_v48 = vadd.f32 %v4421_v33, %v4332_v5  ;;  %v4834_v5 = vld [vmem:[#allocation16 + $0xe8] sm:$0xff] }
 0x9ff   :  { %v4334_v40 = vpop.f32.mrf.mxu1  ;;  %v4423_v55 = vpop.f32.mrf.mxu0  ;;  %v4818_v33 = vld [vmem:[#allocation16 + $0x68] sm:$0xff] }
 0xa00   :  { %v4424_v42 = vadd.f32 %v4423_v55, %v4334_v40  ;;  %v4618_v11 = vadd.f32 %v4422_v48, %v12817_v39  ;;  %v12942_v39 = vmax.f32 %v4615_v60, 0.0  ;;  %v4833_v40 = vld [vmem:[#allocation16 + $0xe0] sm:$0xff]  ;;  %v4826_v48 = vld [vmem:[#allocation16 + $0xa8] sm:$0xff] }
 0xa01   :  { %v4817_v55 = vld [vmem:[#allocation16 + $0x60] sm:$0xff] }
 0xa02   :  { %v4619_v10 = vadd.f32 %v4424_v42, %v3795_v45  ;;  %v4812_v42 = vld [vmem:[#allocation16 + $0x38] sm:$0xff]  ;;  %v4809_v45 = vld [vmem:[#allocation16 + $0x20] sm:$0xff] }
 0xa03   :  { %v4338_v17 = vpop.f32.mrf.mxu1  ;;  %v4427_v24 = vpop.f32.mrf.mxu0 }
 0xa04   :  { %v4428_v61 = vadd.f32 %v4427_v24, %v4338_v17  ;;  %v12935_v56 = vmax.f32 %v4619_v10, 0.0  ;;  %v4814_v17 = vld [vmem:[#allocation16 + $0x48] sm:$0xff]  ;;  %v4829_v24 = vld [vmem:[#allocation16 + $0xc0] sm:$0xff] }
 0xa05   :  { %v4340_v6 = vpop.f32.mrf.mxu1  ;;  %v4429_v43 = vpop.f32.mrf.mxu0 }
 0xa06   :  { %v4430_v2 = vadd.f32 %v4429_v43, %v4340_v6  ;;  %v4622_v31 = vadd.f32 %v4428_v61, %v12822_v9  ;;  %v12939_v9 = vmax.f32 %v4618_v11, 0.0  ;;  %v4827_v61 = vld [vmem:[#allocation16 + $0xb0] sm:$0xff]  ;;  %v4810_v6 = vld [vmem:[#allocation16 + $0x28] sm:$0xff]  ;;  %v4825_v43 = vld [vmem:[#allocation16 + $0xa0] sm:$0xff] }
 0xa08   :  { %v4623_v27 = vadd.f32 %v4430_v2, %v3799_v37  ;;  %v12933_v53 = vmax.f32 %v4622_v31, 0.0  ;;  %v4824_v37 = vld [vmem:[#allocation16 + $0x98] sm:$0xff]  ;;  %v4823_v2 = vld [vmem:[#allocation16 + $0x90] sm:$0xff]  ;;  %v4806_v31 = vld [vmem:[#allocation16 + $0x8] sm:$0xff] }
 0xa0a   :  { %v12930_v19 = vmax.f32 %v4623_v27, 0.0 }
 0xa0c   :  { %4675 = vmatprep.subr.mxu1 %v12930_v19 }
 0xa0d   :  { %4676 = vmatpush1.msra.mxu1 %v12933_v53 }
 0xa0e   :  { %4677 = vmatprep.subr.mxu1 %v12935_v56 }
 0xa0f   :  { %4678 = vmatpush1.msra.mxu1 %v12939_v9 }
 0xa10   :  { %4679 = vmatprep.subr.mxu1 %v12942_v39 }
 0xa11   :  { %4680 = vmatpush1.msra.mxu1 %v12945_v4 }
 0xa12   :  { %4681 = vmatprep.subr.mxu1 %v12948_v20 }
 0xa13   :  { %4682 = vmatpush1.msra.mxu1 %v12951_v47 }
 0xa14   :  { %10712 = vmatmul.mubr.msk.f32.vlgmr.msra.gmra.mxu1 %vm396_vm0, %v12954_v18  ;;  %10778 = vmatprep.subr.mxu1 %v4836_v58 }
 0xa15   :  { %10779 = vmatpush3.msra.mxu1 %v4820_v1  ;;  %4721 = vmatprep.mubr.f32.mxu1 %v13820_v32  ;;  %v13831_v1 = vld [vmem:[#allocation64_spill] sm:$0xff] }
 0xa16   :  { %10780 = vmatprep.subr.mxu1 %v4835_v26  ;;  %v2933_v26 = vadd.f32 %v13831_v1, %v12696_v16 }
 0xa17   :  { %10781 = vmatpush3.msra.mxu1 %v4819_v29  ;;  %v13832_v29 = vld [vmem:[#allocation65_spill] sm:$0xff] }
 0xa18   :  { %10713 = vmatmul.mubr.msk.f32.gmra.mxu1 %vm396_vm0, %v12961_v12  ;;  %10782 = vmatprep.subr.mxu1 %v4834_v5  ;;  %v13833_v5 = vld [vmem:[#allocation66_spill] sm:$0xff] }
 0xa19   :  { %10783 = vmatpush3.msra.mxu1 %v4818_v33  ;;  %v2939_v33 = vadd.f32 %v13833_v5, %v13832_v29 }
 0xa1a   :  { %10784 = vmatprep.subr.mxu1 %v4833_v40  ;;  %v13834_v40 = vld [vmem:[#allocation62_spill] sm:$0xff] }
 0xa1b   :  { %10785 = vmatpush3.msra.mxu1 %v4817_v55  ;;  %v13835_v55 = vld [vmem:[#allocation63_spill] sm:$0xff] }
 0xa1c   :  { %10786 = vmatprep.subr.mxu1 %v4832_v8  ;;  %v2927_v8 = vadd.f32 %v13835_v55, %v13834_v40 }
 0xa1d   :  { %10787 = vmatpush3.msra.mxu1 %v4816_v38 }
 0xa1e   :  { %10788 = vmatprep.subr.mxu1 %v4831_v14 }
 0xa1f   :  { %10789 = vmatpush3.msra.mxu1 %v4815_v41  ;;  %v11336_v41 = vld [vmem:[#allocation13] sm:$0xf] }
 0xa20   :  { %10790 = vmatprep.subr.mxu1 %v4830_v21  ;;  %v13836_v21 = vld [vmem:[#allocation59_spill] sm:$0xff] }
 0xa21   :  { %10791 = vmatpush3.msra.mxu1 %v4814_v17  ;;  %v2957_v17 = vrot.slane %v11336_v41, %v13836_v21  ;;  %v4864_v41 = vld [vmem:[#allocation16 + $0x1d8] sm:$0xff] }
 0xa22   :  { %10792 = vmatprep.subr.mxu1 %v4829_v24  ;;  %v13837_v24 = vld [vmem:[#allocation60_spill] sm:$0xff] }
 0xa23   :  { %10793 = vmatpush3.msra.mxu1 %v4813_v25  ;;  %v13838_v25 = vld [vmem:[#allocation61_spill] sm:$0xff] }
 0xa24   :  { %10794 = vmatprep.subr.mxu1 %v4828_v57  ;;  %v2921_v57 = vadd.f32 %v13838_v25, %v13837_v24  ;;  %v4847_v24 = vld [vmem:[#allocation16 + $0x150] sm:$0xff]  ;;  %v4862_v25 = vld [vmem:[#allocation16 + $0x1c8] sm:$0xff] }
 0xa25   :  { %10795 = vmatpush3.msra.mxu1 %v4812_v42 }
 0xa26   :  { %10796 = vmatprep.subr.mxu1 %v4827_v61 }
 0xa27   :  { %10797 = vmatpush3.msra.mxu1 %v4811_v54  ;;  %v2973_v54 = vadd.f32 %v2957_v17, %v2933_v26 }
 0xa28   :  { %10798 = vmatprep.subr.mxu1 %v4826_v48  ;;  %v2977_v48 = vadd.f32 %v2957_v17, %v2939_v33 }
 0xa29   :  { %10799 = vmatpush3.msra.mxu1 %v4810_v6 }
 0xa2a   :  { %10800 = vmatprep.subr.mxu1 %v4825_v43  ;;  %v2969_v43 = vadd.f32 %v2957_v17, %v2927_v8  ;;  %v4850_v8 = vld [vmem:[#allocation16 + $0x168] sm:$0xff] }
 0xa2b   :  { %10801 = vmatpush3.msra.mxu1 %v4809_v45 }
 0xa2c   :  { %10802 = vmatprep.subr.mxu1 %v4824_v37  ;;  %v3793_v29 = vadd.f32 %v12836_v44, %v2969_v43  ;;  %v4842_v43 = vld [vmem:[#allocation16 + $0x128] sm:$0xff] }
 0xa2d   :  { %10803 = vmatpush3.msra.mxu1 %v4808_v13 }
 0xa2e   :  { %10804 = vmatprep.subr.mxu1 %v4823_v2  ;;  %v3797_v2 = vadd.f32 %v12841_v63, %v2973_v54  ;;  %v4844_v54 = vld [vmem:[#allocation16 + $0x138] sm:$0xff] }
 0xa2f   :  { %10805 = vmatpush3.msra.mxu1 %v4807_v46  ;;  %v3801_v46 = vadd.f32 %v12846_v36, %v2977_v48  ;;  %v4859_v48 = vld [vmem:[#allocation16 + $0x1b0] sm:$0xff] }
 0xa30   :  { %10806 = vmatprep.subr.mxu1 %v4822_v34 }
 0xa31   :  { %10807 = vmatpush3.msra.mxu1 %v4806_v31 }
 0xa32   :  { %10808 = vmatprep.subr.mxu1 %v4821_v51  ;;  %v2965_v51 = vadd.f32 %v2957_v17, %v2921_v57  ;;  %v4848_v17 = vld [vmem:[#allocation16 + $0x158] sm:$0xff]  ;;  %v4846_v57 = vld [vmem:[#allocation16 + $0x148] sm:$0xff] }
 0xa33   :  { %10809 = vmatpush3.msra.mxu1 %v4805_v50 }
 0xa34   :  { %5060 = vmatprep.subr.mxu1 %v12930_v19 }
 0xa38   :  { %v4498_v10 = vpop.f32.mrf.mxu1  ;;  %v4587_v27 = vpop.f32.mrf.mxu0 }
 0xa39   :  { %v4588_v40 = vadd.f32 %v4587_v27, %v4498_v10  ;;  %v4852_v27 = vld [vmem:[#allocation16 + $0x178] sm:$0xff] }
 0xa3a   :  { %v4500_v3 = vpop.f32.mrf.mxu1  ;;  %v4589_v11 = vpop.f32.mrf.mxu0 }
 0xa3b   :  { %v4590_v26 = vadd.f32 %v4589_v11, %v4500_v3  ;;  %v4612_v44 = vadd.f32 %v4588_v40, %v12829_v15  ;;  %v4868_v15 = vld [vmem:[#allocation16 + $0x1f8] sm:$0xff]  ;;  %v4867_v3 = vld [vmem:[#allocation16 + $0x1f0] sm:$0xff] }
 0xa3c   :  { %v4504_v7 = vpop.f32.mrf.mxu1  ;;  %v4593_v60 = vpop.f32.mrf.mxu0  ;;  %v4851_v11 = vld [vmem:[#allocation16 + $0x170] sm:$0xff]  ;;  %v5222_v40 = vld [vmem:[#allocation16 + $0x2f8] sm:$0xff] }
 0xa3d   :  { %v4594_v50 = vadd.f32 %v4593_v60, %v4504_v7  ;;  %v13002_v10 = vmax.f32 %v4612_v44, 0.0  ;;  %v13026_v44 = vld [vmem:[#allocation14 + $0x18] sm:$0xff] }
 0xa3e   :  { %v4506_v52 = vpop.f32.mrf.mxu1  ;;  %v4595_v23 = vpop.f32.mrf.mxu0 }
 0xa3f   :  { %v4596_v34 = vadd.f32 %v4595_v23, %v4506_v52  ;;  %v4616_v36 = vadd.f32 %v4594_v50, %v12834_v28  ;;  %v4866_v23 = vld [vmem:[#allocation16 + $0x1e8] sm:$0xff]  ;;  %v4853_v50 = vld [vmem:[#allocation16 + $0x180] sm:$0xff] }
 0xa40   :  { %v4510_v22 = vpop.f32.mrf.mxu1  ;;  %v4599_v58 = vpop.f32.mrf.mxu0 }
 0xa41   :  { %v4600_v45 = vadd.f32 %v4599_v58, %v4510_v22  ;;  %v3789_v58 = vadd.f32 %v12831_v0, %v2965_v51  ;;  %v4617_v55 = vadd.f32 %v4596_v34, %v3793_v29  ;;  %v12996_v0 = vmax.f32 %v4616_v36, 0.0  ;;  %v4839_v34 = vld [vmem:[#allocation16 + $0x110] sm:$0xff]  ;;  %v4838_v51 = vld [vmem:[#allocation16 + $0x108] sm:$0xff] }
 0xa42   :  { %v4512_v38 = vpop.f32.mrf.mxu1  ;;  %v4601_v14 = vpop.f32.mrf.mxu0  ;;  %v5205_v36 = vld [vmem:[#allocation16 + $0x270] sm:$0xff] }
 0xa43   :  { %v4602_v6 = vadd.f32 %v4601_v14, %v4512_v38  ;;  %v4620_v22 = vadd.f32 %v4600_v45, %v12839_v59  ;;  %v4613_v7 = vadd.f32 %v4590_v26, %v3789_v58  ;;  %v12993_v59 = vmax.f32 %v4617_v55, 0.0  ;;  %v4865_v38 = vld [vmem:[#allocation16 + $0x1e0] sm:$0xff]  ;;  %v5206_v58 = vld [vmem:[#allocation16 + $0x278] sm:$0xff]  ;;  %v5221_v55 = vld [vmem:[#allocation16 + $0x2f0] sm:$0xff] }
 0xa44   :  { %v4516_v42 = vpop.f32.mrf.mxu1  ;;  %v4605_v61 = vpop.f32.mrf.mxu0  ;;  %v4849_v14 = vld [vmem:[#allocation16 + $0x160] sm:$0xff] }
 0xa45   :  { %v4606_v16 = vadd.f32 %v4605_v61, %v4516_v42  ;;  %v4621_v5 = vadd.f32 %v4602_v6, %v3797_v2  ;;  %v12999_v28 = vmax.f32 %v4613_v7, 0.0  ;;  %v4861_v42 = vld [vmem:[#allocation16 + $0x1c0] sm:$0xff]  ;;  %v4843_v6 = vld [vmem:[#allocation16 + $0x130] sm:$0xff]  ;;  %v4840_v2 = vld [vmem:[#allocation16 + $0x118] sm:$0xff] }
 0xa46   :  { %v4518_v37 = vpop.f32.mrf.mxu1  ;;  %v4607_v13 = vpop.f32.mrf.mxu0  ;;  %v4845_v61 = vld [vmem:[#allocation16 + $0x140] sm:$0xff]  ;;  %v5220_v7 = vld [vmem:[#allocation16 + $0x2e8] sm:$0xff] }
 0xa47   :  { %v4608_v31 = vadd.f32 %v4607_v13, %v4518_v37  ;;  %v4624_v1 = vadd.f32 %v4606_v16, %v12844_v30  ;;  %v12986_v60 = vmax.f32 %v4621_v5, 0.0  ;;  %v12990_v30 = vmax.f32 %v4620_v22, 0.0  ;;  %v4858_v16 = vld [vmem:[#allocation16 + $0x1a8] sm:$0xff]  ;;  %v4857_v45 = vld [vmem:[#allocation16 + $0x1a0] sm:$0xff]  ;;  %v4856_v13 = vld [vmem:[#allocation16 + $0x198] sm:$0xff] }
 0xa48   :  { %v4841_v37 = vld [vmem:[#allocation16 + $0x120] sm:$0xff] }
 0xa49   :  { %v4625_v33 = vadd.f32 %v4608_v31, %v3801_v46  ;;  %v12984_v52 = vmax.f32 %v4624_v1, 0.0  ;;  %v4855_v46 = vld [vmem:[#allocation16 + $0x190] sm:$0xff]  ;;  %v4854_v31 = vld [vmem:[#allocation16 + $0x188] sm:$0xff]  ;;  %v4837_v1 = vld [vmem:[#allocation16 + $0x100] sm:$0xff] }
 0xa4a   :  { %v13019_v22 = vld [vmem:[#allocation14 + $0x10] sm:$0xff] }
 0xa4b   :  { %v12981_v63 = vmax.f32 %v4625_v33, 0.0 }
 0xa4d   :  { %4752 = vmatprep.subr.mxu0 %v12981_v63 }
 0xa4e   :  { %4753 = vmatpush1.msra.mxu0 %v12984_v52 }
 0xa4f   :  { %4754 = vmatprep.subr.mxu0 %v12986_v60 }
 0xa50   :  { %4755 = vmatpush1.msra.mxu0 %v12990_v30 }
 0xa51   :  { %4756 = vmatprep.subr.mxu0 %v12993_v59 }
 0xa52   :  { %4757 = vmatpush1.msra.mxu0 %v12996_v0 }
 0xa53   :  { %4758 = vmatprep.subr.mxu0 %v12999_v28 }
 0xa54   :  { %4759 = vmatpush1.msra.mxu0 %v13002_v10 }
 0xa55   :  { %10714 = vmatmul.mubr.msk.f32.vlgmr.msra.gmra.mxu0 %vm396_vm0, %v12954_v18  ;;  %10816 = vmatprep.subr.mxu0 %v4868_v15  ;;  %v4863_v18 = vld [vmem:[#allocation16 + $0x1d0] sm:$0xff]  ;;  %v5204_v15 = vld [vmem:[#allocation16 + $0x268] sm:$0xff] }
 0xa56   :  { %10817 = vmatpush3.msra.mxu0 %v4852_v27  ;;  %4798 = vmatprep.mubr.f32.mxu0 %v13820_v32  ;;  %v5219_v27 = vld [vmem:[#allocation16 + $0x2e0] sm:$0xff] }
 0xa57   :  { %10818 = vmatprep.subr.mxu0 %v4867_v3  ;;  %v5203_v3 = vld [vmem:[#allocation16 + $0x260] sm:$0xff] }
 0xa58   :  { %10819 = vmatpush3.msra.mxu0 %v4851_v11  ;;  %v5218_v11 = vld [vmem:[#allocation16 + $0x2d8] sm:$0xff] }
 0xa59   :  { %10715 = vmatmul.mubr.msk.f32.gmra.mxu0 %vm396_vm0, %v12961_v12  ;;  %10820 = vmatprep.subr.mxu0 %v4866_v23  ;;  %v4860_v12 = vld [vmem:[#allocation16 + $0x1b8] sm:$0xff] }
 0xa5a   :  { %10821 = vmatpush3.msra.mxu0 %v4850_v8  ;;  %v5202_v23 = vld [vmem:[#allocation16 + $0x258] sm:$0xff]  ;;  %v5217_v8 = vld [vmem:[#allocation16 + $0x2d0] sm:$0xff] }
 0xa5b   :  { %10822 = vmatprep.subr.mxu0 %v4865_v38  ;;  %v5201_v38 = vld [vmem:[#allocation16 + $0x250] sm:$0xff] }
 0xa5c   :  { %10823 = vmatpush3.msra.mxu0 %v4849_v14  ;;  %v5216_v14 = vld [vmem:[#allocation16 + $0x2c8] sm:$0xff] }
 0xa5d   :  { %10824 = vmatprep.subr.mxu0 %v4864_v41  ;;  %v5200_v41 = vld [vmem:[#allocation16 + $0x248] sm:$0xff] }
 0xa5e   :  { %10825 = vmatpush3.msra.mxu0 %v4848_v17  ;;  %v5215_v17 = vld [vmem:[#allocation16 + $0x2c0] sm:$0xff] }
 0xa5f   :  { %10826 = vmatprep.subr.mxu0 %v4863_v18  ;;  %v5199_v18 = vld [vmem:[#allocation16 + $0x240] sm:$0xff] }
 0xa60   :  { %10827 = vmatpush3.msra.mxu0 %v4847_v24  ;;  %v5214_v24 = vld [vmem:[#allocation16 + $0x2b8] sm:$0xff] }
 0xa61   :  { %10828 = vmatprep.subr.mxu0 %v4862_v25  ;;  %v5198_v25 = vld [vmem:[#allocation16 + $0x238] sm:$0xff] }
 0xa62   :  { %10829 = vmatpush3.msra.mxu0 %v4846_v57  ;;  %v5213_v57 = vld [vmem:[#allocation16 + $0x2b0] sm:$0xff] }
 0xa63   :  { %10830 = vmatprep.subr.mxu0 %v4861_v42  ;;  %v5197_v42 = vld [vmem:[#allocation16 + $0x230] sm:$0xff] }
 0xa64   :  { %10831 = vmatpush3.msra.mxu0 %v4845_v61  ;;  %v5212_v61 = vld [vmem:[#allocation16 + $0x2a8] sm:$0xff] }
 0xa65   :  { %10832 = vmatprep.subr.mxu0 %v4860_v12  ;;  %v5196_v12 = vld [vmem:[#allocation16 + $0x228] sm:$0xff] }
 0xa66   :  { %10833 = vmatpush3.msra.mxu0 %v4844_v54  ;;  %v5211_v54 = vld [vmem:[#allocation16 + $0x2a0] sm:$0xff] }
 0xa67   :  { %10834 = vmatprep.subr.mxu0 %v4859_v48  ;;  %v5195_v48 = vld [vmem:[#allocation16 + $0x220] sm:$0xff] }
 0xa68   :  { %10835 = vmatpush3.msra.mxu0 %v4843_v6  ;;  %v5210_v6 = vld [vmem:[#allocation16 + $0x298] sm:$0xff] }
 0xa69   :  { %10836 = vmatprep.subr.mxu0 %v4858_v16  ;;  %v5194_v16 = vld [vmem:[#allocation16 + $0x218] sm:$0xff] }
 0xa6a   :  { %10837 = vmatpush3.msra.mxu0 %v4842_v43  ;;  %v5209_v43 = vld [vmem:[#allocation16 + $0x290] sm:$0xff] }
 0xa6b   :  { %10838 = vmatprep.subr.mxu0 %v4857_v45  ;;  %v5193_v45 = vld [vmem:[#allocation16 + $0x210] sm:$0xff] }
 0xa6c   :  { %10839 = vmatpush3.msra.mxu0 %v4841_v37  ;;  %v5208_v37 = vld [vmem:[#allocation16 + $0x288] sm:$0xff] }
 0xa6d   :  { %10840 = vmatprep.subr.mxu0 %v4856_v13  ;;  %v5192_v13 = vld [vmem:[#allocation16 + $0x208] sm:$0xff] }
 0xa6e   :  { %10841 = vmatpush3.msra.mxu0 %v4840_v2  ;;  %v5207_v2 = vld [vmem:[#allocation16 + $0x280] sm:$0xff] }
 0xa6f   :  { %10842 = vmatprep.subr.mxu0 %v4855_v46  ;;  %v5191_v46 = vld [vmem:[#allocation16 + $0x200] sm:$0xff] }
 0xa70   :  { %10843 = vmatpush3.msra.mxu0 %v4839_v34 }
 0xa71   :  { %10844 = vmatprep.subr.mxu0 %v4854_v31 }
 0xa72   :  { %10845 = vmatpush3.msra.mxu0 %v4838_v51 }
 0xa73   :  { %10846 = vmatprep.subr.mxu0 %v4853_v50 }
 0xa74   :  { %10847 = vmatpush3.msra.mxu0 %v4837_v1  ;;  %v5238_v1 = vld [vmem:[#allocation16 + $0x378] sm:$0xff] }
 0xa75   :  { %5137 = vmatprep.subr.mxu0 %v12981_v63 }
 0xad4   :  { %v4717_v29 = vpop.f32.mrf.mxu1 }
 0xad6   :  { %v4719_v26 = vpop.f32.mrf.mxu1 }
 0xad7   :  { %4933 = vmatprep.mubr.f32.mxu1 %v4719_v26  ;;  %v5237_v26 = vld [vmem:[#allocation16 + $0x370] sm:$0xff] }
 0xad8   :  { %v4723_v5 = vpop.f32.mrf.mxu1  ;;  %4934 = vmatmul.mubr.f32.vlgmr.msra.gmra.mxu1 %v4717_v29  ;;  %v5253_v29 = vld [vmem:[#allocation16 + $0x3f0] sm:$0xff] }
 0xad9   :  { %5061 = vmatpush1.msra.mxu1 %v12933_v53 }
 0xada   :  { %5062 = vmatprep.subr.mxu1 %v12935_v56  ;;  %v4725_v33 = vpop.f32.mrf.mxu1 }
 0xadb   :  { %5063 = vmatpush1.msra.mxu1 %v12939_v9  ;;  %4938 = vmatprep.mubr.f32.mxu1 %v4725_v33  ;;  %v5236_v33 = vld [vmem:[#allocation16 + $0x368] sm:$0xff] }
 0xadc   :  { %5064 = vmatprep.subr.mxu1 %v12942_v39  ;;  %4939 = vmatmul.mubr.f32.gmra.mxu1 %v4723_v5  ;;  %v5252_v5 = vld [vmem:[#allocation16 + $0x3e8] sm:$0xff] }
 0xadd   :  { %5065 = vmatpush1.msra.mxu1 %v12945_v4  ;;  %5100 = vmatprep.mubr.f32.mxu1 %v13820_v32 }
 0xade   :  { %5066 = vmatprep.subr.mxu1 %v12948_v20 }
 0xadf   :  { %5067 = vmatpush1.msra.mxu1 %v12951_v47 }
 0xae0   :  { %10854 = vmatprep.subr.mxu1 %v5222_v40  ;;  %10717 = vmatmul.mubr.msk.f32.vlgmr.msra.gmra.mxu1 %vm396_vm0, %v13019_v22  ;;  %v5251_v40 = vld [vmem:[#allocation16 + $0x3e0] sm:$0xff] }
 0xae1   :  { %10855 = vmatpush3.msra.mxu1 %v5206_v58  ;;  %5106 = vmatprep.mubr.f32.mxu1 %v13820_v32  ;;  %v5235_v58 = vld [vmem:[#allocation16 + $0x360] sm:$0xff] }
 0xae2   :  { %10856 = vmatprep.subr.mxu1 %v5221_v55  ;;  %v5250_v55 = vld [vmem:[#allocation16 + $0x3d8] sm:$0xff] }
 0xae3   :  { %10857 = vmatpush3.msra.mxu1 %v5205_v36  ;;  %v5234_v36 = vld [vmem:[#allocation16 + $0x358] sm:$0xff] }
 0xae4   :  { %10858 = vmatprep.subr.mxu1 %v5220_v7  ;;  %10718 = vmatmul.mubr.msk.f32.gmra.mxu1 %vm396_vm0, %v13026_v44  ;;  %v5233_v7 = vld [vmem:[#allocation16 + $0x350] sm:$0xff] }
 0xae5   :  { %10859 = vmatpush3.msra.mxu1 %v5204_v15  ;;  %v5248_v15 = vld [vmem:[#allocation16 + $0x3c8] sm:$0xff] }
 0xae6   :  { %10860 = vmatprep.subr.mxu1 %v5219_v27  ;;  %v5232_v27 = vld [vmem:[#allocation16 + $0x348] sm:$0xff] }
 0xae7   :  { %10861 = vmatpush3.msra.mxu1 %v5203_v3  ;;  %v5247_v3 = vld [vmem:[#allocation16 + $0x3c0] sm:$0xff] }
 0xae8   :  { %10862 = vmatprep.subr.mxu1 %v5218_v11  ;;  %v5231_v11 = vld [vmem:[#allocation16 + $0x340] sm:$0xff] }
 0xae9   :  { %10863 = vmatpush3.msra.mxu1 %v5202_v23  ;;  %v5246_v23 = vld [vmem:[#allocation16 + $0x3b8] sm:$0xff] }
 0xaea   :  { %10864 = vmatprep.subr.mxu1 %v5217_v8  ;;  %v5245_v8 = vld [vmem:[#allocation16 + $0x3b0] sm:$0xff] }
 0xaeb   :  { %10865 = vmatpush3.msra.mxu1 %v5201_v38  ;;  %v5229_v38 = vld [vmem:[#allocation16 + $0x330] sm:$0xff] }
 0xaec   :  { %10866 = vmatprep.subr.mxu1 %v5216_v14  ;;  %v5244_v14 = vld [vmem:[#allocation16 + $0x3a8] sm:$0xff] }
 0xaed   :  { %10867 = vmatpush3.msra.mxu1 %v5200_v41  ;;  %v5228_v41 = vld [vmem:[#allocation16 + $0x328] sm:$0xff] }
 0xaee   :  { %10868 = vmatprep.subr.mxu1 %v5215_v17  ;;  %v5243_v17 = vld [vmem:[#allocation16 + $0x3a0] sm:$0xff] }
 0xaef   :  { %10869 = vmatpush3.msra.mxu1 %v5199_v18  ;;  %v5227_v18 = vld [vmem:[#allocation16 + $0x320] sm:$0xff] }
 0xaf0   :  { %10870 = vmatprep.subr.mxu1 %v5214_v24  ;;  %v5242_v24 = vld [vmem:[#allocation16 + $0x398] sm:$0xff] }
 0xaf1   :  { %10871 = vmatpush3.msra.mxu1 %v5198_v25  ;;  %v5226_v25 = vld [vmem:[#allocation16 + $0x318] sm:$0xff] }
 0xaf2   :  { %10872 = vmatprep.subr.mxu1 %v5213_v57  ;;  %v5241_v57 = vld [vmem:[#allocation16 + $0x390] sm:$0xff] }
 0xaf3   :  { %10873 = vmatpush3.msra.mxu1 %v5197_v42  ;;  %v5225_v42 = vld [vmem:[#allocation16 + $0x310] sm:$0xff] }
 0xaf4   :  { %10874 = vmatprep.subr.mxu1 %v5212_v61  ;;  %v5240_v61 = vld [vmem:[#allocation16 + $0x388] sm:$0xff] }
 0xaf5   :  { %10875 = vmatpush3.msra.mxu1 %v5196_v12  ;;  %v5224_v12 = vld [vmem:[#allocation16 + $0x308] sm:$0xff] }
 0xaf6   :  { %10876 = vmatprep.subr.mxu1 %v5211_v54  ;;  %v5239_v54 = vld [vmem:[#allocation16 + $0x380] sm:$0xff] }
 0xaf7   :  { %10877 = vmatpush3.msra.mxu1 %v5195_v48  ;;  %v5223_v48 = vld [vmem:[#allocation16 + $0x300] sm:$0xff] }
 0xaf8   :  { %10878 = vmatprep.subr.mxu1 %v5210_v6 }
 0xaf9   :  { %10879 = vmatpush3.msra.mxu1 %v5194_v16 }
 0xafa   :  { %10880 = vmatprep.subr.mxu1 %v5209_v43 }
 0xafb   :  { %10881 = vmatpush3.msra.mxu1 %v5193_v45 }
 0xafc   :  { %10882 = vmatprep.subr.mxu1 %v5208_v37 }
 0xafd   :  { %10883 = vmatpush3.msra.mxu1 %v5192_v13 }
 0xafe   :  { %10884 = vmatprep.subr.mxu1 %v5207_v2 }
 0xaff   :  { %10885 = vmatpush3.msra.mxu1 %v5191_v46 }
 0xb00   :  { %5440 = vmatprep.subr.mxu1 %v12930_v19  ;;  %v5254_v19 = vld [vmem:[#allocation16 + $0x3f8] sm:$0xff] }
 0xb15   :  { %v4794_v34 = vpop.f32.mrf.mxu0 }
 0xb17   :  { %v4796_v31 = vpop.f32.mrf.mxu0 }
 0xb18   :  { %5008 = vmatprep.mubr.f32.mxu0 %v4796_v31 }
 0xb19   :  { %v4800_v51 = vpop.f32.mrf.mxu0  ;;  %5009 = vmatmul.mubr.f32.vlgmr.msra.gmra.mxu0 %v4794_v34 }
 0xb1a   :  { %5138 = vmatpush1.msra.mxu0 %v12984_v52 }
 0xb1b   :  { %5139 = vmatprep.subr.mxu0 %v12986_v60  ;;  %v4802_v50 = vpop.f32.mrf.mxu0 }
 0xb1c   :  { %5140 = vmatpush1.msra.mxu0 %v12990_v30  ;;  %5013 = vmatprep.mubr.f32.mxu0 %v4802_v50  ;;  %v5586_v50 = vld [vmem:[#allocation16 + $0x478] sm:$0xff] }
 0xb1d   :  { %5141 = vmatprep.subr.mxu0 %v12993_v59  ;;  %5014 = vmatmul.mubr.f32.gmra.mxu0 %v4800_v51  ;;  %v5602_v51 = vld [vmem:[#allocation16 + $0x4f8] sm:$0xff] }
 0xb1e   :  { %5142 = vmatpush1.msra.mxu0 %v12996_v0  ;;  %5177 = vmatprep.mubr.f32.mxu0 %v13820_v32 }
 0xb1f   :  { %5143 = vmatprep.subr.mxu0 %v12999_v28 }
 0xb20   :  { %5144 = vmatpush1.msra.mxu0 %v13002_v10 }
 0xb21   :  { %10892 = vmatprep.subr.mxu0 %v5254_v19  ;;  %10719 = vmatmul.mubr.msk.f32.vlgmr.msra.gmra.mxu0 %vm396_vm0, %v13019_v22  ;;  %v5249_v22 = vld [vmem:[#allocation16 + $0x3d0] sm:$0xff]  ;;  %v5599_v19 = vld [vmem:[#allocation16 + $0x4e0] sm:$0xff] }
 0xb22   :  { %10893 = vmatpush3.msra.mxu0 %v5238_v1  ;;  %5183 = vmatprep.mubr.f32.mxu0 %v13820_v32  ;;  %v5582_v1 = vld [vmem:[#allocation16 + $0x458] sm:$0xff] }
 0xb23   :  { %10894 = vmatprep.subr.mxu0 %v5253_v29  ;;  %v5597_v29 = vld [vmem:[#allocation16 + $0x4d0] sm:$0xff] }
 0xb24   :  { %10895 = vmatpush3.msra.mxu0 %v5237_v26  ;;  %v5581_v26 = vld [vmem:[#allocation16 + $0x450] sm:$0xff] }
 0xb25   :  { %10896 = vmatprep.subr.mxu0 %v5252_v5  ;;  %10720 = vmatmul.mubr.msk.f32.gmra.mxu0 %vm396_vm0, %v13026_v44  ;;  %v5230_v44 = vld [vmem:[#allocation16 + $0x338] sm:$0xff]  ;;  %v5596_v5 = vld [vmem:[#allocation16 + $0x4c8] sm:$0xff] }
 0xb26   :  { %10897 = vmatpush3.msra.mxu0 %v5236_v33  ;;  %v5580_v33 = vld [vmem:[#allocation16 + $0x448] sm:$0xff] }
 0xb27   :  { %10898 = vmatprep.subr.mxu0 %v5251_v40  ;;  %v5595_v40 = vld [vmem:[#allocation16 + $0x4c0] sm:$0xff] }
 0xb28   :  { %10899 = vmatpush3.msra.mxu0 %v5235_v58  ;;  %v5579_v58 = vld [vmem:[#allocation16 + $0x440] sm:$0xff] }
 0xb29   :  { %10900 = vmatprep.subr.mxu0 %v5250_v55  ;;  %v5594_v55 = vld [vmem:[#allocation16 + $0x4b8] sm:$0xff] }
 0xb2a   :  { %10901 = vmatpush3.msra.mxu0 %v5234_v36  ;;  %v5578_v36 = vld [vmem:[#allocation16 + $0x438] sm:$0xff] }
 0xb2b   :  { %10902 = vmatprep.subr.mxu0 %v5249_v22  ;;  %v5593_v22 = vld [vmem:[#allocation16 + $0x4b0] sm:$0xff] }
 0xb2c   :  { %10903 = vmatpush3.msra.mxu0 %v5233_v7  ;;  %v5577_v7 = vld [vmem:[#allocation16 + $0x430] sm:$0xff] }
 0xb2d   :  { %10904 = vmatprep.subr.mxu0 %v5248_v15 }
 0xb2e   :  { %10905 = vmatpush3.msra.mxu0 %v5232_v27 }
 0xb2f   :  { %10906 = vmatprep.subr.mxu0 %v5247_v3 }
 0xb30   :  { %10907 = vmatpush3.msra.mxu0 %v5231_v11 }
 0xb31   :  { %10908 = vmatprep.subr.mxu0 %v5246_v23 }
 0xb32   :  { %10909 = vmatpush3.msra.mxu0 %v5230_v44 }
 0xb33   :  { %10910 = vmatprep.subr.mxu0 %v5245_v8 }
 0xb34   :  { %10911 = vmatpush3.msra.mxu0 %v5229_v38 }
 0xb35   :  { %10912 = vmatprep.subr.mxu0 %v5244_v14 }
 0xb36   :  { %10913 = vmatpush3.msra.mxu0 %v5228_v41 }
 0xb37   :  { %10914 = vmatprep.subr.mxu0 %v5243_v17  ;;  %v5592_v17 = vld [vmem:[#allocation16 + $0x4a8] sm:$0xff] }
 0xb38   :  { %10915 = vmatpush3.msra.mxu0 %v5227_v18 }
 0xb39   :  { %10916 = vmatprep.subr.mxu0 %v5242_v24 }
 0xb3a   :  { %10917 = vmatpush3.msra.mxu0 %v5226_v25  ;;  %v5634_v25 = vld [vmem:[#allocation16 + $0x5f8] sm:$0xff] }
 0xb3b   :  { %10918 = vmatprep.subr.mxu0 %v5241_v57  ;;  %v5618_v57 = vld [vmem:[#allocation16 + $0x578] sm:$0xff] }
 0xb3c   :  { %10919 = vmatpush3.msra.mxu0 %v5225_v42  ;;  %v5614_v42 = vld [vmem:[#allocation16 + $0x558] sm:$0xff] }
 0xb3d   :  { %10920 = vmatprep.subr.mxu0 %v5240_v61  ;;  %v5629_v61 = vld [vmem:[#allocation16 + $0x5d0] sm:$0xff] }
 0xb3e   :  { %10921 = vmatpush3.msra.mxu0 %v5224_v12  ;;  %v5613_v12 = vld [vmem:[#allocation16 + $0x550] sm:$0xff] }
 0xb3f   :  { %10922 = vmatprep.subr.mxu0 %v5239_v54  ;;  %v5628_v54 = vld [vmem:[#allocation16 + $0x5c8] sm:$0xff] }
 0xb40   :  { %10923 = vmatpush3.msra.mxu0 %v5223_v48  ;;  %v5612_v48 = vld [vmem:[#allocation16 + $0x548] sm:$0xff] }
 0xb41   :  { %5517 = vmatprep.subr.mxu0 %v12981_v63  ;;  %v13055_v63 = vld [vmem:[#allocation14 + $0x20] sm:$0xff] }
 0xb98   :  { %v10810_v6 = vpop.f32.mrf.mxu1 }
 0xb9a   :  { %v10811_v16 = vpop.f32.mrf.mxu1 }
 0xb9b   :  { %v13045_v43 = vadd.f32 %v10811_v16, %v10810_v6  ;;  %v5627_v6 = vld [vmem:[#allocation16 + $0x5c0] sm:$0xff] }
 0xb9c   :  { %v10813_v45 = vpop.f32.mrf.mxu1  ;;  %v5611_v16 = vld [vmem:[#allocation16 + $0x540] sm:$0xff] }
 0xb9e   :  { %v10814_v37 = vpop.f32.mrf.mxu1 }
 0xb9f   :  { %v13047_v13 = vadd.f32 %v10814_v37, %v10813_v45  ;;  %v5610_v45 = vld [vmem:[#allocation16 + $0x538] sm:$0xff]  ;;  %v5625_v37 = vld [vmem:[#allocation16 + $0x5b0] sm:$0xff] }
 0xba0   :  { %v5102_v2 = vpop.f32.mrf.mxu1 }
 0xba2   :  { %v5104_v46 = vpop.f32.mrf.mxu1 }
 0xba3   :  { %5319 = vmatprep.mubr.f32.mxu1 %v5104_v46  ;;  %v5591_v46 = vld [vmem:[#allocation16 + $0x4a0] sm:$0xff] }
 0xba4   :  { %5320 = vmatmul.mubr.f32.vlgmr.msra.gmra.mxu1 %v5102_v2  ;;  %v5108_v34 = vpop.f32.mrf.mxu1  ;;  %v5576_v2 = vld [vmem:[#allocation16 + $0x428] sm:$0xff] }
 0xba5   :  { %5441 = vmatpush1.msra.mxu1 %v12933_v53  ;;  %v5601_v53 = vld [vmem:[#allocation16 + $0x4f0] sm:$0xff] }
 0xba6   :  { %5442 = vmatprep.subr.mxu1 %v12935_v56  ;;  %v5110_v31 = vpop.f32.mrf.mxu1  ;;  %v5585_v56 = vld [vmem:[#allocation16 + $0x470] sm:$0xff] }
 0xba7   :  { %5443 = vmatpush1.msra.mxu1 %v12939_v9  ;;  %5324 = vmatprep.mubr.f32.mxu1 %v5110_v31  ;;  %v13062_v9 = vld [vmem:[#allocation14 + $0x28] sm:$0xff] }
 0xba8   :  { %5444 = vmatprep.subr.mxu1 %v12942_v39  ;;  %5325 = vmatmul.mubr.f32.gmra.mxu1 %v5108_v34  ;;  %v5600_v39 = vld [vmem:[#allocation16 + $0x4e8] sm:$0xff]  ;;  %v5575_v34 = vld [vmem:[#allocation16 + $0x420] sm:$0xff]  ;;  %v5590_v31 = vld [vmem:[#allocation16 + $0x498] sm:$0xff] }
 0xba9   :  { %5445 = vmatpush1.msra.mxu1 %v12945_v4  ;;  %5480 = vmatprep.mubr.f32.mxu1 %v13820_v32  ;;  %v5584_v4 = vld [vmem:[#allocation16 + $0x468] sm:$0xff] }
 0xbaa   :  { %5446 = vmatprep.subr.mxu1 %v12948_v20  ;;  %v5583_v20 = vld [vmem:[#allocation16 + $0x460] sm:$0xff] }
 0xbab   :  { %5447 = vmatpush1.msra.mxu1 %v12951_v47  ;;  %v5598_v47 = vld [vmem:[#allocation16 + $0x4d8] sm:$0xff] }
 0xbac   :  { %10721 = vmatmul.mubr.msk.f32.vlgmr.msra.gmra.mxu1 %vm396_vm0, %v13055_v63  ;;  %10930 = vmatprep.subr.mxu1 %v5602_v51  ;;  %v5608_v51 = vld [vmem:[#allocation16 + $0x528] sm:$0xff] }
 0xbad   :  { %5486 = vmatprep.mubr.f32.mxu1 %v13820_v32  ;;  %10931 = vmatpush3.msra.mxu1 %v5586_v50  ;;  %v5574_v50 = vld [vmem:[#allocation16 + $0x418] sm:$0xff] }
 0xbae   :  { %10932 = vmatprep.subr.mxu1 %v5601_v53  ;;  %v5589_v53 = vld [vmem:[#allocation16 + $0x490] sm:$0xff] }
 0xbaf   :  { %10933 = vmatpush3.msra.mxu1 %v5585_v56  ;;  %v5623_v56 = vld [vmem:[#allocation16 + $0x5a0] sm:$0xff] }
 0xbb0   :  { %10722 = vmatmul.mubr.msk.f32.gmra.mxu1 %vm396_vm0, %v13062_v9  ;;  %10934 = vmatprep.subr.mxu1 %v5600_v39  ;;  %v5607_v39 = vld [vmem:[#allocation16 + $0x520] sm:$0xff] }
 0xbb1   :  { %10935 = vmatpush3.msra.mxu1 %v5584_v4  ;;  %v5588_v4 = vld [vmem:[#allocation16 + $0x488] sm:$0xff] }
 0xbb2   :  { %10936 = vmatprep.subr.mxu1 %v5599_v19  ;;  %v5622_v19 = vld [vmem:[#allocation16 + $0x598] sm:$0xff] }
 0xbb3   :  { %10937 = vmatpush3.msra.mxu1 %v5583_v20  ;;  %v5572_v20 = vld [vmem:[#allocation16 + $0x408] sm:$0xff] }
 0xbb4   :  { %10938 = vmatprep.subr.mxu1 %v5598_v47  ;;  %v5606_v47 = vld [vmem:[#allocation16 + $0x518] sm:$0xff] }
 0xbb5   :  { %10939 = vmatpush3.msra.mxu1 %v5582_v1  ;;  %v5587_v1 = vld [vmem:[#allocation16 + $0x480] sm:$0xff] }
 0xbb6   :  { %10940 = vmatprep.subr.mxu1 %v5597_v29  ;;  %v5621_v29 = vld [vmem:[#allocation16 + $0x590] sm:$0xff] }
 0xbb7   :  { %10941 = vmatpush3.msra.mxu1 %v5581_v26  ;;  %v5571_v26 = vld [vmem:[#allocation16 + $0x400] sm:$0xff] }
 0xbb8   :  { %10942 = vmatprep.subr.mxu1 %v5596_v5  ;;  %v5605_v5 = vld [vmem:[#allocation16 + $0x510] sm:$0xff] }
 0xbb9   :  { %10943 = vmatpush3.msra.mxu1 %v5580_v33  ;;  %v5620_v33 = vld [vmem:[#allocation16 + $0x588] sm:$0xff] }
 0xbba   :  { %10944 = vmatprep.subr.mxu1 %v5595_v40  ;;  %v5604_v40 = vld [vmem:[#allocation16 + $0x508] sm:$0xff] }
 0xbbb   :  { %10945 = vmatpush3.msra.mxu1 %v5579_v58  ;;  %v5619_v58 = vld [vmem:[#allocation16 + $0x580] sm:$0xff] }
 0xbbc   :  { %10946 = vmatprep.subr.mxu1 %v5594_v55  ;;  %v5603_v55 = vld [vmem:[#allocation16 + $0x500] sm:$0xff] }
 0xbbd   :  { %10947 = vmatpush3.msra.mxu1 %v5578_v36 }
 0xbbe   :  { %10948 = vmatprep.subr.mxu1 %v5593_v22 }
 0xbbf   :  { %10949 = vmatpush3.msra.mxu1 %v5577_v7 }
 0xbc0   :  { %10950 = vmatprep.subr.mxu1 %v5592_v17  ;;  %v10716_v17 = vld [vmem:[#allocation17] ss:$0 sm:$0xff] }
 0xbc1   :  { %10951 = vmatpush3.msra.mxu1 %v5576_v2  ;;  %v5909_v2 = vld [vmem:[#allocation20 + $0x160] sm:$0xff] }
 0xbc2   :  { %10952 = vmatprep.subr.mxu1 %v5591_v46  ;;  %v5906_v46 = vld [vmem:[#allocation20 + $0x148] sm:$0xff] }
 0xbc3   :  { %10953 = vmatpush3.msra.mxu1 %v5575_v34  ;;  %v5905_v34 = vld [vmem:[#allocation20 + $0x140] sm:$0xff] }
 0xbc4   :  { %10954 = vmatprep.subr.mxu1 %v5590_v31  ;;  %v5902_v31 = vld [vmem:[#allocation20 + $0x128] sm:$0xff] }
 0xbc5   :  { %10955 = vmatpush3.msra.mxu1 %v5574_v50  ;;  %v5897_v50 = vld [vmem:[#allocation20 + $0x100] sm:$0xff] }
 0xbc6   :  { %10956 = vmatprep.subr.mxu1 %v5589_v53  ;;  %v5894_v53 = vld [vmem:[#allocation20 + $0xe8] sm:$0xff] }
 0xbd9   :  { %v10848_v15 = vpop.f32.mrf.mxu0 }
 0xbdb   :  { %v10849_v27 = vpop.f32.mrf.mxu0 }
 0xbdc   :  { %v10850_v3 = vadd.f32 %v10849_v27, %v10848_v15 }
 0xbdd   :  { %v10851_v11 = vpop.f32.mrf.mxu0 }
 0xbde   :  { %v13067_v23 = vadd.f32 %v10850_v3, %v13045_v43  ;;  %v5626_v43 = vld [vmem:[#allocation16 + $0x5b8] sm:$0xff] }
 0xbdf   :  { %v10852_v44 = vpop.f32.mrf.mxu0 }
 0xbe0   :  { %v10853_v8 = vadd.f32 %v10852_v44, %v10851_v11 }
 0xbe1   :  { %v5179_v38 = vpop.f32.mrf.mxu0 }
 0xbe2   :  { %v13070_v14 = vadd.f32 %v10853_v8, %v13047_v13  ;;  %v5609_v13 = vld [vmem:[#allocation16 + $0x530] sm:$0xff] }
 0xbe3   :  { %v5181_v41 = vpop.f32.mrf.mxu0 }
 0xbe4   :  { %5394 = vmatprep.mubr.f32.mxu0 %v5181_v41 }
 0xbe5   :  { %v5185_v18 = vpop.f32.mrf.mxu0  ;;  %5395 = vmatmul.mubr.f32.vlgmr.msra.gmra.mxu0 %v5179_v38 }
 0xbe6   :  { %5518 = vmatpush1.msra.mxu0 %v12984_v52  ;;  %v5633_v52 = vld [vmem:[#allocation16 + $0x5f0] sm:$0xff] }
 0xbe7   :  { %5519 = vmatprep.subr.mxu0 %v12986_v60  ;;  %v5187_v24 = vpop.f32.mrf.mxu0  ;;  %v5617_v60 = vld [vmem:[#allocation16 + $0x570] sm:$0xff] }
 0xbe8   :  { %5520 = vmatpush1.msra.mxu0 %v12990_v30  ;;  %5399 = vmatprep.mubr.f32.mxu0 %v5187_v24  ;;  %v5632_v30 = vld [vmem:[#allocation16 + $0x5e8] sm:$0xff] }
 0xbe9   :  { %5521 = vmatprep.subr.mxu0 %v12993_v59  ;;  %5400 = vmatmul.mubr.f32.gmra.mxu0 %v5185_v18  ;;  %v5616_v59 = vld [vmem:[#allocation16 + $0x568] sm:$0xff] }
 0xbea   :  { %5522 = vmatpush1.msra.mxu0 %v12996_v0  ;;  %5557 = vmatprep.mubr.f32.mxu0 %v13820_v32  ;;  %v5631_v0 = vld [vmem:[#allocation16 + $0x5e0] sm:$0xff] }
 0xbeb   :  { %5523 = vmatprep.subr.mxu0 %v12999_v28  ;;  %v5615_v28 = vld [vmem:[#allocation16 + $0x560] sm:$0xff] }
 0xbec   :  { %5524 = vmatpush1.msra.mxu0 %v13002_v10  ;;  %v5630_v10 = vld [vmem:[#allocation16 + $0x5d8] sm:$0xff] }
 0xbed   :  { %10723 = vmatmul.mubr.msk.f32.vlgmr.msra.gmra.mxu0 %vm396_vm0, %v13055_v63  ;;  %10968 = vmatprep.subr.mxu0 %v5634_v25  ;;  %v5624_v63 = vld [vmem:[#allocation16 + $0x5a8] sm:$0xff] }
 0xbee   :  { %5563 = vmatprep.mubr.f32.mxu0 %v13820_v32  ;;  %10969 = vmatpush3.msra.mxu0 %v5618_v57  ;;  %v5025_v57 = vadd.f32 %v10716_v17, %v13067_v23  ;;  %v5926_v23 = vld [vmem:[#allocation20 + $0x1e8] sm:$0xff] }
 0xbef   :  { %10970 = vmatprep.subr.mxu0 %v5633_v52 }
 0xbf0   :  { %10971 = vmatpush3.msra.mxu0 %v5617_v60 }
 0xbf1   :  { %10724 = vmatmul.mubr.msk.f32.gmra.mxu0 %vm396_vm0, %v13062_v9  ;;  %10972 = vmatprep.subr.mxu0 %v5632_v30  ;;  %v5573_v9 = vld [vmem:[#allocation16 + $0x410] sm:$0xff] }
 0xbf2   :  { %10973 = vmatpush3.msra.mxu0 %v5616_v59  ;;  %10957 = vmatpush3.msra.mxu1 %v5573_v9  ;;  %v5890_v9 = vld [vmem:[#allocation20 + $0xc8] sm:$0xff] }
 0xbf3   :  { %10974 = vmatprep.subr.mxu0 %v5631_v0  ;;  %10958 = vmatprep.subr.mxu1 %v5588_v4  ;;  %v5886_v4 = vld [vmem:[#allocation20 + $0xa8] sm:$0xff] }
 0xbf4   :  { %10975 = vmatpush3.msra.mxu0 %v5615_v28  ;;  %10959 = vmatpush3.msra.mxu1 %v5572_v20  ;;  %v5026_v28 = vadd.f32 %v10716_v17, %v13070_v14  ;;  %v5921_v14 = vld [vmem:[#allocation20 + $0x1c0] sm:$0xff]  ;;  %v5882_v20 = vld [vmem:[#allocation20 + $0x88] sm:$0xff] }
 0xbf5   :  { %10976 = vmatprep.subr.mxu0 %v5630_v10  ;;  %10960 = vmatprep.subr.mxu1 %v5587_v1  ;;  %v5878_v1 = vld [vmem:[#allocation20 + $0x68] sm:$0xff] }
 0xbf6   :  { %10977 = vmatpush3.msra.mxu0 %v5614_v42  ;;  %10961 = vmatpush3.msra.mxu1 %v5571_v26  ;;  %v5874_v26 = vld [vmem:[#allocation20 + $0x48] sm:$0xff] }
 0xbf7   :  { %10978 = vmatprep.subr.mxu0 %v5629_v61  ;;  %11240 = vmatprep.subr.mxu1 %v13820_v32 }
 0xbf8   :  { %10979 = vmatpush3.msra.mxu0 %v5613_v12 }
 0xbf9   :  { %10980 = vmatprep.subr.mxu0 %v5628_v54 }
 0xbfa   :  { %10981 = vmatpush3.msra.mxu0 %v5612_v48  ;;  %v5925_v48 = vld [vmem:[#allocation20 + $0x1e0] sm:$0xff] }
 0xbfb   :  { %10982 = vmatprep.subr.mxu0 %v5627_v6  ;;  %v5922_v6 = vld [vmem:[#allocation20 + $0x1c8] sm:$0xff] }
 0xbfc   :  { %10983 = vmatpush3.msra.mxu0 %v5611_v16  ;;  %v5918_v16 = vld [vmem:[#allocation20 + $0x1a8] sm:$0xff] }
 0xbfd   :  { %10984 = vmatprep.subr.mxu0 %v5626_v43  ;;  %v5917_v43 = vld [vmem:[#allocation20 + $0x1a0] sm:$0xff] }
 0xbfe   :  { %10985 = vmatpush3.msra.mxu0 %v5610_v45  ;;  %v5914_v45 = vld [vmem:[#allocation20 + $0x188] sm:$0xff] }
 0xbff   :  { %10986 = vmatprep.subr.mxu0 %v5625_v37  ;;  %v5913_v37 = vld [vmem:[#allocation20 + $0x180] sm:$0xff] }
 0xc00   :  { %10987 = vmatpush3.msra.mxu0 %v5609_v13  ;;  %v5910_v13 = vld [vmem:[#allocation20 + $0x168] sm:$0xff] }
 0xc01   :  { %10988 = vmatprep.subr.mxu0 %v5624_v63  ;;  %v5901_v63 = vld [vmem:[#allocation20 + $0x120] sm:$0xff] }
 0xc02   :  { %10989 = vmatpush3.msra.mxu0 %v5608_v51  ;;  %v5898_v51 = vld [vmem:[#allocation20 + $0x108] sm:$0xff] }
 0xc03   :  { %10990 = vmatprep.subr.mxu0 %v5623_v56  ;;  %v5893_v56 = vld [vmem:[#allocation20 + $0xe0] sm:$0xff] }
 0xc04   :  { %10991 = vmatpush3.msra.mxu0 %v5607_v39  ;;  %v5889_v39 = vld [vmem:[#allocation20 + $0xc0] sm:$0xff] }
 0xc05   :  { %10992 = vmatprep.subr.mxu0 %v5622_v19  ;;  %v5885_v19 = vld [vmem:[#allocation20 + $0xa0] sm:$0xff] }
 0xc06   :  { %10993 = vmatpush3.msra.mxu0 %v5606_v47  ;;  %v5881_v47 = vld [vmem:[#allocation20 + $0x80] sm:$0xff] }
 0xc07   :  { %10994 = vmatprep.subr.mxu0 %v5621_v29  ;;  %v5877_v29 = vld [vmem:[#allocation20 + $0x60] sm:$0xff] }
 0xc08   :  { %10995 = vmatpush3.msra.mxu0 %v5605_v5  ;;  %v5873_v5 = vld [vmem:[#allocation20 + $0x40] sm:$0xff] }
 0xc09   :  { %10996 = vmatprep.subr.mxu0 %v5620_v33  ;;  %v5870_v33 = vld [vmem:[#allocation20 + $0x28] sm:$0xff] }
 0xc0a   :  { %10997 = vmatpush3.msra.mxu0 %v5604_v40  ;;  %v5869_v40 = vld [vmem:[#allocation20 + $0x20] sm:$0xff] }
 0xc0b   :  { %10998 = vmatprep.subr.mxu0 %v5619_v58  ;;  %v5866_v58 = vld [vmem:[#allocation20 + $0x8] sm:$0xff] }
 0xc0c   :  { %10999 = vmatpush3.msra.mxu0 %v5603_v55  ;;  %v5865_v55 = vld [vmem:[#allocation20] sm:$0xff] }
 0xc0d   :  { %5929 = vmatprep.subr.mxu0 %v5926_v23  ;;  %v5912_v23 = vld [vmem:[#allocation20 + $0x178] sm:$0xff] }
 0xc64   :  { %v10886_v36 = vpop.f32.mrf.mxu1 }
 0xc66   :  { %v10887_v22 = vpop.f32.mrf.mxu1 }
 0xc67   :  { %v10888_v7 = vadd.f32 %v10887_v22, %v10886_v36 }
 0xc68   :  { %v10889_v15 = vpop.f32.mrf.mxu1 }
 0xc6a   :  { %v10890_v27 = vpop.f32.mrf.mxu1 }
 0xc6b   :  { %v10891_v3 = vadd.f32 %v10890_v27, %v10889_v15 }
 0xc6c   :  { %v5482_v11 = vpop.f32.mrf.mxu1 }
 0xc6e   :  { %v5484_v44 = vpop.f32.mrf.mxu1 }
 0xc6f   :  { %5699 = vmatprep.mubr.f32.mxu1 %v5484_v44 }
 0xc70   :  { %v5488_v8 = vpop.f32.mrf.mxu1  ;;  %5700 = vmatmul.mubr.f32.vlgmr.msra.gmra.mxu1 %v5482_v11 }
 0xc72   :  { %v5490_v38 = vpop.f32.mrf.mxu1 }
 0xc73   :  { %5704 = vmatprep.mubr.f32.mxu1 %v5490_v38 }
 0xc74   :  { %5705 = vmatmul.mubr.f32.gmra.mxu1 %v5488_v8 }
 0xc75   :  { %11244 = vmatprep.mubr.msk.f32.mxu1 %vm11900_vm2, %v13820_v32 }
 0xca5   :  { %v10924_v41 = vpop.f32.mrf.mxu0 }
 0xca7   :  { %v10925_v18 = vpop.f32.mrf.mxu0 }
 0xca8   :  { %v10926_v24 = vadd.f32 %v10925_v18, %v10924_v41 }
 0xca9   :  { %v10927_v25 = vpop.f32.mrf.mxu0 }
 0xcaa   :  { %v5397_v52 = vadd.f32 %v10926_v24, %v10888_v7 }
 0xcab   :  { %v10928_v60 = vpop.f32.mrf.mxu0 }
 0xcac   :  { %v13087_v30 = vadd.f32 %v5397_v52, %v5025_v57  ;;  %v10929_v59 = vadd.f32 %v10928_v60, %v10927_v25 }
 0xcad   :  { %v5559_v0 = vpop.f32.mrf.mxu0 }
 0xcae   :  { %v5402_v10 = vadd.f32 %v10929_v59, %v10891_v3  ;;  %v5790_v59 = vld [vmem:[#allocation19] sm:$0x3] }
 0xcaf   :  { %v5561_v42 = vpop.f32.mrf.mxu0 }
 0xcb0   :  { %v13090_v61 = vadd.f32 %v5402_v10, %v5026_v28  ;;  %5774 = vmatprep.mubr.f32.mxu0 %v5561_v42  ;;  %v5927_v28 = vld [vmem:[#allocation20 + $0x1f0] sm:$0xff]  ;;  %v5924_v10 = vld [vmem:[#allocation20 + $0x1d8] sm:$0xff] }
 0xcb1   :  { %v5565_v12 = vpop.f32.mrf.mxu0  ;;  %5775 = vmatmul.mubr.f32.vlgmr.msra.gmra.mxu0 %v5559_v0  ;;  %v5928_v0 = vld [vmem:[#allocation20 + $0x1f8] sm:$0xff] }
 0xcb2   :  { %5930 = vmatpush1.msra.mxu0 %v5925_v48  ;;  %v5920_v42 = vld [vmem:[#allocation20 + $0x1b8] sm:$0xff]  ;;  %v5911_v48 = vld [vmem:[#allocation20 + $0x170] sm:$0xff] }
 0xcb3   :  { %v5567_v54 = vpop.f32.mrf.mxu0  ;;  %5931 = vmatprep.subr.mxu0 %v5922_v6  ;;  %v5908_v6 = vld [vmem:[#allocation20 + $0x158] sm:$0xff] }
 0xcb4   :  { %5779 = vmatprep.mubr.f32.mxu0 %v5567_v54  ;;  %5932 = vmatpush1.msra.mxu0 %v5921_v14  ;;  %v5915_v54 = vld [vmem:[#allocation20 + $0x190] sm:$0xff] }
 0xcb5   :  { %5780 = vmatmul.mubr.f32.gmra.mxu0 %v5565_v12  ;;  %5933 = vmatprep.subr.mxu0 %v5918_v16  ;;  %v5916_v12 = vld [vmem:[#allocation20 + $0x198] sm:$0xff]  ;;  %v5907_v14 = vld [vmem:[#allocation20 + $0x150] sm:$0xff] }
 0xcb6   :  { %5993 = vmatprep.mubr.f32.mxu0 %v13820_v32  ;;  %5934 = vmatpush1.msra.mxu0 %v5917_v43  ;;  %v5904_v16 = vld [vmem:[#allocation20 + $0x138] sm:$0xff]  ;;  %v5903_v43 = vld [vmem:[#allocation20 + $0x130] sm:$0xff] }
 0xcb7   :  { %5935 = vmatprep.subr.mxu0 %v5914_v45  ;;  %v5900_v45 = vld [vmem:[#allocation20 + $0x118] sm:$0xff] }
 0xcb8   :  { %5936 = vmatpush1.msra.mxu0 %v5913_v37  ;;  %v5899_v37 = vld [vmem:[#allocation20 + $0x110] sm:$0xff] }
 0xcb9   :  { %5937 = vmatprep.subr.mxu0 %v5910_v13  ;;  %v5896_v13 = vld [vmem:[#allocation20 + $0xf8] sm:$0xff] }
 0xcba   :  { %5938 = vmatpush1.msra.mxu0 %v5909_v2  ;;  %v5895_v2 = vld [vmem:[#allocation20 + $0xf0] sm:$0xff] }
 0xcbb   :  { %5939 = vmatprep.subr.mxu0 %v5906_v46  ;;  %v5892_v46 = vld [vmem:[#allocation20 + $0xd8] sm:$0xff] }
 0xcbc   :  { %5940 = vmatpush1.msra.mxu0 %v5905_v34  ;;  %v5891_v34 = vld [vmem:[#allocation20 + $0xd0] sm:$0xff] }
 0xcbd   :  { %5941 = vmatprep.subr.mxu0 %v5902_v31  ;;  %v5888_v31 = vld [vmem:[#allocation20 + $0xb8] sm:$0xff] }
 0xcbe   :  { %5942 = vmatpush1.msra.mxu0 %v5901_v63  ;;  %v5887_v63 = vld [vmem:[#allocation20 + $0xb0] sm:$0xff] }
 0xcbf   :  { %5943 = vmatprep.subr.mxu0 %v5898_v51  ;;  %v5884_v51 = vld [vmem:[#allocation20 + $0x98] sm:$0xff] }
 0xcc0   :  { %5944 = vmatpush1.msra.mxu0 %v5897_v50  ;;  %v5883_v50 = vld [vmem:[#allocation20 + $0x90] sm:$0xff] }
 0xcc1   :  { %5945 = vmatprep.subr.mxu0 %v5894_v53  ;;  %v5880_v53 = vld [vmem:[#allocation20 + $0x78] sm:$0xff] }
 0xcc2   :  { %5946 = vmatpush1.msra.mxu0 %v5893_v56  ;;  %v5879_v56 = vld [vmem:[#allocation20 + $0x70] sm:$0xff] }
 0xcc3   :  { %5947 = vmatprep.subr.mxu0 %v5890_v9  ;;  %v5876_v9 = vld [vmem:[#allocation20 + $0x58] sm:$0xff] }
 0xcc4   :  { %5948 = vmatpush1.msra.mxu0 %v5889_v39  ;;  %v5875_v39 = vld [vmem:[#allocation20 + $0x50] sm:$0xff] }
 0xcc5   :  { %5949 = vmatprep.subr.mxu0 %v5886_v4  ;;  %v5872_v4 = vld [vmem:[#allocation20 + $0x38] sm:$0xff] }
 0xcc6   :  { %5950 = vmatpush1.msra.mxu0 %v5885_v19  ;;  %v5871_v19 = vld [vmem:[#allocation20 + $0x30] sm:$0xff] }
 0xcc7   :  { %5951 = vmatprep.subr.mxu0 %v5882_v20  ;;  %v5868_v20 = vld [vmem:[#allocation20 + $0x18] sm:$0xff] }
 0xcc8   :  { %5952 = vmatpush1.msra.mxu0 %v5881_v47  ;;  %v5867_v47 = vld [vmem:[#allocation20 + $0x10] sm:$0xff] }
 0xcc9   :  { %5953 = vmatprep.subr.mxu0 %v5878_v1  ;;  %v6232_v1 = vld [vmem:[#allocation20 + $0x3e8] sm:$0xff] }
 0xcca   :  { %5954 = vmatpush1.msra.mxu0 %v5877_v29 }
 0xccb   :  { %5955 = vmatprep.subr.mxu0 %v5874_v26  ;;  %v6231_v26 = vld [vmem:[#allocation20 + $0x3e0] sm:$0xff] }
 0xccc   :  { %5956 = vmatpush1.msra.mxu0 %v5873_v5  ;;  %v6228_v5 = vld [vmem:[#allocation20 + $0x3c8] sm:$0xff] }
 0xccd   :  { %5957 = vmatprep.subr.mxu0 %v5870_v33  ;;  %v6097_v33 = vld [vmem:[#allocation19 + $0x2] sm:$0x3] }
 0xcce   :  { %5958 = vmatpush1.msra.mxu0 %v5869_v40 }
 0xccf   :  { %5959 = vmatprep.subr.mxu0 %v5866_v58  ;;  %v6234_v58 = vld [vmem:[#allocation20 + $0x3f8] sm:$0xff] }
 0xcd0   :  { %5960 = vmatpush1.msra.mxu0 %v5865_v55  ;;  %v6233_v55 = vld [vmem:[#allocation20 + $0x3f0] sm:$0xff] }
 0xcd1   :  { %11247 = vmatprep.subr.mxu0 %v13820_v32 }
 0xd30   :  { %v10962_v36 = vpop.f32.mrf.mxu1 }
 0xd32   :  { %v10963_v22 = vpop.f32.mrf.mxu1 }
 0xd33   :  { %v10964_v8 = vadd.f32 %v10963_v22, %v10962_v36  ;;  %v6227_v36 = vld [vmem:[#allocation20 + $0x3c0] sm:$0xff]  ;;  %v6230_v22 = vld [vmem:[#allocation20 + $0x3d8] sm:$0xff] }
 0xd34   :  { %v10965_v15 = vpop.f32.mrf.mxu1 }
 0xd36   :  { %v10966_v44 = vpop.f32.mrf.mxu1 }
 0xd37   :  { %v10967_v17 = vadd.f32 %v10966_v44, %v10965_v15  ;;  %v6229_v15 = vld [vmem:[#allocation20 + $0x3d0] sm:$0xff] }
 0xd38   :  { %v6225_v44 = vld [vmem:[#allocation20 + $0x3b0] sm:$0xff] }
 0xd71   :  { %v11000_v7 = vpop.f32.mrf.mxu0 }
 0xd73   :  { %v11001_v27 = vpop.f32.mrf.mxu0 }
 0xd74   :  { %v11002_v3 = vadd.f32 %v11001_v27, %v11000_v7  ;;  %v6224_v7 = vld [vmem:[#allocation20 + $0x3a8] sm:$0xff]  ;;  %v6223_v27 = vld [vmem:[#allocation20 + $0x3a0] sm:$0xff] }
 0xd75   :  { %v11003_v11 = vpop.f32.mrf.mxu0 }
 0xd76   :  { %v5777_v41 = vadd.f32 %v11002_v3, %v10964_v8  ;;  %v6226_v3 = vld [vmem:[#allocation20 + $0x3b8] sm:$0xff]  ;;  %v6219_v8 = vld [vmem:[#allocation20 + $0x380] sm:$0xff] }
 0xd77   :  { %v11004_v38 = vpop.f32.mrf.mxu0 }
 0xd78   :  { %v11005_v18 = vadd.f32 %v11004_v38, %v11003_v11  ;;  %v5785_v25 = vadd.f32 %v5777_v41, %v13087_v30  ;;  %v5923_v30 = vld [vmem:[#allocation20 + $0x1d0] sm:$0xff]  ;;  %v6220_v11 = vld [vmem:[#allocation20 + $0x388] sm:$0xff]  ;;  %v6222_v38 = vld [vmem:[#allocation20 + $0x398] sm:$0xff] }
 0xd79   :  { %v6216_v41 = vld [vmem:[#allocation20 + $0x368] sm:$0xff] }
 0xd7a   :  { %v5782_v24 = vadd.f32 %v11005_v18, %v10967_v17  ;;  %v13100_v60 = vmax.f32 %v5785_v25, 0.0  ;;  %v6221_v17 = vld [vmem:[#allocation20 + $0x390] sm:$0xff]  ;;  %v6215_v18 = vld [vmem:[#allocation20 + $0x360] sm:$0xff]  ;;  %v6212_v25 = vld [vmem:[#allocation20 + $0x348] sm:$0xff] }
 0xd7c   :  { %v5786_v57 = vadd.f32 %v5782_v24, %v13090_v61  ;;  %v5919_v61 = vld [vmem:[#allocation20 + $0x1b0] sm:$0xff]  ;;  %v6218_v24 = vld [vmem:[#allocation20 + $0x378] sm:$0xff] }
 0xd7e   :  { %v13098_v52 = vmax.f32 %v5786_v57, 0.0  ;;  %v6217_v57 = vld [vmem:[#allocation20 + $0x370] sm:$0xff] }
 0xd80   :  { %11241 = vmatpush3.msra.mxu1 %v13098_v52 }
 0xd81   :  { %11242 = vmatprep.subr.mxu1 %v13820_v32 }
 0xd82   :  { %11243 = vmatpush3.msra.mxu1 %v13100_v60 }
 0xd83   :  { %11245 = vmatmul.mubr.msk.f32.vlgmr.msra.gmra.mxu1 %vm5791_vm3, %v5790_v59  ;;  %6000 = vmatprep.subr.mxu1 %v5928_v0  ;;  %v6211_v59 = vld [vmem:[#allocation20 + $0x340] sm:$0xff]  ;;  %v6214_v0 = vld [vmem:[#allocation20 + $0x358] sm:$0xff] }
 0xd84   :  { %6001 = vmatpush1.msra.mxu1 %v5927_v28  ;;  %6064 = vmatprep.mubr.f32.mxu1 %v13820_v32  ;;  %v6208_v28 = vld [vmem:[#allocation20 + $0x328] sm:$0xff] }
 0xd85   :  { %6002 = vmatprep.subr.mxu1 %v5924_v10  ;;  %v6213_v10 = vld [vmem:[#allocation20 + $0x350] sm:$0xff] }
 0xd86   :  { %6003 = vmatpush1.msra.mxu1 %v5923_v30  ;;  %v6207_v30 = vld [vmem:[#allocation20 + $0x320] sm:$0xff] }
 0xd87   :  { %6004 = vmatprep.subr.mxu1 %v5920_v42  ;;  %v6210_v42 = vld [vmem:[#allocation20 + $0x338] sm:$0xff] }
 0xd88   :  { %6005 = vmatpush1.msra.mxu1 %v5919_v61  ;;  %v6204_v61 = vld [vmem:[#allocation20 + $0x308] sm:$0xff] }
 0xd89   :  { %6006 = vmatprep.subr.mxu1 %v5916_v12  ;;  %v6209_v12 = vld [vmem:[#allocation20 + $0x330] sm:$0xff] }
 0xd8a   :  { %6007 = vmatpush1.msra.mxu1 %v5915_v54  ;;  %v6203_v54 = vld [vmem:[#allocation20 + $0x300] sm:$0xff] }
 0xd8b   :  { %6008 = vmatprep.subr.mxu1 %v5912_v23  ;;  %v6206_v23 = vld [vmem:[#allocation20 + $0x318] sm:$0xff] }
 0xd8c   :  { %6009 = vmatpush1.msra.mxu1 %v5911_v48  ;;  %v6200_v48 = vld [vmem:[#allocation20 + $0x2e8] sm:$0xff] }
 0xd8d   :  { %6010 = vmatprep.subr.mxu1 %v5908_v6  ;;  %v6205_v6 = vld [vmem:[#allocation20 + $0x310] sm:$0xff] }
 0xd8e   :  { %6011 = vmatpush1.msra.mxu1 %v5907_v14  ;;  %v6199_v14 = vld [vmem:[#allocation20 + $0x2e0] sm:$0xff] }
 0xd8f   :  { %6012 = vmatprep.subr.mxu1 %v5904_v16  ;;  %v6202_v16 = vld [vmem:[#allocation20 + $0x2f8] sm:$0xff] }
 0xd90   :  { %6013 = vmatpush1.msra.mxu1 %v5903_v43  ;;  %v6196_v43 = vld [vmem:[#allocation20 + $0x2c8] sm:$0xff] }
 0xd91   :  { %6014 = vmatprep.subr.mxu1 %v5900_v45  ;;  %v6201_v45 = vld [vmem:[#allocation20 + $0x2f0] sm:$0xff] }
 0xd92   :  { %6015 = vmatpush1.msra.mxu1 %v5899_v37  ;;  %v6195_v37 = vld [vmem:[#allocation20 + $0x2c0] sm:$0xff] }
 0xd93   :  { %6016 = vmatprep.subr.mxu1 %v5896_v13  ;;  %v6198_v13 = vld [vmem:[#allocation20 + $0x2d8] sm:$0xff] }
 0xd94   :  { %6017 = vmatpush1.msra.mxu1 %v5895_v2  ;;  %v6192_v2 = vld [vmem:[#allocation20 + $0x2a8] sm:$0xff] }
 0xd95   :  { %6018 = vmatprep.subr.mxu1 %v5892_v46  ;;  %v6197_v46 = vld [vmem:[#allocation20 + $0x2d0] sm:$0xff] }
 0xd96   :  { %6019 = vmatpush1.msra.mxu1 %v5891_v34  ;;  %v6191_v34 = vld [vmem:[#allocation20 + $0x2a0] sm:$0xff] }
 0xd97   :  { %6020 = vmatprep.subr.mxu1 %v5888_v31  ;;  %v6194_v31 = vld [vmem:[#allocation20 + $0x2b8] sm:$0xff] }
 0xd98   :  { %6021 = vmatpush1.msra.mxu1 %v5887_v63  ;;  %v6188_v63 = vld [vmem:[#allocation20 + $0x288] sm:$0xff] }
 0xd99   :  { %6022 = vmatprep.subr.mxu1 %v5884_v51  ;;  %v6193_v51 = vld [vmem:[#allocation20 + $0x2b0] sm:$0xff] }
 0xd9a   :  { %6023 = vmatpush1.msra.mxu1 %v5883_v50  ;;  %v6187_v50 = vld [vmem:[#allocation20 + $0x280] sm:$0xff] }
 0xd9b   :  { %6024 = vmatprep.subr.mxu1 %v5880_v53  ;;  %v6190_v53 = vld [vmem:[#allocation20 + $0x298] sm:$0xff] }
 0xd9c   :  { %6025 = vmatpush1.msra.mxu1 %v5879_v56  ;;  %v6184_v56 = vld [vmem:[#allocation20 + $0x268] sm:$0xff] }
 0xd9d   :  { %6026 = vmatprep.subr.mxu1 %v5876_v9  ;;  %v6189_v9 = vld [vmem:[#allocation20 + $0x290] sm:$0xff] }
 0xd9e   :  { %6027 = vmatpush1.msra.mxu1 %v5875_v39  ;;  %v6183_v39 = vld [vmem:[#allocation20 + $0x260] sm:$0xff] }
 0xd9f   :  { %6028 = vmatprep.subr.mxu1 %v5872_v4  ;;  %v6186_v4 = vld [vmem:[#allocation20 + $0x278] sm:$0xff] }
 0xda0   :  { %6029 = vmatpush1.msra.mxu1 %v5871_v19  ;;  %v6180_v19 = vld [vmem:[#allocation20 + $0x248] sm:$0xff] }
 0xda1   :  { %6030 = vmatprep.subr.mxu1 %v5868_v20  ;;  %v6185_v20 = vld [vmem:[#allocation20 + $0x270] sm:$0xff] }
 0xda2   :  { %6031 = vmatpush1.msra.mxu1 %v5867_v47  ;;  %v6179_v47 = vld [vmem:[#allocation20 + $0x240] sm:$0xff] }
 0xda3   :  { %6235 = vmatprep.subr.mxu1 %v6232_v1  ;;  %v6182_v1 = vld [vmem:[#allocation20 + $0x258] sm:$0xff] }
 0xe43   :  { %v5861_v29 = vpop.f32.mrf.mxu1 }
 0xe44   :  { %5994 = vmatmul.mubr.f32.vlgmr.msra.gmra.mxu0 %v5861_v29  ;;  %6065 = vmatmul.mubr.f32.vlgmr.msra.gmra.mxu1 %v5861_v29  ;;  %v6176_v29 = vld [vmem:[#allocation20 + $0x228] sm:$0xff] }
 0xe45   :  { %11248 = vmatpush3.msra.mxu0 %v13098_v52  ;;  %11251 = vmatprep.mubr.msk.f32.mxu0 %vm11900_vm2, %v13820_v32  ;;  %v11246_v40 = vpop.f32.mrf.mxu1 }
 0xe46   :  { %11249 = vmatprep.subr.mxu0 %v13820_v32  ;;  %6236 = vmatpush1.msra.mxu1 %v6231_v26  ;;  %v6181_v26 = vld [vmem:[#allocation20 + $0x250] sm:$0xff]  ;;  %v6172_v40 = vld [vmem:[#allocation20 + $0x208] sm:$0xff] }
 0xe47   :  { %11250 = vmatpush3.msra.mxu0 %v13100_v60  ;;  %6237 = vmatprep.subr.mxu1 %v6228_v5  ;;  %v6175_v5 = vld [vmem:[#allocation20 + $0x220] sm:$0xff] }
 0xe48   :  { %11252 = vmatmul.mubr.msk.f32.vlgmr.msra.gmra.mxu0 %vm5791_vm3, %v6097_v33  ;;  %6306 = vmatprep.subr.mxu0 %v6234_v58  ;;  %v6178_v33 = vld [vmem:[#allocation20 + $0x238] sm:$0xff]  ;;  %v6177_v58 = vld [vmem:[#allocation20 + $0x230] sm:$0xff] }
 0xe49   :  { %6307 = vmatpush1.msra.mxu0 %v6233_v55  ;;  %6238 = vmatpush1.msra.mxu1 %v6227_v36  ;;  %v6171_v55 = vld [vmem:[#allocation20 + $0x200] sm:$0xff]  ;;  %v6174_v36 = vld [vmem:[#allocation20 + $0x218] sm:$0xff] }
 0xe4a   :  { %6308 = vmatprep.subr.mxu0 %v6230_v22  ;;  %6239 = vmatprep.subr.mxu1 %v6224_v7  ;;  %v6173_v22 = vld [vmem:[#allocation20 + $0x210] sm:$0xff]  ;;  %v6517_v7 = vld [vmem:[#allocation20 + $0x5e8] sm:$0xff] }
 0xe4b   :  { %6309 = vmatpush1.msra.mxu0 %v6229_v15  ;;  %6240 = vmatpush1.msra.mxu1 %v6223_v27  ;;  %v13116_v15 = vld [vmem:[#allocation22] sm:$0xf] }
 0xe4c   :  { %6310 = vmatprep.subr.mxu0 %v6226_v3  ;;  %6241 = vmatprep.subr.mxu1 %v6220_v11  ;;  %v6083_v27 = vrot.slane %v13116_v15, %v13829_v62 }
 0xe4d   :  { %6311 = vmatpush1.msra.mxu0 %v6225_v44  ;;  %6242 = vmatpush1.msra.mxu1 %v6219_v8 }
 0xe4e   :  { %6312 = vmatprep.subr.mxu0 %v6222_v38  ;;  %6243 = vmatprep.subr.mxu1 %v6216_v41  ;;  %v6516_v41 = vld [vmem:[#allocation20 + $0x5e0] sm:$0xff] }
 0xe4f   :  { %6313 = vmatpush1.msra.mxu0 %v6221_v17  ;;  %6244 = vmatpush1.msra.mxu1 %v6215_v18  ;;  %v6513_v17 = vld [vmem:[#allocation20 + $0x5c8] sm:$0xff]  ;;  %v6382_v18 = vld [vmem:[#allocation19 + $0x4] sm:$0x3] }
 0xe50   :  { %6314 = vmatprep.subr.mxu0 %v6218_v24  ;;  %6245 = vmatprep.subr.mxu1 %v6212_v25  ;;  %v6519_v25 = vld [vmem:[#allocation20 + $0x5f8] sm:$0xff] }
 0xe51   :  { %6315 = vmatpush1.msra.mxu0 %v6217_v57  ;;  %6246 = vmatpush1.msra.mxu1 %v6211_v59  ;;  %v6518_v57 = vld [vmem:[#allocation20 + $0x5f0] sm:$0xff]  ;;  %v6512_v59 = vld [vmem:[#allocation20 + $0x5c0] sm:$0xff] }
 0xe52   :  { %6316 = vmatprep.subr.mxu0 %v6214_v0  ;;  %6247 = vmatprep.subr.mxu1 %v6208_v28  ;;  %v6515_v0 = vld [vmem:[#allocation20 + $0x5d8] sm:$0xff]  ;;  %v6509_v28 = vld [vmem:[#allocation20 + $0x5a8] sm:$0xff] }
 0xe53   :  { %6317 = vmatpush1.msra.mxu0 %v6213_v10  ;;  %6248 = vmatpush1.msra.mxu1 %v6207_v30  ;;  %v6514_v10 = vld [vmem:[#allocation20 + $0x5d0] sm:$0xff]  ;;  %v6508_v30 = vld [vmem:[#allocation20 + $0x5a0] sm:$0xff] }
 0xe54   :  { %6318 = vmatprep.subr.mxu0 %v6210_v42  ;;  %6249 = vmatprep.subr.mxu1 %v6204_v61  ;;  %v6511_v42 = vld [vmem:[#allocation20 + $0x5b8] sm:$0xff]  ;;  %v6505_v61 = vld [vmem:[#allocation20 + $0x588] sm:$0xff] }
 0xe55   :  { %6319 = vmatpush1.msra.mxu0 %v6209_v12  ;;  %6250 = vmatpush1.msra.mxu1 %v6203_v54  ;;  %v6510_v12 = vld [vmem:[#allocation20 + $0x5b0] sm:$0xff]  ;;  %v6504_v54 = vld [vmem:[#allocation20 + $0x580] sm:$0xff] }
 0xe56   :  { %6320 = vmatprep.subr.mxu0 %v6206_v23  ;;  %6251 = vmatprep.subr.mxu1 %v6200_v48  ;;  %v6507_v23 = vld [vmem:[#allocation20 + $0x598] sm:$0xff]  ;;  %v6501_v48 = vld [vmem:[#allocation20 + $0x568] sm:$0xff] }
 0xe57   :  { %6321 = vmatpush1.msra.mxu0 %v6205_v6  ;;  %6252 = vmatpush1.msra.mxu1 %v6199_v14  ;;  %v6506_v6 = vld [vmem:[#allocation20 + $0x590] sm:$0xff]  ;;  %v6500_v14 = vld [vmem:[#allocation20 + $0x560] sm:$0xff] }
 0xe58   :  { %6322 = vmatprep.subr.mxu0 %v6202_v16  ;;  %6253 = vmatprep.subr.mxu1 %v6196_v43  ;;  %v6503_v16 = vld [vmem:[#allocation20 + $0x578] sm:$0xff]  ;;  %v6497_v43 = vld [vmem:[#allocation20 + $0x548] sm:$0xff] }
 0xe59   :  { %6323 = vmatpush1.msra.mxu0 %v6201_v45  ;;  %6254 = vmatpush1.msra.mxu1 %v6195_v37  ;;  %v6502_v45 = vld [vmem:[#allocation20 + $0x570] sm:$0xff]  ;;  %v6496_v37 = vld [vmem:[#allocation20 + $0x540] sm:$0xff] }
 0xe5a   :  { %6324 = vmatprep.subr.mxu0 %v6198_v13  ;;  %6255 = vmatprep.subr.mxu1 %v6192_v2  ;;  %v6499_v13 = vld [vmem:[#allocation20 + $0x558] sm:$0xff]  ;;  %v6493_v2 = vld [vmem:[#allocation20 + $0x528] sm:$0xff] }
 0xe5b   :  { %6325 = vmatpush1.msra.mxu0 %v6197_v46  ;;  %6256 = vmatpush1.msra.mxu1 %v6191_v34  ;;  %v6498_v46 = vld [vmem:[#allocation20 + $0x550] sm:$0xff]  ;;  %v6492_v34 = vld [vmem:[#allocation20 + $0x520] sm:$0xff] }
 0xe5c   :  { %6326 = vmatprep.subr.mxu0 %v6194_v31  ;;  %6257 = vmatprep.subr.mxu1 %v6188_v63  ;;  %v6495_v31 = vld [vmem:[#allocation20 + $0x538] sm:$0xff]  ;;  %v6489_v63 = vld [vmem:[#allocation20 + $0x508] sm:$0xff] }
 0xe5d   :  { %6327 = vmatpush1.msra.mxu0 %v6193_v51  ;;  %6258 = vmatpush1.msra.mxu1 %v6187_v50  ;;  %v6494_v51 = vld [vmem:[#allocation20 + $0x530] sm:$0xff]  ;;  %v6488_v50 = vld [vmem:[#allocation20 + $0x500] sm:$0xff] }
 0xe5e   :  { %6328 = vmatprep.subr.mxu0 %v6190_v53  ;;  %6259 = vmatprep.subr.mxu1 %v6184_v56  ;;  %v6491_v53 = vld [vmem:[#allocation20 + $0x518] sm:$0xff]  ;;  %v6485_v56 = vld [vmem:[#allocation20 + $0x4e8] sm:$0xff] }
 0xe5f   :  { %6329 = vmatpush1.msra.mxu0 %v6189_v9  ;;  %6260 = vmatpush1.msra.mxu1 %v6183_v39  ;;  %v6490_v9 = vld [vmem:[#allocation20 + $0x510] sm:$0xff]  ;;  %v6484_v39 = vld [vmem:[#allocation20 + $0x4e0] sm:$0xff] }
 0xe60   :  { %6330 = vmatprep.subr.mxu0 %v6186_v4  ;;  %6261 = vmatprep.subr.mxu1 %v6180_v19  ;;  %v6487_v4 = vld [vmem:[#allocation20 + $0x4f8] sm:$0xff]  ;;  %v6481_v19 = vld [vmem:[#allocation20 + $0x4c8] sm:$0xff] }
 0xe61   :  { %6331 = vmatpush1.msra.mxu0 %v6185_v20  ;;  %6262 = vmatpush1.msra.mxu1 %v6179_v47  ;;  %v6486_v20 = vld [vmem:[#allocation20 + $0x4f0] sm:$0xff]  ;;  %v6480_v47 = vld [vmem:[#allocation20 + $0x4c0] sm:$0xff] }
 0xe62   :  { %6332 = vmatprep.subr.mxu0 %v6182_v1  ;;  %6299 = vmatprep.mubr.f32.mxu1 %v13820_v32  ;;  %v6483_v1 = vld [vmem:[#allocation20 + $0x4d8] sm:$0xff] }
 0xe63   :  { %6370 = vmatprep.mubr.f32.mxu0 %v13820_v32  ;;  %6263 = vmatprep.subr.mxu1 %v6176_v29  ;;  %v6477_v29 = vld [vmem:[#allocation20 + $0x4a8] sm:$0xff] }
 0xe64   :  { %6333 = vmatpush1.msra.mxu0 %v6181_v26  ;;  %6264 = vmatpush1.msra.mxu1 %v6175_v5  ;;  %v6482_v26 = vld [vmem:[#allocation20 + $0x4d0] sm:$0xff]  ;;  %v6476_v5 = vld [vmem:[#allocation20 + $0x4a0] sm:$0xff] }
 0xe65   :  { %6334 = vmatprep.subr.mxu0 %v6178_v33  ;;  %6265 = vmatprep.subr.mxu1 %v6172_v40  ;;  %v6479_v33 = vld [vmem:[#allocation20 + $0x4b8] sm:$0xff]  ;;  %v6473_v40 = vld [vmem:[#allocation20 + $0x488] sm:$0xff] }
 0xe66   :  { %6335 = vmatpush1.msra.mxu0 %v6177_v58  ;;  %6266 = vmatpush1.msra.mxu1 %v6171_v55  ;;  %v6478_v58 = vld [vmem:[#allocation20 + $0x4b0] sm:$0xff]  ;;  %v6472_v55 = vld [vmem:[#allocation20 + $0x480] sm:$0xff] }
 0xe67   :  { %6336 = vmatprep.subr.mxu0 %v6174_v36  ;;  %11254 = vmatprep.subr.mxu1 %v13820_v32  ;;  %v6475_v36 = vld [vmem:[#allocation20 + $0x498] sm:$0xff] }
 0xe68   :  { %6337 = vmatpush1.msra.mxu0 %v6173_v22  ;;  %v6469_v22 = vld [vmem:[#allocation20 + $0x468] sm:$0xff] }
 0xe69   :  { %6520 = vmatprep.subr.mxu0 %v6517_v7  ;;  %v6474_v7 = vld [vmem:[#allocation20 + $0x490] sm:$0xff] }
 0xf04   :  { %v13120_v3 = vpop.f32.mrf.mxu0  ;;  %v6066_v11 = vpop.f32.mrf.mxu1 }
 0xf05   :  { %v13122_v44 = vadd.f32 %v6083_v27, %v6066_v11  ;;  %v6468_v27 = vld [vmem:[#allocation20 + $0x460] sm:$0xff]  ;;  %v6471_v11 = vld [vmem:[#allocation20 + $0x478] sm:$0xff] }
 0xf06   :  { %v13124_v8 = vpop.f32.mrf.mxu0 }
 0xf08   :  { %v6167_v38 = vpop.f32.mrf.mxu0 }
 0xf09   :  { %6300 = vmatmul.mubr.f32.vlgmr.msra.gmra.mxu1 %v6167_v38  ;;  %6371 = vmatmul.mubr.f32.vlgmr.msra.gmra.mxu0 %v6167_v38  ;;  %v6465_v38 = vld [vmem:[#allocation20 + $0x448] sm:$0xff] }
 0xf0a   :  { %11255 = vmatpush3.msra.mxu1 %v13098_v52  ;;  %11258 = vmatprep.mubr.msk.f32.mxu1 %vm11900_vm2, %v13820_v32  ;;  %v11253_v24 = vpop.f32.mrf.mxu0 }
 0xf0b   :  { %11256 = vmatprep.subr.mxu1 %v13820_v32  ;;  %6521 = vmatpush1.msra.mxu0 %v6516_v41  ;;  %v6470_v41 = vld [vmem:[#allocation20 + $0x470] sm:$0xff]  ;;  %v6461_v24 = vld [vmem:[#allocation20 + $0x428] sm:$0xff] }
 0xf0c   :  { %11257 = vmatpush3.msra.mxu1 %v13100_v60  ;;  %6522 = vmatprep.subr.mxu0 %v6513_v17  ;;  %v6464_v17 = vld [vmem:[#allocation20 + $0x440] sm:$0xff] }
 0xf0d   :  { %11259 = vmatmul.mubr.msk.f32.vlgmr.msra.gmra.mxu1 %vm5791_vm3, %v6382_v18  ;;  %6591 = vmatprep.subr.mxu1 %v6519_v25  ;;  %v6467_v18 = vld [vmem:[#allocation20 + $0x458] sm:$0xff]  ;;  %v6466_v25 = vld [vmem:[#allocation20 + $0x450] sm:$0xff] }
 0xf0e   :  { %6592 = vmatpush1.msra.mxu1 %v6518_v57  ;;  %6523 = vmatpush1.msra.mxu0 %v6512_v59  ;;  %v6460_v57 = vld [vmem:[#allocation20 + $0x420] sm:$0xff]  ;;  %v6463_v59 = vld [vmem:[#allocation20 + $0x438] sm:$0xff] }
 0xf0f   :  { %6593 = vmatprep.subr.mxu1 %v6515_v0  ;;  %6524 = vmatprep.subr.mxu0 %v6509_v28  ;;  %v6457_v0 = vld [vmem:[#allocation20 + $0x408] sm:$0xff]  ;;  %v6462_v28 = vld [vmem:[#allocation20 + $0x430] sm:$0xff] }
 0xf10   :  { %6594 = vmatpush1.msra.mxu1 %v6514_v10  ;;  %6525 = vmatpush1.msra.mxu0 %v6508_v30  ;;  %v6456_v10 = vld [vmem:[#allocation20 + $0x400] sm:$0xff]  ;;  %v6459_v30 = vld [vmem:[#allocation20 + $0x418] sm:$0xff] }
 0xf11   :  { %6595 = vmatprep.subr.mxu1 %v6511_v42  ;;  %6526 = vmatprep.subr.mxu0 %v6505_v61  ;;  %v6458_v42 = vld [vmem:[#allocation20 + $0x410] sm:$0xff]  ;;  %v6802_v61 = vld [vmem:[#allocation20 + $0x7e8] sm:$0xff] }
 0xf12   :  { %6596 = vmatpush1.msra.mxu1 %v6510_v12  ;;  %6527 = vmatpush1.msra.mxu0 %v6504_v54  ;;  %v6075_v12 = vrot.slane %v13116_v15, %v13828_v49  ;;  %v6079_v54 = vrot.slane %v13116_v15, %v13830_v35  ;;  %v6798_v15 = vld [vmem:[#allocation20 + $0x7c8] sm:$0xff] }
 0xf13   :  { %6597 = vmatprep.subr.mxu1 %v6507_v23  ;;  %6528 = vmatprep.subr.mxu0 %v6501_v48  ;;  %v13139_v23 = vpop.f32.mrf.mxu1 }
 0xf14   :  { %6598 = vmatpush1.msra.mxu1 %v6506_v6  ;;  %6529 = vmatpush1.msra.mxu0 %v6500_v14  ;;  %v6092_v48 = vadd.f32 %v6075_v12, %v13120_v3  ;;  %v6667_v3 = vld [vmem:[#allocation19 + $0x6] sm:$0x3] }
 0xf15   :  { %6599 = vmatprep.subr.mxu1 %v6503_v16  ;;  %6530 = vmatprep.subr.mxu0 %v6497_v43  ;;  %v6093_v16 = vadd.f32 %v6079_v54, %v13124_v8  ;;  %v6763_v12 = vld [vmem:[#allocation20 + $0x6b0] sm:$0xff]  ;;  %v6757_v54 = vld [vmem:[#allocation20 + $0x680] sm:$0xff] }
 0xf16   :  { %6600 = vmatpush1.msra.mxu1 %v6502_v45  ;;  %6531 = vmatpush1.msra.mxu0 %v6496_v37 }
 0xf17   :  { %6601 = vmatprep.subr.mxu1 %v6499_v13  ;;  %6532 = vmatprep.subr.mxu0 %v6493_v2 }
 0xf18   :  { %6602 = vmatpush1.msra.mxu1 %v6498_v46  ;;  %6533 = vmatpush1.msra.mxu0 %v6492_v34  ;;  %v6801_v46 = vld [vmem:[#allocation20 + $0x7e0] sm:$0xff]  ;;  %v6804_v34 = vld [vmem:[#allocation20 + $0x7f8] sm:$0xff] }
 0xf19   :  { %6603 = vmatprep.subr.mxu1 %v6495_v31  ;;  %6534 = vmatprep.subr.mxu0 %v6489_v63  ;;  %v6797_v31 = vld [vmem:[#allocation20 + $0x7c0] sm:$0xff]  ;;  %v6800_v63 = vld [vmem:[#allocation20 + $0x7d8] sm:$0xff] }
 0xf1a   :  { %6604 = vmatpush1.msra.mxu1 %v6494_v51  ;;  %6535 = vmatpush1.msra.mxu0 %v6488_v50  ;;  %v6794_v51 = vld [vmem:[#allocation20 + $0x7a8] sm:$0xff]  ;;  %v6799_v50 = vld [vmem:[#allocation20 + $0x7d0] sm:$0xff] }
 0xf1b   :  { %6605 = vmatprep.subr.mxu1 %v6491_v53  ;;  %6536 = vmatprep.subr.mxu0 %v6485_v56  ;;  %v6793_v53 = vld [vmem:[#allocation20 + $0x7a0] sm:$0xff]  ;;  %v6796_v56 = vld [vmem:[#allocation20 + $0x7b8] sm:$0xff] }
 0xf1c   :  { %6606 = vmatpush1.msra.mxu1 %v6490_v9  ;;  %6537 = vmatpush1.msra.mxu0 %v6484_v39  ;;  %v6790_v9 = vld [vmem:[#allocation20 + $0x788] sm:$0xff]  ;;  %v6795_v39 = vld [vmem:[#allocation20 + $0x7b0] sm:$0xff] }
 0xf1d   :  { %6607 = vmatprep.subr.mxu1 %v6487_v4  ;;  %6538 = vmatprep.subr.mxu0 %v6481_v19  ;;  %v6789_v4 = vld [vmem:[#allocation20 + $0x780] sm:$0xff]  ;;  %v6792_v19 = vld [vmem:[#allocation20 + $0x798] sm:$0xff] }
 0xf1e   :  { %6608 = vmatpush1.msra.mxu1 %v6486_v20  ;;  %6539 = vmatpush1.msra.mxu0 %v6480_v47  ;;  %v6786_v20 = vld [vmem:[#allocation20 + $0x768] sm:$0xff]  ;;  %v6791_v47 = vld [vmem:[#allocation20 + $0x790] sm:$0xff] }
 0xf1f   :  { %6609 = vmatprep.subr.mxu1 %v6483_v1  ;;  %6540 = vmatprep.subr.mxu0 %v6477_v29  ;;  %v6785_v1 = vld [vmem:[#allocation20 + $0x760] sm:$0xff]  ;;  %v6788_v29 = vld [vmem:[#allocation20 + $0x778] sm:$0xff] }
 0xf20   :  { %6610 = vmatpush1.msra.mxu1 %v6482_v26  ;;  %6541 = vmatpush1.msra.mxu0 %v6476_v5  ;;  %v6782_v26 = vld [vmem:[#allocation20 + $0x748] sm:$0xff]  ;;  %v6787_v5 = vld [vmem:[#allocation20 + $0x770] sm:$0xff] }
 0xf21   :  { %6611 = vmatprep.subr.mxu1 %v6479_v33  ;;  %6542 = vmatprep.subr.mxu0 %v6473_v40  ;;  %v6781_v33 = vld [vmem:[#allocation20 + $0x740] sm:$0xff]  ;;  %v6784_v40 = vld [vmem:[#allocation20 + $0x758] sm:$0xff] }
 0xf22   :  { %6612 = vmatpush1.msra.mxu1 %v6478_v58  ;;  %6543 = vmatpush1.msra.mxu0 %v6472_v55  ;;  %v6778_v58 = vld [vmem:[#allocation20 + $0x728] sm:$0xff]  ;;  %v6783_v55 = vld [vmem:[#allocation20 + $0x750] sm:$0xff] }
 0xf23   :  { %6613 = vmatprep.subr.mxu1 %v6475_v36  ;;  %6544 = vmatprep.subr.mxu0 %v6469_v22  ;;  %v6777_v36 = vld [vmem:[#allocation20 + $0x720] sm:$0xff]  ;;  %v6780_v22 = vld [vmem:[#allocation20 + $0x738] sm:$0xff] }
 0xf24   :  { %6614 = vmatpush1.msra.mxu1 %v6474_v7  ;;  %6545 = vmatpush1.msra.mxu0 %v6468_v27  ;;  %v6774_v7 = vld [vmem:[#allocation20 + $0x708] sm:$0xff]  ;;  %v6779_v27 = vld [vmem:[#allocation20 + $0x730] sm:$0xff] }
 0xf25   :  { %6615 = vmatprep.subr.mxu1 %v6471_v11  ;;  %6546 = vmatprep.subr.mxu0 %v6465_v38  ;;  %v6773_v11 = vld [vmem:[#allocation20 + $0x700] sm:$0xff]  ;;  %v6776_v38 = vld [vmem:[#allocation20 + $0x718] sm:$0xff] }
 0xf26   :  { %6616 = vmatpush1.msra.mxu1 %v6470_v41  ;;  %6547 = vmatpush1.msra.mxu0 %v6464_v17  ;;  %v6770_v41 = vld [vmem:[#allocation20 + $0x6e8] sm:$0xff]  ;;  %v6775_v17 = vld [vmem:[#allocation20 + $0x710] sm:$0xff] }
 0xf27   :  { %6617 = vmatprep.subr.mxu1 %v6467_v18  ;;  %6584 = vmatprep.mubr.f32.mxu0 %v13820_v32  ;;  %v6769_v18 = vld [vmem:[#allocation20 + $0x6e0] sm:$0xff] }
 0xf28   :  { %6655 = vmatprep.mubr.f32.mxu1 %v13820_v32  ;;  %6548 = vmatprep.subr.mxu0 %v6461_v24  ;;  %v6772_v24 = vld [vmem:[#allocation20 + $0x6f8] sm:$0xff] }
 0xf29   :  { %6618 = vmatpush1.msra.mxu1 %v6466_v25  ;;  %6549 = vmatpush1.msra.mxu0 %v6460_v57  ;;  %v6766_v25 = vld [vmem:[#allocation20 + $0x6c8] sm:$0xff]  ;;  %v6771_v57 = vld [vmem:[#allocation20 + $0x6f0] sm:$0xff] }
 0xf2a   :  { %6619 = vmatprep.subr.mxu1 %v6463_v59  ;;  %6550 = vmatprep.subr.mxu0 %v6457_v0  ;;  %v6765_v59 = vld [vmem:[#allocation20 + $0x6c0] sm:$0xff]  ;;  %v6768_v0 = vld [vmem:[#allocation20 + $0x6d8] sm:$0xff] }
 0xf2b   :  { %6620 = vmatpush1.msra.mxu1 %v6462_v28  ;;  %6551 = vmatpush1.msra.mxu0 %v6456_v10  ;;  %v6762_v28 = vld [vmem:[#allocation20 + $0x6a8] sm:$0xff]  ;;  %v6767_v10 = vld [vmem:[#allocation20 + $0x6d0] sm:$0xff] }
 0xf2c   :  { %6621 = vmatprep.subr.mxu1 %v6459_v30  ;;  %11261 = vmatprep.subr.mxu0 %v13820_v32  ;;  %v6761_v30 = vld [vmem:[#allocation20 + $0x6a0] sm:$0xff] }
 0xf2d   :  { %6622 = vmatpush1.msra.mxu1 %v6458_v42  ;;  %v6764_v42 = vld [vmem:[#allocation20 + $0x6b8] sm:$0xff] }
 0xf2e   :  { %6805 = vmatprep.subr.mxu1 %v6802_v61  ;;  %v6758_v61 = vld [vmem:[#allocation20 + $0x688] sm:$0xff] }
 0xfc9   :  { %v6301_v6 = vpop.f32.mrf.mxu1  ;;  %v6372_v14 = vpop.f32.mrf.mxu0 }
 0xfca   :  { %v13143_v43 = vadd.f32 %v6301_v6, %v6092_v48  ;;  %v13146_v45 = vadd.f32 %v6372_v14, %v13122_v44  ;;  %v6803_v44 = vld [vmem:[#allocation20 + $0x7f0] sm:$0xff]  ;;  %v6760_v48 = vld [vmem:[#allocation20 + $0x698] sm:$0xff]  ;;  %v6754_v6 = vld [vmem:[#allocation20 + $0x668] sm:$0xff] }
 0xfcb   :  { %v6303_v37 = vpop.f32.mrf.mxu1  ;;  %v6759_v14 = vld [vmem:[#allocation20 + $0x690] sm:$0xff] }
 0xfcc   :  { %v13148_v13 = vadd.f32 %v6303_v37, %v6093_v16  ;;  %v6753_v16 = vld [vmem:[#allocation20 + $0x660] sm:$0xff]  ;;  %v6756_v37 = vld [vmem:[#allocation20 + $0x678] sm:$0xff] }
 0xfcd   :  { %v6452_v2 = vpop.f32.mrf.mxu1 }
 0xfce   :  { %6585 = vmatmul.mubr.f32.vlgmr.msra.gmra.mxu0 %v6452_v2  ;;  %6656 = vmatmul.mubr.f32.vlgmr.msra.gmra.mxu1 %v6452_v2  ;;  %v6750_v2 = vld [vmem:[#allocation20 + $0x648] sm:$0xff] }
 0xfcf   :  { %11262 = vmatpush3.msra.mxu0 %v13098_v52  ;;  %11265 = vmatprep.mubr.msk.f32.mxu0 %vm11900_vm2, %v13820_v32  ;;  %v11260_v8 = vpop.f32.mrf.mxu1 }
 0xfd0   :  { %11263 = vmatprep.subr.mxu0 %v13820_v32  ;;  %6806 = vmatpush1.msra.mxu1 %v6801_v46  ;;  %v6755_v46 = vld [vmem:[#allocation20 + $0x670] sm:$0xff]  ;;  %v6746_v8 = vld [vmem:[#allocation20 + $0x628] sm:$0xff] }
 0xfd1   :  { %11264 = vmatpush3.msra.mxu0 %v13100_v60  ;;  %6807 = vmatprep.subr.mxu1 %v6798_v15  ;;  %v6749_v15 = vld [vmem:[#allocation20 + $0x640] sm:$0xff] }
 0xfd2   :  { %11266 = vmatmul.mubr.msk.f32.vlgmr.msra.gmra.mxu0 %vm5791_vm3, %v6667_v3  ;;  %6876 = vmatprep.subr.mxu0 %v6804_v34  ;;  %v6752_v3 = vld [vmem:[#allocation20 + $0x658] sm:$0xff]  ;;  %v6751_v34 = vld [vmem:[#allocation20 + $0x650] sm:$0xff] }
 0xfd3   :  { %6877 = vmatpush1.msra.mxu0 %v6803_v44  ;;  %6808 = vmatpush1.msra.mxu1 %v6797_v31  ;;  %v6745_v44 = vld [vmem:[#allocation20 + $0x620] sm:$0xff]  ;;  %v6748_v31 = vld [vmem:[#allocation20 + $0x638] sm:$0xff] }
 0xfd4   :  { %6878 = vmatprep.subr.mxu0 %v6800_v63  ;;  %6809 = vmatprep.subr.mxu1 %v6794_v51  ;;  %v6742_v63 = vld [vmem:[#allocation20 + $0x608] sm:$0xff]  ;;  %v6747_v51 = vld [vmem:[#allocation20 + $0x630] sm:$0xff] }
 0xfd5   :  { %6879 = vmatpush1.msra.mxu0 %v6799_v50  ;;  %6810 = vmatpush1.msra.mxu1 %v6793_v53  ;;  %v6741_v50 = vld [vmem:[#allocation20 + $0x600] sm:$0xff]  ;;  %v6744_v53 = vld [vmem:[#allocation20 + $0x618] sm:$0xff] }
 0xfd6   :  { %6880 = vmatprep.subr.mxu0 %v6796_v56  ;;  %6811 = vmatprep.subr.mxu1 %v6790_v9  ;;  %v6743_v56 = vld [vmem:[#allocation20 + $0x610] sm:$0xff]  ;;  %v7087_v9 = vld [vmem:[#allocation20 + $0x9e8] sm:$0xff] }
 0xfd7   :  { %6881 = vmatpush1.msra.mxu0 %v6795_v39  ;;  %6812 = vmatpush1.msra.mxu1 %v6789_v4  ;;  %v13159_v39 = vpop.f32.mrf.mxu0 }
 0xfd8   :  { %6882 = vmatprep.subr.mxu0 %v6792_v19  ;;  %6813 = vmatprep.subr.mxu1 %v6786_v20 }
 0xfd9   :  { %6883 = vmatpush1.msra.mxu0 %v6791_v47  ;;  %6814 = vmatpush1.msra.mxu1 %v6785_v1 }
 0xfda   :  { %6884 = vmatprep.subr.mxu0 %v6788_v29  ;;  %6815 = vmatprep.subr.mxu1 %v6782_v26 }
 0xfdb   :  { %6885 = vmatpush1.msra.mxu0 %v6787_v5  ;;  %6816 = vmatpush1.msra.mxu1 %v6781_v33  ;;  %v7086_v5 = vld [vmem:[#allocation20 + $0x9e0] sm:$0xff]  ;;  %v7083_v33 = vld [vmem:[#allocation20 + $0x9c8] sm:$0xff] }
 0xfdc   :  { %6886 = vmatprep.subr.mxu0 %v6784_v40  ;;  %6817 = vmatprep.subr.mxu1 %v6778_v58  ;;  %v6952_v40 = vld [vmem:[#allocation19 + $0x8] sm:$0x3] }
 0xfdd   :  { %6887 = vmatpush1.msra.mxu0 %v6783_v55  ;;  %6818 = vmatpush1.msra.mxu1 %v6777_v36  ;;  %v7089_v58 = vld [vmem:[#allocation20 + $0x9f8] sm:$0xff]  ;;  %v7082_v55 = vld [vmem:[#allocation20 + $0x9c0] sm:$0xff]  ;;  %v7079_v36 = vld [vmem:[#allocation20 + $0x9a8] sm:$0xff] }
 0xfde   :  { %6888 = vmatprep.subr.mxu0 %v6780_v22  ;;  %6819 = vmatprep.subr.mxu1 %v6774_v7  ;;  %v7084_v22 = vld [vmem:[#allocation20 + $0x9d0] sm:$0xff]  ;;  %v7078_v7 = vld [vmem:[#allocation20 + $0x9a0] sm:$0xff] }
 0xfdf   :  { %6889 = vmatpush1.msra.mxu0 %v6779_v27  ;;  %6820 = vmatpush1.msra.mxu1 %v6773_v11  ;;  %v7081_v27 = vld [vmem:[#allocation20 + $0x9b8] sm:$0xff]  ;;  %v7075_v11 = vld [vmem:[#allocation20 + $0x988] sm:$0xff] }
 0xfe0   :  { %6890 = vmatprep.subr.mxu0 %v6776_v38  ;;  %6821 = vmatprep.subr.mxu1 %v6770_v41  ;;  %v7080_v38 = vld [vmem:[#allocation20 + $0x9b0] sm:$0xff]  ;;  %v7074_v41 = vld [vmem:[#allocation20 + $0x980] sm:$0xff] }
 0xfe1   :  { %6891 = vmatpush1.msra.mxu0 %v6775_v17  ;;  %6822 = vmatpush1.msra.mxu1 %v6769_v18  ;;  %v7077_v17 = vld [vmem:[#allocation20 + $0x998] sm:$0xff]  ;;  %v7071_v18 = vld [vmem:[#allocation20 + $0x968] sm:$0xff] }
 0xfe2   :  { %6892 = vmatprep.subr.mxu0 %v6772_v24  ;;  %6823 = vmatprep.subr.mxu1 %v6766_v25  ;;  %v7076_v24 = vld [vmem:[#allocation20 + $0x990] sm:$0xff]  ;;  %v7070_v25 = vld [vmem:[#allocation20 + $0x960] sm:$0xff] }
 0xfe3   :  { %6893 = vmatpush1.msra.mxu0 %v6771_v57  ;;  %6824 = vmatpush1.msra.mxu1 %v6765_v59  ;;  %v7073_v57 = vld [vmem:[#allocation20 + $0x978] sm:$0xff]  ;;  %v7067_v59 = vld [vmem:[#allocation20 + $0x948] sm:$0xff] }
 0xfe4   :  { %6894 = vmatprep.subr.mxu0 %v6768_v0  ;;  %6825 = vmatprep.subr.mxu1 %v6762_v28  ;;  %v7072_v0 = vld [vmem:[#allocation20 + $0x970] sm:$0xff]  ;;  %v7066_v28 = vld [vmem:[#allocation20 + $0x940] sm:$0xff] }
 0xfe5   :  { %6895 = vmatpush1.msra.mxu0 %v6767_v10  ;;  %6826 = vmatpush1.msra.mxu1 %v6761_v30  ;;  %v7069_v10 = vld [vmem:[#allocation20 + $0x958] sm:$0xff]  ;;  %v7063_v30 = vld [vmem:[#allocation20 + $0x928] sm:$0xff] }
 0xfe6   :  { %6896 = vmatprep.subr.mxu0 %v6764_v42  ;;  %6827 = vmatprep.subr.mxu1 %v6758_v61  ;;  %v7068_v42 = vld [vmem:[#allocation20 + $0x950] sm:$0xff]  ;;  %v7062_v61 = vld [vmem:[#allocation20 + $0x920] sm:$0xff] }
 0xfe7   :  { %6897 = vmatpush1.msra.mxu0 %v6763_v12  ;;  %6828 = vmatpush1.msra.mxu1 %v6757_v54  ;;  %v7065_v12 = vld [vmem:[#allocation20 + $0x938] sm:$0xff]  ;;  %v7059_v54 = vld [vmem:[#allocation20 + $0x908] sm:$0xff] }
 0xfe8   :  { %6898 = vmatprep.subr.mxu0 %v6760_v48  ;;  %6829 = vmatprep.subr.mxu1 %v6754_v6  ;;  %v7064_v48 = vld [vmem:[#allocation20 + $0x930] sm:$0xff]  ;;  %v7058_v6 = vld [vmem:[#allocation20 + $0x900] sm:$0xff] }
 0xfe9   :  { %6899 = vmatpush1.msra.mxu0 %v6759_v14  ;;  %6830 = vmatpush1.msra.mxu1 %v6753_v16  ;;  %v7061_v14 = vld [vmem:[#allocation20 + $0x918] sm:$0xff]  ;;  %v7055_v16 = vld [vmem:[#allocation20 + $0x8e8] sm:$0xff] }
 0xfea   :  { %6900 = vmatprep.subr.mxu0 %v6756_v37  ;;  %6831 = vmatprep.subr.mxu1 %v6750_v2  ;;  %v7060_v37 = vld [vmem:[#allocation20 + $0x910] sm:$0xff]  ;;  %v7054_v2 = vld [vmem:[#allocation20 + $0x8e0] sm:$0xff] }
 0xfeb   :  { %6901 = vmatpush1.msra.mxu0 %v6755_v46  ;;  %6832 = vmatpush1.msra.mxu1 %v6749_v15  ;;  %v7057_v46 = vld [vmem:[#allocation20 + $0x8f8] sm:$0xff]  ;;  %v7051_v15 = vld [vmem:[#allocation20 + $0x8c8] sm:$0xff] }
 0xfec   :  { %6902 = vmatprep.subr.mxu0 %v6752_v3  ;;  %6869 = vmatprep.mubr.f32.mxu1 %v13820_v32  ;;  %v7056_v3 = vld [vmem:[#allocation20 + $0x8f0] sm:$0xff] }
 0xfed   :  { %6940 = vmatprep.mubr.f32.mxu0 %v13820_v32  ;;  %6833 = vmatprep.subr.mxu1 %v6746_v8  ;;  %v7050_v8 = vld [vmem:[#allocation20 + $0x8c0] sm:$0xff] }
 0xfee   :  { %6903 = vmatpush1.msra.mxu0 %v6751_v34  ;;  %6834 = vmatpush1.msra.mxu1 %v6745_v44  ;;  %v7053_v34 = vld [vmem:[#allocation20 + $0x8d8] sm:$0xff]  ;;  %v7047_v44 = vld [vmem:[#allocation20 + $0x8a8] sm:$0xff] }
 0xfef   :  { %6904 = vmatprep.subr.mxu0 %v6748_v31  ;;  %6835 = vmatprep.subr.mxu1 %v6742_v63  ;;  %v7052_v31 = vld [vmem:[#allocation20 + $0x8d0] sm:$0xff]  ;;  %v7046_v63 = vld [vmem:[#allocation20 + $0x8a0] sm:$0xff] }
 0xff0   :  { %6905 = vmatpush1.msra.mxu0 %v6747_v51  ;;  %6836 = vmatpush1.msra.mxu1 %v6741_v50  ;;  %v7049_v51 = vld [vmem:[#allocation20 + $0x8b8] sm:$0xff]  ;;  %v7043_v50 = vld [vmem:[#allocation20 + $0x888] sm:$0xff] }
 0xff1   :  { %6906 = vmatprep.subr.mxu0 %v6744_v53  ;;  %11268 = vmatprep.subr.mxu1 %v13820_v32  ;;  %v7048_v53 = vld [vmem:[#allocation20 + $0x8b0] sm:$0xff] }
 0xff2   :  { %6907 = vmatpush1.msra.mxu0 %v6743_v56  ;;  %v7042_v56 = vld [vmem:[#allocation20 + $0x880] sm:$0xff] }
 0xff3   :  { %7090 = vmatprep.subr.mxu0 %v7087_v9  ;;  %v7045_v9 = vld [vmem:[#allocation20 + $0x898] sm:$0xff] }
0x108e   :  { %v6586_v4 = vpop.f32.mrf.mxu0  ;;  %v6657_v19 = vpop.f32.mrf.mxu1 }
0x108f   :  { %v13162_v20 = vadd.f32 %v6586_v4, %v13143_v43  ;;  %v13165_v47 = vadd.f32 %v6657_v19, %v13146_v45  ;;  %v7088_v45 = vld [vmem:[#allocation20 + $0x9f0] sm:$0xff]  ;;  %v7039_v4 = vld [vmem:[#allocation20 + $0x868] sm:$0xff] }
0x1090   :  { %v6588_v1 = vpop.f32.mrf.mxu0  ;;  %v7044_v19 = vld [vmem:[#allocation20 + $0x890] sm:$0xff] }
0x1091   :  { %v13168_v29 = vadd.f32 %v6588_v1, %v13148_v13  ;;  %v7085_v13 = vld [vmem:[#allocation20 + $0x9d8] sm:$0xff]  ;;  %v7038_v1 = vld [vmem:[#allocation20 + $0x860] sm:$0xff] }
0x1092   :  { %v6737_v26 = vpop.f32.mrf.mxu0 }
0x1093   :  { %6870 = vmatmul.mubr.f32.vlgmr.msra.gmra.mxu1 %v6737_v26  ;;  %6941 = vmatmul.mubr.f32.vlgmr.msra.gmra.mxu0 %v6737_v26  ;;  %v7041_v26 = vld [vmem:[#allocation20 + $0x878] sm:$0xff] }
0x1094   :  { %11269 = vmatpush3.msra.mxu1 %v13098_v52  ;;  %11272 = vmatprep.mubr.msk.f32.mxu1 %vm11900_vm2, %v13820_v32  ;;  %v11267_v43 = vpop.f32.mrf.mxu0 }
0x1095   :  { %11270 = vmatprep.subr.mxu1 %v13820_v32  ;;  %7091 = vmatpush1.msra.mxu0 %v7086_v5  ;;  %v7035_v5 = vld [vmem:[#allocation20 + $0x848] sm:$0xff]  ;;  %v7037_v43 = vld [vmem:[#allocation20 + $0x858] sm:$0xff] }
0x1096   :  { %11271 = vmatpush3.msra.mxu1 %v13100_v60  ;;  %7092 = vmatprep.subr.mxu0 %v7083_v33  ;;  %v7040_v33 = vld [vmem:[#allocation20 + $0x870] sm:$0xff] }
0x1097   :  { %11273 = vmatmul.mubr.msk.f32.vlgmr.msra.gmra.mxu1 %vm5791_vm3, %v6952_v40  ;;  %7161 = vmatprep.subr.mxu1 %v7089_v58  ;;  %v7034_v40 = vld [vmem:[#allocation20 + $0x840] sm:$0xff]  ;;  %v7031_v58 = vld [vmem:[#allocation20 + $0x828] sm:$0xff] }
0x1098   :  { %7162 = vmatpush1.msra.mxu1 %v7088_v45  ;;  %7093 = vmatpush1.msra.mxu0 %v7082_v55  ;;  %v7036_v45 = vld [vmem:[#allocation20 + $0x850] sm:$0xff]  ;;  %v7030_v55 = vld [vmem:[#allocation20 + $0x820] sm:$0xff] }
0x1099   :  { %7163 = vmatprep.subr.mxu1 %v7085_v13  ;;  %7094 = vmatprep.subr.mxu0 %v7079_v36  ;;  %v7033_v13 = vld [vmem:[#allocation20 + $0x838] sm:$0xff]  ;;  %v7027_v36 = vld [vmem:[#allocation20 + $0x808] sm:$0xff] }
0x109a   :  { %7164 = vmatpush1.msra.mxu1 %v7084_v22  ;;  %7095 = vmatpush1.msra.mxu0 %v7078_v7  ;;  %v7032_v22 = vld [vmem:[#allocation20 + $0x830] sm:$0xff]  ;;  %v7026_v7 = vld [vmem:[#allocation20 + $0x800] sm:$0xff] }
0x109b   :  { %7165 = vmatprep.subr.mxu1 %v7081_v27  ;;  %7096 = vmatprep.subr.mxu0 %v7075_v11  ;;  %v7029_v27 = vld [vmem:[#allocation20 + $0x818] sm:$0xff]  ;;  %v7028_v11 = vld [vmem:[#allocation20 + $0x810] sm:$0xff] }
0x109c   :  { %7166 = vmatpush1.msra.mxu1 %v7080_v38  ;;  %7097 = vmatpush1.msra.mxu0 %v7074_v41  ;;  %v7372_v38 = vld [vmem:[#allocation20 + $0xbe8] sm:$0xff]  ;;  %v13179_v41 = vpop.f32.mrf.mxu1 }
0x109d   :  { %7167 = vmatprep.subr.mxu1 %v7077_v17  ;;  %7098 = vmatprep.subr.mxu0 %v7071_v18 }
0x109e   :  { %7168 = vmatpush1.msra.mxu1 %v7076_v24  ;;  %7099 = vmatpush1.msra.mxu0 %v7070_v25 }
0x109f   :  { %7169 = vmatprep.subr.mxu1 %v7073_v57  ;;  %7100 = vmatprep.subr.mxu0 %v7067_v59 }
0x10a0   :  { %7170 = vmatpush1.msra.mxu1 %v7072_v0  ;;  %7101 = vmatpush1.msra.mxu0 %v7066_v28  ;;  %v7371_v28 = vld [vmem:[#allocation20 + $0xbe0] sm:$0xff] }
0x10a1   :  { %7171 = vmatprep.subr.mxu1 %v7069_v10  ;;  %7102 = vmatprep.subr.mxu0 %v7063_v30  ;;  %v7368_v10 = vld [vmem:[#allocation20 + $0xbc8] sm:$0xff]  ;;  %v7237_v30 = vld [vmem:[#allocation19 + $0xa] sm:$0x3] }
0x10a2   :  { %7172 = vmatpush1.msra.mxu1 %v7068_v42  ;;  %7103 = vmatpush1.msra.mxu0 %v7062_v61  ;;  %v7374_v42 = vld [vmem:[#allocation20 + $0xbf8] sm:$0xff]  ;;  %v7367_v61 = vld [vmem:[#allocation20 + $0xbc0] sm:$0xff] }
0x10a3   :  { %7173 = vmatprep.subr.mxu1 %v7065_v12  ;;  %7104 = vmatprep.subr.mxu0 %v7059_v54  ;;  %v7364_v12 = vld [vmem:[#allocation20 + $0xba8] sm:$0xff]  ;;  %v7369_v54 = vld [vmem:[#allocation20 + $0xbd0] sm:$0xff] }
0x10a4   :  { %7174 = vmatpush1.msra.mxu1 %v7064_v48  ;;  %7105 = vmatpush1.msra.mxu0 %v7058_v6  ;;  %v7363_v48 = vld [vmem:[#allocation20 + $0xba0] sm:$0xff]  ;;  %v7366_v6 = vld [vmem:[#allocation20 + $0xbb8] sm:$0xff] }
0x10a5   :  { %7175 = vmatprep.subr.mxu1 %v7061_v14  ;;  %7106 = vmatprep.subr.mxu0 %v7055_v16  ;;  %v7360_v14 = vld [vmem:[#allocation20 + $0xb88] sm:$0xff]  ;;  %v7365_v16 = vld [vmem:[#allocation20 + $0xbb0] sm:$0xff] }
0x10a6   :  { %7176 = vmatpush1.msra.mxu1 %v7060_v37  ;;  %7107 = vmatpush1.msra.mxu0 %v7054_v2  ;;  %v7359_v37 = vld [vmem:[#allocation20 + $0xb80] sm:$0xff]  ;;  %v7362_v2 = vld [vmem:[#allocation20 + $0xb98] sm:$0xff] }
0x10a7   :  { %7177 = vmatprep.subr.mxu1 %v7057_v46  ;;  %7108 = vmatprep.subr.mxu0 %v7051_v15  ;;  %v7356_v46 = vld [vmem:[#allocation20 + $0xb68] sm:$0xff]  ;;  %v7361_v15 = vld [vmem:[#allocation20 + $0xb90] sm:$0xff] }
0x10a8   :  { %7178 = vmatpush1.msra.mxu1 %v7056_v3  ;;  %7109 = vmatpush1.msra.mxu0 %v7050_v8  ;;  %v7355_v3 = vld [vmem:[#allocation20 + $0xb60] sm:$0xff]  ;;  %v7358_v8 = vld [vmem:[#allocation20 + $0xb78] sm:$0xff] }
0x10a9   :  { %7179 = vmatprep.subr.mxu1 %v7053_v34  ;;  %7110 = vmatprep.subr.mxu0 %v7047_v44  ;;  %v7352_v34 = vld [vmem:[#allocation20 + $0xb48] sm:$0xff]  ;;  %v7357_v44 = vld [vmem:[#allocation20 + $0xb70] sm:$0xff] }
0x10aa   :  { %7180 = vmatpush1.msra.mxu1 %v7052_v31  ;;  %7111 = vmatpush1.msra.mxu0 %v7046_v63  ;;  %v7351_v31 = vld [vmem:[#allocation20 + $0xb40] sm:$0xff]  ;;  %v7354_v63 = vld [vmem:[#allocation20 + $0xb58] sm:$0xff] }
0x10ab   :  { %7181 = vmatprep.subr.mxu1 %v7049_v51  ;;  %7112 = vmatprep.subr.mxu0 %v7043_v50  ;;  %v7348_v51 = vld [vmem:[#allocation20 + $0xb28] sm:$0xff]  ;;  %v7353_v50 = vld [vmem:[#allocation20 + $0xb50] sm:$0xff] }
0x10ac   :  { %7182 = vmatpush1.msra.mxu1 %v7048_v53  ;;  %7113 = vmatpush1.msra.mxu0 %v7042_v56  ;;  %v7347_v53 = vld [vmem:[#allocation20 + $0xb20] sm:$0xff]  ;;  %v7350_v56 = vld [vmem:[#allocation20 + $0xb38] sm:$0xff] }
0x10ad   :  { %7183 = vmatprep.subr.mxu1 %v7045_v9  ;;  %7114 = vmatprep.subr.mxu0 %v7039_v4  ;;  %v7344_v9 = vld [vmem:[#allocation20 + $0xb08] sm:$0xff]  ;;  %v7349_v4 = vld [vmem:[#allocation20 + $0xb30] sm:$0xff] }
0x10ae   :  { %7184 = vmatpush1.msra.mxu1 %v7044_v19  ;;  %7115 = vmatpush1.msra.mxu0 %v7038_v1  ;;  %v7343_v19 = vld [vmem:[#allocation20 + $0xb00] sm:$0xff]  ;;  %v7346_v1 = vld [vmem:[#allocation20 + $0xb18] sm:$0xff] }
0x10af   :  { %7185 = vmatprep.subr.mxu1 %v7041_v26  ;;  %7116 = vmatprep.subr.mxu0 %v7035_v5  ;;  %v7340_v26 = vld [vmem:[#allocation20 + $0xae8] sm:$0xff]  ;;  %v7345_v5 = vld [vmem:[#allocation20 + $0xb10] sm:$0xff] }
0x10b0   :  { %7186 = vmatpush1.msra.mxu1 %v7040_v33  ;;  %7117 = vmatpush1.msra.mxu0 %v7034_v40  ;;  %v7339_v33 = vld [vmem:[#allocation20 + $0xae0] sm:$0xff]  ;;  %v7342_v40 = vld [vmem:[#allocation20 + $0xaf8] sm:$0xff] }
0x10b1   :  { %7187 = vmatprep.subr.mxu1 %v7037_v43  ;;  %7154 = vmatprep.mubr.f32.mxu0 %v13820_v32  ;;  %v7336_v43 = vld [vmem:[#allocation20 + $0xac8] sm:$0xff] }
0x10b2   :  { %7225 = vmatprep.mubr.f32.mxu1 %v13820_v32  ;;  %7118 = vmatprep.subr.mxu0 %v7031_v58  ;;  %v7341_v58 = vld [vmem:[#allocation20 + $0xaf0] sm:$0xff] }
0x10b3   :  { %7188 = vmatpush1.msra.mxu1 %v7036_v45  ;;  %7119 = vmatpush1.msra.mxu0 %v7030_v55  ;;  %v7335_v45 = vld [vmem:[#allocation20 + $0xac0] sm:$0xff]  ;;  %v7338_v55 = vld [vmem:[#allocation20 + $0xad8] sm:$0xff] }
0x10b4   :  { %7189 = vmatprep.subr.mxu1 %v7033_v13  ;;  %7120 = vmatprep.subr.mxu0 %v7027_v36  ;;  %v7332_v13 = vld [vmem:[#allocation20 + $0xaa8] sm:$0xff]  ;;  %v7337_v36 = vld [vmem:[#allocation20 + $0xad0] sm:$0xff] }
0x10b5   :  { %7190 = vmatpush1.msra.mxu1 %v7032_v22  ;;  %7121 = vmatpush1.msra.mxu0 %v7026_v7  ;;  %v7331_v22 = vld [vmem:[#allocation20 + $0xaa0] sm:$0xff]  ;;  %v7334_v7 = vld [vmem:[#allocation20 + $0xab8] sm:$0xff] }
0x10b6   :  { %7191 = vmatprep.subr.mxu1 %v7029_v27  ;;  %11275 = vmatprep.subr.mxu0 %v13820_v32  ;;  %v7328_v27 = vld [vmem:[#allocation20 + $0xa88] sm:$0xff] }
0x10b7   :  { %7192 = vmatpush1.msra.mxu1 %v7028_v11  ;;  %v7333_v11 = vld [vmem:[#allocation20 + $0xab0] sm:$0xff] }
0x10b8   :  { %7375 = vmatprep.subr.mxu1 %v7372_v38  ;;  %v7327_v38 = vld [vmem:[#allocation20 + $0xa80] sm:$0xff] }
0x1153   :  { %v6871_v17 = vpop.f32.mrf.mxu1  ;;  %v6942_v18 = vpop.f32.mrf.mxu0 }
0x1154   :  { %v13182_v24 = vadd.f32 %v6871_v17, %v13162_v20  ;;  %v13185_v25 = vadd.f32 %v6942_v18, %v13165_v47  ;;  %v7373_v47 = vld [vmem:[#allocation20 + $0xbf0] sm:$0xff]  ;;  %v7330_v17 = vld [vmem:[#allocation20 + $0xa98] sm:$0xff]  ;;  %v7324_v18 = vld [vmem:[#allocation20 + $0xa68] sm:$0xff] }
0x1155   :  { %v6873_v57 = vpop.f32.mrf.mxu1 }
0x1156   :  { %v13188_v59 = vadd.f32 %v6873_v57, %v13168_v29  ;;  %v7370_v29 = vld [vmem:[#allocation20 + $0xbd8] sm:$0xff]  ;;  %v7329_v57 = vld [vmem:[#allocation20 + $0xa90] sm:$0xff] }
0x1157   :  { %v7022_v0 = vpop.f32.mrf.mxu1 }
0x1158   :  { %7155 = vmatmul.mubr.f32.vlgmr.msra.gmra.mxu0 %v7022_v0  ;;  %7226 = vmatmul.mubr.f32.vlgmr.msra.gmra.mxu1 %v7022_v0  ;;  %v7323_v0 = vld [vmem:[#allocation20 + $0xa60] sm:$0xff] }
0x1159   :  { %11276 = vmatpush3.msra.mxu0 %v13098_v52  ;;  %11279 = vmatprep.mubr.msk.f32.mxu0 %vm11900_vm2, %v13820_v32  ;;  %v11274_v20 = vpop.f32.mrf.mxu1 }
0x115a   :  { %11277 = vmatprep.subr.mxu0 %v13820_v32  ;;  %7376 = vmatpush1.msra.mxu1 %v7371_v28  ;;  %v7326_v28 = vld [vmem:[#allocation20 + $0xa78] sm:$0xff]  ;;  %v7319_v20 = vld [vmem:[#allocation20 + $0xa40] sm:$0xff] }
0x115b   :  { %11278 = vmatpush3.msra.mxu0 %v13100_v60  ;;  %7377 = vmatprep.subr.mxu1 %v7368_v10  ;;  %v7320_v10 = vld [vmem:[#allocation20 + $0xa48] sm:$0xff] }
0x115c   :  { %11280 = vmatmul.mubr.msk.f32.vlgmr.msra.gmra.mxu0 %vm5791_vm3, %v7237_v30  ;;  %7446 = vmatprep.subr.mxu0 %v7374_v42  ;;  %v7325_v30 = vld [vmem:[#allocation20 + $0xa70] sm:$0xff]  ;;  %v7322_v42 = vld [vmem:[#allocation20 + $0xa58] sm:$0xff] }
0x115d   :  { %7447 = vmatpush1.msra.mxu0 %v7373_v47  ;;  %7378 = vmatpush1.msra.mxu1 %v7367_v61  ;;  %v7316_v47 = vld [vmem:[#allocation20 + $0xa28] sm:$0xff]  ;;  %v7321_v61 = vld [vmem:[#allocation20 + $0xa50] sm:$0xff] }
0x115e   :  { %7448 = vmatprep.subr.mxu0 %v7370_v29  ;;  %7379 = vmatprep.subr.mxu1 %v7364_v12  ;;  %v7315_v29 = vld [vmem:[#allocation20 + $0xa20] sm:$0xff]  ;;  %v7318_v12 = vld [vmem:[#allocation20 + $0xa38] sm:$0xff] }
0x115f   :  { %7449 = vmatpush1.msra.mxu0 %v7369_v54  ;;  %7380 = vmatpush1.msra.mxu1 %v7363_v48  ;;  %v7312_v54 = vld [vmem:[#allocation20 + $0xa08] sm:$0xff]  ;;  %v7317_v48 = vld [vmem:[#allocation20 + $0xa30] sm:$0xff] }
0x1160   :  { %7450 = vmatprep.subr.mxu0 %v7366_v6  ;;  %7381 = vmatprep.subr.mxu1 %v7360_v14  ;;  %v7311_v6 = vld [vmem:[#allocation20 + $0xa00] sm:$0xff]  ;;  %v7314_v14 = vld [vmem:[#allocation20 + $0xa18] sm:$0xff] }
0x1161   :  { %7451 = vmatpush1.msra.mxu0 %v7365_v16  ;;  %7382 = vmatpush1.msra.mxu1 %v7359_v37  ;;  %v7313_v16 = vld [vmem:[#allocation20 + $0xa10] sm:$0xff]  ;;  %v7657_v37 = vld [vmem:[#allocation20 + $0xde8] sm:$0xff] }
0x1162   :  { %7452 = vmatprep.subr.mxu0 %v7362_v2  ;;  %7383 = vmatprep.subr.mxu1 %v7356_v46  ;;  %v13199_v2 = vpop.f32.mrf.mxu0 }
0x1163   :  { %7453 = vmatpush1.msra.mxu0 %v7361_v15  ;;  %7384 = vmatpush1.msra.mxu1 %v7355_v3 }
0x1164   :  { %7454 = vmatprep.subr.mxu0 %v7358_v8  ;;  %7385 = vmatprep.subr.mxu1 %v7352_v34 }
0x1165   :  { %7455 = vmatpush1.msra.mxu0 %v7357_v44  ;;  %7386 = vmatpush1.msra.mxu1 %v7351_v31 }
0x1166   :  { %7456 = vmatprep.subr.mxu0 %v7354_v63  ;;  %7387 = vmatprep.subr.mxu1 %v7348_v51  ;;  %v7656_v63 = vld [vmem:[#allocation20 + $0xde0] sm:$0xff]  ;;  %v7653_v51 = vld [vmem:[#allocation20 + $0xdc8] sm:$0xff] }
0x1167   :  { %7457 = vmatpush1.msra.mxu0 %v7353_v50  ;;  %7388 = vmatpush1.msra.mxu1 %v7347_v53  ;;  %v7522_v50 = vld [vmem:[#allocation19 + $0xc] sm:$0x3] }
0x1168   :  { %7458 = vmatprep.subr.mxu0 %v7350_v56  ;;  %7389 = vmatprep.subr.mxu1 %v7344_v9  ;;  %v7659_v53 = vld [vmem:[#allocation20 + $0xdf8] sm:$0xff]  ;;  %v7652_v56 = vld [vmem:[#allocation20 + $0xdc0] sm:$0xff]  ;;  %v7649_v9 = vld [vmem:[#allocation20 + $0xda8] sm:$0xff] }
0x1169   :  { %7459 = vmatpush1.msra.mxu0 %v7349_v4  ;;  %7390 = vmatpush1.msra.mxu1 %v7343_v19  ;;  %v7654_v4 = vld [vmem:[#allocation20 + $0xdd0] sm:$0xff]  ;;  %v7648_v19 = vld [vmem:[#allocation20 + $0xda0] sm:$0xff] }
0x116a   :  { %7460 = vmatprep.subr.mxu0 %v7346_v1  ;;  %7391 = vmatprep.subr.mxu1 %v7340_v26  ;;  %v7651_v1 = vld [vmem:[#allocation20 + $0xdb8] sm:$0xff]  ;;  %v7645_v26 = vld [vmem:[#allocation20 + $0xd88] sm:$0xff] }
0x116b   :  { %7461 = vmatpush1.msra.mxu0 %v7345_v5  ;;  %7392 = vmatpush1.msra.mxu1 %v7339_v33  ;;  %v7650_v5 = vld [vmem:[#allocation20 + $0xdb0] sm:$0xff]  ;;  %v7644_v33 = vld [vmem:[#allocation20 + $0xd80] sm:$0xff] }
0x116c   :  { %7462 = vmatprep.subr.mxu0 %v7342_v40  ;;  %7393 = vmatprep.subr.mxu1 %v7336_v43  ;;  %v7647_v40 = vld [vmem:[#allocation20 + $0xd98] sm:$0xff]  ;;  %v7641_v43 = vld [vmem:[#allocation20 + $0xd68] sm:$0xff] }
0x116d   :  { %7463 = vmatpush1.msra.mxu0 %v7341_v58  ;;  %7394 = vmatpush1.msra.mxu1 %v7335_v45  ;;  %v7646_v58 = vld [vmem:[#allocation20 + $0xd90] sm:$0xff]  ;;  %v7640_v45 = vld [vmem:[#allocation20 + $0xd60] sm:$0xff] }
0x116e   :  { %7464 = vmatprep.subr.mxu0 %v7338_v55  ;;  %7395 = vmatprep.subr.mxu1 %v7332_v13  ;;  %v7643_v55 = vld [vmem:[#allocation20 + $0xd78] sm:$0xff]  ;;  %v7637_v13 = vld [vmem:[#allocation20 + $0xd48] sm:$0xff] }
0x116f   :  { %7465 = vmatpush1.msra.mxu0 %v7337_v36  ;;  %7396 = vmatpush1.msra.mxu1 %v7331_v22  ;;  %v7642_v36 = vld [vmem:[#allocation20 + $0xd70] sm:$0xff]  ;;  %v7636_v22 = vld [vmem:[#allocation20 + $0xd40] sm:$0xff] }
0x1170   :  { %7466 = vmatprep.subr.mxu0 %v7334_v7  ;;  %7397 = vmatprep.subr.mxu1 %v7328_v27  ;;  %v7639_v7 = vld [vmem:[#allocation20 + $0xd58] sm:$0xff]  ;;  %v7633_v27 = vld [vmem:[#allocation20 + $0xd28] sm:$0xff] }
0x1171   :  { %7467 = vmatpush1.msra.mxu0 %v7333_v11  ;;  %7398 = vmatpush1.msra.mxu1 %v7327_v38  ;;  %v7638_v11 = vld [vmem:[#allocation20 + $0xd50] sm:$0xff]  ;;  %v7632_v38 = vld [vmem:[#allocation20 + $0xd20] sm:$0xff] }
0x1172   :  { %7468 = vmatprep.subr.mxu0 %v7330_v17  ;;  %7399 = vmatprep.subr.mxu1 %v7324_v18  ;;  %v7635_v17 = vld [vmem:[#allocation20 + $0xd38] sm:$0xff]  ;;  %v7629_v18 = vld [vmem:[#allocation20 + $0xd08] sm:$0xff] }
0x1173   :  { %7469 = vmatpush1.msra.mxu0 %v7329_v57  ;;  %7400 = vmatpush1.msra.mxu1 %v7323_v0  ;;  %v7634_v57 = vld [vmem:[#allocation20 + $0xd30] sm:$0xff]  ;;  %v7628_v0 = vld [vmem:[#allocation20 + $0xd00] sm:$0xff] }
0x1174   :  { %7470 = vmatprep.subr.mxu0 %v7326_v28  ;;  %7401 = vmatprep.subr.mxu1 %v7320_v10  ;;  %v7631_v28 = vld [vmem:[#allocation20 + $0xd18] sm:$0xff]  ;;  %v7625_v10 = vld [vmem:[#allocation20 + $0xce8] sm:$0xff] }
0x1175   :  { %7471 = vmatpush1.msra.mxu0 %v7325_v30  ;;  %7402 = vmatpush1.msra.mxu1 %v7319_v20  ;;  %v7630_v30 = vld [vmem:[#allocation20 + $0xd10] sm:$0xff]  ;;  %v7624_v20 = vld [vmem:[#allocation20 + $0xce0] sm:$0xff] }
0x1176   :  { %7472 = vmatprep.subr.mxu0 %v7322_v42  ;;  %7439 = vmatprep.mubr.f32.mxu1 %v13820_v32  ;;  %v7627_v42 = vld [vmem:[#allocation20 + $0xcf8] sm:$0xff] }
0x1177   :  { %7510 = vmatprep.mubr.f32.mxu0 %v13820_v32  ;;  %7403 = vmatprep.subr.mxu1 %v7316_v47  ;;  %v7621_v47 = vld [vmem:[#allocation20 + $0xcc8] sm:$0xff] }
0x1178   :  { %7473 = vmatpush1.msra.mxu0 %v7321_v61  ;;  %7404 = vmatpush1.msra.mxu1 %v7315_v29  ;;  %v7626_v61 = vld [vmem:[#allocation20 + $0xcf0] sm:$0xff]  ;;  %v7620_v29 = vld [vmem:[#allocation20 + $0xcc0] sm:$0xff] }
0x1179   :  { %7474 = vmatprep.subr.mxu0 %v7318_v12  ;;  %7405 = vmatprep.subr.mxu1 %v7312_v54  ;;  %v7623_v12 = vld [vmem:[#allocation20 + $0xcd8] sm:$0xff]  ;;  %v7617_v54 = vld [vmem:[#allocation20 + $0xca8] sm:$0xff] }
0x117a   :  { %7475 = vmatpush1.msra.mxu0 %v7317_v48  ;;  %7406 = vmatpush1.msra.mxu1 %v7311_v6  ;;  %v7622_v48 = vld [vmem:[#allocation20 + $0xcd0] sm:$0xff]  ;;  %v7616_v6 = vld [vmem:[#allocation20 + $0xca0] sm:$0xff] }
0x117b   :  { %7476 = vmatprep.subr.mxu0 %v7314_v14  ;;  %11282 = vmatprep.subr.mxu1 %v13820_v32  ;;  %v7619_v14 = vld [vmem:[#allocation20 + $0xcb8] sm:$0xff] }
0x117c   :  { %7477 = vmatpush1.msra.mxu0 %v7313_v16  ;;  %v7613_v16 = vld [vmem:[#allocation20 + $0xc88] sm:$0xff] }
0x117d   :  { %7660 = vmatprep.subr.mxu0 %v7657_v37  ;;  %v7618_v37 = vld [vmem:[#allocation20 + $0xcb0] sm:$0xff] }
0x1218   :  { %v7156_v46 = vpop.f32.mrf.mxu0  ;;  %v7227_v15 = vpop.f32.mrf.mxu1 }
0x1219   :  { %v13202_v3 = vadd.f32 %v7156_v46, %v13182_v24  ;;  %v13205_v8 = vadd.f32 %v7227_v15, %v13185_v25  ;;  %v7658_v25 = vld [vmem:[#allocation20 + $0xdf0] sm:$0xff]  ;;  %v7612_v46 = vld [vmem:[#allocation20 + $0xc80] sm:$0xff]  ;;  %v7615_v15 = vld [vmem:[#allocation20 + $0xc98] sm:$0xff] }
0x121a   :  { %v7158_v34 = vpop.f32.mrf.mxu0 }
0x121b   :  { %v13208_v44 = vadd.f32 %v7158_v34, %v13188_v59  ;;  %v7655_v59 = vld [vmem:[#allocation20 + $0xdd8] sm:$0xff]  ;;  %v7609_v34 = vld [vmem:[#allocation20 + $0xc68] sm:$0xff] }
0x121c   :  { %v7307_v31 = vpop.f32.mrf.mxu0 }
0x121d   :  { %7440 = vmatmul.mubr.f32.vlgmr.msra.gmra.mxu1 %v7307_v31  ;;  %7511 = vmatmul.mubr.f32.vlgmr.msra.gmra.mxu0 %v7307_v31  ;;  %v7614_v31 = vld [vmem:[#allocation20 + $0xc90] sm:$0xff] }
0x121e   :  { %11283 = vmatpush3.msra.mxu1 %v13098_v52  ;;  %11286 = vmatprep.mubr.msk.f32.mxu1 %vm11900_vm2, %v13820_v32  ;;  %v11281_v24 = vpop.f32.mrf.mxu0 }
0x121f   :  { %11284 = vmatprep.subr.mxu1 %v13820_v32  ;;  %7661 = vmatpush1.msra.mxu0 %v7656_v63  ;;  %v7608_v63 = vld [vmem:[#allocation20 + $0xc60] sm:$0xff]  ;;  %v7610_v24 = vld [vmem:[#allocation20 + $0xc70] sm:$0xff] }
0x1220   :  { %11285 = vmatpush3.msra.mxu1 %v13100_v60  ;;  %7662 = vmatprep.subr.mxu0 %v7653_v51  ;;  %v7611_v51 = vld [vmem:[#allocation20 + $0xc78] sm:$0xff] }
0x1221   :  { %11287 = vmatmul.mubr.msk.f32.vlgmr.msra.gmra.mxu1 %vm5791_vm3, %v7522_v50  ;;  %7731 = vmatprep.subr.mxu1 %v7659_v53  ;;  %v7605_v50 = vld [vmem:[#allocation20 + $0xc48] sm:$0xff]  ;;  %v7604_v53 = vld [vmem:[#allocation20 + $0xc40] sm:$0xff] }
0x1222   :  { %7732 = vmatpush1.msra.mxu1 %v7658_v25  ;;  %7663 = vmatpush1.msra.mxu0 %v7652_v56  ;;  %v7607_v25 = vld [vmem:[#allocation20 + $0xc58] sm:$0xff]  ;;  %v7601_v56 = vld [vmem:[#allocation20 + $0xc28] sm:$0xff] }
0x1223   :  { %7733 = vmatprep.subr.mxu1 %v7655_v59  ;;  %7664 = vmatprep.subr.mxu0 %v7649_v9  ;;  %v7606_v59 = vld [vmem:[#allocation20 + $0xc50] sm:$0xff]  ;;  %v7600_v9 = vld [vmem:[#allocation20 + $0xc20] sm:$0xff] }
0x1224   :  { %7734 = vmatpush1.msra.mxu1 %v7654_v4  ;;  %7665 = vmatpush1.msra.mxu0 %v7648_v19  ;;  %v7603_v4 = vld [vmem:[#allocation20 + $0xc38] sm:$0xff]  ;;  %v7597_v19 = vld [vmem:[#allocation20 + $0xc08] sm:$0xff] }
0x1225   :  { %7735 = vmatprep.subr.mxu1 %v7651_v1  ;;  %7666 = vmatprep.subr.mxu0 %v7645_v26  ;;  %v7602_v1 = vld [vmem:[#allocation20 + $0xc30] sm:$0xff]  ;;  %v7596_v26 = vld [vmem:[#allocation20 + $0xc00] sm:$0xff] }
0x1226   :  { %7736 = vmatpush1.msra.mxu1 %v7650_v5  ;;  %7667 = vmatpush1.msra.mxu0 %v7644_v33  ;;  %v7599_v5 = vld [vmem:[#allocation20 + $0xc18] sm:$0xff]  ;;  %v7598_v33 = vld [vmem:[#allocation20 + $0xc10] sm:$0xff] }
0x1227   :  { %7737 = vmatprep.subr.mxu1 %v7647_v40  ;;  %7668 = vmatprep.subr.mxu0 %v7641_v43  ;;  %v7942_v40 = vld [vmem:[#allocation20 + $0xfe8] sm:$0xff]  ;;  %v13219_v43 = vpop.f32.mrf.mxu1 }
0x1228   :  { %7738 = vmatpush1.msra.mxu1 %v7646_v58  ;;  %7669 = vmatpush1.msra.mxu0 %v7640_v45 }
0x1229   :  { %7739 = vmatprep.subr.mxu1 %v7643_v55  ;;  %7670 = vmatprep.subr.mxu0 %v7637_v13 }
0x122a   :  { %7740 = vmatpush1.msra.mxu1 %v7642_v36  ;;  %7671 = vmatpush1.msra.mxu0 %v7636_v22 }
0x122b   :  { %7741 = vmatprep.subr.mxu1 %v7639_v7  ;;  %7672 = vmatprep.subr.mxu0 %v7633_v27  ;;  %v7941_v27 = vld [vmem:[#allocation20 + $0xfe0] sm:$0xff] }
0x122c   :  { %7742 = vmatpush1.msra.mxu1 %v7638_v11  ;;  %7673 = vmatpush1.msra.mxu0 %v7632_v38  ;;  %v7938_v11 = vld [vmem:[#allocation20 + $0xfc8] sm:$0xff]  ;;  %v7807_v38 = vld [vmem:[#allocation19 + $0xe] sm:$0x3] }
0x122d   :  { %7743 = vmatprep.subr.mxu1 %v7635_v17  ;;  %7674 = vmatprep.subr.mxu0 %v7629_v18  ;;  %v7944_v17 = vld [vmem:[#allocation20 + $0xff8] sm:$0xff]  ;;  %v7937_v18 = vld [vmem:[#allocation20 + $0xfc0] sm:$0xff] }
0x122e   :  { %7744 = vmatpush1.msra.mxu1 %v7634_v57  ;;  %7675 = vmatpush1.msra.mxu0 %v7628_v0  ;;  %v7934_v57 = vld [vmem:[#allocation20 + $0xfa8] sm:$0xff]  ;;  %v7933_v0 = vld [vmem:[#allocation20 + $0xfa0] sm:$0xff] }
0x122f   :  { %7745 = vmatprep.subr.mxu1 %v7631_v28  ;;  %7676 = vmatprep.subr.mxu0 %v7625_v10  ;;  %v7936_v28 = vld [vmem:[#allocation20 + $0xfb8] sm:$0xff]  ;;  %v7930_v10 = vld [vmem:[#allocation20 + $0xf88] sm:$0xff] }
0x1230   :  { %7746 = vmatpush1.msra.mxu1 %v7630_v30  ;;  %7677 = vmatpush1.msra.mxu0 %v7624_v20  ;;  %v7935_v30 = vld [vmem:[#allocation20 + $0xfb0] sm:$0xff]  ;;  %v7929_v20 = vld [vmem:[#allocation20 + $0xf80] sm:$0xff] }
0x1231   :  { %7747 = vmatprep.subr.mxu1 %v7627_v42  ;;  %7678 = vmatprep.subr.mxu0 %v7621_v47  ;;  %v7932_v42 = vld [vmem:[#allocation20 + $0xf98] sm:$0xff]  ;;  %v7931_v47 = vld [vmem:[#allocation20 + $0xf90] sm:$0xff] }
0x1232   :  { %7748 = vmatpush1.msra.mxu1 %v7626_v61  ;;  %7679 = vmatpush1.msra.mxu0 %v7620_v29  ;;  %v7925_v61 = vld [vmem:[#allocation20 + $0xf60] sm:$0xff]  ;;  %v7928_v29 = vld [vmem:[#allocation20 + $0xf78] sm:$0xff] }
0x1233   :  { %7749 = vmatprep.subr.mxu1 %v7623_v12  ;;  %7680 = vmatprep.subr.mxu0 %v7617_v54  ;;  %v7922_v12 = vld [vmem:[#allocation20 + $0xf48] sm:$0xff]  ;;  %v7927_v54 = vld [vmem:[#allocation20 + $0xf70] sm:$0xff] }
0x1234   :  { %7750 = vmatpush1.msra.mxu1 %v7622_v48  ;;  %7681 = vmatpush1.msra.mxu0 %v7616_v6  ;;  %v7921_v48 = vld [vmem:[#allocation20 + $0xf40] sm:$0xff]  ;;  %v7924_v6 = vld [vmem:[#allocation20 + $0xf58] sm:$0xff] }
0x1235   :  { %7751 = vmatprep.subr.mxu1 %v7619_v14  ;;  %7682 = vmatprep.subr.mxu0 %v7613_v16  ;;  %v7918_v14 = vld [vmem:[#allocation20 + $0xf28] sm:$0xff]  ;;  %v7923_v16 = vld [vmem:[#allocation20 + $0xf50] sm:$0xff] }
0x1236   :  { %7752 = vmatpush1.msra.mxu1 %v7618_v37  ;;  %7683 = vmatpush1.msra.mxu0 %v7612_v46  ;;  %v7917_v37 = vld [vmem:[#allocation20 + $0xf20] sm:$0xff]  ;;  %v7920_v46 = vld [vmem:[#allocation20 + $0xf38] sm:$0xff] }
0x1237   :  { %7753 = vmatprep.subr.mxu1 %v7615_v15  ;;  %7684 = vmatprep.subr.mxu0 %v7609_v34  ;;  %v7914_v15 = vld [vmem:[#allocation20 + $0xf08] sm:$0xff]  ;;  %v7919_v34 = vld [vmem:[#allocation20 + $0xf30] sm:$0xff] }
0x1238   :  { %7754 = vmatpush1.msra.mxu1 %v7614_v31  ;;  %7685 = vmatpush1.msra.mxu0 %v7608_v63  ;;  %v7913_v31 = vld [vmem:[#allocation20 + $0xf00] sm:$0xff]  ;;  %v7916_v63 = vld [vmem:[#allocation20 + $0xf18] sm:$0xff] }
0x1239   :  { %7755 = vmatprep.subr.mxu1 %v7611_v51  ;;  %7686 = vmatprep.subr.mxu0 %v7605_v50  ;;  %v7910_v51 = vld [vmem:[#allocation20 + $0xee8] sm:$0xff]  ;;  %v7915_v50 = vld [vmem:[#allocation20 + $0xf10] sm:$0xff] }
0x123a   :  { %7756 = vmatpush1.msra.mxu1 %v7610_v24  ;;  %7687 = vmatpush1.msra.mxu0 %v7604_v53  ;;  %v7909_v24 = vld [vmem:[#allocation20 + $0xee0] sm:$0xff]  ;;  %v7912_v53 = vld [vmem:[#allocation20 + $0xef8] sm:$0xff] }
0x123b   :  { %7757 = vmatprep.subr.mxu1 %v7607_v25  ;;  %7724 = vmatprep.mubr.f32.mxu0 %v13820_v32  ;;  %v7906_v25 = vld [vmem:[#allocation20 + $0xec8] sm:$0xff] }
0x123c   :  { %7795 = vmatprep.mubr.f32.mxu1 %v13820_v32  ;;  %7688 = vmatprep.subr.mxu0 %v7601_v56  ;;  %v7911_v56 = vld [vmem:[#allocation20 + $0xef0] sm:$0xff] }
0x123d   :  { %7758 = vmatpush1.msra.mxu1 %v7606_v59  ;;  %7689 = vmatpush1.msra.mxu0 %v7600_v9  ;;  %v7905_v59 = vld [vmem:[#allocation20 + $0xec0] sm:$0xff]  ;;  %v7908_v9 = vld [vmem:[#allocation20 + $0xed8] sm:$0xff] }
0x123e   :  { %7759 = vmatprep.subr.mxu1 %v7603_v4  ;;  %7690 = vmatprep.subr.mxu0 %v7597_v19  ;;  %v7902_v4 = vld [vmem:[#allocation20 + $0xea8] sm:$0xff]  ;;  %v7907_v19 = vld [vmem:[#allocation20 + $0xed0] sm:$0xff] }
0x123f   :  { %7760 = vmatpush1.msra.mxu1 %v7602_v1  ;;  %7691 = vmatpush1.msra.mxu0 %v7596_v26  ;;  %v7901_v1 = vld [vmem:[#allocation20 + $0xea0] sm:$0xff]  ;;  %v7904_v26 = vld [vmem:[#allocation20 + $0xeb8] sm:$0xff] }
0x1240   :  { %7761 = vmatprep.subr.mxu1 %v7599_v5  ;;  %11289 = vmatprep.subr.mxu0 %v13820_v32  ;;  %v7898_v5 = vld [vmem:[#allocation20 + $0xe88] sm:$0xff] }
0x1241   :  { %7762 = vmatpush1.msra.mxu1 %v7598_v33  ;;  %v7903_v33 = vld [vmem:[#allocation20 + $0xeb0] sm:$0xff] }
0x1242   :  { %7945 = vmatprep.subr.mxu1 %v7942_v40  ;;  %v7897_v40 = vld [vmem:[#allocation20 + $0xe80] sm:$0xff] }
0x12dd   :  { %v7441_v58 = vpop.f32.mrf.mxu1  ;;  %v7512_v45 = vpop.f32.mrf.mxu0 }
0x12de   :  { %v13222_v55 = vadd.f32 %v7441_v58, %v13202_v3  ;;  %v13225_v13 = vadd.f32 %v7512_v45, %v13205_v8  ;;  %v7943_v8 = vld [vmem:[#allocation20 + $0xff0] sm:$0xff]  ;;  %v7900_v58 = vld [vmem:[#allocation20 + $0xe98] sm:$0xff]  ;;  %v7894_v45 = vld [vmem:[#allocation20 + $0xe68] sm:$0xff] }
0x12df   :  { %v7443_v36 = vpop.f32.mrf.mxu1 }
0x12e0   :  { %v13228_v22 = vadd.f32 %v7443_v36, %v13208_v44  ;;  %v7940_v44 = vld [vmem:[#allocation20 + $0xfd8] sm:$0xff]  ;;  %v7899_v36 = vld [vmem:[#allocation20 + $0xe90] sm:$0xff] }
0x12e1   :  { %v7592_v7 = vpop.f32.mrf.mxu1 }
0x12e2   :  { %7725 = vmatmul.mubr.f32.vlgmr.msra.gmra.mxu0 %v7592_v7  ;;  %7796 = vmatmul.mubr.f32.vlgmr.msra.gmra.mxu1 %v7592_v7  ;;  %v7893_v7 = vld [vmem:[#allocation20 + $0xe60] sm:$0xff] }
0x12e3   :  { %11290 = vmatpush3.msra.mxu0 %v13098_v52  ;;  %11293 = vmatprep.mubr.msk.f32.mxu0 %vm11900_vm2, %v13820_v32  ;;  %v11288_v3 = vpop.f32.mrf.mxu1  ;;  %v7939_v52 = vld [vmem:[#allocation20 + $0xfd0] sm:$0xff] }
0x12e4   :  { %11291 = vmatprep.subr.mxu0 %v13820_v32  ;;  %7946 = vmatpush1.msra.mxu1 %v7941_v27  ;;  %v7896_v27 = vld [vmem:[#allocation20 + $0xe78] sm:$0xff]  ;;  %v7889_v3 = vld [vmem:[#allocation20 + $0xe40] sm:$0xff] }
0x12e5   :  { %11292 = vmatpush3.msra.mxu0 %v13100_v60  ;;  %7947 = vmatprep.subr.mxu1 %v7938_v11  ;;  %v7926_v60 = vld [vmem:[#allocation20 + $0xf68] sm:$0xff] }
0x12e6   :  { %11294 = vmatmul.mubr.msk.f32.vlgmr.msra.gmra.mxu0 %vm5791_vm3, %v7807_v38  ;;  %8016 = vmatprep.subr.mxu0 %v7944_v17  ;;  %v7890_v11 = vld [vmem:[#allocation20 + $0xe48] sm:$0xff]  ;;  %v7895_v38 = vld [vmem:[#allocation20 + $0xe70] sm:$0xff]  ;;  %v7892_v17 = vld [vmem:[#allocation20 + $0xe58] sm:$0xff] }
0x12e7   :  { %8017 = vmatpush1.msra.mxu0 %v7943_v8  ;;  %7948 = vmatpush1.msra.mxu1 %v7937_v18  ;;  %v7891_v8 = vld [vmem:[#allocation20 + $0xe50] sm:$0xff]  ;;  %v7886_v18 = vld [vmem:[#allocation20 + $0xe28] sm:$0xff] }
0x12e8   :  { %8018 = vmatprep.subr.mxu0 %v7940_v44  ;;  %7949 = vmatprep.subr.mxu1 %v7934_v57  ;;  %v7888_v44 = vld [vmem:[#allocation20 + $0xe38] sm:$0xff]  ;;  %v7885_v57 = vld [vmem:[#allocation20 + $0xe20] sm:$0xff] }
0x12e9   :  { %8019 = vmatpush1.msra.mxu0 %v7939_v52  ;;  %7950 = vmatpush1.msra.mxu1 %v7933_v0  ;;  %v7887_v52 = vld [vmem:[#allocation20 + $0xe30] sm:$0xff]  ;;  %v7882_v0 = vld [vmem:[#allocation20 + $0xe08] sm:$0xff] }
0x12ea   :  { %8020 = vmatprep.subr.mxu0 %v7936_v28  ;;  %7951 = vmatprep.subr.mxu1 %v7930_v10  ;;  %v7884_v28 = vld [vmem:[#allocation20 + $0xe18] sm:$0xff]  ;;  %v7881_v10 = vld [vmem:[#allocation20 + $0xe00] sm:$0xff] }
0x12eb   :  { %8021 = vmatpush1.msra.mxu0 %v7935_v30  ;;  %7952 = vmatpush1.msra.mxu1 %v7929_v20  ;;  %v7883_v30 = vld [vmem:[#allocation20 + $0xe10] sm:$0xff] }
0x12ec   :  { %8022 = vmatprep.subr.mxu0 %v7932_v42  ;;  %7953 = vmatprep.subr.mxu1 %v7926_v60  ;;  %v8121_v20 = vld [vmem:[#allocation23 + $0xc8] sm:$0xff]  ;;  %v8123_v42 = vld [vmem:[#allocation23 + $0xd8] sm:$0xff]  ;;  %v13238_v60 = vpop.f32.mrf.mxu0 }
0x12ed   :  { %8023 = vmatpush1.msra.mxu0 %v7931_v47  ;;  %7954 = vmatpush1.msra.mxu1 %v7925_v61 }
0x12ee   :  { %8024 = vmatprep.subr.mxu0 %v7928_v29  ;;  %7955 = vmatprep.subr.mxu1 %v7922_v12 }
0x12ef   :  { %8025 = vmatpush1.msra.mxu0 %v7927_v54  ;;  %7956 = vmatpush1.msra.mxu1 %v7921_v48 }
0x12f0   :  { %8026 = vmatprep.subr.mxu0 %v7924_v6  ;;  %7957 = vmatprep.subr.mxu1 %v7918_v14  ;;  %v8120_v6 = vld [vmem:[#allocation23 + $0xc0] sm:$0xff]  ;;  %v8122_v14 = vld [vmem:[#allocation23 + $0xd0] sm:$0xff] }
0x12f1   :  { %8027 = vmatpush1.msra.mxu0 %v7923_v16  ;;  %7958 = vmatpush1.msra.mxu1 %v7917_v37  ;;  %v8113_v37 = vld [vmem:[#allocation23 + $0x88] sm:$0xff] }
0x12f2   :  { %8028 = vmatprep.subr.mxu0 %v7920_v46  ;;  %7959 = vmatprep.subr.mxu1 %v7914_v15  ;;  %v8115_v46 = vld [vmem:[#allocation23 + $0x98] sm:$0xff]  ;;  %v8112_v15 = vld [vmem:[#allocation23 + $0x80] sm:$0xff] }
0x12f3   :  { %8029 = vmatpush1.msra.mxu0 %v7919_v34  ;;  %7960 = vmatpush1.msra.mxu1 %v7913_v31  ;;  %v8114_v34 = vld [vmem:[#allocation23 + $0x90] sm:$0xff]  ;;  %v8107_v31 = vld [vmem:[#allocation23 + $0x58] sm:$0xff] }
0x12f4   :  { %8030 = vmatprep.subr.mxu0 %v7916_v63  ;;  %7961 = vmatprep.subr.mxu1 %v7910_v51  ;;  %v8106_v51 = vld [vmem:[#allocation23 + $0x50] sm:$0xff] }
0x12f5   :  { %8031 = vmatpush1.msra.mxu0 %v7915_v50  ;;  %7962 = vmatpush1.msra.mxu1 %v7909_v24  ;;  %v8099_v50 = vld [vmem:[#allocation23 + $0x18] sm:$0xff]  ;;  %v8096_v24 = vld [vmem:[#allocation23] sm:$0xff] }
0x12f6   :  { %8032 = vmatprep.subr.mxu0 %v7912_v53  ;;  %7963 = vmatprep.subr.mxu1 %v7906_v25  ;;  %v8098_v53 = vld [vmem:[#allocation23 + $0x10] sm:$0xff] }
0x12f7   :  { %8033 = vmatpush1.msra.mxu0 %v7911_v56  ;;  %7964 = vmatpush1.msra.mxu1 %v7905_v59  ;;  %v8095_v25 = vld [vmem:[#allocation2] sm:$0x3]  ;;  %v8125_v56 = vld [vmem:[#allocation23 + $0xe8] sm:$0xff]  ;;  %v8127_v59 = vld [vmem:[#allocation23 + $0xf8] sm:$0xff] }
0x12f8   :  { %8034 = vmatprep.subr.mxu0 %v7908_v9  ;;  %7965 = vmatprep.subr.mxu1 %v7902_v4  ;;  %v8124_v9 = vld [vmem:[#allocation23 + $0xe0] sm:$0xff]  ;;  %v8126_v4 = vld [vmem:[#allocation23 + $0xf0] sm:$0xff] }
0x12f9   :  { %8035 = vmatpush1.msra.mxu0 %v7907_v19  ;;  %7966 = vmatpush1.msra.mxu1 %v7901_v1  ;;  %v8117_v19 = vld [vmem:[#allocation23 + $0xa8] sm:$0xff]  ;;  %v8119_v1 = vld [vmem:[#allocation23 + $0xb8] sm:$0xff] }
0x12fa   :  { %8036 = vmatprep.subr.mxu0 %v7904_v26  ;;  %7967 = vmatprep.subr.mxu1 %v7898_v5  ;;  %v8116_v26 = vld [vmem:[#allocation23 + $0xa0] sm:$0xff]  ;;  %v8118_v5 = vld [vmem:[#allocation23 + $0xb0] sm:$0xff] }
0x12fb   :  { %8037 = vmatpush1.msra.mxu0 %v7903_v33  ;;  %7968 = vmatpush1.msra.mxu1 %v7897_v40  ;;  %v8109_v33 = vld [vmem:[#allocation23 + $0x68] sm:$0xff]  ;;  %v8111_v40 = vld [vmem:[#allocation23 + $0x78] sm:$0xff] }
0x12fc   :  { %8038 = vmatprep.subr.mxu0 %v7900_v58  ;;  %7969 = vmatprep.subr.mxu1 %v7894_v45  ;;  %v8108_v58 = vld [vmem:[#allocation23 + $0x60] sm:$0xff]  ;;  %v8110_v45 = vld [vmem:[#allocation23 + $0x70] sm:$0xff] }
0x12fd   :  { %8039 = vmatpush1.msra.mxu0 %v7899_v36  ;;  %7970 = vmatpush1.msra.mxu1 %v7893_v7  ;;  %v8101_v36 = vld [vmem:[#allocation23 + $0x28] sm:$0xff]  ;;  %v8100_v7 = vld [vmem:[#allocation23 + $0x20] sm:$0xff] }
0x12fe   :  { %8040 = vmatprep.subr.mxu0 %v7896_v27  ;;  %7971 = vmatprep.subr.mxu1 %v7890_v11  ;;  %v8103_v27 = vld [vmem:[#allocation23 + $0x38] sm:$0xff]  ;;  %v8102_v11 = vld [vmem:[#allocation23 + $0x30] sm:$0xff] }
0x12ff   :  { %8041 = vmatpush1.msra.mxu0 %v7895_v38  ;;  %7972 = vmatpush1.msra.mxu1 %v7889_v3  ;;  %v8526_v38 = vld [vmem:[#allocation26 + $0x1e8] sm:$0xff] }
0x1300   :  { %8042 = vmatprep.subr.mxu0 %v7892_v17  ;;  %8009 = vmatprep.mubr.f32.mxu1 %v13820_v32  ;;  %v8654_v3 = vld [vmem:[#allocation26 + $0x5e8] sm:$0xff]  ;;  %v8525_v17 = vld [vmem:[#allocation26 + $0x1e0] sm:$0xff] }
0x1301   :  { %8043 = vmatpush1.msra.mxu0 %v7891_v8  ;;  %8080 = vmatprep.mubr.f32.mxu0 %v13820_v32  ;;  %v8653_v8 = vld [vmem:[#allocation26 + $0x5e0] sm:$0xff] }
0x1302   :  { %7973 = vmatprep.subr.mxu1 %v7886_v18  ;;  %8044 = vmatprep.subr.mxu0 %v7888_v44  ;;  %v8522_v18 = vld [vmem:[#allocation26 + $0x1c8] sm:$0xff] }
0x1303   :  { %7974 = vmatpush1.msra.mxu1 %v7885_v57  ;;  %8045 = vmatpush1.msra.mxu0 %v7887_v52  ;;  %v8650_v44 = vld [vmem:[#allocation26 + $0x5c8] sm:$0xff]  ;;  %v8521_v57 = vld [vmem:[#allocation26 + $0x1c0] sm:$0xff] }
0x1304   :  { %7975 = vmatprep.subr.mxu1 %v7882_v0  ;;  %8046 = vmatprep.subr.mxu0 %v7884_v28  ;;  %v8649_v52 = vld [vmem:[#allocation26 + $0x5c0] sm:$0xff]  ;;  %v8518_v0 = vld [vmem:[#allocation26 + $0x1a8] sm:$0xff] }
0x1305   :  { %7976 = vmatpush1.msra.mxu1 %v7881_v10  ;;  %8047 = vmatpush1.msra.mxu0 %v7883_v30  ;;  %v8646_v28 = vld [vmem:[#allocation26 + $0x5a8] sm:$0xff]  ;;  %v8517_v10 = vld [vmem:[#allocation26 + $0x1a0] sm:$0xff] }
0x1306   :  { %8197 = vmatprep.subr.mxu1 %v8121_v20  ;;  %8268 = vmatprep.subr.mxu0 %v8123_v42  ;;  %v8645_v30 = vld [vmem:[#allocation26 + $0x5a0] sm:$0xff]  ;;  %v8514_v20 = vld [vmem:[#allocation26 + $0x188] sm:$0xff] }
0x1307   :  { %v8513_v42 = vld [vmem:[#allocation26 + $0x180] sm:$0xff] }
0x13a2   :  { %v7726_v47 = vpop.f32.mrf.mxu0  ;;  %v7797_v61 = vpop.f32.mrf.mxu1 }
0x13a3   :  { %v13241_v29 = vadd.f32 %v7726_v47, %v13222_v55  ;;  %v13244_v12 = vadd.f32 %v7797_v61, %v13225_v13  ;;  %v8105_v55 = vld [vmem:[#allocation23 + $0x48] sm:$0xff]  ;;  %v8104_v13 = vld [vmem:[#allocation23 + $0x40] sm:$0xff]  ;;  %v8510_v61 = vld [vmem:[#allocation26 + $0x168] sm:$0xff] }
0x13a4   :  { %v7728_v54 = vpop.f32.mrf.mxu0  ;;  %v8641_v47 = vld [vmem:[#allocation26 + $0x580] sm:$0xff] }
0x13a5   :  { %v13247_v48 = vadd.f32 %v7728_v54, %v13228_v22  ;;  %v8097_v22 = vld [vmem:[#allocation23 + $0x8] sm:$0xff]  ;;  %v8638_v54 = vld [vmem:[#allocation26 + $0x568] sm:$0xff] }
0x13a6   :  { %v7877_v16 = vpop.f32.mrf.mxu0 }
0x13a7   :  { %8010 = vmatmul.mubr.f32.vlgmr.msra.gmra.mxu1 %v7877_v16  ;;  %8081 = vmatmul.mubr.f32.vlgmr.msra.gmra.mxu0 %v7877_v16  ;;  %v8506_v16 = vld [vmem:[#allocation26 + $0x148] sm:$0xff] }
0x13a8   :  { %8198 = vmatpush1.msra.mxu1 %v8120_v6  ;;  %8269 = vmatpush1.msra.mxu0 %v8122_v14  ;;  %v11295_v63 = vpop.f32.mrf.mxu0  ;;  %v8509_v6 = vld [vmem:[#allocation26 + $0x160] sm:$0xff] }
0x13a9   :  { %8199 = vmatprep.subr.mxu1 %v8113_v37  ;;  %8270 = vmatprep.subr.mxu0 %v8115_v46  ;;  %v8637_v14 = vld [vmem:[#allocation26 + $0x560] sm:$0xff]  ;;  %v8634_v37 = vld [vmem:[#allocation26 + $0x548] sm:$0xff] }
0x13aa   :  { %8200 = vmatpush1.msra.mxu1 %v8112_v15  ;;  %8271 = vmatpush1.msra.mxu0 %v8114_v34  ;;  %v8505_v46 = vld [vmem:[#allocation26 + $0x140] sm:$0xff]  ;;  %v8502_v34 = vld [vmem:[#allocation26 + $0x128] sm:$0xff] }
0x13ab   :  { %8201 = vmatprep.subr.mxu1 %v8105_v55  ;;  %8272 = vmatprep.subr.mxu0 %v8107_v31  ;;  %v8633_v15 = vld [vmem:[#allocation26 + $0x540] sm:$0xff]  ;;  %v8630_v55 = vld [vmem:[#allocation26 + $0x528] sm:$0xff] }
0x13ac   :  { %8202 = vmatpush1.msra.mxu1 %v8104_v13  ;;  %8273 = vmatpush1.msra.mxu0 %v8106_v51  ;;  %v8501_v31 = vld [vmem:[#allocation26 + $0x120] sm:$0xff]  ;;  %v8498_v13 = vld [vmem:[#allocation26 + $0x108] sm:$0xff] }
0x13ad   :  { %8203 = vmatprep.subr.mxu1 %v8097_v22  ;;  %8274 = vmatprep.subr.mxu0 %v8099_v50  ;;  %v8629_v63 = vld [vmem:[#allocation26 + $0x520] sm:$0xff]  ;;  %v8626_v51 = vld [vmem:[#allocation26 + $0x508] sm:$0xff] }
0x13ae   :  { %8204 = vmatpush1.msra.mxu1 %v8096_v24  ;;  %8237 = vmatprep.mubr.f32.mxu1 %v13820_v32  ;;  %v8497_v22 = vld [vmem:[#allocation26 + $0x100] sm:$0xff]  ;;  %v8494_v24 = vld [vmem:[#allocation26 + $0xe8] sm:$0xff] }
0x13af   :  { %8275 = vmatpush1.msra.mxu0 %v8098_v53  ;;  %8308 = vmatprep.mubr.f32.mxu0 %v13820_v32  ;;  %v8625_v50 = vld [vmem:[#allocation26 + $0x500] sm:$0xff]  ;;  %v8622_v53 = vld [vmem:[#allocation26 + $0x4e8] sm:$0xff] }
0x13b0   :  { %10733 = vmatmul.mubr.msk.f32.vlgmr.msra.gmra.mxu1 %vm396_vm0, %v8095_v25  ;;  %10734 = vmatmul.mubr.msk.f32.vlgmr.msra.gmra.mxu0 %vm396_vm0, %v8095_v25 }
0x13b1   :  { %8339 = vmatprep.subr.mxu1 %v8125_v56  ;;  %8410 = vmatprep.subr.mxu0 %v8127_v59  ;;  %v8621_v56 = vld [vmem:[#allocation26 + $0x4e0] sm:$0xff]  ;;  %v8490_v59 = vld [vmem:[#allocation26 + $0xc8] sm:$0xff] }
0x13b2   :  { %8340 = vmatpush1.msra.mxu1 %v8124_v9  ;;  %8411 = vmatpush1.msra.mxu0 %v8126_v4  ;;  %v8618_v9 = vld [vmem:[#allocation26 + $0x4c8] sm:$0xff]  ;;  %v8489_v4 = vld [vmem:[#allocation26 + $0xc0] sm:$0xff] }
0x13b3   :  { %8341 = vmatprep.subr.mxu1 %v8117_v19  ;;  %8412 = vmatprep.subr.mxu0 %v8119_v1  ;;  %v8617_v19 = vld [vmem:[#allocation26 + $0x4c0] sm:$0xff]  ;;  %v8486_v1 = vld [vmem:[#allocation26 + $0xa8] sm:$0xff] }
0x13b4   :  { %8342 = vmatpush1.msra.mxu1 %v8116_v26  ;;  %8413 = vmatpush1.msra.mxu0 %v8118_v5  ;;  %v8614_v26 = vld [vmem:[#allocation26 + $0x4a8] sm:$0xff]  ;;  %v8485_v5 = vld [vmem:[#allocation26 + $0xa0] sm:$0xff] }
0x13b5   :  { %8343 = vmatprep.subr.mxu1 %v8109_v33  ;;  %8414 = vmatprep.subr.mxu0 %v8111_v40  ;;  %v8613_v33 = vld [vmem:[#allocation26 + $0x4a0] sm:$0xff]  ;;  %v8482_v40 = vld [vmem:[#allocation26 + $0x88] sm:$0xff] }
0x13b6   :  { %8344 = vmatpush1.msra.mxu1 %v8108_v58  ;;  %8415 = vmatpush1.msra.mxu0 %v8110_v45  ;;  %v8610_v58 = vld [vmem:[#allocation26 + $0x488] sm:$0xff]  ;;  %v8481_v45 = vld [vmem:[#allocation26 + $0x80] sm:$0xff] }
0x13b7   :  { %8345 = vmatprep.subr.mxu1 %v8101_v36  ;;  %8379 = vmatprep.mubr.f32.mxu1 %v13820_v32  ;;  %v8609_v36 = vld [vmem:[#allocation26 + $0x480] sm:$0xff] }
0x13b8   :  { %8346 = vmatpush1.msra.mxu1 %v8100_v7  ;;  %8416 = vmatprep.subr.mxu0 %v8103_v27  ;;  %v8478_v7 = vld [vmem:[#allocation26 + $0x68] sm:$0xff] }
0x13b9   :  { %10735 = vmatmul.mubr.msk.f32.vlgmr.msra.gmra.mxu1 %vm396_vm0, %v8095_v25  ;;  %8417 = vmatpush1.msra.mxu0 %v8102_v11  ;;  %v8606_v27 = vld [vmem:[#allocation26 + $0x468] sm:$0xff]  ;;  %v8477_v11 = vld [vmem:[#allocation26 + $0x60] sm:$0xff] }
0x13ba   :  { %8450 = vmatprep.mubr.f32.mxu0 %v13820_v32  ;;  %8743 = vmatprep.subr.mxu1 %v8526_v38  ;;  %v8642_v32 = vld [vmem:[#allocation26 + $0x588] sm:$0xff]  ;;  %v8605_v38 = vld [vmem:[#allocation26 + $0x460] sm:$0xff] }
0x13bb   :  { %10736 = vmatmul.mubr.msk.f32.vlgmr.msra.gmra.mxu0 %vm396_vm0, %v8095_v25  ;;  %8814 = vmatprep.subr.mxu0 %v8654_v3  ;;  %v8493_v25 = vld [vmem:[#allocation26 + $0xe0] sm:$0xff]  ;;  %v8474_v3 = vld [vmem:[#allocation26 + $0x48] sm:$0xff] }
0x13bc   :  { %8744 = vmatpush1.msra.mxu1 %v8525_v17  ;;  %8815 = vmatpush1.msra.mxu0 %v8653_v8  ;;  %v8602_v17 = vld [vmem:[#allocation26 + $0x448] sm:$0xff]  ;;  %v8473_v8 = vld [vmem:[#allocation26 + $0x40] sm:$0xff] }
0x13bd   :  { %8745 = vmatprep.subr.mxu1 %v8522_v18  ;;  %8816 = vmatprep.subr.mxu0 %v8650_v44  ;;  %v8601_v18 = vld [vmem:[#allocation26 + $0x440] sm:$0xff]  ;;  %v8470_v44 = vld [vmem:[#allocation26 + $0x28] sm:$0xff] }
0x13be   :  { %8746 = vmatpush1.msra.mxu1 %v8521_v57  ;;  %8817 = vmatpush1.msra.mxu0 %v8649_v52  ;;  %v8598_v57 = vld [vmem:[#allocation26 + $0x428] sm:$0xff]  ;;  %v8469_v52 = vld [vmem:[#allocation26 + $0x20] sm:$0xff] }
0x13bf   :  { %8747 = vmatprep.subr.mxu1 %v8518_v0  ;;  %8818 = vmatprep.subr.mxu0 %v8646_v28  ;;  %v8597_v0 = vld [vmem:[#allocation26 + $0x420] sm:$0xff]  ;;  %v8466_v28 = vld [vmem:[#allocation26 + $0x8] sm:$0xff] }
0x13c0   :  { %8748 = vmatpush1.msra.mxu1 %v8517_v10  ;;  %8819 = vmatpush1.msra.mxu0 %v8645_v30  ;;  %v8594_v10 = vld [vmem:[#allocation26 + $0x408] sm:$0xff]  ;;  %v8465_v30 = vld [vmem:[#allocation26] sm:$0xff] }
0x13c1   :  { %8749 = vmatprep.subr.mxu1 %v8514_v20  ;;  %8820 = vmatprep.subr.mxu0 %v8642_v32  ;;  %v8593_v20 = vld [vmem:[#allocation26 + $0x400] sm:$0xff]  ;;  %v8590_v32 = vld [vmem:[#allocation26 + $0x3e8] sm:$0xff] }
0x13c2   :  { %8750 = vmatpush1.msra.mxu1 %v8513_v42  ;;  %8821 = vmatpush1.msra.mxu0 %v8641_v47  ;;  %v8718_v42 = vld [vmem:[#allocation26 + $0x7e8] sm:$0xff]  ;;  %v8589_v47 = vld [vmem:[#allocation26 + $0x3e0] sm:$0xff] }
0x13c3   :  { %8751 = vmatprep.subr.mxu1 %v8510_v61  ;;  %8822 = vmatprep.subr.mxu0 %v8638_v54  ;;  %v8717_v61 = vld [vmem:[#allocation26 + $0x7e0] sm:$0xff]  ;;  %v8586_v54 = vld [vmem:[#allocation26 + $0x3c8] sm:$0xff] }
0x13c4   :  { %8752 = vmatpush1.msra.mxu1 %v8509_v6  ;;  %8823 = vmatpush1.msra.mxu0 %v8637_v14  ;;  %v8714_v6 = vld [vmem:[#allocation26 + $0x7c8] sm:$0xff]  ;;  %v8585_v14 = vld [vmem:[#allocation26 + $0x3c0] sm:$0xff] }
0x13c5   :  { %8753 = vmatprep.subr.mxu1 %v8506_v16  ;;  %8824 = vmatprep.subr.mxu0 %v8634_v37  ;;  %v8713_v16 = vld [vmem:[#allocation26 + $0x7c0] sm:$0xff]  ;;  %v8582_v37 = vld [vmem:[#allocation26 + $0x3a8] sm:$0xff] }
0x13c6   :  { %8754 = vmatpush1.msra.mxu1 %v8505_v46  ;;  %8825 = vmatpush1.msra.mxu0 %v8633_v15  ;;  %v8710_v46 = vld [vmem:[#allocation26 + $0x7a8] sm:$0xff]  ;;  %v8581_v15 = vld [vmem:[#allocation26 + $0x3a0] sm:$0xff] }
0x13c7   :  { %8755 = vmatprep.subr.mxu1 %v8502_v34  ;;  %8826 = vmatprep.subr.mxu0 %v8630_v55  ;;  %v8709_v34 = vld [vmem:[#allocation26 + $0x7a0] sm:$0xff]  ;;  %v8578_v55 = vld [vmem:[#allocation26 + $0x388] sm:$0xff] }
0x13c8   :  { %8756 = vmatpush1.msra.mxu1 %v8501_v31  ;;  %8827 = vmatpush1.msra.mxu0 %v8629_v63  ;;  %v8706_v31 = vld [vmem:[#allocation26 + $0x788] sm:$0xff]  ;;  %v8577_v63 = vld [vmem:[#allocation26 + $0x380] sm:$0xff] }
0x13c9   :  { %8757 = vmatprep.subr.mxu1 %v8498_v13  ;;  %8828 = vmatprep.subr.mxu0 %v8626_v51  ;;  %v8705_v13 = vld [vmem:[#allocation26 + $0x780] sm:$0xff]  ;;  %v8574_v51 = vld [vmem:[#allocation26 + $0x368] sm:$0xff] }
0x13ca   :  { %8758 = vmatpush1.msra.mxu1 %v8497_v22  ;;  %8829 = vmatpush1.msra.mxu0 %v8625_v50  ;;  %v8702_v22 = vld [vmem:[#allocation26 + $0x768] sm:$0xff]  ;;  %v8573_v50 = vld [vmem:[#allocation26 + $0x360] sm:$0xff] }
0x13cb   :  { %8759 = vmatprep.subr.mxu1 %v8494_v24  ;;  %8830 = vmatprep.subr.mxu0 %v8622_v53  ;;  %v8701_v24 = vld [vmem:[#allocation26 + $0x760] sm:$0xff]  ;;  %v8570_v53 = vld [vmem:[#allocation26 + $0x348] sm:$0xff] }
0x13cc   :  { %8760 = vmatpush1.msra.mxu1 %v8493_v25  ;;  %8831 = vmatpush1.msra.mxu0 %v8621_v56  ;;  %v8698_v25 = vld [vmem:[#allocation26 + $0x748] sm:$0xff]  ;;  %v8569_v56 = vld [vmem:[#allocation26 + $0x340] sm:$0xff] }
0x13cd   :  { %8761 = vmatprep.subr.mxu1 %v8490_v59  ;;  %8832 = vmatprep.subr.mxu0 %v8618_v9  ;;  %v8697_v59 = vld [vmem:[#allocation26 + $0x740] sm:$0xff]  ;;  %v8566_v9 = vld [vmem:[#allocation26 + $0x328] sm:$0xff] }
0x13ce   :  { %8762 = vmatpush1.msra.mxu1 %v8489_v4  ;;  %8833 = vmatpush1.msra.mxu0 %v8617_v19  ;;  %v8694_v4 = vld [vmem:[#allocation26 + $0x728] sm:$0xff]  ;;  %v8565_v19 = vld [vmem:[#allocation26 + $0x320] sm:$0xff] }
0x13cf   :  { %8763 = vmatprep.subr.mxu1 %v8486_v1  ;;  %8834 = vmatprep.subr.mxu0 %v8614_v26  ;;  %v8693_v1 = vld [vmem:[#allocation26 + $0x720] sm:$0xff]  ;;  %v8562_v26 = vld [vmem:[#allocation26 + $0x308] sm:$0xff] }
0x13d0   :  { %8764 = vmatpush1.msra.mxu1 %v8485_v5  ;;  %8835 = vmatpush1.msra.mxu0 %v8613_v33  ;;  %v8690_v5 = vld [vmem:[#allocation26 + $0x708] sm:$0xff]  ;;  %v8561_v33 = vld [vmem:[#allocation26 + $0x300] sm:$0xff] }
0x13d1   :  { %8765 = vmatprep.subr.mxu1 %v8482_v40  ;;  %8836 = vmatprep.subr.mxu0 %v8610_v58  ;;  %v8689_v40 = vld [vmem:[#allocation26 + $0x700] sm:$0xff]  ;;  %v8558_v58 = vld [vmem:[#allocation26 + $0x2e8] sm:$0xff] }
0x13d2   :  { %8766 = vmatpush1.msra.mxu1 %v8481_v45  ;;  %8837 = vmatpush1.msra.mxu0 %v8609_v36  ;;  %v8686_v45 = vld [vmem:[#allocation26 + $0x6e8] sm:$0xff]  ;;  %v8557_v36 = vld [vmem:[#allocation26 + $0x2e0] sm:$0xff] }
0x13d3   :  { %8767 = vmatprep.subr.mxu1 %v8478_v7  ;;  %8838 = vmatprep.subr.mxu0 %v8606_v27  ;;  %v8685_v7 = vld [vmem:[#allocation26 + $0x6e0] sm:$0xff]  ;;  %v8554_v27 = vld [vmem:[#allocation26 + $0x2c8] sm:$0xff] }
0x13d4   :  { %8768 = vmatpush1.msra.mxu1 %v8477_v11  ;;  %8839 = vmatpush1.msra.mxu0 %v8605_v38  ;;  %v8682_v11 = vld [vmem:[#allocation26 + $0x6c8] sm:$0xff]  ;;  %v8553_v38 = vld [vmem:[#allocation26 + $0x2c0] sm:$0xff] }
0x13d5   :  { %8769 = vmatprep.subr.mxu1 %v8474_v3  ;;  %8840 = vmatprep.subr.mxu0 %v8602_v17  ;;  %v8681_v3 = vld [vmem:[#allocation26 + $0x6c0] sm:$0xff]  ;;  %v8550_v17 = vld [vmem:[#allocation26 + $0x2a8] sm:$0xff] }
0x13d6   :  { %8770 = vmatpush1.msra.mxu1 %v8473_v8  ;;  %8841 = vmatpush1.msra.mxu0 %v8601_v18  ;;  %v8678_v8 = vld [vmem:[#allocation26 + $0x6a8] sm:$0xff]  ;;  %v8549_v18 = vld [vmem:[#allocation26 + $0x2a0] sm:$0xff] }
0x13d7   :  { %8771 = vmatprep.subr.mxu1 %v8470_v44  ;;  %8842 = vmatprep.subr.mxu0 %v8598_v57  ;;  %v8677_v44 = vld [vmem:[#allocation26 + $0x6a0] sm:$0xff]  ;;  %v8546_v57 = vld [vmem:[#allocation26 + $0x288] sm:$0xff] }
0x13d8   :  { %8772 = vmatpush1.msra.mxu1 %v8469_v52  ;;  %8843 = vmatpush1.msra.mxu0 %v8597_v0  ;;  %v8674_v52 = vld [vmem:[#allocation26 + $0x688] sm:$0xff]  ;;  %v8545_v0 = vld [vmem:[#allocation26 + $0x280] sm:$0xff] }
0x13d9   :  { %8773 = vmatprep.subr.mxu1 %v8466_v28  ;;  %8844 = vmatprep.subr.mxu0 %v8594_v10  ;;  %v8673_v28 = vld [vmem:[#allocation26 + $0x680] sm:$0xff]  ;;  %v8542_v10 = vld [vmem:[#allocation26 + $0x268] sm:$0xff] }
0x13da   :  { %8774 = vmatpush1.msra.mxu1 %v8465_v30  ;;  %8845 = vmatpush1.msra.mxu0 %v8593_v20  ;;  %v8670_v30 = vld [vmem:[#allocation26 + $0x668] sm:$0xff]  ;;  %v8541_v20 = vld [vmem:[#allocation26 + $0x260] sm:$0xff] }
0x13db   :  { %8775 = vmatprep.subr.mxu1 %v8590_v32  ;;  %8846 = vmatprep.subr.mxu0 %v8718_v42  ;;  %v8669_v32 = vld [vmem:[#allocation26 + $0x660] sm:$0xff]  ;;  %v8538_v42 = vld [vmem:[#allocation26 + $0x248] sm:$0xff] }
0x13dc   :  { %8776 = vmatpush2.msra.mxu1 %v8589_v47  ;;  %8847 = vmatpush2.msra.mxu0 %v8717_v61  ;;  %v8666_v47 = vld [vmem:[#allocation26 + $0x648] sm:$0xff]  ;;  %v8537_v61 = vld [vmem:[#allocation26 + $0x240] sm:$0xff] }
0x13dd   :  { %8777 = vmatprep.subr.mxu1 %v8586_v54  ;;  %8848 = vmatprep.subr.mxu0 %v8714_v6  ;;  %v8665_v54 = vld [vmem:[#allocation26 + $0x640] sm:$0xff]  ;;  %v8534_v6 = vld [vmem:[#allocation26 + $0x228] sm:$0xff] }
0x13de   :  { %8778 = vmatpush2.msra.mxu1 %v8585_v14  ;;  %8849 = vmatpush2.msra.mxu0 %v8713_v16  ;;  %v8662_v14 = vld [vmem:[#allocation26 + $0x628] sm:$0xff]  ;;  %v8533_v16 = vld [vmem:[#allocation26 + $0x220] sm:$0xff] }
0x13df   :  { %8779 = vmatprep.subr.mxu1 %v8582_v37  ;;  %8850 = vmatprep.subr.mxu0 %v8710_v46  ;;  %v8661_v37 = vld [vmem:[#allocation26 + $0x620] sm:$0xff]  ;;  %v8530_v46 = vld [vmem:[#allocation26 + $0x208] sm:$0xff] }
0x13e0   :  { %8780 = vmatpush2.msra.mxu1 %v8581_v15  ;;  %8851 = vmatpush2.msra.mxu0 %v8709_v34  ;;  %v8658_v15 = vld [vmem:[#allocation26 + $0x608] sm:$0xff]  ;;  %v8529_v34 = vld [vmem:[#allocation26 + $0x200] sm:$0xff] }
0x13e1   :  { %8781 = vmatprep.subr.mxu1 %v8578_v55  ;;  %8852 = vmatprep.subr.mxu0 %v8706_v31  ;;  %v8657_v55 = vld [vmem:[#allocation26 + $0x600] sm:$0xff]  ;;  %v8528_v31 = vld [vmem:[#allocation26 + $0x1f8] sm:$0xff] }
0x13e2   :  { %8782 = vmatpush2.msra.mxu1 %v8577_v63  ;;  %8853 = vmatpush2.msra.mxu0 %v8705_v13  ;;  %v8656_v63 = vld [vmem:[#allocation26 + $0x5f8] sm:$0xff]  ;;  %v11337_v13 = vld [vmem:[#allocation22] sm:$0xf] }
0x13e3   :  { %8783 = vmatprep.subr.mxu1 %v8574_v51  ;;  %8854 = vmatprep.subr.mxu0 %v8702_v22  ;;  %v6087_v51 = vrot.slane %v11337_v13, %v13836_v21  ;;  %v8631_v13 = vld [vmem:[#allocation26 + $0x530] sm:$0xff] }
0x13e4   :  { %8784 = vmatpush2.msra.mxu1 %v8573_v50  ;;  %8855 = vmatpush2.msra.mxu0 %v8701_v24 }
0x13e5   :  { %8785 = vmatprep.subr.mxu1 %v8570_v53  ;;  %8856 = vmatprep.subr.mxu0 %v8698_v25  ;;  %v6095_v22 = vadd.f32 %v6087_v51, %v13139_v23  ;;  %v8500_v51 = vld [vmem:[#allocation26 + $0x118] sm:$0xff] }
0x13e6   :  { %8786 = vmatpush2.msra.mxu1 %v8569_v56  ;;  %8857 = vmatpush2.msra.mxu0 %v8697_v59  ;;  %v7799_v56 = vpop.f32.mrf.mxu1 }
0x13e7   :  { %8787 = vmatprep.subr.mxu1 %v8566_v9  ;;  %8858 = vmatprep.subr.mxu0 %v8694_v4  ;;  %v6380_v50 = vadd.f32 %v13159_v39, %v6095_v22  ;;  %v8628_v22 = vld [vmem:[#allocation26 + $0x518] sm:$0xff] }
0x13e8   :  { %8788 = vmatpush2.msra.mxu1 %v8565_v19  ;;  %8859 = vmatpush2.msra.mxu0 %v8693_v1 }
0x13e9   :  { %8789 = vmatprep.subr.mxu1 %v8562_v26  ;;  %8860 = vmatprep.subr.mxu0 %v8690_v5  ;;  %v6665_v24 = vadd.f32 %v13179_v41, %v6380_v50  ;;  %v8499_v50 = vld [vmem:[#allocation26 + $0x110] sm:$0xff] }
0x13ea   :  { %8790 = vmatpush2.msra.mxu1 %v8561_v33  ;;  %8861 = vmatpush2.msra.mxu0 %v8689_v40 }
0x13eb   :  { %8791 = vmatprep.subr.mxu1 %v8558_v58  ;;  %8862 = vmatprep.subr.mxu0 %v8686_v45  ;;  %v6950_v53 = vadd.f32 %v13199_v2, %v6665_v24  ;;  %v8627_v24 = vld [vmem:[#allocation26 + $0x510] sm:$0xff] }
0x13ec   :  { %8792 = vmatpush2.msra.mxu1 %v8557_v36  ;;  %8863 = vmatpush2.msra.mxu0 %v8685_v7 }
0x13ed   :  { %8793 = vmatprep.subr.mxu1 %v8554_v27  ;;  %8864 = vmatprep.subr.mxu0 %v8682_v11  ;;  %v7235_v25 = vadd.f32 %v13219_v43, %v6950_v53  ;;  %v13275_v43 = vld [vmem:[#allocation25] sm:$0xff] }
0x13ee   :  { %8794 = vmatpush2.msra.mxu1 %v8553_v38  ;;  %8865 = vmatpush2.msra.mxu0 %v8681_v3  ;;  %v8133_v5 = vrot.slane %v13275_v43, %v13828_v49  ;;  %v8496_v53 = vld [vmem:[#allocation26 + $0xf8] sm:$0xff] }
0x13ef   :  { %8795 = vmatprep.subr.mxu1 %v8550_v17  ;;  %8866 = vmatprep.subr.mxu0 %v8678_v8  ;;  %v7520_v59 = vadd.f32 %v13238_v60, %v7235_v25  ;;  %v8141_v60 = vrot.slane %v13275_v43, %v13829_v62  ;;  %v8527_v8 = vld [vmem:[#allocation26 + $0x1f0] sm:$0xff]  ;;  %v8624_v25 = vld [vmem:[#allocation26 + $0x4f8] sm:$0xff] }
0x13f0   :  { %8796 = vmatpush2.msra.mxu1 %v8549_v18  ;;  %8867 = vmatpush2.msra.mxu0 %v8677_v44  ;;  %v8655_v18 = vld [vmem:[#allocation26 + $0x5f0] sm:$0xff]  ;;  %v8524_v44 = vld [vmem:[#allocation26 + $0x1d8] sm:$0xff] }
0x13f1   :  { %8797 = vmatprep.subr.mxu1 %v8546_v57  ;;  %8868 = vmatprep.subr.mxu0 %v8674_v52  ;;  %v7805_v19 = vadd.f32 %v7799_v56, %v7520_v59  ;;  %v8652_v57 = vld [vmem:[#allocation26 + $0x5d8] sm:$0xff]  ;;  %v8523_v52 = vld [vmem:[#allocation26 + $0x1d0] sm:$0xff] }
0x13f2   :  { %8798 = vmatpush2.msra.mxu1 %v8545_v0  ;;  %8869 = vmatpush2.msra.mxu0 %v8673_v28  ;;  %v8651_v0 = vld [vmem:[#allocation26 + $0x5d0] sm:$0xff]  ;;  %v8520_v28 = vld [vmem:[#allocation26 + $0x1b8] sm:$0xff] }
0x13f3   :  { %8799 = vmatprep.subr.mxu1 %v8542_v10  ;;  %8870 = vmatprep.subr.mxu0 %v8670_v30  ;;  %v8648_v10 = vld [vmem:[#allocation26 + $0x5b8] sm:$0xff]  ;;  %v8519_v30 = vld [vmem:[#allocation26 + $0x1b0] sm:$0xff] }
0x13f4   :  { %8800 = vmatpush2.msra.mxu1 %v8541_v20  ;;  %8871 = vmatpush2.msra.mxu0 %v8669_v32  ;;  %v8647_v20 = vld [vmem:[#allocation26 + $0x5b0] sm:$0xff]  ;;  %v8516_v32 = vld [vmem:[#allocation26 + $0x198] sm:$0xff] }
0x13f5   :  { %8801 = vmatprep.subr.mxu1 %v8538_v42  ;;  %8872 = vmatprep.subr.mxu0 %v8666_v47  ;;  %v8644_v42 = vld [vmem:[#allocation26 + $0x598] sm:$0xff]  ;;  %v8515_v47 = vld [vmem:[#allocation26 + $0x190] sm:$0xff] }
0x13f6   :  { %8802 = vmatpush2.msra.mxu1 %v8537_v61  ;;  %8873 = vmatpush2.msra.mxu0 %v8665_v54  ;;  %v8643_v61 = vld [vmem:[#allocation26 + $0x590] sm:$0xff]  ;;  %v8512_v54 = vld [vmem:[#allocation26 + $0x178] sm:$0xff] }
0x13f7   :  { %8803 = vmatprep.subr.mxu1 %v8534_v6  ;;  %8874 = vmatprep.subr.mxu0 %v8662_v14  ;;  %v8640_v6 = vld [vmem:[#allocation26 + $0x578] sm:$0xff]  ;;  %v8511_v14 = vld [vmem:[#allocation26 + $0x170] sm:$0xff] }
0x13f8   :  { %8804 = vmatpush2.msra.mxu1 %v8533_v16  ;;  %8875 = vmatpush2.msra.mxu0 %v8661_v37  ;;  %v8639_v16 = vld [vmem:[#allocation26 + $0x570] sm:$0xff]  ;;  %v8508_v37 = vld [vmem:[#allocation26 + $0x158] sm:$0xff] }
0x13f9   :  { %8805 = vmatprep.subr.mxu1 %v8530_v46  ;;  %8876 = vmatprep.subr.mxu0 %v8658_v15  ;;  %v8636_v46 = vld [vmem:[#allocation26 + $0x558] sm:$0xff]  ;;  %v8507_v15 = vld [vmem:[#allocation26 + $0x150] sm:$0xff] }
0x13fa   :  { %8806 = vmatpush2.msra.mxu1 %v8529_v34  ;;  %8877 = vmatpush2.msra.mxu0 %v8657_v55  ;;  %v8635_v34 = vld [vmem:[#allocation26 + $0x550] sm:$0xff]  ;;  %v8504_v55 = vld [vmem:[#allocation26 + $0x138] sm:$0xff] }
0x13fb   :  { %8885 = vmatprep.subr.mxu1 %v8528_v31  ;;  %8956 = vmatprep.subr.mxu0 %v8656_v63  ;;  %v8632_v31 = vld [vmem:[#allocation26 + $0x538] sm:$0xff]  ;;  %v8503_v63 = vld [vmem:[#allocation26 + $0x130] sm:$0xff] }
0x13fc   :  { %v8495_v56 = vld [vmem:[#allocation26 + $0xf0] sm:$0xff] }
0x13fd   :  { %v8623_v59 = vld [vmem:[#allocation26 + $0x4f0] sm:$0xff] }
0x1467   :  { %v8011_v9 = vpop.f32.mrf.mxu1  ;;  %v8082_v4 = vpop.f32.mrf.mxu0 }
0x1468   :  { %v13265_v1 = vadd.f32 %v8011_v9, %v13241_v29  ;;  %v13268_v26 = vadd.f32 %v8082_v4, %v13244_v12  ;;  %v8137_v29 = vrot.slane %v13275_v43, %v13830_v35  ;;  %v8145_v12 = vrot.slane %v13275_v43, %v13836_v21  ;;  %v8492_v9 = vld [vmem:[#allocation26 + $0xd8] sm:$0xff] }
0x1469   :  { %v8013_v23 = vpop.f32.mrf.mxu1  ;;  %v8084_v39 = vpop.f32.mrf.mxu0  ;;  %v8620_v4 = vld [vmem:[#allocation26 + $0x4d8] sm:$0xff] }
0x146a   :  { %v13271_v41 = vadd.f32 %v8013_v23, %v13247_v48  ;;  %v13273_v2 = vadd.f32 %v8084_v39, %v7805_v19  ;;  %v8491_v19 = vld [vmem:[#allocation26 + $0xd0] sm:$0xff]  ;;  %v8488_v39 = vld [vmem:[#allocation26 + $0xb8] sm:$0xff] }
0x146b   :  { %v8619_v23 = vld [vmem:[#allocation26 + $0x4d0] sm:$0xff] }
0x1470   :  { %v8239_v33 = vpop.f32.mrf.mxu1  ;;  %v8310_v40 = vpop.f32.mrf.mxu0 }
0x1471   :  { %v13285_v48 = vadd.f32 %v8310_v40, %v8141_v60  ;;  %v13287_v58 = vadd.f32 %v8239_v33, %v8133_v5  ;;  %v8616_v60 = vld [vmem:[#allocation26 + $0x4b8] sm:$0xff]  ;;  %v8487_v5 = vld [vmem:[#allocation26 + $0xb0] sm:$0xff] }
0x1472   :  { %v8241_v45 = vpop.f32.mrf.mxu1  ;;  %v8312_v36 = vpop.f32.mrf.mxu0  ;;  %v8612_v33 = vld [vmem:[#allocation26 + $0x498] sm:$0xff]  ;;  %v8483_v40 = vld [vmem:[#allocation26 + $0x90] sm:$0xff] }
0x1473   :  { %v8242_v7 = vadd.f32 %v8241_v45, %v8137_v29  ;;  %v8313_v27 = vadd.f32 %v8312_v36, %v8145_v12  ;;  %v8459_v11 = vmax.f32 %v13285_v48, 0.0  ;;  %v8457_v17 = vmax.f32 %v13287_v58, 0.0  ;;  %v8615_v29 = vld [vmem:[#allocation26 + $0x4b0] sm:$0xff]  ;;  %v8484_v12 = vld [vmem:[#allocation26 + $0x98] sm:$0xff]  ;;  %v9079_v48 = vld [vmem:[#allocation29 + $0x180] sm:$0xff] }
0x1474   :  { %v8611_v45 = vld [vmem:[#allocation26 + $0x490] sm:$0xff]  ;;  %v8480_v36 = vld [vmem:[#allocation26 + $0x78] sm:$0xff] }
0x1475   :  { %v8458_v38 = vmax.f32 %v8242_v7, 0.0  ;;  %v8460_v3 = vmax.f32 %v8313_v27, 0.0  ;;  %v8608_v7 = vld [vmem:[#allocation26 + $0x478] sm:$0xff]  ;;  %v8479_v27 = vld [vmem:[#allocation26 + $0x70] sm:$0xff] }
0x1476   :  { %v9080_v58 = vld [vmem:[#allocation29 + $0x188] sm:$0xff] }
0x1477   :  { %8807 = vmatprep.mubr.f32.mxu1 %v8458_v38  ;;  %8878 = vmatprep.mubr.f32.mxu0 %v8460_v3 }
0x1478   :  { %8808 = vmatmul.mubr.f32.vlgmr.msra.gmra.mxu1 %v8457_v17  ;;  %8879 = vmatmul.mubr.f32.vlgmr.msra.gmra.mxu0 %v8459_v11 }
0x1479   :  { %8886 = vmatpush1.msra.mxu1 %v8527_v8  ;;  %8957 = vmatpush1.msra.mxu0 %v8655_v18  ;;  %v8604_v8 = vld [vmem:[#allocation26 + $0x458] sm:$0xff]  ;;  %v8475_v18 = vld [vmem:[#allocation26 + $0x50] sm:$0xff] }
0x147a   :  { %8887 = vmatprep.subr.mxu1 %v8524_v44  ;;  %8958 = vmatprep.subr.mxu0 %v8652_v57  ;;  %v8603_v44 = vld [vmem:[#allocation26 + $0x450] sm:$0xff]  ;;  %v8472_v57 = vld [vmem:[#allocation26 + $0x38] sm:$0xff] }
0x147b   :  { %8888 = vmatpush1.msra.mxu1 %v8523_v52  ;;  %8959 = vmatpush1.msra.mxu0 %v8651_v0  ;;  %v8600_v52 = vld [vmem:[#allocation26 + $0x438] sm:$0xff]  ;;  %v8471_v0 = vld [vmem:[#allocation26 + $0x30] sm:$0xff] }
0x147c   :  { %8889 = vmatprep.subr.mxu1 %v8520_v28  ;;  %8960 = vmatprep.subr.mxu0 %v8648_v10  ;;  %v8599_v28 = vld [vmem:[#allocation26 + $0x430] sm:$0xff]  ;;  %v8468_v10 = vld [vmem:[#allocation26 + $0x18] sm:$0xff] }
0x147d   :  { %8890 = vmatpush1.msra.mxu1 %v8519_v30  ;;  %8961 = vmatpush1.msra.mxu0 %v8647_v20  ;;  %v8596_v30 = vld [vmem:[#allocation26 + $0x418] sm:$0xff]  ;;  %v8467_v20 = vld [vmem:[#allocation26 + $0x10] sm:$0xff] }
0x147e   :  { %8891 = vmatprep.subr.mxu1 %v8516_v32  ;;  %8962 = vmatprep.subr.mxu0 %v8644_v42  ;;  %v8595_v32 = vld [vmem:[#allocation26 + $0x410] sm:$0xff]  ;;  %v8592_v42 = vld [vmem:[#allocation26 + $0x3f8] sm:$0xff] }
0x147f   :  { %8892 = vmatpush1.msra.mxu1 %v8515_v47  ;;  %8949 = vmatprep.mubr.f32.mxu1 %v8458_v38  ;;  %v8607_v38 = vld [vmem:[#allocation26 + $0x470] sm:$0xff]  ;;  %v8720_v47 = vld [vmem:[#allocation26 + $0x7f8] sm:$0xff] }
0x1480   :  { %8963 = vmatpush1.msra.mxu0 %v8643_v61  ;;  %8893 = vmatprep.subr.mxu1 %v8512_v54  ;;  %v8591_v61 = vld [vmem:[#allocation26 + $0x3f0] sm:$0xff] }
0x1481   :  { %8964 = vmatprep.subr.mxu0 %v8640_v6  ;;  %8894 = vmatpush1.msra.mxu1 %v8511_v14  ;;  %v8719_v54 = vld [vmem:[#allocation26 + $0x7f0] sm:$0xff]  ;;  %v8588_v6 = vld [vmem:[#allocation26 + $0x3d8] sm:$0xff] }
0x1482   :  { %8965 = vmatpush1.msra.mxu0 %v8639_v16  ;;  %9020 = vmatprep.mubr.f32.mxu0 %v8460_v3  ;;  %v8476_v3 = vld [vmem:[#allocation26 + $0x58] sm:$0xff]  ;;  %v8587_v16 = vld [vmem:[#allocation26 + $0x3d0] sm:$0xff] }
0x1483   :  { %8895 = vmatprep.subr.mxu1 %v8508_v37  ;;  %8966 = vmatprep.subr.mxu0 %v8636_v46  ;;  %v8716_v14 = vld [vmem:[#allocation26 + $0x7d8] sm:$0xff]  ;;  %v8715_v37 = vld [vmem:[#allocation26 + $0x7d0] sm:$0xff] }
0x1484   :  { %8896 = vmatpush1.msra.mxu1 %v8507_v15  ;;  %8967 = vmatpush1.msra.mxu0 %v8635_v34  ;;  %v8584_v46 = vld [vmem:[#allocation26 + $0x3b8] sm:$0xff]  ;;  %v8583_v34 = vld [vmem:[#allocation26 + $0x3b0] sm:$0xff] }
0x1485   :  { %8897 = vmatprep.subr.mxu1 %v8504_v55  ;;  %8968 = vmatprep.subr.mxu0 %v8632_v31  ;;  %v8712_v15 = vld [vmem:[#allocation26 + $0x7b8] sm:$0xff]  ;;  %v8711_v55 = vld [vmem:[#allocation26 + $0x7b0] sm:$0xff] }
0x1486   :  { %8898 = vmatpush1.msra.mxu1 %v8503_v63  ;;  %8969 = vmatpush1.msra.mxu0 %v8631_v13  ;;  %v8580_v31 = vld [vmem:[#allocation26 + $0x398] sm:$0xff]  ;;  %v8579_v13 = vld [vmem:[#allocation26 + $0x390] sm:$0xff] }
0x1487   :  { %8899 = vmatprep.subr.mxu1 %v8500_v51  ;;  %8970 = vmatprep.subr.mxu0 %v8628_v22  ;;  %v8708_v63 = vld [vmem:[#allocation26 + $0x798] sm:$0xff]  ;;  %v8707_v51 = vld [vmem:[#allocation26 + $0x790] sm:$0xff] }
0x1488   :  { %8900 = vmatpush1.msra.mxu1 %v8499_v50  ;;  %8971 = vmatpush1.msra.mxu0 %v8627_v24  ;;  %v8576_v22 = vld [vmem:[#allocation26 + $0x378] sm:$0xff]  ;;  %v8575_v24 = vld [vmem:[#allocation26 + $0x370] sm:$0xff] }
0x1489   :  { %8901 = vmatprep.subr.mxu1 %v8496_v53  ;;  %8972 = vmatprep.subr.mxu0 %v8624_v25  ;;  %v8704_v50 = vld [vmem:[#allocation26 + $0x778] sm:$0xff]  ;;  %v8703_v53 = vld [vmem:[#allocation26 + $0x770] sm:$0xff] }
0x148a   :  { %8902 = vmatpush1.msra.mxu1 %v8495_v56  ;;  %8973 = vmatpush1.msra.mxu0 %v8623_v59  ;;  %v8572_v25 = vld [vmem:[#allocation26 + $0x358] sm:$0xff]  ;;  %v8571_v59 = vld [vmem:[#allocation26 + $0x350] sm:$0xff] }
0x148b   :  { %8903 = vmatprep.subr.mxu1 %v8492_v9  ;;  %8974 = vmatprep.subr.mxu0 %v8620_v4  ;;  %v8700_v56 = vld [vmem:[#allocation26 + $0x758] sm:$0xff]  ;;  %v8699_v9 = vld [vmem:[#allocation26 + $0x750] sm:$0xff] }
0x148c   :  { %8904 = vmatpush1.msra.mxu1 %v8491_v19  ;;  %8975 = vmatpush1.msra.mxu0 %v8619_v23  ;;  %v8568_v4 = vld [vmem:[#allocation26 + $0x338] sm:$0xff]  ;;  %v8567_v23 = vld [vmem:[#allocation26 + $0x330] sm:$0xff] }
0x148d   :  { %8905 = vmatprep.subr.mxu1 %v8488_v39  ;;  %8976 = vmatprep.subr.mxu0 %v8616_v60  ;;  %v8696_v19 = vld [vmem:[#allocation26 + $0x738] sm:$0xff]  ;;  %v8695_v39 = vld [vmem:[#allocation26 + $0x730] sm:$0xff] }
0x148e   :  { %8906 = vmatpush1.msra.mxu1 %v8487_v5  ;;  %8977 = vmatpush1.msra.mxu0 %v8615_v29  ;;  %v8564_v60 = vld [vmem:[#allocation26 + $0x318] sm:$0xff]  ;;  %v8563_v29 = vld [vmem:[#allocation26 + $0x310] sm:$0xff] }
0x148f   :  { %8907 = vmatprep.subr.mxu1 %v8484_v12  ;;  %8978 = vmatprep.subr.mxu0 %v8612_v33  ;;  %v8692_v5 = vld [vmem:[#allocation26 + $0x718] sm:$0xff]  ;;  %v8691_v12 = vld [vmem:[#allocation26 + $0x710] sm:$0xff] }
0x1490   :  { %8908 = vmatpush1.msra.mxu1 %v8483_v40  ;;  %8979 = vmatpush1.msra.mxu0 %v8611_v45  ;;  %v8560_v33 = vld [vmem:[#allocation26 + $0x2f8] sm:$0xff]  ;;  %v8559_v45 = vld [vmem:[#allocation26 + $0x2f0] sm:$0xff] }
0x1491   :  { %8909 = vmatprep.subr.mxu1 %v8480_v36  ;;  %8980 = vmatprep.subr.mxu0 %v8608_v7  ;;  %v8688_v40 = vld [vmem:[#allocation26 + $0x6f8] sm:$0xff]  ;;  %v8687_v36 = vld [vmem:[#allocation26 + $0x6f0] sm:$0xff] }
0x1492   :  { %8910 = vmatpush1.msra.mxu1 %v8479_v27  ;;  %8981 = vmatpush1.msra.mxu0 %v8607_v38  ;;  %v8556_v7 = vld [vmem:[#allocation26 + $0x2d8] sm:$0xff]  ;;  %v8555_v38 = vld [vmem:[#allocation26 + $0x2d0] sm:$0xff] }
0x1493   :  { %8911 = vmatprep.subr.mxu1 %v8476_v3  ;;  %8982 = vmatprep.subr.mxu0 %v8604_v8  ;;  %v8684_v27 = vld [vmem:[#allocation26 + $0x6d8] sm:$0xff]  ;;  %v8683_v3 = vld [vmem:[#allocation26 + $0x6d0] sm:$0xff] }
0x1494   :  { %8912 = vmatpush1.msra.mxu1 %v8475_v18  ;;  %8983 = vmatpush1.msra.mxu0 %v8603_v44  ;;  %v8552_v8 = vld [vmem:[#allocation26 + $0x2b8] sm:$0xff]  ;;  %v8551_v44 = vld [vmem:[#allocation26 + $0x2b0] sm:$0xff] }
0x1495   :  { %8913 = vmatprep.subr.mxu1 %v8472_v57  ;;  %8984 = vmatprep.subr.mxu0 %v8600_v52  ;;  %v8680_v18 = vld [vmem:[#allocation26 + $0x6b8] sm:$0xff]  ;;  %v8679_v57 = vld [vmem:[#allocation26 + $0x6b0] sm:$0xff] }
0x1496   :  { %8914 = vmatpush1.msra.mxu1 %v8471_v0  ;;  %8985 = vmatpush1.msra.mxu0 %v8599_v28  ;;  %v8548_v52 = vld [vmem:[#allocation26 + $0x298] sm:$0xff]  ;;  %v8547_v28 = vld [vmem:[#allocation26 + $0x290] sm:$0xff] }
0x1497   :  { %8915 = vmatprep.subr.mxu1 %v8468_v10  ;;  %8986 = vmatprep.subr.mxu0 %v8596_v30  ;;  %v8676_v0 = vld [vmem:[#allocation26 + $0x698] sm:$0xff]  ;;  %v8675_v10 = vld [vmem:[#allocation26 + $0x690] sm:$0xff] }
0x1498   :  { %8916 = vmatpush1.msra.mxu1 %v8467_v20  ;;  %8987 = vmatpush1.msra.mxu0 %v8595_v32  ;;  %v8544_v30 = vld [vmem:[#allocation26 + $0x278] sm:$0xff]  ;;  %v8543_v32 = vld [vmem:[#allocation26 + $0x270] sm:$0xff] }
0x1499   :  { %8917 = vmatprep.subr.mxu1 %v8592_v42  ;;  %8988 = vmatprep.subr.mxu0 %v8720_v47  ;;  %v8672_v20 = vld [vmem:[#allocation26 + $0x678] sm:$0xff]  ;;  %v8671_v42 = vld [vmem:[#allocation26 + $0x670] sm:$0xff] }
0x149a   :  { %8918 = vmatpush2.msra.mxu1 %v8591_v61  ;;  %8989 = vmatpush2.msra.mxu0 %v8719_v54  ;;  %v8540_v47 = vld [vmem:[#allocation26 + $0x258] sm:$0xff]  ;;  %v8539_v54 = vld [vmem:[#allocation26 + $0x250] sm:$0xff] }
0x149b   :  { %8919 = vmatprep.subr.mxu1 %v8588_v6  ;;  %8990 = vmatprep.subr.mxu0 %v8716_v14  ;;  %v8668_v61 = vld [vmem:[#allocation26 + $0x658] sm:$0xff]  ;;  %v8667_v6 = vld [vmem:[#allocation26 + $0x650] sm:$0xff] }
0x149c   :  { %8920 = vmatpush2.msra.mxu1 %v8587_v16  ;;  %8991 = vmatpush2.msra.mxu0 %v8715_v37  ;;  %v8536_v14 = vld [vmem:[#allocation26 + $0x238] sm:$0xff]  ;;  %v8535_v37 = vld [vmem:[#allocation26 + $0x230] sm:$0xff] }
0x149d   :  { %8921 = vmatprep.subr.mxu1 %v8584_v46  ;;  %8992 = vmatprep.subr.mxu0 %v8712_v15  ;;  %v8664_v16 = vld [vmem:[#allocation26 + $0x638] sm:$0xff]  ;;  %v8663_v46 = vld [vmem:[#allocation26 + $0x630] sm:$0xff] }
0x149e   :  { %8922 = vmatpush2.msra.mxu1 %v8583_v34  ;;  %8993 = vmatpush2.msra.mxu0 %v8711_v55  ;;  %v8532_v15 = vld [vmem:[#allocation26 + $0x218] sm:$0xff]  ;;  %v8531_v55 = vld [vmem:[#allocation26 + $0x210] sm:$0xff] }
0x149f   :  { %8923 = vmatprep.subr.mxu1 %v8580_v31  ;;  %8994 = vmatprep.subr.mxu0 %v8708_v63  ;;  %v8660_v34 = vld [vmem:[#allocation26 + $0x618] sm:$0xff]  ;;  %v8659_v31 = vld [vmem:[#allocation26 + $0x610] sm:$0xff] }
0x14a0   :  { %8924 = vmatpush2.msra.mxu1 %v8579_v13  ;;  %8995 = vmatpush2.msra.mxu0 %v8707_v51  ;;  %v9092_v63 = vld [vmem:[#allocation29 + $0x1e8] sm:$0xff]  ;;  %v9091_v51 = vld [vmem:[#allocation29 + $0x1e0] sm:$0xff] }
0x14a1   :  { %8925 = vmatprep.subr.mxu1 %v8576_v22  ;;  %8996 = vmatprep.subr.mxu0 %v8704_v50  ;;  %v9220_v13 = vld [vmem:[#allocation29 + $0x5e8] sm:$0xff]  ;;  %v9219_v22 = vld [vmem:[#allocation29 + $0x5e0] sm:$0xff] }
0x14a2   :  { %8926 = vmatpush2.msra.mxu1 %v8575_v24  ;;  %8997 = vmatpush2.msra.mxu0 %v8703_v53  ;;  %v9088_v50 = vld [vmem:[#allocation29 + $0x1c8] sm:$0xff]  ;;  %v9087_v53 = vld [vmem:[#allocation29 + $0x1c0] sm:$0xff] }
0x14a3   :  { %8927 = vmatprep.subr.mxu1 %v8572_v25  ;;  %8998 = vmatprep.subr.mxu0 %v8700_v56  ;;  %v9216_v24 = vld [vmem:[#allocation29 + $0x5c8] sm:$0xff]  ;;  %v9215_v25 = vld [vmem:[#allocation29 + $0x5c0] sm:$0xff] }
0x14a4   :  { %8928 = vmatpush2.msra.mxu1 %v8571_v59  ;;  %8999 = vmatpush2.msra.mxu0 %v8699_v9  ;;  %v9084_v56 = vld [vmem:[#allocation29 + $0x1a8] sm:$0xff]  ;;  %v9083_v9 = vld [vmem:[#allocation29 + $0x1a0] sm:$0xff] }
0x14a5   :  { %8929 = vmatprep.subr.mxu1 %v8568_v4  ;;  %9000 = vmatprep.subr.mxu0 %v8696_v19  ;;  %v9212_v59 = vld [vmem:[#allocation29 + $0x5a8] sm:$0xff]  ;;  %v9211_v4 = vld [vmem:[#allocation29 + $0x5a0] sm:$0xff] }
0x14a6   :  { %8930 = vmatpush2.msra.mxu1 %v8567_v23  ;;  %9001 = vmatpush2.msra.mxu0 %v8695_v39  ;;  %v9076_v19 = vld [vmem:[#allocation29 + $0x168] sm:$0xff]  ;;  %v9075_v39 = vld [vmem:[#allocation29 + $0x160] sm:$0xff] }
0x14a7   :  { %8931 = vmatprep.subr.mxu1 %v8564_v60  ;;  %9002 = vmatprep.subr.mxu0 %v8692_v5  ;;  %v9204_v23 = vld [vmem:[#allocation29 + $0x568] sm:$0xff]  ;;  %v9203_v60 = vld [vmem:[#allocation29 + $0x560] sm:$0xff] }
0x14a8   :  { %8932 = vmatpush2.msra.mxu1 %v8563_v29  ;;  %9003 = vmatpush2.msra.mxu0 %v8691_v12  ;;  %v9072_v5 = vld [vmem:[#allocation29 + $0x148] sm:$0xff]  ;;  %v9071_v12 = vld [vmem:[#allocation29 + $0x140] sm:$0xff] }
0x14a9   :  { %8933 = vmatprep.subr.mxu1 %v8560_v33  ;;  %9004 = vmatprep.subr.mxu0 %v8688_v40  ;;  %v9200_v29 = vld [vmem:[#allocation29 + $0x548] sm:$0xff]  ;;  %v9199_v33 = vld [vmem:[#allocation29 + $0x540] sm:$0xff] }
0x14aa   :  { %8934 = vmatpush2.msra.mxu1 %v8559_v45  ;;  %9005 = vmatpush2.msra.mxu0 %v8687_v36  ;;  %v9068_v40 = vld [vmem:[#allocation29 + $0x128] sm:$0xff]  ;;  %v9067_v36 = vld [vmem:[#allocation29 + $0x120] sm:$0xff] }
0x14ab   :  { %8935 = vmatprep.subr.mxu1 %v8556_v7  ;;  %9006 = vmatprep.subr.mxu0 %v8684_v27  ;;  %v9196_v45 = vld [vmem:[#allocation29 + $0x528] sm:$0xff]  ;;  %v9195_v7 = vld [vmem:[#allocation29 + $0x520] sm:$0xff] }
0x14ac   :  { %8936 = vmatpush2.msra.mxu1 %v8555_v38  ;;  %9007 = vmatpush2.msra.mxu0 %v8683_v3  ;;  %v9064_v27 = vld [vmem:[#allocation29 + $0x108] sm:$0xff]  ;;  %v9063_v3 = vld [vmem:[#allocation29 + $0x100] sm:$0xff] }
0x14ad   :  { %8937 = vmatprep.subr.mxu1 %v8552_v8  ;;  %9008 = vmatprep.subr.mxu0 %v8680_v18  ;;  %v9192_v38 = vld [vmem:[#allocation29 + $0x508] sm:$0xff]  ;;  %v9191_v8 = vld [vmem:[#allocation29 + $0x500] sm:$0xff] }
0x14ae   :  { %8938 = vmatpush2.msra.mxu1 %v8551_v44  ;;  %9009 = vmatpush2.msra.mxu0 %v8679_v57  ;;  %v9060_v18 = vld [vmem:[#allocation29 + $0xe8] sm:$0xff]  ;;  %v9059_v57 = vld [vmem:[#allocation29 + $0xe0] sm:$0xff] }
0x14af   :  { %8939 = vmatprep.subr.mxu1 %v8548_v52  ;;  %9010 = vmatprep.subr.mxu0 %v8676_v0  ;;  %v9188_v44 = vld [vmem:[#allocation29 + $0x4e8] sm:$0xff]  ;;  %v9187_v52 = vld [vmem:[#allocation29 + $0x4e0] sm:$0xff] }
0x14b0   :  { %8940 = vmatpush2.msra.mxu1 %v8547_v28  ;;  %9011 = vmatpush2.msra.mxu0 %v8675_v10  ;;  %v9056_v0 = vld [vmem:[#allocation29 + $0xc8] sm:$0xff]  ;;  %v9055_v10 = vld [vmem:[#allocation29 + $0xc0] sm:$0xff] }
0x14b1   :  { %8941 = vmatprep.subr.mxu1 %v8544_v30  ;;  %9012 = vmatprep.subr.mxu0 %v8672_v20  ;;  %v9184_v28 = vld [vmem:[#allocation29 + $0x4c8] sm:$0xff]  ;;  %v9183_v30 = vld [vmem:[#allocation29 + $0x4c0] sm:$0xff] }
0x14b2   :  { %8942 = vmatpush2.msra.mxu1 %v8543_v32  ;;  %9013 = vmatpush2.msra.mxu0 %v8671_v42  ;;  %v9052_v20 = vld [vmem:[#allocation29 + $0xa8] sm:$0xff]  ;;  %v9051_v42 = vld [vmem:[#allocation29 + $0xa0] sm:$0xff] }
0x14b3   :  { %8943 = vmatprep.subr.mxu1 %v8540_v47  ;;  %9014 = vmatprep.subr.mxu0 %v8668_v61  ;;  %v9180_v32 = vld [vmem:[#allocation29 + $0x4a8] sm:$0xff]  ;;  %v9179_v47 = vld [vmem:[#allocation29 + $0x4a0] sm:$0xff] }
0x14b4   :  { %8944 = vmatpush2.msra.mxu1 %v8539_v54  ;;  %9015 = vmatpush2.msra.mxu0 %v8667_v6  ;;  %v9048_v61 = vld [vmem:[#allocation29 + $0x88] sm:$0xff]  ;;  %v9047_v6 = vld [vmem:[#allocation29 + $0x80] sm:$0xff] }
0x14b5   :  { %8945 = vmatprep.subr.mxu1 %v8536_v14  ;;  %9016 = vmatprep.subr.mxu0 %v8664_v16  ;;  %v9176_v54 = vld [vmem:[#allocation29 + $0x488] sm:$0xff]  ;;  %v9175_v14 = vld [vmem:[#allocation29 + $0x480] sm:$0xff] }
0x14b6   :  { %8946 = vmatpush2.msra.mxu1 %v8535_v37  ;;  %9017 = vmatpush2.msra.mxu0 %v8663_v46  ;;  %v9044_v16 = vld [vmem:[#allocation29 + $0x68] sm:$0xff]  ;;  %v9043_v46 = vld [vmem:[#allocation29 + $0x60] sm:$0xff] }
0x14b7   :  { %8947 = vmatprep.subr.mxu1 %v8532_v15  ;;  %9018 = vmatprep.subr.mxu0 %v8660_v34  ;;  %v9172_v37 = vld [vmem:[#allocation29 + $0x468] sm:$0xff]  ;;  %v9171_v15 = vld [vmem:[#allocation29 + $0x460] sm:$0xff] }
0x14b8   :  { %8948 = vmatpush2.msra.mxu1 %v8531_v55  ;;  %9019 = vmatpush2.msra.mxu0 %v8659_v31  ;;  %v9040_v34 = vld [vmem:[#allocation29 + $0x48] sm:$0xff]  ;;  %v9039_v31 = vld [vmem:[#allocation29 + $0x40] sm:$0xff] }
0x14b9   :  { %8950 = vmatmul.mubr.f32.vlgmr.msra.gmra.mxu1 %v8457_v17  ;;  %9021 = vmatmul.mubr.f32.vlgmr.msra.gmra.mxu0 %v8459_v11  ;;  %v9208_v17 = vld [vmem:[#allocation29 + $0x588] sm:$0xff]  ;;  %v9207_v11 = vld [vmem:[#allocation29 + $0x580] sm:$0xff] }
0x14ba   :  { %9309 = vmatprep.subr.mxu1 %v9092_v63  ;;  %9380 = vmatprep.subr.mxu0 %v9220_v13  ;;  %v9168_v55 = vld [vmem:[#allocation29 + $0x448] sm:$0xff]  ;;  %v9167_v63 = vld [vmem:[#allocation29 + $0x440] sm:$0xff] }
0x14bb   :  { %9310 = vmatpush1.msra.mxu1 %v9091_v51  ;;  %9381 = vmatpush1.msra.mxu0 %v9219_v22  ;;  %v9036_v13 = vld [vmem:[#allocation29 + $0x28] sm:$0xff]  ;;  %v9035_v22 = vld [vmem:[#allocation29 + $0x20] sm:$0xff] }
0x14bc   :  { %9311 = vmatprep.subr.mxu1 %v9088_v50  ;;  %9382 = vmatprep.subr.mxu0 %v9216_v24  ;;  %v9164_v51 = vld [vmem:[#allocation29 + $0x428] sm:$0xff]  ;;  %v9163_v50 = vld [vmem:[#allocation29 + $0x420] sm:$0xff] }
0x14bd   :  { %9312 = vmatpush1.msra.mxu1 %v9087_v53  ;;  %9383 = vmatpush1.msra.mxu0 %v9215_v25  ;;  %v9032_v24 = vld [vmem:[#allocation29 + $0x8] sm:$0xff]  ;;  %v9031_v25 = vld [vmem:[#allocation29] sm:$0xff] }
0x14be   :  { %9313 = vmatprep.subr.mxu1 %v9084_v56  ;;  %9384 = vmatprep.subr.mxu0 %v9212_v59  ;;  %v9160_v53 = vld [vmem:[#allocation29 + $0x408] sm:$0xff]  ;;  %v9159_v56 = vld [vmem:[#allocation29 + $0x400] sm:$0xff] }
0x14bf   :  { %9314 = vmatpush1.msra.mxu1 %v9083_v9  ;;  %9385 = vmatpush1.msra.mxu0 %v9211_v4  ;;  %v9156_v59 = vld [vmem:[#allocation29 + $0x3e8] sm:$0xff]  ;;  %v9155_v4 = vld [vmem:[#allocation29 + $0x3e0] sm:$0xff] }
0x14c0   :  { %9315 = vmatprep.subr.mxu1 %v9080_v58  ;;  %9386 = vmatprep.subr.mxu0 %v9208_v17  ;;  %v9284_v9 = vld [vmem:[#allocation29 + $0x7e8] sm:$0xff]  ;;  %v9283_v58 = vld [vmem:[#allocation29 + $0x7e0] sm:$0xff] }
0x14c1   :  { %9316 = vmatpush1.msra.mxu1 %v9079_v48  ;;  %9387 = vmatpush1.msra.mxu0 %v9207_v11  ;;  %v9152_v17 = vld [vmem:[#allocation29 + $0x3c8] sm:$0xff]  ;;  %v9151_v11 = vld [vmem:[#allocation29 + $0x3c0] sm:$0xff] }
0x14c2   :  { %9317 = vmatprep.subr.mxu1 %v9076_v19  ;;  %9388 = vmatprep.subr.mxu0 %v9204_v23  ;;  %v9280_v48 = vld [vmem:[#allocation29 + $0x7c8] sm:$0xff]  ;;  %v9279_v19 = vld [vmem:[#allocation29 + $0x7c0] sm:$0xff] }
0x14c3   :  { %9318 = vmatpush1.msra.mxu1 %v9075_v39  ;;  %9389 = vmatpush1.msra.mxu0 %v9203_v60  ;;  %v9148_v23 = vld [vmem:[#allocation29 + $0x3a8] sm:$0xff]  ;;  %v9147_v60 = vld [vmem:[#allocation29 + $0x3a0] sm:$0xff] }
0x14c4   :  { %9319 = vmatprep.subr.mxu1 %v9072_v5  ;;  %9390 = vmatprep.subr.mxu0 %v9200_v29  ;;  %v9276_v39 = vld [vmem:[#allocation29 + $0x7a8] sm:$0xff]  ;;  %v9275_v5 = vld [vmem:[#allocation29 + $0x7a0] sm:$0xff] }
0x14c5   :  { %9320 = vmatpush1.msra.mxu1 %v9071_v12  ;;  %9391 = vmatpush1.msra.mxu0 %v9199_v33  ;;  %v9144_v29 = vld [vmem:[#allocation29 + $0x388] sm:$0xff]  ;;  %v9143_v33 = vld [vmem:[#allocation29 + $0x380] sm:$0xff] }
0x14c6   :  { %9321 = vmatprep.subr.mxu1 %v9068_v40  ;;  %9392 = vmatprep.subr.mxu0 %v9196_v45  ;;  %v9272_v12 = vld [vmem:[#allocation29 + $0x788] sm:$0xff]  ;;  %v9271_v40 = vld [vmem:[#allocation29 + $0x780] sm:$0xff] }
0x14c7   :  { %9322 = vmatpush1.msra.mxu1 %v9067_v36  ;;  %9393 = vmatpush1.msra.mxu0 %v9195_v7  ;;  %v9140_v45 = vld [vmem:[#allocation29 + $0x368] sm:$0xff]  ;;  %v9139_v7 = vld [vmem:[#allocation29 + $0x360] sm:$0xff] }
0x14c8   :  { %9323 = vmatprep.subr.mxu1 %v9064_v27  ;;  %9394 = vmatprep.subr.mxu0 %v9192_v38  ;;  %v9268_v36 = vld [vmem:[#allocation29 + $0x768] sm:$0xff]  ;;  %v9267_v27 = vld [vmem:[#allocation29 + $0x760] sm:$0xff] }
0x14c9   :  { %9324 = vmatpush1.msra.mxu1 %v9063_v3  ;;  %9395 = vmatpush1.msra.mxu0 %v9191_v8  ;;  %v9136_v38 = vld [vmem:[#allocation29 + $0x348] sm:$0xff]  ;;  %v9135_v8 = vld [vmem:[#allocation29 + $0x340] sm:$0xff] }
0x14ca   :  { %9325 = vmatprep.subr.mxu1 %v9060_v18  ;;  %9396 = vmatprep.subr.mxu0 %v9188_v44  ;;  %v9264_v3 = vld [vmem:[#allocation29 + $0x748] sm:$0xff]  ;;  %v9263_v18 = vld [vmem:[#allocation29 + $0x740] sm:$0xff] }
0x14cb   :  { %9326 = vmatpush1.msra.mxu1 %v9059_v57  ;;  %9397 = vmatpush1.msra.mxu0 %v9187_v52  ;;  %v9132_v44 = vld [vmem:[#allocation29 + $0x328] sm:$0xff]  ;;  %v9131_v52 = vld [vmem:[#allocation29 + $0x320] sm:$0xff] }
0x14cc   :  { %9327 = vmatprep.subr.mxu1 %v9056_v0  ;;  %9398 = vmatprep.subr.mxu0 %v9184_v28  ;;  %v9260_v57 = vld [vmem:[#allocation29 + $0x728] sm:$0xff]  ;;  %v9259_v0 = vld [vmem:[#allocation29 + $0x720] sm:$0xff] }
0x14cd   :  { %9328 = vmatpush1.msra.mxu1 %v9055_v10  ;;  %9399 = vmatpush1.msra.mxu0 %v9183_v30  ;;  %v9128_v28 = vld [vmem:[#allocation29 + $0x308] sm:$0xff]  ;;  %v9127_v30 = vld [vmem:[#allocation29 + $0x300] sm:$0xff] }
0x14ce   :  { %9329 = vmatprep.subr.mxu1 %v9052_v20  ;;  %9400 = vmatprep.subr.mxu0 %v9180_v32  ;;  %v9256_v10 = vld [vmem:[#allocation29 + $0x708] sm:$0xff]  ;;  %v9255_v20 = vld [vmem:[#allocation29 + $0x700] sm:$0xff] }
0x14cf   :  { %9330 = vmatpush1.msra.mxu1 %v9051_v42  ;;  %9401 = vmatpush1.msra.mxu0 %v9179_v47  ;;  %v9124_v32 = vld [vmem:[#allocation29 + $0x2e8] sm:$0xff]  ;;  %v9123_v47 = vld [vmem:[#allocation29 + $0x2e0] sm:$0xff] }
0x14d0   :  { %9331 = vmatprep.subr.mxu1 %v9048_v61  ;;  %9402 = vmatprep.subr.mxu0 %v9176_v54  ;;  %v9252_v42 = vld [vmem:[#allocation29 + $0x6e8] sm:$0xff]  ;;  %v9251_v61 = vld [vmem:[#allocation29 + $0x6e0] sm:$0xff] }
0x14d1   :  { %9332 = vmatpush1.msra.mxu1 %v9047_v6  ;;  %9403 = vmatpush1.msra.mxu0 %v9175_v14  ;;  %v9120_v54 = vld [vmem:[#allocation29 + $0x2c8] sm:$0xff] }
0x14d2   :  { %9333 = vmatprep.subr.mxu1 %v9044_v16  ;;  %9404 = vmatprep.subr.mxu0 %v9172_v37  ;;  %v9248_v6 = vld [vmem:[#allocation29 + $0x6c8] sm:$0xff]  ;;  %v9119_v37 = vld [vmem:[#allocation29 + $0x2c0] sm:$0xff] }
0x14d3   :  { %9334 = vmatpush1.msra.mxu1 %v9043_v46  ;;  %9405 = vmatpush1.msra.mxu0 %v9171_v15  ;;  %v13839_v14 = vld [vmem:[#allocation55_spill] sm:$0xff]  ;;  %v9247_v46 = vld [vmem:[#allocation29 + $0x6c0] sm:$0xff]  ;;  %v8381_v15 = vpop.f32.mrf.mxu1 }
0x14d4   :  { %9335 = vmatprep.subr.mxu1 %v9040_v34  ;;  %9406 = vmatprep.subr.mxu0 %v9168_v55  ;;  %v8152_v16 = vsub.s32 5, %v13839_v14  ;;  %v9116_v34 = vld [vmem:[#allocation29 + $0x2a8] sm:$0xff] }
0x14d5   :  { %9336 = vmatpush1.msra.mxu1 %v9039_v31  ;;  %9407 = vmatpush1.msra.mxu0 %v9167_v63  ;;  %v9244_v55 = vld [vmem:[#allocation29 + $0x6a8] sm:$0xff]  ;;  %v8160_v31 = vsub.s32 7, %v13839_v14  ;;  %v9115_v63 = vld [vmem:[#allocation29 + $0x2a0] sm:$0xff] }
0x14d6   :  { %9337 = vmatprep.subr.mxu1 %v9036_v13  ;;  %9408 = vmatprep.subr.mxu0 %v9164_v51  ;;  %v9243_v13 = vld [vmem:[#allocation29 + $0x6a0] sm:$0xff]  ;;  %v8148_v51 = vsub.s32 4, %v13839_v14 }
0x14d7   :  { %9338 = vmatpush1.msra.mxu1 %v9035_v22  ;;  %9409 = vmatpush1.msra.mxu0 %v9163_v50  ;;  %v8156_v22 = vsub.s32 6, %v13839_v14  ;;  %v8452_v50 = vpop.f32.mrf.mxu0  ;;  %v9214_v14 = vld [vmem:[#allocation29 + $0x5b8] sm:$0xff] }
0x14d8   :  { %9339 = vmatprep.subr.mxu1 %v9032_v24  ;;  %9410 = vmatprep.subr.mxu0 %v9160_v53  ;;  %v9112_v24 = vld [vmem:[#allocation29 + $0x288] sm:$0xff] }
0x14d9   :  { %9340 = vmatpush1.msra.mxu1 %v9031_v25  ;;  %9411 = vmatpush1.msra.mxu0 %v9159_v56  ;;  %v9240_v53 = vld [vmem:[#allocation29 + $0x688] sm:$0xff]  ;;  %v8153_v25 = vrot.slane %v13275_v43, %v8152_v16  ;;  %v9111_v56 = vld [vmem:[#allocation29 + $0x280] sm:$0xff]  ;;  %v9085_v16 = vld [vmem:[#allocation29 + $0x1b0] sm:$0xff] }
0x14da   :  { %9341 = vmatprep.subr.mxu1 %v9156_v59  ;;  %9412 = vmatprep.subr.mxu0 %v9284_v9  ;;  %v9239_v59 = vld [vmem:[#allocation29 + $0x680] sm:$0xff]  ;;  %v8383_v9 = vpop.f32.mrf.mxu1 }
0x14db   :  { %9342 = vmatpush2.msra.mxu1 %v9155_v4  ;;  %9413 = vmatpush2.msra.mxu0 %v9283_v58  ;;  %v9108_v4 = vld [vmem:[#allocation29 + $0x268] sm:$0xff] }
0x14dc   :  { %9343 = vmatprep.subr.mxu1 %v9152_v17  ;;  %9414 = vmatprep.subr.mxu0 %v9280_v48  ;;  %v9236_v58 = vld [vmem:[#allocation29 + $0x668] sm:$0xff]  ;;  %v8161_v17 = vrot.slane %v13275_v43, %v8160_v31  ;;  %v8149_v48 = vrot.slane %v13275_v43, %v8148_v51  ;;  %v9078_v31 = vld [vmem:[#allocation29 + $0x178] sm:$0xff]  ;;  %v9205_v51 = vld [vmem:[#allocation29 + $0x570] sm:$0xff] }
0x14dd   :  { %9344 = vmatpush2.msra.mxu1 %v9151_v11  ;;  %9415 = vmatpush2.msra.mxu0 %v9279_v19  ;;  %v8157_v11 = vrot.slane %v13275_v43, %v8156_v22  ;;  %v9107_v19 = vld [vmem:[#allocation29 + $0x260] sm:$0xff]  ;;  %v9074_v22 = vld [vmem:[#allocation29 + $0x158] sm:$0xff] }
0x14de   :  { %9345 = vmatprep.subr.mxu1 %v9148_v23  ;;  %9416 = vmatprep.subr.mxu0 %v9276_v39  ;;  %v9235_v23 = vld [vmem:[#allocation29 + $0x660] sm:$0xff]  ;;  %v8454_v39 = vpop.f32.mrf.mxu0  ;;  %v13311_v43 = vadd.f32 %v8381_v15, %v8149_v48  ;;  %v9210_v15 = vld [vmem:[#allocation29 + $0x598] sm:$0xff]  ;;  %v9193_v48 = vld [vmem:[#allocation29 + $0x510] sm:$0xff] }
0x14df   :  { %9346 = vmatpush2.msra.mxu1 %v9147_v60  ;;  %9417 = vmatpush2.msra.mxu0 %v9275_v5  ;;  %v13307_v60 = vadd.f32 %v8383_v9, %v8153_v25  ;;  %v9104_v5 = vld [vmem:[#allocation29 + $0x248] sm:$0xff]  ;;  %v9070_v25 = vld [vmem:[#allocation29 + $0x138] sm:$0xff]  ;;  %v9197_v9 = vld [vmem:[#allocation29 + $0x530] sm:$0xff] }
0x14e0   :  { %9347 = vmatprep.subr.mxu1 %v9144_v29  ;;  %9418 = vmatprep.subr.mxu0 %v9272_v12  ;;  %v9232_v29 = vld [vmem:[#allocation29 + $0x648] sm:$0xff]  ;;  %v9103_v12 = vld [vmem:[#allocation29 + $0x240] sm:$0xff] }
0x14e1   :  { %9348 = vmatpush2.msra.mxu1 %v9143_v33  ;;  %9419 = vmatpush2.msra.mxu0 %v9271_v40  ;;  %v9231_v33 = vld [vmem:[#allocation29 + $0x640] sm:$0xff]  ;;  %v13309_v40 = vadd.f32 %v8454_v39, %v8161_v17  ;;  %v9065_v17 = vld [vmem:[#allocation29 + $0x110] sm:$0xff] }
0x14e2   :  { %9349 = vmatprep.subr.mxu1 %v9140_v45  ;;  %9420 = vmatprep.subr.mxu0 %v9268_v36  ;;  %v9100_v45 = vld [vmem:[#allocation29 + $0x228] sm:$0xff]  ;;  %v9189_v39 = vld [vmem:[#allocation29 + $0x4f0] sm:$0xff] }
0x14e3   :  { %9350 = vmatpush2.msra.mxu1 %v9139_v7  ;;  %9421 = vmatpush2.msra.mxu0 %v9267_v27  ;;  %v9228_v36 = vld [vmem:[#allocation29 + $0x628] sm:$0xff]  ;;  %v13313_v7 = vadd.f32 %v8452_v50, %v8157_v11  ;;  %v9099_v27 = vld [vmem:[#allocation29 + $0x220] sm:$0xff]  ;;  %v9202_v50 = vld [vmem:[#allocation29 + $0x558] sm:$0xff] }
0x14e4   :  { %9351 = vmatprep.subr.mxu1 %v9136_v38  ;;  %9422 = vmatprep.subr.mxu0 %v9264_v3  ;;  %v9227_v38 = vld [vmem:[#allocation29 + $0x620] sm:$0xff]  ;;  %v8462_v3 = vmax.f32 %v13307_v60, 0.0  ;;  %v9062_v11 = vld [vmem:[#allocation29 + $0xf8] sm:$0xff] }
0x14e5   :  { %9352 = vmatpush2.msra.mxu1 %v9135_v8  ;;  %9423 = vmatpush2.msra.mxu0 %v9263_v18  ;;  %v9096_v8 = vld [vmem:[#allocation29 + $0x208] sm:$0xff]  ;;  %v9058_v60 = vld [vmem:[#allocation29 + $0xd8] sm:$0xff] }
0x14e6   :  { %9353 = vmatprep.subr.mxu1 %v9132_v44  ;;  %9424 = vmatprep.subr.mxu0 %v9260_v57  ;;  %v9224_v18 = vld [vmem:[#allocation29 + $0x608] sm:$0xff]  ;;  %v9095_v44 = vld [vmem:[#allocation29 + $0x200] sm:$0xff]  ;;  %v8464_v57 = vmax.f32 %v13309_v40, 0.0  ;;  %v9182_v40 = vld [vmem:[#allocation29 + $0x4b8] sm:$0xff] }
0x14e7   :  { %9354 = vmatpush2.msra.mxu1 %v9131_v52  ;;  %9425 = vmatpush2.msra.mxu0 %v9259_v0  ;;  %v9223_v52 = vld [vmem:[#allocation29 + $0x600] sm:$0xff]  ;;  %v8461_v0 = vmax.f32 %v13311_v43, 0.0  ;;  %v9622_v43 = vld [vmem:[#allocation32 + $0xc8] sm:$0xff] }
0x14e8   :  { %9355 = vmatprep.subr.mxu1 %v9128_v28  ;;  %9426 = vmatprep.subr.mxu0 %v9256_v10  ;;  %v8463_v28 = vmax.f32 %v13313_v7, 0.0  ;;  %v9094_v10 = vld [vmem:[#allocation29 + $0x1f8] sm:$0xff] }
0x14e9   :  { %9356 = vmatpush2.msra.mxu1 %v9127_v30  ;;  %9427 = vmatpush2.msra.mxu0 %v9255_v20  ;;  %v9222_v30 = vld [vmem:[#allocation29 + $0x5f8] sm:$0xff]  ;;  %v9093_v20 = vld [vmem:[#allocation29 + $0x1f0] sm:$0xff] }
0x14ea   :  { %9357 = vmatprep.subr.mxu1 %v9124_v32  ;;  %9428 = vmatprep.subr.mxu0 %v9252_v42  ;;  %v9221_v32 = vld [vmem:[#allocation29 + $0x5f0] sm:$0xff]  ;;  %v9090_v42 = vld [vmem:[#allocation29 + $0x1d8] sm:$0xff] }
0x14eb   :  { %9358 = vmatpush2.msra.mxu1 %v9123_v47  ;;  %9429 = vmatpush2.msra.mxu0 %v9251_v61  ;;  %v9218_v47 = vld [vmem:[#allocation29 + $0x5d8] sm:$0xff]  ;;  %v9089_v61 = vld [vmem:[#allocation29 + $0x1d0] sm:$0xff] }
0x14ec   :  { %9359 = vmatprep.subr.mxu1 %v9120_v54  ;;  %9430 = vmatprep.subr.mxu0 %v9248_v6  ;;  %v9217_v54 = vld [vmem:[#allocation29 + $0x5d0] sm:$0xff]  ;;  %v9086_v6 = vld [vmem:[#allocation29 + $0x1b8] sm:$0xff] }
0x14ed   :  { %9360 = vmatpush2.msra.mxu1 %v9119_v37  ;;  %9431 = vmatpush2.msra.mxu0 %v9247_v46  ;;  %v9213_v37 = vld [vmem:[#allocation29 + $0x5b0] sm:$0xff]  ;;  %v9082_v46 = vld [vmem:[#allocation29 + $0x198] sm:$0xff] }
0x14ee   :  { %9361 = vmatprep.subr.mxu1 %v9116_v34  ;;  %9432 = vmatprep.subr.mxu0 %v9244_v55  ;;  %v9081_v34 = vld [vmem:[#allocation29 + $0x190] sm:$0xff] }
0x14ef   :  { %9362 = vmatpush2.msra.mxu1 %v9115_v63  ;;  %9433 = vmatpush2.msra.mxu0 %v9243_v13  ;;  %v9209_v55 = vld [vmem:[#allocation29 + $0x590] sm:$0xff]  ;;  %v9206_v63 = vld [vmem:[#allocation29 + $0x578] sm:$0xff] }
0x14f0   :  { %9363 = vmatprep.subr.mxu1 %v9112_v24  ;;  %9434 = vmatprep.subr.mxu0 %v9240_v53  ;;  %v9077_v13 = vld [vmem:[#allocation29 + $0x170] sm:$0xff] }
0x14f1   :  { %9364 = vmatpush2.msra.mxu1 %v9111_v56  ;;  %9435 = vmatpush2.msra.mxu0 %v9239_v59  ;;  %v9073_v24 = vld [vmem:[#allocation29 + $0x150] sm:$0xff]  ;;  %v9198_v56 = vld [vmem:[#allocation29 + $0x538] sm:$0xff] }
0x14f2   :  { %9365 = vmatprep.subr.mxu1 %v9108_v4  ;;  %9436 = vmatprep.subr.mxu0 %v9236_v58  ;;  %v9201_v53 = vld [vmem:[#allocation29 + $0x550] sm:$0xff]  ;;  %v9066_v4 = vld [vmem:[#allocation29 + $0x118] sm:$0xff] }
0x14f3   :  { %9366 = vmatpush2.msra.mxu1 %v9107_v19  ;;  %9437 = vmatpush2.msra.mxu0 %v9235_v23  ;;  %v9069_v59 = vld [vmem:[#allocation29 + $0x130] sm:$0xff]  ;;  %v9194_v58 = vld [vmem:[#allocation29 + $0x518] sm:$0xff] }
0x14f4   :  { %9367 = vmatprep.subr.mxu1 %v9104_v5  ;;  %9438 = vmatprep.subr.mxu0 %v9232_v29  ;;  %v9190_v19 = vld [vmem:[#allocation29 + $0x4f8] sm:$0xff]  ;;  %v9061_v23 = vld [vmem:[#allocation29 + $0xf0] sm:$0xff] }
0x14f5   :  { %9368 = vmatpush2.msra.mxu1 %v9103_v12  ;;  %9439 = vmatpush2.msra.mxu0 %v9231_v33  ;;  %v9186_v5 = vld [vmem:[#allocation29 + $0x4d8] sm:$0xff]  ;;  %v9057_v29 = vld [vmem:[#allocation29 + $0xd0] sm:$0xff] }
0x14f6   :  { %9369 = vmatprep.subr.mxu1 %v9100_v45  ;;  %9440 = vmatprep.subr.mxu0 %v9228_v36  ;;  %v9185_v12 = vld [vmem:[#allocation29 + $0x4d0] sm:$0xff]  ;;  %v9054_v33 = vld [vmem:[#allocation29 + $0xb8] sm:$0xff] }
0x14f7   :  { %9370 = vmatpush2.msra.mxu1 %v9099_v27  ;;  %9441 = vmatpush2.msra.mxu0 %v9227_v38  ;;  %v9053_v45 = vld [vmem:[#allocation29 + $0xb0] sm:$0xff]  ;;  %v9050_v27 = vld [vmem:[#allocation29 + $0x98] sm:$0xff] }
0x14f8   :  { %9371 = vmatprep.subr.mxu1 %v9096_v8  ;;  %9442 = vmatprep.subr.mxu0 %v9224_v18  ;;  %v9181_v36 = vld [vmem:[#allocation29 + $0x4b0] sm:$0xff]  ;;  %v9178_v38 = vld [vmem:[#allocation29 + $0x498] sm:$0xff] }
0x14f9   :  { %9372 = vmatpush2.msra.mxu1 %v9095_v44  ;;  %9373 = vmatprep.mubr.f32.mxu1 %v8462_v3  ;;  %v9177_v8 = vld [vmem:[#allocation29 + $0x490] sm:$0xff]  ;;  %v9046_v18 = vld [vmem:[#allocation29 + $0x78] sm:$0xff] }
0x14fa   :  { %9443 = vmatpush2.msra.mxu0 %v9223_v52  ;;  %9374 = vmatmul.mubr.f32.vlgmr.msra.gmra.mxu1 %v8461_v0  ;;  %v9174_v44 = vld [vmem:[#allocation29 + $0x478] sm:$0xff]  ;;  %v9173_v52 = vld [vmem:[#allocation29 + $0x470] sm:$0xff] }
0x14fb   :  { %9444 = vmatprep.mubr.f32.mxu0 %v8464_v57  ;;  %9451 = vmatprep.subr.mxu1 %v9094_v10  ;;  %v9042_v10 = vld [vmem:[#allocation29 + $0x58] sm:$0xff] }
0x14fc   :  { %9522 = vmatprep.subr.mxu0 %v9222_v30  ;;  %9445 = vmatmul.mubr.f32.vlgmr.msra.gmra.mxu0 %v8463_v28  ;;  %v9170_v30 = vld [vmem:[#allocation29 + $0x458] sm:$0xff] }
0x14fd   :  { %9452 = vmatpush1.msra.mxu1 %v9093_v20  ;;  %9523 = vmatpush1.msra.mxu0 %v9221_v32  ;;  %v9041_v20 = vld [vmem:[#allocation29 + $0x50] sm:$0xff] }
0x14fe   :  { %9453 = vmatprep.subr.mxu1 %v9090_v42  ;;  %9524 = vmatprep.subr.mxu0 %v9218_v47  ;;  %v9169_v32 = vld [vmem:[#allocation29 + $0x450] sm:$0xff]  ;;  %v9038_v42 = vld [vmem:[#allocation29 + $0x38] sm:$0xff] }
0x14ff   :  { %9454 = vmatpush1.msra.mxu1 %v9089_v61  ;;  %9525 = vmatpush1.msra.mxu0 %v9217_v54  ;;  %v9166_v47 = vld [vmem:[#allocation29 + $0x438] sm:$0xff]  ;;  %v9037_v61 = vld [vmem:[#allocation29 + $0x30] sm:$0xff] }
0x1500   :  { %9455 = vmatprep.subr.mxu1 %v9086_v6  ;;  %9526 = vmatprep.subr.mxu0 %v9214_v14  ;;  %v9165_v54 = vld [vmem:[#allocation29 + $0x430] sm:$0xff]  ;;  %v9034_v6 = vld [vmem:[#allocation29 + $0x18] sm:$0xff] }
0x1501   :  { %9456 = vmatpush1.msra.mxu1 %v9085_v16  ;;  %9527 = vmatpush1.msra.mxu0 %v9213_v37  ;;  %v9162_v14 = vld [vmem:[#allocation29 + $0x418] sm:$0xff]  ;;  %v9033_v16 = vld [vmem:[#allocation29 + $0x10] sm:$0xff] }
0x1502   :  { %9457 = vmatprep.subr.mxu1 %v9082_v46  ;;  %9528 = vmatprep.subr.mxu0 %v9210_v15  ;;  %v9161_v37 = vld [vmem:[#allocation29 + $0x410] sm:$0xff]  ;;  %v9158_v46 = vld [vmem:[#allocation29 + $0x3f8] sm:$0xff] }
0x1503   :  { %9458 = vmatpush1.msra.mxu1 %v9081_v34  ;;  %9515 = vmatprep.mubr.f32.mxu1 %v8462_v3  ;;  %v9049_v3 = vld [vmem:[#allocation29 + $0x90] sm:$0xff]  ;;  %v9286_v15 = vld [vmem:[#allocation29 + $0x7f8] sm:$0xff] }
0x1504   :  { %9529 = vmatpush1.msra.mxu0 %v9209_v55  ;;  %9459 = vmatprep.subr.mxu1 %v9078_v31  ;;  %v9157_v34 = vld [vmem:[#allocation29 + $0x3f0] sm:$0xff]  ;;  %v9154_v31 = vld [vmem:[#allocation29 + $0x3d8] sm:$0xff] }
0x1505   :  { %9530 = vmatprep.subr.mxu0 %v9206_v63  ;;  %9460 = vmatpush1.msra.mxu1 %v9077_v13  ;;  %v9285_v55 = vld [vmem:[#allocation29 + $0x7f0] sm:$0xff]  ;;  %v9282_v63 = vld [vmem:[#allocation29 + $0x7d8] sm:$0xff] }
0x1506   :  { %9531 = vmatpush1.msra.mxu0 %v9205_v51  ;;  %9586 = vmatprep.mubr.f32.mxu0 %v8464_v57  ;;  %v9045_v57 = vld [vmem:[#allocation29 + $0x70] sm:$0xff] }
0x1507   :  { %9461 = vmatprep.subr.mxu1 %v9074_v22  ;;  %9532 = vmatprep.subr.mxu0 %v9202_v50  ;;  %v9153_v13 = vld [vmem:[#allocation29 + $0x3d0] sm:$0xff]  ;;  %v9150_v22 = vld [vmem:[#allocation29 + $0x3b8] sm:$0xff] }
0x1508   :  { %9462 = vmatpush1.msra.mxu1 %v9073_v24  ;;  %9533 = vmatpush1.msra.mxu0 %v9201_v53  ;;  %v9281_v51 = vld [vmem:[#allocation29 + $0x7d0] sm:$0xff]  ;;  %v9278_v50 = vld [vmem:[#allocation29 + $0x7b8] sm:$0xff] }
0x1509   :  { %9463 = vmatprep.subr.mxu1 %v9070_v25  ;;  %9534 = vmatprep.subr.mxu0 %v9198_v56  ;;  %v9149_v24 = vld [vmem:[#allocation29 + $0x3b0] sm:$0xff]  ;;  %v9146_v25 = vld [vmem:[#allocation29 + $0x398] sm:$0xff] }
0x150a   :  { %9464 = vmatpush1.msra.mxu1 %v9069_v59  ;;  %9535 = vmatpush1.msra.mxu0 %v9197_v9  ;;  %v9277_v53 = vld [vmem:[#allocation29 + $0x7b0] sm:$0xff]  ;;  %v9274_v56 = vld [vmem:[#allocation29 + $0x798] sm:$0xff] }
0x150b   :  { %9465 = vmatprep.subr.mxu1 %v9066_v4  ;;  %9536 = vmatprep.subr.mxu0 %v9194_v58  ;;  %v9145_v59 = vld [vmem:[#allocation29 + $0x390] sm:$0xff]  ;;  %v9142_v4 = vld [vmem:[#allocation29 + $0x378] sm:$0xff] }
0x150c   :  { %9466 = vmatpush1.msra.mxu1 %v9065_v17  ;;  %9537 = vmatpush1.msra.mxu0 %v9193_v48  ;;  %v9273_v9 = vld [vmem:[#allocation29 + $0x790] sm:$0xff]  ;;  %v9270_v58 = vld [vmem:[#allocation29 + $0x778] sm:$0xff] }
0x150d   :  { %9467 = vmatprep.subr.mxu1 %v9062_v11  ;;  %9538 = vmatprep.subr.mxu0 %v9190_v19  ;;  %v9141_v17 = vld [vmem:[#allocation29 + $0x370] sm:$0xff]  ;;  %v9138_v11 = vld [vmem:[#allocation29 + $0x358] sm:$0xff] }
0x150e   :  { %9468 = vmatpush1.msra.mxu1 %v9061_v23  ;;  %9539 = vmatpush1.msra.mxu0 %v9189_v39  ;;  %v9269_v48 = vld [vmem:[#allocation29 + $0x770] sm:$0xff]  ;;  %v9266_v19 = vld [vmem:[#allocation29 + $0x758] sm:$0xff] }
0x150f   :  { %9469 = vmatprep.subr.mxu1 %v9058_v60  ;;  %9540 = vmatprep.subr.mxu0 %v9186_v5  ;;  %v9137_v23 = vld [vmem:[#allocation29 + $0x350] sm:$0xff]  ;;  %v9134_v60 = vld [vmem:[#allocation29 + $0x338] sm:$0xff] }
0x1510   :  { %9470 = vmatpush1.msra.mxu1 %v9057_v29  ;;  %9541 = vmatpush1.msra.mxu0 %v9185_v12  ;;  %v9265_v39 = vld [vmem:[#allocation29 + $0x750] sm:$0xff]  ;;  %v9262_v5 = vld [vmem:[#allocation29 + $0x738] sm:$0xff] }
0x1511   :  { %9471 = vmatprep.subr.mxu1 %v9054_v33  ;;  %9542 = vmatprep.subr.mxu0 %v9182_v40  ;;  %v9133_v29 = vld [vmem:[#allocation29 + $0x330] sm:$0xff]  ;;  %v9130_v33 = vld [vmem:[#allocation29 + $0x318] sm:$0xff] }
0x1512   :  { %9472 = vmatpush1.msra.mxu1 %v9053_v45  ;;  %9543 = vmatpush1.msra.mxu0 %v9181_v36  ;;  %v9261_v12 = vld [vmem:[#allocation29 + $0x730] sm:$0xff]  ;;  %v9258_v40 = vld [vmem:[#allocation29 + $0x718] sm:$0xff] }
0x1513   :  { %9473 = vmatprep.subr.mxu1 %v9050_v27  ;;  %9544 = vmatprep.subr.mxu0 %v9178_v38  ;;  %v9129_v45 = vld [vmem:[#allocation29 + $0x310] sm:$0xff]  ;;  %v9126_v27 = vld [vmem:[#allocation29 + $0x2f8] sm:$0xff] }
0x1514   :  { %9474 = vmatpush1.msra.mxu1 %v9049_v3  ;;  %9545 = vmatpush1.msra.mxu0 %v9177_v8  ;;  %v9257_v36 = vld [vmem:[#allocation29 + $0x710] sm:$0xff]  ;;  %v9254_v38 = vld [vmem:[#allocation29 + $0x6f8] sm:$0xff] }
0x1515   :  { %9475 = vmatprep.subr.mxu1 %v9046_v18  ;;  %9546 = vmatprep.subr.mxu0 %v9174_v44  ;;  %v9125_v3 = vld [vmem:[#allocation29 + $0x2f0] sm:$0xff]  ;;  %v9122_v18 = vld [vmem:[#allocation29 + $0x2d8] sm:$0xff] }
0x1516   :  { %9476 = vmatpush1.msra.mxu1 %v9045_v57  ;;  %9547 = vmatpush1.msra.mxu0 %v9173_v52  ;;  %v9253_v8 = vld [vmem:[#allocation29 + $0x6f0] sm:$0xff]  ;;  %v9250_v44 = vld [vmem:[#allocation29 + $0x6d8] sm:$0xff] }
0x1517   :  { %9477 = vmatprep.subr.mxu1 %v9042_v10  ;;  %9548 = vmatprep.subr.mxu0 %v9170_v30  ;;  %v9121_v57 = vld [vmem:[#allocation29 + $0x2d0] sm:$0xff]  ;;  %v9118_v10 = vld [vmem:[#allocation29 + $0x2b8] sm:$0xff] }
0x1518   :  { %9478 = vmatpush1.msra.mxu1 %v9041_v20  ;;  %9549 = vmatpush1.msra.mxu0 %v9169_v32  ;;  %v9249_v52 = vld [vmem:[#allocation29 + $0x6d0] sm:$0xff]  ;;  %v9246_v30 = vld [vmem:[#allocation29 + $0x6b8] sm:$0xff] }
0x1519   :  { %9479 = vmatprep.subr.mxu1 %v9038_v42  ;;  %9550 = vmatprep.subr.mxu0 %v9166_v47  ;;  %v9117_v20 = vld [vmem:[#allocation29 + $0x2b0] sm:$0xff]  ;;  %v9114_v42 = vld [vmem:[#allocation29 + $0x298] sm:$0xff] }
0x151a   :  { %9480 = vmatpush1.msra.mxu1 %v9037_v61  ;;  %9551 = vmatpush1.msra.mxu0 %v9165_v54  ;;  %v9245_v32 = vld [vmem:[#allocation29 + $0x6b0] sm:$0xff]  ;;  %v9242_v47 = vld [vmem:[#allocation29 + $0x698] sm:$0xff] }
0x151b   :  { %9481 = vmatprep.subr.mxu1 %v9034_v6  ;;  %9552 = vmatprep.subr.mxu0 %v9162_v14  ;;  %v9113_v61 = vld [vmem:[#allocation29 + $0x290] sm:$0xff]  ;;  %v9110_v6 = vld [vmem:[#allocation29 + $0x278] sm:$0xff] }
0x151c   :  { %9482 = vmatpush1.msra.mxu1 %v9033_v16  ;;  %9553 = vmatpush1.msra.mxu0 %v9161_v37  ;;  %v9241_v54 = vld [vmem:[#allocation29 + $0x690] sm:$0xff]  ;;  %v9238_v14 = vld [vmem:[#allocation29 + $0x678] sm:$0xff] }
0x151d   :  { %9483 = vmatprep.subr.mxu1 %v9158_v46  ;;  %9554 = vmatprep.subr.mxu0 %v9286_v15  ;;  %v9109_v16 = vld [vmem:[#allocation29 + $0x270] sm:$0xff]  ;;  %v9106_v46 = vld [vmem:[#allocation29 + $0x258] sm:$0xff] }
0x151e   :  { %9484 = vmatpush2.msra.mxu1 %v9157_v34  ;;  %9555 = vmatpush2.msra.mxu0 %v9285_v55  ;;  %v9237_v37 = vld [vmem:[#allocation29 + $0x670] sm:$0xff]  ;;  %v9234_v15 = vld [vmem:[#allocation29 + $0x658] sm:$0xff] }
0x151f   :  { %9485 = vmatprep.subr.mxu1 %v9154_v31  ;;  %9556 = vmatprep.subr.mxu0 %v9282_v63  ;;  %v9105_v34 = vld [vmem:[#allocation29 + $0x250] sm:$0xff]  ;;  %v9102_v31 = vld [vmem:[#allocation29 + $0x238] sm:$0xff] }
0x1520   :  { %9486 = vmatpush2.msra.mxu1 %v9153_v13  ;;  %9557 = vmatpush2.msra.mxu0 %v9281_v51  ;;  %v9233_v55 = vld [vmem:[#allocation29 + $0x650] sm:$0xff]  ;;  %v9230_v63 = vld [vmem:[#allocation29 + $0x638] sm:$0xff] }
0x1521   :  { %9487 = vmatprep.subr.mxu1 %v9150_v22  ;;  %9558 = vmatprep.subr.mxu0 %v9278_v50  ;;  %v13323_v13 = vld [vmem:[#allocation28] sm:$0xf]  ;;  %v9101_v51 = vld [vmem:[#allocation29 + $0x230] sm:$0xff] }
0x1522   :  { %9488 = vmatpush2.msra.mxu1 %v9149_v24  ;;  %9559 = vmatpush2.msra.mxu0 %v9277_v53  ;;  %v9229_v22 = vld [vmem:[#allocation29 + $0x630] sm:$0xff]  ;;  %v8730_v50 = vrot.slane %v13323_v13, %v13830_v35  ;;  %v9098_v24 = vld [vmem:[#allocation29 + $0x218] sm:$0xff] }
0x1523   :  { %9489 = vmatprep.subr.mxu1 %v9146_v25  ;;  %9560 = vmatprep.subr.mxu0 %v9274_v56  ;;  %v9226_v53 = vld [vmem:[#allocation29 + $0x618] sm:$0xff] }
0x1524   :  { %9490 = vmatpush2.msra.mxu1 %v9145_v59  ;;  %9561 = vmatpush2.msra.mxu0 %v9273_v9  ;;  %v9097_v59 = vld [vmem:[#allocation29 + $0x210] sm:$0xff] }
0x1525   :  { %9491 = vmatprep.subr.mxu1 %v9142_v4  ;;  %9562 = vmatprep.subr.mxu0 %v9270_v58  ;;  %v9225_v9 = vld [vmem:[#allocation29 + $0x610] sm:$0xff]  ;;  %v9628_v58 = vld [vmem:[#allocation32 + $0xf8] sm:$0xff] }
0x1526   :  { %9492 = vmatpush2.msra.mxu1 %v9141_v17  ;;  %9563 = vmatpush2.msra.mxu0 %v9269_v48  ;;  %v9692_v48 = vld [vmem:[#allocation32 + $0x2f8] sm:$0xff]  ;;  %v9687_v7 = vld [vmem:[#allocation32 + $0x2d0] sm:$0xff] }
0x1527   :  { %9493 = vmatprep.subr.mxu1 %v9138_v11  ;;  %9564 = vmatprep.subr.mxu0 %v9266_v19  ;;  %v9627_v11 = vld [vmem:[#allocation32 + $0xf0] sm:$0xff] }
0x1528   :  { %9494 = vmatpush2.msra.mxu1 %v9137_v23  ;;  %9565 = vmatpush2.msra.mxu0 %v9265_v39  ;;  %v9691_v23 = vld [vmem:[#allocation32 + $0x2f0] sm:$0xff]  ;;  %v9626_v39 = vld [vmem:[#allocation32 + $0xe8] sm:$0xff] }
0x1529   :  { %9495 = vmatprep.subr.mxu1 %v9134_v60  ;;  %9566 = vmatprep.subr.mxu0 %v9262_v5  ;;  %v9690_v5 = vld [vmem:[#allocation32 + $0x2e8] sm:$0xff] }
0x152a   :  { %9496 = vmatpush2.msra.mxu1 %v9133_v29  ;;  %9567 = vmatpush2.msra.mxu0 %v9261_v12  ;;  %v9625_v29 = vld [vmem:[#allocation32 + $0xe0] sm:$0xff] }
0x152b   :  { %9497 = vmatprep.subr.mxu1 %v9130_v33  ;;  %9568 = vmatprep.subr.mxu0 %v9258_v40  ;;  %v9689_v12 = vld [vmem:[#allocation32 + $0x2e0] sm:$0xff]  ;;  %v9624_v33 = vld [vmem:[#allocation32 + $0xd8] sm:$0xff] }
0x152c   :  { %9498 = vmatpush2.msra.mxu1 %v9129_v45  ;;  %9569 = vmatpush2.msra.mxu0 %v9257_v36  ;;  %v9623_v45 = vld [vmem:[#allocation32 + $0xd0] sm:$0xff]  ;;  %v9688_v36 = vld [vmem:[#allocation32 + $0x2d8] sm:$0xff] }
0x152d   :  { %9499 = vmatprep.subr.mxu1 %v9126_v27  ;;  %9570 = vmatprep.subr.mxu0 %v9254_v38  ;;  %v9620_v27 = vld [vmem:[#allocation32 + $0xb8] sm:$0xff]  ;;  %v9685_v38 = vld [vmem:[#allocation32 + $0x2c0] sm:$0xff] }
0x152e   :  { %9500 = vmatpush2.msra.mxu1 %v9125_v3  ;;  %9571 = vmatpush2.msra.mxu0 %v9253_v8  ;;  %v9619_v3 = vld [vmem:[#allocation32 + $0xb0] sm:$0xff]  ;;  %v9684_v8 = vld [vmem:[#allocation32 + $0x2b8] sm:$0xff] }
0x152f   :  { %9501 = vmatprep.subr.mxu1 %v9122_v18  ;;  %9572 = vmatprep.subr.mxu0 %v9250_v44  ;;  %v9618_v18 = vld [vmem:[#allocation32 + $0xa8] sm:$0xff]  ;;  %v9683_v44 = vld [vmem:[#allocation32 + $0x2b0] sm:$0xff] }
0x1530   :  { %9502 = vmatpush2.msra.mxu1 %v9121_v57  ;;  %9573 = vmatpush2.msra.mxu0 %v9249_v52  ;;  %v9617_v57 = vld [vmem:[#allocation32 + $0xa0] sm:$0xff]  ;;  %v9682_v52 = vld [vmem:[#allocation32 + $0x2a8] sm:$0xff] }
0x1531   :  { %9503 = vmatprep.subr.mxu1 %v9118_v10  ;;  %9574 = vmatprep.subr.mxu0 %v9246_v30  ;;  %v9616_v10 = vld [vmem:[#allocation32 + $0x98] sm:$0xff]  ;;  %v9681_v30 = vld [vmem:[#allocation32 + $0x2a0] sm:$0xff] }
0x1532   :  { %9504 = vmatpush2.msra.mxu1 %v9117_v20  ;;  %9575 = vmatpush2.msra.mxu0 %v9245_v32  ;;  %v9615_v20 = vld [vmem:[#allocation32 + $0x90] sm:$0xff]  ;;  %v9680_v32 = vld [vmem:[#allocation32 + $0x298] sm:$0xff] }
0x1533   :  { %9505 = vmatprep.subr.mxu1 %v9114_v42  ;;  %9576 = vmatprep.subr.mxu0 %v9242_v47  ;;  %v9614_v42 = vld [vmem:[#allocation32 + $0x88] sm:$0xff]  ;;  %v9679_v47 = vld [vmem:[#allocation32 + $0x290] sm:$0xff] }
0x1534   :  { %9506 = vmatpush2.msra.mxu1 %v9113_v61  ;;  %9577 = vmatpush2.msra.mxu0 %v9241_v54  ;;  %v9613_v61 = vld [vmem:[#allocation32 + $0x80] sm:$0xff]  ;;  %v9678_v54 = vld [vmem:[#allocation32 + $0x288] sm:$0xff] }
0x1535   :  { %9507 = vmatprep.subr.mxu1 %v9110_v6  ;;  %9578 = vmatprep.subr.mxu0 %v9238_v14  ;;  %v9612_v6 = vld [vmem:[#allocation32 + $0x78] sm:$0xff]  ;;  %v9677_v14 = vld [vmem:[#allocation32 + $0x280] sm:$0xff] }
0x1536   :  { %9508 = vmatpush2.msra.mxu1 %v9109_v16  ;;  %9579 = vmatpush2.msra.mxu0 %v9237_v37  ;;  %v9611_v16 = vld [vmem:[#allocation32 + $0x70] sm:$0xff]  ;;  %v9676_v37 = vld [vmem:[#allocation32 + $0x278] sm:$0xff] }
0x1537   :  { %9509 = vmatprep.subr.mxu1 %v9106_v46  ;;  %9580 = vmatprep.subr.mxu0 %v9234_v15  ;;  %v9610_v46 = vld [vmem:[#allocation32 + $0x68] sm:$0xff]  ;;  %v9675_v15 = vld [vmem:[#allocation32 + $0x270] sm:$0xff] }
0x1538   :  { %9510 = vmatpush2.msra.mxu1 %v9105_v34  ;;  %9581 = vmatpush2.msra.mxu0 %v9233_v55  ;;  %v13327_v25 = vpop.f32.mrf.mxu1  ;;  %v13329_v56 = vpop.f32.mrf.mxu0  ;;  %v9609_v34 = vld [vmem:[#allocation32 + $0x60] sm:$0xff]  ;;  %v9674_v55 = vld [vmem:[#allocation32 + $0x268] sm:$0xff] }
0x1539   :  { %9511 = vmatprep.subr.mxu1 %v9102_v31  ;;  %9582 = vmatprep.subr.mxu0 %v9230_v63  ;;  %v9608_v31 = vld [vmem:[#allocation32 + $0x58] sm:$0xff]  ;;  %v9673_v63 = vld [vmem:[#allocation32 + $0x260] sm:$0xff] }
0x153a   :  { %9512 = vmatpush2.msra.mxu1 %v9101_v51  ;;  %9583 = vmatpush2.msra.mxu0 %v9229_v22  ;;  %v8811_v4 = vpop.f32.mrf.mxu1  ;;  %v8882_v19 = vpop.f32.mrf.mxu0  ;;  %v9607_v51 = vld [vmem:[#allocation32 + $0x50] sm:$0xff]  ;;  %v9672_v22 = vld [vmem:[#allocation32 + $0x258] sm:$0xff] }
0x153b   :  { %9513 = vmatprep.subr.mxu1 %v9098_v24  ;;  %9584 = vmatprep.subr.mxu0 %v9226_v53  ;;  %v8812_v17 = vadd.f32 %v8811_v4, %v8730_v50  ;;  %v9606_v50 = vld [vmem:[#allocation32 + $0x48] sm:$0xff]  ;;  %v9671_v24 = vld [vmem:[#allocation32 + $0x250] sm:$0xff]  ;;  %v9605_v53 = vld [vmem:[#allocation32 + $0x40] sm:$0xff] }
0x153c   :  { %9514 = vmatpush2.msra.mxu1 %v9097_v59  ;;  %9585 = vmatpush2.msra.mxu0 %v9225_v9  ;;  %v9670_v59 = vld [vmem:[#allocation32 + $0x248] sm:$0xff]  ;;  %v9604_v9 = vld [vmem:[#allocation32 + $0x38] sm:$0xff]  ;;  %v9669_v4 = vld [vmem:[#allocation32 + $0x240] sm:$0xff] }
0x153d   :  { %9516 = vmatmul.mubr.f32.vlgmr.msra.gmra.mxu1 %v8461_v0  ;;  %9587 = vmatmul.mubr.f32.vlgmr.msra.gmra.mxu0 %v8463_v28  ;;  %v8883_v60 = vadd.f32 %v8882_v19, %v8812_v17  ;;  %v9621_v0 = vld [vmem:[#allocation32 + $0xc0] sm:$0xff]  ;;  %v9686_v28 = vld [vmem:[#allocation32 + $0x2c8] sm:$0xff]  ;;  %v9668_v17 = vld [vmem:[#allocation32 + $0x238] sm:$0xff] }
0x153e   :  { %9737 = vmatprep.subr.mxu1 %v9628_v58  ;;  %9808 = vmatprep.subr.mxu0 %v9692_v48  ;;  %v9603_v58 = vld [vmem:[#allocation32 + $0x30] sm:$0xff]  ;;  %v9602_v48 = vld [vmem:[#allocation32 + $0x28] sm:$0xff]  ;;  %v9601_v19 = vld [vmem:[#allocation32 + $0x20] sm:$0xff] }
0x153f   :  { %9738 = vmatpush1.msra.mxu1 %v9627_v11  ;;  %v9028_v40 = vmax.f32 %v8883_v60, 0.0  ;;  %9809 = vmatpush1.msra.mxu0 %v9691_v23  ;;  %v9667_v11 = vld [vmem:[#allocation32 + $0x230] sm:$0xff]  ;;  %v9666_v23 = vld [vmem:[#allocation32 + $0x228] sm:$0xff]  ;;  %v9665_v60 = vld [vmem:[#allocation32 + $0x220] sm:$0xff] }
0x1540   :  { %9739 = vmatprep.subr.mxu1 %v9626_v39  ;;  %9810 = vmatprep.subr.mxu0 %v9690_v5  ;;  %v9600_v39 = vld [vmem:[#allocation32 + $0x18] sm:$0xff]  ;;  %v9599_v5 = vld [vmem:[#allocation32 + $0x10] sm:$0xff] }
0x1541   :  { %9740 = vmatpush1.msra.mxu1 %v9625_v29  ;;  %9811 = vmatpush1.msra.mxu0 %v9689_v12  ;;  %v9664_v29 = vld [vmem:[#allocation32 + $0x218] sm:$0xff]  ;;  %v9598_v12 = vld [vmem:[#allocation32 + $0x8] sm:$0xff] }
0x1542   :  { %9741 = vmatprep.subr.mxu1 %v9624_v33  ;;  %9801 = vmatprep.mubr.f32.mxu1 %v9028_v40  ;;  %v9663_v33 = vld [vmem:[#allocation32 + $0x210] sm:$0xff]  ;;  %v9597_v40 = vld [vmem:[#allocation32] sm:$0xff] }
0x1543   :  { %9742 = vmatpush1.msra.mxu1 %v9623_v45  ;;  %9812 = vmatprep.subr.mxu0 %v9688_v36  ;;  %v9662_v45 = vld [vmem:[#allocation32 + $0x208] sm:$0xff]  ;;  %v9660_v36 = vld [vmem:[#allocation32 + $0x1f8] sm:$0xff] }
0x1544   :  { %9743 = vmatprep.subr.mxu1 %v9622_v43  ;;  %9813 = vmatpush1.msra.mxu0 %v9687_v7  ;;  %v9661_v43 = vld [vmem:[#allocation32 + $0x200] sm:$0xff]  ;;  %v9659_v7 = vld [vmem:[#allocation32 + $0x1f0] sm:$0xff] }
0x1545   :  { %9744 = vmatpush1.msra.mxu1 %v9621_v0  ;;  %9814 = vmatprep.subr.mxu0 %v9686_v28  ;;  %v9724_v0 = vld [vmem:[#allocation32 + $0x3f8] sm:$0xff]  ;;  %v9658_v28 = vld [vmem:[#allocation32 + $0x1e8] sm:$0xff] }
0x1546   :  { %9745 = vmatprep.subr.mxu1 %v9620_v27  ;;  %9815 = vmatpush1.msra.mxu0 %v9685_v38  ;;  %v9723_v27 = vld [vmem:[#allocation32 + $0x3f0] sm:$0xff]  ;;  %v9657_v38 = vld [vmem:[#allocation32 + $0x1e0] sm:$0xff] }
0x1547   :  { %9746 = vmatpush1.msra.mxu1 %v9619_v3  ;;  %9816 = vmatprep.subr.mxu0 %v9684_v8  ;;  %v9722_v3 = vld [vmem:[#allocation32 + $0x3e8] sm:$0xff]  ;;  %v9656_v8 = vld [vmem:[#allocation32 + $0x1d8] sm:$0xff] }
0x1548   :  { %9747 = vmatprep.subr.mxu1 %v9618_v18  ;;  %9817 = vmatpush1.msra.mxu0 %v9683_v44  ;;  %v9721_v18 = vld [vmem:[#allocation32 + $0x3e0] sm:$0xff]  ;;  %v9655_v44 = vld [vmem:[#allocation32 + $0x1d0] sm:$0xff] }
0x1549   :  { %9748 = vmatpush1.msra.mxu1 %v9617_v57  ;;  %9818 = vmatprep.subr.mxu0 %v9682_v52  ;;  %v9720_v57 = vld [vmem:[#allocation32 + $0x3d8] sm:$0xff]  ;;  %v9654_v52 = vld [vmem:[#allocation32 + $0x1c8] sm:$0xff] }
0x154a   :  { %9749 = vmatprep.subr.mxu1 %v9616_v10  ;;  %9819 = vmatpush1.msra.mxu0 %v9681_v30  ;;  %v9719_v10 = vld [vmem:[#allocation32 + $0x3d0] sm:$0xff]  ;;  %v9653_v30 = vld [vmem:[#allocation32 + $0x1c0] sm:$0xff] }
0x154b   :  { %9750 = vmatpush1.msra.mxu1 %v9615_v20  ;;  %9820 = vmatprep.subr.mxu0 %v9680_v32  ;;  %v9718_v20 = vld [vmem:[#allocation32 + $0x3c8] sm:$0xff]  ;;  %v9652_v32 = vld [vmem:[#allocation32 + $0x1b8] sm:$0xff] }
0x154c   :  { %9751 = vmatprep.subr.mxu1 %v9614_v42  ;;  %9821 = vmatpush1.msra.mxu0 %v9679_v47  ;;  %v9717_v42 = vld [vmem:[#allocation32 + $0x3c0] sm:$0xff]  ;;  %v9651_v47 = vld [vmem:[#allocation32 + $0x1b0] sm:$0xff] }
0x154d   :  { %9752 = vmatpush1.msra.mxu1 %v9613_v61  ;;  %9822 = vmatprep.subr.mxu0 %v9678_v54  ;;  %v9716_v61 = vld [vmem:[#allocation32 + $0x3b8] sm:$0xff]  ;;  %v9650_v54 = vld [vmem:[#allocation32 + $0x1a8] sm:$0xff] }
0x154e   :  { %9753 = vmatprep.subr.mxu1 %v9612_v6  ;;  %9823 = vmatpush1.msra.mxu0 %v9677_v14  ;;  %v9715_v6 = vld [vmem:[#allocation32 + $0x3b0] sm:$0xff]  ;;  %v9649_v14 = vld [vmem:[#allocation32 + $0x1a0] sm:$0xff] }
0x154f   :  { %9754 = vmatpush1.msra.mxu1 %v9611_v16  ;;  %9824 = vmatprep.subr.mxu0 %v9676_v37  ;;  %v9714_v16 = vld [vmem:[#allocation32 + $0x3a8] sm:$0xff]  ;;  %v9648_v37 = vld [vmem:[#allocation32 + $0x198] sm:$0xff] }
0x1550   :  { %9755 = vmatprep.subr.mxu1 %v9610_v46  ;;  %9825 = vmatpush1.msra.mxu0 %v9675_v15  ;;  %v9713_v46 = vld [vmem:[#allocation32 + $0x3a0] sm:$0xff]  ;;  %v9647_v15 = vld [vmem:[#allocation32 + $0x190] sm:$0xff] }
0x1551   :  { %9756 = vmatpush1.msra.mxu1 %v9609_v34  ;;  %9826 = vmatprep.subr.mxu0 %v9674_v55  ;;  %v9712_v34 = vld [vmem:[#allocation32 + $0x398] sm:$0xff]  ;;  %v9646_v55 = vld [vmem:[#allocation32 + $0x188] sm:$0xff] }
0x1552   :  { %9757 = vmatprep.subr.mxu1 %v9608_v31  ;;  %9827 = vmatpush1.msra.mxu0 %v9673_v63  ;;  %v9711_v31 = vld [vmem:[#allocation32 + $0x390] sm:$0xff]  ;;  %v9645_v63 = vld [vmem:[#allocation32 + $0x180] sm:$0xff] }
0x1553   :  { %9758 = vmatpush1.msra.mxu1 %v9607_v51  ;;  %9828 = vmatprep.subr.mxu0 %v9672_v22  ;;  %v9710_v51 = vld [vmem:[#allocation32 + $0x388] sm:$0xff]  ;;  %v9644_v22 = vld [vmem:[#allocation32 + $0x178] sm:$0xff] }
0x1554   :  { %9759 = vmatprep.subr.mxu1 %v9606_v50  ;;  %9829 = vmatpush1.msra.mxu0 %v9671_v24  ;;  %v9709_v50 = vld [vmem:[#allocation32 + $0x380] sm:$0xff]  ;;  %v9643_v24 = vld [vmem:[#allocation32 + $0x170] sm:$0xff] }
0x1555   :  { %9760 = vmatpush1.msra.mxu1 %v9605_v53  ;;  %9830 = vmatprep.subr.mxu0 %v9670_v59  ;;  %v9708_v53 = vld [vmem:[#allocation32 + $0x378] sm:$0xff]  ;;  %v9642_v59 = vld [vmem:[#allocation32 + $0x168] sm:$0xff] }
0x1556   :  { %9761 = vmatprep.subr.mxu1 %v9604_v9  ;;  %9831 = vmatpush1.msra.mxu0 %v9669_v4  ;;  %v9707_v9 = vld [vmem:[#allocation32 + $0x370] sm:$0xff]  ;;  %v9641_v4 = vld [vmem:[#allocation32 + $0x160] sm:$0xff] }
0x1557   :  { %9762 = vmatpush1.msra.mxu1 %v9603_v58  ;;  %9832 = vmatprep.subr.mxu0 %v9668_v17  ;;  %v9706_v58 = vld [vmem:[#allocation32 + $0x368] sm:$0xff]  ;;  %v9640_v17 = vld [vmem:[#allocation32 + $0x158] sm:$0xff] }
0x1558   :  { %9763 = vmatprep.subr.mxu1 %v9602_v48  ;;  %9833 = vmatpush1.msra.mxu0 %v9667_v11  ;;  %v9705_v48 = vld [vmem:[#allocation32 + $0x360] sm:$0xff]  ;;  %v8726_v11 = vrot.slane %v13323_v13, %v13828_v49 }
0x1559   :  { %9764 = vmatpush1.msra.mxu1 %v9601_v19  ;;  %9834 = vmatprep.subr.mxu0 %v9666_v23  ;;  %v9639_v19 = vld [vmem:[#allocation32 + $0x150] sm:$0xff]  ;;  %v9704_v23 = vld [vmem:[#allocation32 + $0x358] sm:$0xff] }
0x155a   :  { %9765 = vmatprep.subr.mxu1 %v9600_v39  ;;  %9835 = vmatpush1.msra.mxu0 %v9665_v60  ;;  %v9638_v39 = vld [vmem:[#allocation32 + $0x148] sm:$0xff]  ;;  %v9703_v60 = vld [vmem:[#allocation32 + $0x350] sm:$0xff] }
0x155b   :  { %9766 = vmatpush1.msra.mxu1 %v9599_v5  ;;  %9836 = vmatprep.subr.mxu0 %v9664_v29  ;;  %v9637_v5 = vld [vmem:[#allocation32 + $0x140] sm:$0xff]  ;;  %v9702_v29 = vld [vmem:[#allocation32 + $0x348] sm:$0xff] }
0x155c   :  { %9767 = vmatprep.subr.mxu1 %v9598_v12  ;;  %9837 = vmatpush1.msra.mxu0 %v9663_v33  ;;  %v9636_v12 = vld [vmem:[#allocation32 + $0x138] sm:$0xff]  ;;  %v9701_v33 = vld [vmem:[#allocation32 + $0x340] sm:$0xff] }
0x155d   :  { %9768 = vmatpush1.msra.mxu1 %v9597_v40  ;;  %9838 = vmatprep.subr.mxu0 %v9662_v45  ;;  %v8810_v40 = vadd.f32 %v13327_v25, %v8726_v11  ;;  %v9635_v45 = vld [vmem:[#allocation32 + $0x130] sm:$0xff] }
0x155e   :  { %9769 = vmatprep.subr.mxu1 %v9660_v36  ;;  %9839 = vmatpush1.msra.mxu0 %v9661_v43  ;;  %v9700_v36 = vld [vmem:[#allocation32 + $0x338] sm:$0xff]  ;;  %v9634_v43 = vld [vmem:[#allocation32 + $0x128] sm:$0xff] }
0x155f   :  { %9770 = vmatpush2.msra.mxu1 %v9659_v7  ;;  %9840 = vmatprep.subr.mxu0 %v9724_v0  ;;  %v9699_v7 = vld [vmem:[#allocation32 + $0x330] sm:$0xff]  ;;  %v9633_v0 = vld [vmem:[#allocation32 + $0x120] sm:$0xff]  ;;  %v8881_v25 = vadd.f32 %v13329_v56, %v8810_v40 }
0x1560   :  { %9771 = vmatprep.subr.mxu1 %v9658_v28  ;;  %9841 = vmatpush2.msra.mxu0 %v9723_v27  ;;  %v8734_v28 = vrot.slane %v13323_v13, %v13829_v62  ;;  %v9698_v27 = vld [vmem:[#allocation32 + $0x328] sm:$0xff] }
0x1561   :  { %9772 = vmatpush2.msra.mxu1 %v9657_v38  ;;  %9842 = vmatprep.subr.mxu0 %v9722_v3  ;;  %v9632_v38 = vld [vmem:[#allocation32 + $0x118] sm:$0xff]  ;;  %v9697_v3 = vld [vmem:[#allocation32 + $0x320] sm:$0xff]  ;;  %v9970_v11 = vld [vmem:[#allocation35 + $0x2c8] sm:$0xff] }
0x1562   :  { %9773 = vmatprep.subr.mxu1 %v9656_v8  ;;  %9843 = vmatpush2.msra.mxu0 %v9721_v18  ;;  %v9631_v8 = vld [vmem:[#allocation32 + $0x110] sm:$0xff]  ;;  %v8738_v18 = vrot.slane %v13323_v13, %v13836_v21  ;;  %v9897_v40 = vld [vmem:[#allocation35 + $0x80] sm:$0xff] }
0x1563   :  { %9774 = vmatpush2.msra.mxu1 %v9655_v44  ;;  %9844 = vmatprep.subr.mxu0 %v9720_v57  ;;  %v9696_v44 = vld [vmem:[#allocation32 + $0x318] sm:$0xff]  ;;  %v9630_v57 = vld [vmem:[#allocation32 + $0x108] sm:$0xff] }
0x1564   :  { %9775 = vmatprep.subr.mxu1 %v9654_v52  ;;  %9845 = vmatpush2.msra.mxu0 %v9719_v10 }
0x1565   :  { %9776 = vmatpush2.msra.mxu1 %v9653_v30  ;;  %9846 = vmatprep.subr.mxu0 %v9718_v20  ;;  %v9695_v30 = vld [vmem:[#allocation32 + $0x310] sm:$0xff]  ;;  %v9629_v20 = vld [vmem:[#allocation32 + $0x100] sm:$0xff] }
0x1566   :  { %9777 = vmatprep.subr.mxu1 %v9652_v32  ;;  %9847 = vmatpush2.msra.mxu0 %v9717_v42  ;;  %v9694_v42 = vld [vmem:[#allocation32 + $0x308] sm:$0xff] }
0x1567   :  { %9778 = vmatpush2.msra.mxu1 %v9651_v47  ;;  %9848 = vmatprep.subr.mxu0 %v9716_v61  ;;  %v9693_v47 = vld [vmem:[#allocation32 + $0x300] sm:$0xff]  ;;  %v9027_v61 = vmax.f32 %v8881_v25, 0.0 }
0x1568   :  { %9779 = vmatprep.subr.mxu1 %v9650_v54  ;;  %9849 = vmatpush2.msra.mxu0 %v9715_v6  ;;  %v9912_v54 = vld [vmem:[#allocation35 + $0xf8] sm:$0xff] }
0x1569   :  { %9780 = vmatpush2.msra.mxu1 %v9649_v14  ;;  %9850 = vmatprep.subr.mxu0 %v9714_v16  ;;  %v9976_v6 = vld [vmem:[#allocation35 + $0x2f8] sm:$0xff] }
0x156a   :  { %9781 = vmatprep.subr.mxu1 %v9648_v37  ;;  %9851 = vmatpush2.msra.mxu0 %v9713_v46  ;;  %v9911_v37 = vld [vmem:[#allocation35 + $0xf0] sm:$0xff]  ;;  %v9892_v25 = vld [vmem:[#allocation35 + $0x58] sm:$0xff] }
0x156b   :  { %9782 = vmatpush2.msra.mxu1 %v9647_v15  ;;  %9852 = vmatprep.subr.mxu0 %v9712_v34  ;;  %v9910_v15 = vld [vmem:[#allocation35 + $0xe8] sm:$0xff]  ;;  %v9909_v34 = vld [vmem:[#allocation35 + $0xe0] sm:$0xff] }
0x156c   :  { %9783 = vmatprep.subr.mxu1 %v9646_v55  ;;  %9853 = vmatpush2.msra.mxu0 %v9711_v31  ;;  %v9908_v31 = vld [vmem:[#allocation35 + $0xd8] sm:$0xff] }
0x156d   :  { %9784 = vmatpush2.msra.mxu1 %v9645_v63  ;;  %9854 = vmatprep.subr.mxu0 %v9710_v51  ;;  %v9907_v51 = vld [vmem:[#allocation35 + $0xd0] sm:$0xff] }
0x156e   :  { %9785 = vmatprep.subr.mxu1 %v9644_v22  ;;  %9855 = vmatpush2.msra.mxu0 %v9709_v50  ;;  %v9975_v22 = vld [vmem:[#allocation35 + $0x2f0] sm:$0xff]  ;;  %v9906_v50 = vld [vmem:[#allocation35 + $0xc8] sm:$0xff] }
0x156f   :  { %9786 = vmatpush2.msra.mxu1 %v9643_v24  ;;  %9856 = vmatprep.subr.mxu0 %v9708_v53  ;;  %v9974_v24 = vld [vmem:[#allocation35 + $0x2e8] sm:$0xff]  ;;  %v9905_v53 = vld [vmem:[#allocation35 + $0xc0] sm:$0xff] }
0x1570   :  { %9787 = vmatprep.subr.mxu1 %v9642_v59  ;;  %9857 = vmatpush2.msra.mxu0 %v9707_v9  ;;  %v9973_v59 = vld [vmem:[#allocation35 + $0x2e0] sm:$0xff]  ;;  %v9904_v9 = vld [vmem:[#allocation35 + $0xb8] sm:$0xff] }
0x1571   :  { %9788 = vmatpush2.msra.mxu1 %v9641_v4  ;;  %9858 = vmatprep.subr.mxu0 %v9706_v58  ;;  %v9972_v4 = vld [vmem:[#allocation35 + $0x2d8] sm:$0xff]  ;;  %v9903_v58 = vld [vmem:[#allocation35 + $0xb0] sm:$0xff] }
0x1572   :  { %9789 = vmatprep.subr.mxu1 %v9640_v17  ;;  %9859 = vmatpush2.msra.mxu0 %v9705_v48  ;;  %v9971_v17 = vld [vmem:[#allocation35 + $0x2d0] sm:$0xff]  ;;  %v9902_v48 = vld [vmem:[#allocation35 + $0xa8] sm:$0xff] }
0x1573   :  { %9790 = vmatpush2.msra.mxu1 %v9639_v19  ;;  %9860 = vmatprep.subr.mxu0 %v9704_v23  ;;  %v9901_v19 = vld [vmem:[#allocation35 + $0xa0] sm:$0xff] }
0x1574   :  { %9791 = vmatprep.subr.mxu1 %v9638_v39  ;;  %9861 = vmatpush2.msra.mxu0 %v9703_v60  ;;  %v9969_v23 = vld [vmem:[#allocation35 + $0x2c0] sm:$0xff]  ;;  %v9900_v39 = vld [vmem:[#allocation35 + $0x98] sm:$0xff] }
0x1575   :  { %9792 = vmatpush2.msra.mxu1 %v9637_v5  ;;  %9862 = vmatprep.subr.mxu0 %v9702_v29  ;;  %v9968_v60 = vld [vmem:[#allocation35 + $0x2b8] sm:$0xff]  ;;  %v9899_v5 = vld [vmem:[#allocation35 + $0x90] sm:$0xff] }
0x1576   :  { %9793 = vmatprep.subr.mxu1 %v9636_v12  ;;  %9863 = vmatpush2.msra.mxu0 %v9701_v33  ;;  %v9967_v29 = vld [vmem:[#allocation35 + $0x2b0] sm:$0xff]  ;;  %v9898_v12 = vld [vmem:[#allocation35 + $0x88] sm:$0xff] }
0x1577   :  { %9794 = vmatpush2.msra.mxu1 %v9635_v45  ;;  %9864 = vmatprep.subr.mxu0 %v9700_v36  ;;  %v9966_v33 = vld [vmem:[#allocation35 + $0x2a8] sm:$0xff]  ;;  %v9965_v45 = vld [vmem:[#allocation35 + $0x2a0] sm:$0xff]  ;;  %v9896_v36 = vld [vmem:[#allocation35 + $0x78] sm:$0xff] }
0x1578   :  { %9795 = vmatprep.subr.mxu1 %v9634_v43  ;;  %9865 = vmatpush2.msra.mxu0 %v9699_v7  ;;  %v9964_v43 = vld [vmem:[#allocation35 + $0x298] sm:$0xff]  ;;  %v9895_v7 = vld [vmem:[#allocation35 + $0x70] sm:$0xff] }
0x1579   :  { %9796 = vmatpush2.msra.mxu1 %v9633_v0  ;;  %v8951_v52 = vpop.f32.mrf.mxu1  ;;  %v9022_v10 = vpop.f32.mrf.mxu0  ;;  %9866 = vmatprep.subr.mxu0 %v9698_v27  ;;  %v9963_v0 = vld [vmem:[#allocation35 + $0x290] sm:$0xff]  ;;  %v9962_v27 = vld [vmem:[#allocation35 + $0x288] sm:$0xff] }
0x157a   :  { %9797 = vmatprep.subr.mxu1 %v9632_v38  ;;  %v8952_v32 = vadd.f32 %v8951_v52, %v8734_v28  ;;  %9867 = vmatpush2.msra.mxu0 %v9697_v3  ;;  %v9894_v28 = vld [vmem:[#allocation35 + $0x68] sm:$0xff]  ;;  %v9893_v38 = vld [vmem:[#allocation35 + $0x60] sm:$0xff] }
0x157b   :  { %9798 = vmatpush2.msra.mxu1 %v9631_v8  ;;  %v8953_v56 = vpop.f32.mrf.mxu1  ;;  %9868 = vmatprep.subr.mxu0 %v9696_v44  ;;  %v9024_v16 = vpop.f32.mrf.mxu0  ;;  %v9961_v3 = vld [vmem:[#allocation35 + $0x280] sm:$0xff]  ;;  %v9960_v8 = vld [vmem:[#allocation35 + $0x278] sm:$0xff]  ;;  %v9959_v44 = vld [vmem:[#allocation35 + $0x270] sm:$0xff] }
0x157c   :  { %9799 = vmatprep.subr.mxu1 %v9630_v57  ;;  %v8954_v13 = vadd.f32 %v8953_v56, %v8738_v18  ;;  %9869 = vmatpush2.msra.mxu0 %v9695_v30  ;;  %v9023_v14 = vadd.f32 %v9022_v10, %v8952_v32  ;;  %v9891_v18 = vld [vmem:[#allocation35 + $0x50] sm:$0xff]  ;;  %v9890_v57 = vld [vmem:[#allocation35 + $0x48] sm:$0xff]  ;;  %v9889_v10 = vld [vmem:[#allocation35 + $0x40] sm:$0xff] }
0x157d   :  { %9800 = vmatpush2.msra.mxu1 %v9629_v20  ;;  %9870 = vmatprep.subr.mxu0 %v9694_v42  ;;  %v9958_v52 = vld [vmem:[#allocation35 + $0x268] sm:$0xff]  ;;  %v9957_v30 = vld [vmem:[#allocation35 + $0x260] sm:$0xff]  ;;  %v9888_v20 = vld [vmem:[#allocation35 + $0x38] sm:$0xff] }
0x157e   :  { %9802 = vmatmul.mubr.f32.vlgmr.msra.gmra.mxu1 %v9027_v61  ;;  %v9025_v46 = vadd.f32 %v9024_v16, %v8954_v13  ;;  %9871 = vmatpush2.msra.mxu0 %v9693_v47  ;;  %v9029_v63 = vmax.f32 %v9023_v14, 0.0  ;;  %v9956_v32 = vld [vmem:[#allocation35 + $0x258] sm:$0xff]  ;;  %v9887_v42 = vld [vmem:[#allocation35 + $0x30] sm:$0xff]  ;;  %v9886_v47 = vld [vmem:[#allocation35 + $0x28] sm:$0xff] }
0x157f   :  { %10021 = vmatprep.subr.mxu1 %v9912_v54  ;;  %10092 = vmatprep.subr.mxu0 %v9976_v6  ;;  %v9955_v56 = vld [vmem:[#allocation35 + $0x250] sm:$0xff]  ;;  %v9954_v61 = vld [vmem:[#allocation35 + $0x248] sm:$0xff]  ;;  %v9885_v13 = vld [vmem:[#allocation35 + $0x20] sm:$0xff] }
0x1580   :  { %v9030_v55 = vmax.f32 %v9025_v46, 0.0  ;;  %10022 = vmatpush1.msra.mxu1 %v9911_v37  ;;  %v9953_v54 = vld [vmem:[#allocation35 + $0x240] sm:$0xff]  ;;  %v9884_v6 = vld [vmem:[#allocation35 + $0x18] sm:$0xff]  ;;  %v9883_v16 = vld [vmem:[#allocation35 + $0x10] sm:$0xff] }
0x1581   :  { %10023 = vmatprep.subr.mxu1 %v9910_v15  ;;  %v9952_v14 = vld [vmem:[#allocation35 + $0x238] sm:$0xff]  ;;  %v9951_v37 = vld [vmem:[#allocation35 + $0x230] sm:$0xff]  ;;  %v9882_v46 = vld [vmem:[#allocation35 + $0x8] sm:$0xff] }
0x1582   :  { %9872 = vmatprep.mubr.f32.mxu0 %v9030_v55  ;;  %10024 = vmatpush1.msra.mxu1 %v9909_v34  ;;  %v9950_v15 = vld [vmem:[#allocation35 + $0x228] sm:$0xff]  ;;  %v9881_v34 = vld [vmem:[#allocation35] sm:$0xff] }
0x1583   :  { %9873 = vmatmul.mubr.f32.vlgmr.msra.gmra.mxu0 %v9029_v63  ;;  %10025 = vmatprep.subr.mxu1 %v9908_v31  ;;  %v9949_v55 = vld [vmem:[#allocation35 + $0x220] sm:$0xff]  ;;  %v9944_v31 = vld [vmem:[#allocation35 + $0x1f8] sm:$0xff] }
0x1584   :  { %10026 = vmatpush1.msra.mxu1 %v9907_v51  ;;  %10093 = vmatpush1.msra.mxu0 %v9975_v22  ;;  %v9948_v63 = vld [vmem:[#allocation35 + $0x218] sm:$0xff]  ;;  %v9943_v51 = vld [vmem:[#allocation35 + $0x1f0] sm:$0xff] }
0x1585   :  { %10027 = vmatprep.subr.mxu1 %v9906_v50  ;;  %10094 = vmatprep.subr.mxu0 %v9974_v24  ;;  %v9947_v22 = vld [vmem:[#allocation35 + $0x210] sm:$0xff]  ;;  %v9942_v50 = vld [vmem:[#allocation35 + $0x1e8] sm:$0xff] }
0x1586   :  { %10028 = vmatpush1.msra.mxu1 %v9905_v53  ;;  %10095 = vmatpush1.msra.mxu0 %v9973_v59  ;;  %v9946_v24 = vld [vmem:[#allocation35 + $0x208] sm:$0xff]  ;;  %v9941_v53 = vld [vmem:[#allocation35 + $0x1e0] sm:$0xff] }
0x1587   :  { %10029 = vmatprep.subr.mxu1 %v9904_v9  ;;  %10096 = vmatprep.subr.mxu0 %v9972_v4  ;;  %v9945_v59 = vld [vmem:[#allocation35 + $0x200] sm:$0xff]  ;;  %v9940_v9 = vld [vmem:[#allocation35 + $0x1d8] sm:$0xff] }
0x1588   :  { %10030 = vmatpush1.msra.mxu1 %v9903_v58  ;;  %10097 = vmatpush1.msra.mxu0 %v9971_v17  ;;  %v10008_v4 = vld [vmem:[#allocation35 + $0x3f8] sm:$0xff]  ;;  %v9939_v58 = vld [vmem:[#allocation35 + $0x1d0] sm:$0xff] }
0x1589   :  { %10031 = vmatprep.subr.mxu1 %v9902_v48  ;;  %10098 = vmatprep.subr.mxu0 %v9970_v11  ;;  %v10007_v17 = vld [vmem:[#allocation35 + $0x3f0] sm:$0xff]  ;;  %v9938_v48 = vld [vmem:[#allocation35 + $0x1c8] sm:$0xff] }
0x158a   :  { %10032 = vmatpush1.msra.mxu1 %v9901_v19  ;;  %10099 = vmatpush1.msra.mxu0 %v9969_v23  ;;  %v10006_v11 = vld [vmem:[#allocation35 + $0x3e8] sm:$0xff]  ;;  %v9937_v19 = vld [vmem:[#allocation35 + $0x1c0] sm:$0xff] }
0x158b   :  { %10033 = vmatprep.subr.mxu1 %v9900_v39  ;;  %10100 = vmatprep.subr.mxu0 %v9968_v60  ;;  %v10005_v23 = vld [vmem:[#allocation35 + $0x3e0] sm:$0xff]  ;;  %v9936_v39 = vld [vmem:[#allocation35 + $0x1b8] sm:$0xff] }
0x158c   :  { %10034 = vmatpush1.msra.mxu1 %v9899_v5  ;;  %10101 = vmatpush1.msra.mxu0 %v9967_v29  ;;  %v10004_v60 = vld [vmem:[#allocation35 + $0x3d8] sm:$0xff]  ;;  %v9935_v5 = vld [vmem:[#allocation35 + $0x1b0] sm:$0xff] }
0x158d   :  { %10035 = vmatprep.subr.mxu1 %v9898_v12  ;;  %10102 = vmatprep.subr.mxu0 %v9966_v33  ;;  %v10003_v29 = vld [vmem:[#allocation35 + $0x3d0] sm:$0xff]  ;;  %v9934_v12 = vld [vmem:[#allocation35 + $0x1a8] sm:$0xff] }
0x158e   :  { %10036 = vmatpush1.msra.mxu1 %v9897_v40  ;;  %10103 = vmatpush1.msra.mxu0 %v9965_v45  ;;  %v10002_v33 = vld [vmem:[#allocation35 + $0x3c8] sm:$0xff]  ;;  %v9933_v40 = vld [vmem:[#allocation35 + $0x1a0] sm:$0xff] }
0x158f   :  { %10037 = vmatprep.subr.mxu1 %v9896_v36  ;;  %10104 = vmatprep.subr.mxu0 %v9964_v43  ;;  %v10001_v45 = vld [vmem:[#allocation35 + $0x3c0] sm:$0xff]  ;;  %v9932_v36 = vld [vmem:[#allocation35 + $0x198] sm:$0xff] }
0x1590   :  { %10038 = vmatpush1.msra.mxu1 %v9895_v7  ;;  %10105 = vmatpush1.msra.mxu0 %v9963_v0  ;;  %v10000_v43 = vld [vmem:[#allocation35 + $0x3b8] sm:$0xff]  ;;  %v9931_v7 = vld [vmem:[#allocation35 + $0x190] sm:$0xff] }
0x1591   :  { %10039 = vmatprep.subr.mxu1 %v9894_v28  ;;  %10106 = vmatprep.subr.mxu0 %v9962_v27  ;;  %v9999_v0 = vld [vmem:[#allocation35 + $0x3b0] sm:$0xff]  ;;  %v9930_v28 = vld [vmem:[#allocation35 + $0x188] sm:$0xff] }
0x1592   :  { %10040 = vmatpush1.msra.mxu1 %v9893_v38  ;;  %10107 = vmatpush1.msra.mxu0 %v9961_v3  ;;  %v9998_v27 = vld [vmem:[#allocation35 + $0x3a8] sm:$0xff]  ;;  %v9929_v38 = vld [vmem:[#allocation35 + $0x180] sm:$0xff] }
0x1593   :  { %10041 = vmatprep.subr.mxu1 %v9892_v25  ;;  %10108 = vmatprep.subr.mxu0 %v9960_v8  ;;  %v9997_v3 = vld [vmem:[#allocation35 + $0x3a0] sm:$0xff]  ;;  %v9928_v25 = vld [vmem:[#allocation35 + $0x178] sm:$0xff] }
0x1594   :  { %10042 = vmatpush1.msra.mxu1 %v9891_v18  ;;  %10109 = vmatpush1.msra.mxu0 %v9959_v44  ;;  %v9996_v8 = vld [vmem:[#allocation35 + $0x398] sm:$0xff]  ;;  %v9927_v18 = vld [vmem:[#allocation35 + $0x170] sm:$0xff] }
0x1595   :  { %10043 = vmatprep.subr.mxu1 %v9890_v57  ;;  %10110 = vmatprep.subr.mxu0 %v9958_v52  ;;  %v9995_v44 = vld [vmem:[#allocation35 + $0x390] sm:$0xff]  ;;  %v9926_v57 = vld [vmem:[#allocation35 + $0x168] sm:$0xff] }
0x1596   :  { %10044 = vmatpush1.msra.mxu1 %v9889_v10  ;;  %10111 = vmatpush1.msra.mxu0 %v9957_v30  ;;  %v9994_v52 = vld [vmem:[#allocation35 + $0x388] sm:$0xff]  ;;  %v9925_v10 = vld [vmem:[#allocation35 + $0x160] sm:$0xff] }
0x1597   :  { %10045 = vmatprep.subr.mxu1 %v9888_v20  ;;  %10112 = vmatprep.subr.mxu0 %v9956_v32  ;;  %v9993_v30 = vld [vmem:[#allocation35 + $0x380] sm:$0xff]  ;;  %v9924_v20 = vld [vmem:[#allocation35 + $0x158] sm:$0xff] }
0x1598   :  { %10046 = vmatpush1.msra.mxu1 %v9887_v42  ;;  %10113 = vmatpush1.msra.mxu0 %v9955_v56  ;;  %v9992_v32 = vld [vmem:[#allocation35 + $0x378] sm:$0xff]  ;;  %v9923_v42 = vld [vmem:[#allocation35 + $0x150] sm:$0xff] }
0x1599   :  { %10047 = vmatprep.subr.mxu1 %v9886_v47  ;;  %10114 = vmatprep.subr.mxu0 %v9954_v61  ;;  %v9991_v56 = vld [vmem:[#allocation35 + $0x370] sm:$0xff]  ;;  %v9922_v47 = vld [vmem:[#allocation35 + $0x148] sm:$0xff] }
0x159a   :  { %10048 = vmatpush1.msra.mxu1 %v9885_v13  ;;  %10115 = vmatpush1.msra.mxu0 %v9953_v54  ;;  %v9990_v61 = vld [vmem:[#allocation35 + $0x368] sm:$0xff]  ;;  %v9921_v13 = vld [vmem:[#allocation35 + $0x140] sm:$0xff] }
0x159b   :  { %10049 = vmatprep.subr.mxu1 %v9884_v6  ;;  %10116 = vmatprep.subr.mxu0 %v9952_v14  ;;  %v9989_v54 = vld [vmem:[#allocation35 + $0x360] sm:$0xff]  ;;  %v13343_v6 = vld [vmem:[#allocation31] sm:$0xf] }
0x159c   :  { %10050 = vmatpush1.msra.mxu1 %v9883_v16  ;;  %10117 = vmatpush1.msra.mxu0 %v9951_v37  ;;  %v9920_v14 = vld [vmem:[#allocation35 + $0x138] sm:$0xff]  ;;  %v9919_v37 = vld [vmem:[#allocation35 + $0x130] sm:$0xff] }
0x159d   :  { %10051 = vmatprep.subr.mxu1 %v9882_v46  ;;  %10118 = vmatprep.subr.mxu0 %v9950_v15  ;;  %v9988_v16 = vld [vmem:[#allocation35 + $0x358] sm:$0xff]  ;;  %v9987_v46 = vld [vmem:[#allocation35 + $0x350] sm:$0xff]  ;;  %v9918_v15 = vld [vmem:[#allocation35 + $0x128] sm:$0xff] }
0x159e   :  { %10052 = vmatpush1.msra.mxu1 %v9881_v34  ;;  %10119 = vmatpush1.msra.mxu0 %v9949_v55  ;;  %v9986_v34 = vld [vmem:[#allocation35 + $0x348] sm:$0xff]  ;;  %v9292_v55 = vrot.slane %v13343_v6, %v13828_v49 }
0x159f   :  { %10053 = vmatprep.subr.mxu1 %v9944_v31  ;;  %10120 = vmatprep.subr.mxu0 %v9948_v63  ;;  %v9917_v31 = vld [vmem:[#allocation35 + $0x120] sm:$0xff] }
0x15a0   :  { %10054 = vmatpush2.msra.mxu1 %v9943_v51  ;;  %10121 = vmatpush1.msra.mxu0 %v9947_v22  ;;  %v9985_v63 = vld [vmem:[#allocation35 + $0x340] sm:$0xff]  ;;  %v9916_v51 = vld [vmem:[#allocation35 + $0x118] sm:$0xff] }
0x15a1   :  { %10055 = vmatprep.subr.mxu1 %v9942_v50  ;;  %10122 = vmatprep.subr.mxu0 %v9946_v24  ;;  %v9984_v22 = vld [vmem:[#allocation35 + $0x338] sm:$0xff]  ;;  %v9296_v50 = vrot.slane %v13343_v6, %v13830_v35  ;;  %v9915_v24 = vld [vmem:[#allocation35 + $0x110] sm:$0xff] }
0x15a2   :  { %10056 = vmatpush2.msra.mxu1 %v9941_v53  ;;  %10123 = vmatpush1.msra.mxu0 %v9945_v59  ;;  %v9983_v53 = vld [vmem:[#allocation35 + $0x330] sm:$0xff] }
0x15a3   :  { %10057 = vmatprep.subr.mxu1 %v9940_v9  ;;  %10124 = vmatprep.subr.mxu0 %v10008_v4  ;;  %v9914_v9 = vld [vmem:[#allocation35 + $0x108] sm:$0xff] }
0x15a4   :  { %10058 = vmatpush2.msra.mxu1 %v9939_v58  ;;  %10125 = vmatpush2.msra.mxu0 %v10007_v17  ;;  %v9982_v4 = vld [vmem:[#allocation35 + $0x328] sm:$0xff]  ;;  %v9913_v17 = vld [vmem:[#allocation35 + $0x100] sm:$0xff] }
0x15a5   :  { %10059 = vmatprep.subr.mxu1 %v9938_v48  ;;  %10126 = vmatprep.subr.mxu0 %v10006_v11  ;;  %v9981_v48 = vld [vmem:[#allocation35 + $0x320] sm:$0xff] }
0x15a6   :  { %10060 = vmatpush2.msra.mxu1 %v9937_v19  ;;  %10127 = vmatpush2.msra.mxu0 %v10005_v23  ;;  %v10196_v23 = vld [vmem:[%s13840_s7 + $0xf8] sm:$0xff] }
0x15a7   :  { %10061 = vmatprep.subr.mxu1 %v9936_v39  ;;  %10128 = vmatprep.subr.mxu0 %v10004_v60  ;;  %v9980_v39 = vld [vmem:[#allocation35 + $0x318] sm:$0xff] }
0x15a8   :  { %10062 = vmatpush2.msra.mxu1 %v9935_v5  ;;  %10129 = vmatpush2.msra.mxu0 %v10003_v29  ;;  %v9979_v5 = vld [vmem:[#allocation35 + $0x310] sm:$0xff] }
0x15a9   :  { %10063 = vmatprep.subr.mxu1 %v9934_v12  ;;  %10130 = vmatprep.subr.mxu0 %v10002_v33  ;;  %v9978_v33 = vld [vmem:[#allocation35 + $0x308] sm:$0xff] }
0x15aa   :  { %10064 = vmatpush2.msra.mxu1 %v9933_v40  ;;  %10131 = vmatpush2.msra.mxu0 %v10001_v45  ;;  %v9977_v45 = vld [vmem:[#allocation35 + $0x300] sm:$0xff] }
0x15ab   :  { %10065 = vmatprep.subr.mxu1 %v9932_v36  ;;  %10132 = vmatprep.subr.mxu0 %v10000_v43  ;;  %v10228_v36 = vld [vmem:[%s13840_s7 + $0x1f8] sm:$0xff] }
0x15ac   :  { %10066 = vmatpush2.msra.mxu1 %v9931_v7  ;;  %10133 = vmatpush2.msra.mxu0 %v9999_v0  ;;  %v10180_v0 = vld [vmem:[%s13840_s7 + $0x78] sm:$0xff] }
0x15ad   :  { %10067 = vmatprep.subr.mxu1 %v9930_v28  ;;  %10134 = vmatprep.subr.mxu0 %v9998_v27  ;;  %v8092_v28 = vmax.f32 %v13271_v41, 0.0  ;;  %v10195_v27 = vld [vmem:[%s13840_s7 + $0xf0] sm:$0xff]  ;;  %v10178_v41 = vld [vmem:[%s13840_s7 + $0x68] sm:$0xff] }
0x15ae   :  { %10068 = vmatpush2.msra.mxu1 %v9929_v38  ;;  %10135 = vmatpush2.msra.mxu0 %v9997_v3  ;;  %v10179_v38 = vld [vmem:[%s13840_s7 + $0x70] sm:$0xff]  ;;  %v10194_v3 = vld [vmem:[%s13840_s7 + $0xe8] sm:$0xff] }
0x15af   :  { %10069 = vmatprep.subr.mxu1 %v9928_v25  ;;  %10136 = vmatprep.subr.mxu0 %v9996_v8  ;;  %v10193_v25 = vld [vmem:[%s13840_s7 + $0xe0] sm:$0xff] }
0x15b0   :  { %10070 = vmatpush2.msra.mxu1 %v9927_v18  ;;  %10137 = vmatpush2.msra.mxu0 %v9995_v44  ;;  %v10177_v8 = vld [vmem:[%s13840_s7 + $0x60] sm:$0xff]  ;;  %v10192_v18 = vld [vmem:[%s13840_s7 + $0xd8] sm:$0xff] }
0x15b1   :  { %10071 = vmatprep.subr.mxu1 %v9926_v57  ;;  %10138 = vmatprep.subr.mxu0 %v9994_v52  ;;  %v10176_v44 = vld [vmem:[%s13840_s7 + $0x58] sm:$0xff]  ;;  %v10191_v57 = vld [vmem:[%s13840_s7 + $0xd0] sm:$0xff] }
0x15b2   :  { %10072 = vmatpush2.msra.mxu1 %v9925_v10  ;;  %10139 = vmatpush2.msra.mxu0 %v9993_v30  ;;  %v10175_v52 = vld [vmem:[%s13840_s7 + $0x50] sm:$0xff]  ;;  %v10190_v10 = vld [vmem:[%s13840_s7 + $0xc8] sm:$0xff] }
0x15b3   :  { %10073 = vmatprep.subr.mxu1 %v9924_v20  ;;  %10140 = vmatprep.subr.mxu0 %v9992_v32  ;;  %v10174_v30 = vld [vmem:[%s13840_s7 + $0x48] sm:$0xff]  ;;  %v10189_v20 = vld [vmem:[%s13840_s7 + $0xc0] sm:$0xff] }
0x15b4   :  { %10074 = vmatpush2.msra.mxu1 %v9923_v42  ;;  %10141 = vmatpush2.msra.mxu0 %v9991_v56  ;;  %v10173_v32 = vld [vmem:[%s13840_s7 + $0x40] sm:$0xff]  ;;  %v10188_v42 = vld [vmem:[%s13840_s7 + $0xb8] sm:$0xff] }
0x15b5   :  { %10075 = vmatprep.subr.mxu1 %v9922_v47  ;;  %10142 = vmatprep.subr.mxu0 %v9990_v61  ;;  %v10172_v56 = vld [vmem:[%s13840_s7 + $0x38] sm:$0xff]  ;;  %v10187_v47 = vld [vmem:[%s13840_s7 + $0xb0] sm:$0xff] }
0x15b6   :  { %10076 = vmatpush2.msra.mxu1 %v9921_v13  ;;  %10143 = vmatpush2.msra.mxu0 %v9989_v54  ;;  %v10171_v61 = vld [vmem:[%s13840_s7 + $0x30] sm:$0xff]  ;;  %v10186_v13 = vld [vmem:[%s13840_s7 + $0xa8] sm:$0xff] }
0x15b7   :  { %10077 = vmatprep.subr.mxu1 %v9920_v14  ;;  %10144 = vmatprep.subr.mxu0 %v9988_v16  ;;  %v10170_v54 = vld [vmem:[%s13840_s7 + $0x28] sm:$0xff]  ;;  %v10185_v14 = vld [vmem:[%s13840_s7 + $0xa0] sm:$0xff] }
0x15b8   :  { %10078 = vmatpush2.msra.mxu1 %v9919_v37  ;;  %10145 = vmatpush2.msra.mxu0 %v9987_v46  ;;  %v10169_v16 = vld [vmem:[%s13840_s7 + $0x20] sm:$0xff]  ;;  %v10184_v37 = vld [vmem:[%s13840_s7 + $0x98] sm:$0xff] }
0x15b9   :  { %10079 = vmatprep.subr.mxu1 %v9918_v15  ;;  %10146 = vmatprep.subr.mxu0 %v9986_v34  ;;  %v10168_v46 = vld [vmem:[%s13840_s7 + $0x18] sm:$0xff]  ;;  %v10183_v15 = vld [vmem:[%s13840_s7 + $0x90] sm:$0xff] }
0x15ba   :  { %v9375_v59 = vpop.f32.mrf.mxu1  ;;  %10080 = vmatpush2.msra.mxu1 %v9917_v31  ;;  %10147 = vmatpush2.msra.mxu0 %v9985_v63  ;;  %v10167_v34 = vld [vmem:[%s13840_s7 + $0x10] sm:$0xff]  ;;  %v10166_v31 = vld [vmem:[%s13840_s7 + $0x8] sm:$0xff]  ;;  %v10181_v63 = vld [vmem:[%s13840_s7 + $0x80] sm:$0xff] }
0x15bb   :  { %v9376_v58 = vadd.f32 %v9375_v59, %v9292_v55  ;;  %10081 = vmatprep.subr.mxu1 %v9916_v51  ;;  %10148 = vmatprep.subr.mxu0 %v9984_v22  ;;  %v10182_v55 = vld [vmem:[%s13840_s7 + $0x88] sm:$0xff]  ;;  %v10165_v51 = vld [vmem:[%s13840_s7] sm:$0xff]  ;;  %v10260_v22 = vld [vmem:[%s13840_s7 + $0x2f8] sm:$0xff] }
0x15bc   :  { %v9377_v11 = vpop.f32.mrf.mxu1  ;;  %v9446_v19 = vpop.f32.mrf.mxu0  ;;  %10082 = vmatpush2.msra.mxu1 %v9915_v24  ;;  %10149 = vmatpush2.msra.mxu0 %v9983_v53  ;;  %v10244_v24 = vld [vmem:[%s13840_s7 + $0x278] sm:$0xff]  ;;  %v10259_v53 = vld [vmem:[%s13840_s7 + $0x2f0] sm:$0xff] }
0x15bd   :  { %v9378_v60 = vadd.f32 %v9377_v11, %v9296_v50  ;;  %10083 = vmatprep.subr.mxu1 %v9914_v9  ;;  %10150 = vmatprep.subr.mxu0 %v9982_v4  ;;  %v9447_v29 = vadd.f32 %v9446_v19, %v9376_v58  ;;  %v8091_v50 = vmax.f32 %v13265_v1, 0.0  ;;  %v10243_v59 = vld [vmem:[%s13840_s7 + $0x270] sm:$0xff]  ;;  %v10258_v1 = vld [vmem:[%s13840_s7 + $0x2e8] sm:$0xff]  ;;  %v10257_v4 = vld [vmem:[%s13840_s7 + $0x2e0] sm:$0xff] }
0x15be   :  { %v9448_v12 = vpop.f32.mrf.mxu0  ;;  %10084 = vmatpush2.msra.mxu1 %v9913_v17  ;;  %10151 = vmatpush2.msra.mxu0 %v9981_v48  ;;  %v10242_v9 = vld [vmem:[%s13840_s7 + $0x268] sm:$0xff]  ;;  %v10241_v58 = vld [vmem:[%s13840_s7 + $0x260] sm:$0xff]  ;;  %v10256_v17 = vld [vmem:[%s13840_s7 + $0x2d8] sm:$0xff] }
0x15bf   :  { %v9449_v40 = vadd.f32 %v9448_v12, %v9378_v60  ;;  %11030 = vmatprep.subr.mxu1 %v10196_v23  ;;  %10152 = vmatprep.subr.mxu0 %v9980_v39  ;;  %v9593_v7 = vmax.f32 %v9447_v29, 0.0  ;;  %v10240_v48 = vld [vmem:[%s13840_s7 + $0x258] sm:$0xff]  ;;  %v10255_v11 = vld [vmem:[%s13840_s7 + $0x2d0] sm:$0xff]  ;;  %v10254_v23 = vld [vmem:[%s13840_s7 + $0x2c8] sm:$0xff] }
0x15c0   :  { %10153 = vmatpush2.msra.mxu0 %v9979_v5  ;;  %v10239_v19 = vld [vmem:[%s13840_s7 + $0x250] sm:$0xff]  ;;  %v10238_v39 = vld [vmem:[%s13840_s7 + $0x248] sm:$0xff]  ;;  %v10253_v60 = vld [vmem:[%s13840_s7 + $0x2c0] sm:$0xff] }
0x15c1   :  { %v9594_v43 = vmax.f32 %v9449_v40, 0.0  ;;  %10154 = vmatprep.subr.mxu0 %v9978_v33  ;;  %v10237_v5 = vld [vmem:[%s13840_s7 + $0x240] sm:$0xff]  ;;  %v10252_v29 = vld [vmem:[%s13840_s7 + $0x2b8] sm:$0xff]  ;;  %v10251_v33 = vld [vmem:[%s13840_s7 + $0x2b0] sm:$0xff] }
0x15c2   :  { %10155 = vmatpush2.msra.mxu0 %v9977_v45  ;;  %v10236_v12 = vld [vmem:[%s13840_s7 + $0x238] sm:$0xff]  ;;  %v10235_v40 = vld [vmem:[%s13840_s7 + $0x230] sm:$0xff]  ;;  %v10250_v45 = vld [vmem:[%s13840_s7 + $0x2a8] sm:$0xff] }
0x15c3   :  { %10085 = vmatprep.mubr.f32.mxu1 %v9594_v43  ;;  %11065 = vmatprep.subr.mxu0 %v10228_v36  ;;  %v10234_v36 = vld [vmem:[%s13840_s7 + $0x228] sm:$0xff]  ;;  %v10249_v43 = vld [vmem:[%s13840_s7 + $0x2a0] sm:$0xff] }
0x15c4   :  { %10086 = vmatmul.mubr.f32.vlgmr.msra.gmra.mxu1 %v9593_v7  ;;  %v10233_v7 = vld [vmem:[%s13840_s7 + $0x220] sm:$0xff] }
0x15c5   :  { %11031 = vmatpush3.msra.mxu1 %v10180_v0  ;;  %10364 = vmatprep.mubr.f32.mxu1 %v8092_v28  ;;  %v10248_v0 = vld [vmem:[%s13840_s7 + $0x298] sm:$0xff]  ;;  %v9300_v28 = vrot.slane %v13343_v6, %v13829_v62 }
0x15c6   :  { %11032 = vmatprep.subr.mxu1 %v10195_v27  ;;  %v10232_v27 = vld [vmem:[%s13840_s7 + $0x218] sm:$0xff] }
0x15c7   :  { %11033 = vmatpush3.msra.mxu1 %v10179_v38  ;;  %v10247_v38 = vld [vmem:[%s13840_s7 + $0x290] sm:$0xff] }
0x15c8   :  { %11034 = vmatprep.subr.mxu1 %v10194_v3  ;;  %v9304_v3 = vrot.slane %v13343_v6, %v13836_v21  ;;  %v10245_v21 = vld [vmem:[%s13840_s7 + $0x280] sm:$0xff] }
0x15c9   :  { %11035 = vmatpush3.msra.mxu1 %v10178_v41  ;;  %v10231_v41 = vld [vmem:[%s13840_s7 + $0x210] sm:$0xff] }
0x15ca   :  { %11036 = vmatprep.subr.mxu1 %v10193_v25 }
0x15cb   :  { %11037 = vmatpush3.msra.mxu1 %v10177_v8  ;;  %v10246_v8 = vld [vmem:[%s13840_s7 + $0x288] sm:$0xff] }
0x15cc   :  { %11038 = vmatprep.subr.mxu1 %v10192_v18 }
0x15cd   :  { %11039 = vmatpush3.msra.mxu1 %v10176_v44  ;;  %v10230_v44 = vld [vmem:[%s13840_s7 + $0x208] sm:$0xff] }
0x15ce   :  { %11040 = vmatprep.subr.mxu1 %v10191_v57 }
0x15cf   :  { %11041 = vmatpush3.msra.mxu1 %v10175_v52  ;;  %v10229_v52 = vld [vmem:[%s13840_s7 + $0x200] sm:$0xff] }
0x15d0   :  { %11042 = vmatprep.subr.mxu1 %v10190_v10 }
0x15d1   :  { %11043 = vmatpush3.msra.mxu1 %v10174_v30 }
0x15d2   :  { %11044 = vmatprep.subr.mxu1 %v10189_v20 }
0x15d3   :  { %11045 = vmatpush3.msra.mxu1 %v10173_v32 }
0x15d4   :  { %11046 = vmatprep.subr.mxu1 %v10188_v42 }
0x15d5   :  { %11047 = vmatpush3.msra.mxu1 %v10172_v56  ;;  %v10212_v56 = vld [vmem:[%s13840_s7 + $0x178] sm:$0xff] }
0x15d6   :  { %11048 = vmatprep.subr.mxu1 %v10187_v47  ;;  %v8094_v47 = vmax.f32 %v13273_v2, 0.0  ;;  %v10210_v2 = vld [vmem:[%s13840_s7 + $0x168] sm:$0xff] }
0x15d7   :  { %11049 = vmatpush3.msra.mxu1 %v10171_v61  ;;  %v10227_v61 = vld [vmem:[%s13840_s7 + $0x1f0] sm:$0xff] }
0x15d8   :  { %11050 = vmatprep.subr.mxu1 %v10186_v13  ;;  %v10211_v13 = vld [vmem:[%s13840_s7 + $0x170] sm:$0xff] }
0x15d9   :  { %11051 = vmatpush3.msra.mxu1 %v10170_v54  ;;  %v10226_v54 = vld [vmem:[%s13840_s7 + $0x1e8] sm:$0xff] }
0x15da   :  { %11052 = vmatprep.subr.mxu1 %v10185_v14  ;;  %v10225_v14 = vld [vmem:[%s13840_s7 + $0x1e0] sm:$0xff] }
0x15db   :  { %11053 = vmatpush3.msra.mxu1 %v10169_v16  ;;  %v10209_v16 = vld [vmem:[%s13840_s7 + $0x160] sm:$0xff] }
0x15dc   :  { %11054 = vmatprep.subr.mxu1 %v10184_v37  ;;  %v10224_v37 = vld [vmem:[%s13840_s7 + $0x1d8] sm:$0xff] }
0x15dd   :  { %11055 = vmatpush3.msra.mxu1 %v10168_v46  ;;  %v10208_v46 = vld [vmem:[%s13840_s7 + $0x158] sm:$0xff] }
0x15de   :  { %11056 = vmatprep.subr.mxu1 %v10183_v15  ;;  %v10223_v15 = vld [vmem:[%s13840_s7 + $0x1d0] sm:$0xff] }
0x15df   :  { %11057 = vmatpush3.msra.mxu1 %v10167_v34  ;;  %v10207_v34 = vld [vmem:[%s13840_s7 + $0x150] sm:$0xff] }
0x15e0   :  { %11058 = vmatprep.subr.mxu1 %v10182_v55  ;;  %v10222_v55 = vld [vmem:[%s13840_s7 + $0x1c8] sm:$0xff] }
0x15e1   :  { %11059 = vmatpush3.msra.mxu1 %v10166_v31  ;;  %v10206_v31 = vld [vmem:[%s13840_s7 + $0x148] sm:$0xff] }
0x15e2   :  { %11060 = vmatprep.subr.mxu1 %v10181_v63  ;;  %v10221_v63 = vld [vmem:[%s13840_s7 + $0x1c0] sm:$0xff] }
0x15e3   :  { %11061 = vmatpush3.msra.mxu1 %v10165_v51  ;;  %v10205_v51 = vld [vmem:[%s13840_s7 + $0x140] sm:$0xff] }
0x15e4   :  { %10365 = vmatmul.mubr.f32.vlgmr.msra.gmra.mxu1 %v8091_v50  ;;  %11100 = vmatprep.subr.mxu1 %v10260_v22  ;;  %v10220_v22 = vld [vmem:[%s13840_s7 + $0x1b8] sm:$0xff] }
0x15e5   :  { %11101 = vmatpush3.msra.mxu1 %v10244_v24  ;;  %v10204_v50 = vld [vmem:[%s13840_s7 + $0x138] sm:$0xff]  ;;  %v10219_v24 = vld [vmem:[%s13840_s7 + $0x1b0] sm:$0xff] }
0x15e6   :  { %11102 = vmatprep.subr.mxu1 %v10259_v53  ;;  %v10203_v53 = vld [vmem:[%s13840_s7 + $0x130] sm:$0xff] }
0x15e7   :  { %11103 = vmatpush3.msra.mxu1 %v10243_v59  ;;  %v10218_v59 = vld [vmem:[%s13840_s7 + $0x1a8] sm:$0xff] }
0x15e8   :  { %11104 = vmatprep.subr.mxu1 %v10258_v1  ;;  %v10202_v1 = vld [vmem:[%s13840_s7 + $0x128] sm:$0xff] }
0x15e9   :  { %11105 = vmatpush3.msra.mxu1 %v10242_v9  ;;  %v10217_v9 = vld [vmem:[%s13840_s7 + $0x1a0] sm:$0xff] }
0x15ea   :  { %11106 = vmatprep.subr.mxu1 %v10257_v4  ;;  %v10201_v4 = vld [vmem:[%s13840_s7 + $0x120] sm:$0xff] }
0x15eb   :  { %11107 = vmatpush3.msra.mxu1 %v10241_v58  ;;  %v10216_v58 = vld [vmem:[%s13840_s7 + $0x198] sm:$0xff] }
0x15ec   :  { %11108 = vmatprep.subr.mxu1 %v10256_v17  ;;  %v10200_v17 = vld [vmem:[%s13840_s7 + $0x118] sm:$0xff] }
0x15ed   :  { %11109 = vmatpush3.msra.mxu1 %v10240_v48  ;;  %v10215_v48 = vld [vmem:[%s13840_s7 + $0x190] sm:$0xff] }
0x15ee   :  { %11110 = vmatprep.subr.mxu1 %v10255_v11  ;;  %v10199_v11 = vld [vmem:[%s13840_s7 + $0x110] sm:$0xff] }
0x15ef   :  { %11111 = vmatpush3.msra.mxu1 %v10239_v19  ;;  %v10214_v19 = vld [vmem:[%s13840_s7 + $0x188] sm:$0xff] }
0x15f0   :  { %11112 = vmatprep.subr.mxu1 %v10254_v23  ;;  %v10198_v23 = vld [vmem:[%s13840_s7 + $0x108] sm:$0xff] }
0x15f1   :  { %11113 = vmatpush3.msra.mxu1 %v10238_v39  ;;  %v10213_v39 = vld [vmem:[%s13840_s7 + $0x180] sm:$0xff] }
0x15f2   :  { %11114 = vmatprep.subr.mxu1 %v10253_v60  ;;  %v10197_v60 = vld [vmem:[%s13840_s7 + $0x100] sm:$0xff] }
0x15f3   :  { %11115 = vmatpush3.msra.mxu1 %v10237_v5  ;;  %v8093_v5 = vmax.f32 %v13268_v26, 0.0  ;;  %v10275_v26 = vld [vmem:[%s13840_s7 + $0x370] sm:$0xff] }
0x15f4   :  { %11116 = vmatprep.subr.mxu1 %v10252_v29  ;;  %v10292_v29 = vld [vmem:[%s13840_s7 + $0x3f8] sm:$0xff] }
0x15f5   :  { %11117 = vmatpush3.msra.mxu1 %v10236_v12  ;;  %v10276_v12 = vld [vmem:[%s13840_s7 + $0x378] sm:$0xff] }
0x15f6   :  { %11118 = vmatprep.subr.mxu1 %v10251_v33  ;;  %v10291_v33 = vld [vmem:[%s13840_s7 + $0x3f0] sm:$0xff] }
0x15f7   :  { %11119 = vmatpush3.msra.mxu1 %v10235_v40  ;;  %v10290_v40 = vld [vmem:[%s13840_s7 + $0x3e8] sm:$0xff] }
0x15f8   :  { %11120 = vmatprep.subr.mxu1 %v10250_v45  ;;  %v10274_v45 = vld [vmem:[%s13840_s7 + $0x368] sm:$0xff] }
0x15f9   :  { %11121 = vmatpush3.msra.mxu1 %v10234_v36  ;;  %v10289_v36 = vld [vmem:[%s13840_s7 + $0x3e0] sm:$0xff] }
0x15fa   :  { %11122 = vmatprep.subr.mxu1 %v10249_v43  ;;  %v10273_v43 = vld [vmem:[%s13840_s7 + $0x360] sm:$0xff] }
0x15fb   :  { %11123 = vmatpush3.msra.mxu1 %v10233_v7  ;;  %v10288_v7 = vld [vmem:[%s13840_s7 + $0x3d8] sm:$0xff] }
0x15fc   :  { %11124 = vmatprep.subr.mxu1 %v10248_v0  ;;  %v10272_v0 = vld [vmem:[%s13840_s7 + $0x358] sm:$0xff] }
0x15fd   :  { %v9517_v25 = vpop.f32.mrf.mxu1  ;;  %v9588_v62 = vpop.f32.mrf.mxu0  ;;  %11125 = vmatpush3.msra.mxu1 %v10232_v27  ;;  %v10271_v27 = vld [vmem:[%s13840_s7 + $0x350] sm:$0xff] }
0x15fe   :  { %v9518_v18 = vadd.f32 %v9517_v25, %v9300_v28  ;;  %11126 = vmatprep.subr.mxu1 %v10247_v38  ;;  %v10287_v28 = vld [vmem:[%s13840_s7 + $0x3d0] sm:$0xff]  ;;  %v10286_v38 = vld [vmem:[%s13840_s7 + $0x3c8] sm:$0xff]  ;;  %v10269_v25 = vld [vmem:[%s13840_s7 + $0x340] sm:$0xff] }
0x15ff   :  { %v9519_v57 = vpop.f32.mrf.mxu1  ;;  %11127 = vmatpush3.msra.mxu1 %v10231_v41  ;;  %v9590_v30 = vpop.f32.mrf.mxu0  ;;  %v10285_v41 = vld [vmem:[%s13840_s7 + $0x3c0] sm:$0xff] }
0x1600   :  { %v9520_v6 = vadd.f32 %v9519_v57, %v9304_v3  ;;  %11128 = vmatprep.subr.mxu1 %v10246_v8  ;;  %v9589_v10 = vadd.f32 %v9588_v62, %v9518_v18  ;;  %v10270_v3 = vld [vmem:[%s13840_s7 + $0x348] sm:$0xff]  ;;  %v10284_v62 = vld [vmem:[%s13840_s7 + $0x3b8] sm:$0xff]  ;;  %v10283_v18 = vld [vmem:[%s13840_s7 + $0x3b0] sm:$0xff] }
0x1601   :  { %11129 = vmatpush3.msra.mxu1 %v10230_v44  ;;  %v10268_v8 = vld [vmem:[%s13840_s7 + $0x338] sm:$0xff]  ;;  %v10267_v44 = vld [vmem:[%s13840_s7 + $0x330] sm:$0xff]  ;;  %v10282_v57 = vld [vmem:[%s13840_s7 + $0x3a8] sm:$0xff] }
0x1602   :  { %v9591_v20 = vadd.f32 %v9590_v30, %v9520_v6  ;;  %11130 = vmatprep.subr.mxu1 %v10245_v21  ;;  %v9595_v42 = vmax.f32 %v9589_v10, 0.0  ;;  %v9725_v21 = vld [vmem:[#allocation34] sm:$0x3]  ;;  %v10266_v6 = vld [vmem:[%s13840_s7 + $0x328] sm:$0xff] }
0x1603   :  { %11131 = vmatpush3.msra.mxu1 %v10229_v52  ;;  %v10281_v52 = vld [vmem:[%s13840_s7 + $0x3a0] sm:$0xff] }
0x1604   :  { %v9596_v32 = vmax.f32 %v9591_v20, 0.0  ;;  %v10265_v30 = vld [vmem:[%s13840_s7 + $0x320] sm:$0xff]  ;;  %v9730_v20 = vrot.slane %v9725_v21, %v13828_v49 }
0x1606   :  { %10156 = vmatprep.mubr.f32.mxu0 %v9596_v32  ;;  %v9734_v32 = vrot.slane %v9725_v21, %v13830_v35 }
0x1607   :  { %10157 = vmatmul.mubr.f32.vlgmr.msra.gmra.mxu0 %v9595_v42 }
0x1608   :  { %11066 = vmatpush3.msra.mxu0 %v10212_v56  ;;  %10434 = vmatprep.mubr.f32.mxu0 %v8094_v47 }
0x1609   :  { %11067 = vmatprep.subr.mxu0 %v10227_v61 }
0x160a   :  { %11068 = vmatpush3.msra.mxu0 %v10211_v13 }
0x160b   :  { %11069 = vmatprep.subr.mxu0 %v10226_v54 }
0x160c   :  { %11070 = vmatpush3.msra.mxu0 %v10210_v2 }
0x160d   :  { %11071 = vmatprep.subr.mxu0 %v10225_v14 }
0x160e   :  { %11072 = vmatpush3.msra.mxu0 %v10209_v16 }
0x160f   :  { %11073 = vmatprep.subr.mxu0 %v10224_v37  ;;  %v10280_v37 = vld [vmem:[%s13840_s7 + $0x398] sm:$0xff] }
0x1610   :  { %11074 = vmatpush3.msra.mxu0 %v10208_v46  ;;  %v10264_v46 = vld [vmem:[%s13840_s7 + $0x318] sm:$0xff] }
0x1611   :  { %11075 = vmatprep.subr.mxu0 %v10223_v15  ;;  %v10279_v15 = vld [vmem:[%s13840_s7 + $0x390] sm:$0xff] }
0x1612   :  { %11076 = vmatpush3.msra.mxu0 %v10207_v34  ;;  %v10263_v34 = vld [vmem:[%s13840_s7 + $0x310] sm:$0xff] }
0x1613   :  { %11077 = vmatprep.subr.mxu0 %v10222_v55  ;;  %v10278_v55 = vld [vmem:[%s13840_s7 + $0x388] sm:$0xff] }
0x1614   :  { %11078 = vmatpush3.msra.mxu0 %v10206_v31  ;;  %v10262_v31 = vld [vmem:[%s13840_s7 + $0x308] sm:$0xff] }
0x1615   :  { %11079 = vmatprep.subr.mxu0 %v10221_v63  ;;  %v10277_v63 = vld [vmem:[%s13840_s7 + $0x380] sm:$0xff] }
0x1616   :  { %11080 = vmatpush3.msra.mxu0 %v10205_v51  ;;  %v10261_v51 = vld [vmem:[%s13840_s7 + $0x300] sm:$0xff]  ;;  %s11902_s7 = smov 127  }
0x1617   :  { %11081 = vmatprep.subr.mxu0 %v10220_v22  ;;  %v10009_v22 = vld [vmem:[#allocation37] sm:$0x3] }
0x1618   :  { %11082 = vmatpush3.msra.mxu0 %v10204_v50 }
0x1619   :  { %11083 = vmatprep.subr.mxu0 %v10219_v24  ;;  %v10014_v24 = vrot.slane %v10009_v22, %v13828_v49 }
0x161a   :  { %11084 = vmatpush3.msra.mxu0 %v10203_v53  ;;  %v10018_v53 = vrot.slane %v10009_v22, %v13830_v35 }
0x161b   :  { %11085 = vmatprep.subr.mxu0 %v10218_v59 }
0x161c   :  { %11086 = vmatpush3.msra.mxu0 %v10202_v1 }
0x161d   :  { %11087 = vmatprep.subr.mxu0 %v10217_v9 }
0x161e   :  { %11088 = vmatpush3.msra.mxu0 %v10201_v4 }
0x161f   :  { %11089 = vmatprep.subr.mxu0 %v10216_v58 }
0x1620   :  { %11090 = vmatpush3.msra.mxu0 %v10200_v17 }
0x1621   :  { %11091 = vmatprep.subr.mxu0 %v10215_v48 }
0x1622   :  { %11092 = vmatpush3.msra.mxu0 %v10199_v11 }
0x1623   :  { %11093 = vmatprep.subr.mxu0 %v10214_v19 }
0x1624   :  { %11094 = vmatpush3.msra.mxu0 %v10198_v23  ;;  %v11901_v23 = vmov 0  }
0x1625   :  { %11095 = vmatprep.subr.mxu0 %v10213_v39  ;;  %11334 = vset.pattern.permute.xlu1 %v11901_v23 }
0x1626   :  { %11096 = vmatpush3.msra.mxu0 %v10197_v60  ;;  %11335 = vset.pattern.permute.xlu0 %v11901_v23 }
0x1627   :  { %10435 = vmatmul.mubr.f32.vlgmr.msra.gmra.mxu0 %v8093_v5  ;;  %11135 = vmatprep.subr.mxu0 %v10292_v29 }
0x1628   :  { %11136 = vmatpush3.msra.mxu0 %v10276_v12  ;;  %v10737_v12 = vld [vmem:[#allocation38] ss:$0 sm:$0xff] }
0x1629   :  { %11137 = vmatprep.subr.mxu0 %v10291_v33 }
0x162a   :  { %11138 = vmatpush3.msra.mxu0 %v10275_v26 }
0x162b   :  { %11139 = vmatprep.subr.mxu0 %v10290_v40 }
0x162c   :  { %11140 = vmatpush3.msra.mxu0 %v10274_v45 }
0x162d   :  { %11141 = vmatprep.subr.mxu0 %v10289_v36 }
0x162e   :  { %11142 = vmatpush3.msra.mxu0 %v10273_v43 }
0x162f   :  { %11143 = vmatprep.subr.mxu0 %v10288_v7 }
0x1630   :  { %11144 = vmatpush3.msra.mxu0 %v10272_v0 }
0x1631   :  { %11145 = vmatprep.subr.mxu0 %v10287_v28 }
0x1632   :  { %11146 = vmatpush3.msra.mxu0 %v10271_v27 }
0x1633   :  { %11147 = vmatprep.subr.mxu0 %v10286_v38 }
0x1634   :  { %11148 = vmatpush3.msra.mxu0 %v10270_v3 }
0x1635   :  { %11149 = vmatprep.subr.mxu0 %v10285_v41 }
0x1636   :  { %11150 = vmatpush3.msra.mxu0 %v10269_v25 }
0x1637   :  { %11151 = vmatprep.subr.mxu0 %v10284_v62 }
0x1638   :  { %11152 = vmatpush3.msra.mxu0 %v10268_v8 }
0x1639   :  { %11153 = vmatprep.subr.mxu0 %v10283_v18 }
0x163a   :  { %11154 = vmatpush3.msra.mxu0 %v10267_v44 }
0x163b   :  { %11155 = vmatprep.subr.mxu0 %v10282_v57 }
0x163c   :  { %11156 = vmatpush3.msra.mxu0 %v10266_v6 }
0x163d   :  { %11157 = vmatprep.subr.mxu0 %v10281_v52 }
0x163e   :  { %v9803_v10 = vpop.f32.mrf.mxu1  ;;  %11158 = vmatpush3.msra.mxu0 %v10265_v30 }
0x163f   :  { %v9804_v56 = vadd.f32 %v9803_v10, %v9730_v20  ;;  %11159 = vmatprep.subr.mxu0 %v10280_v37 }
0x1640   :  { %v9805_v42 = vpop.f32.mrf.mxu1  ;;  %11160 = vmatpush3.msra.mxu0 %v10264_v46 }
0x1641   :  { %v9806_v61 = vadd.f32 %v9805_v42, %v9734_v32  ;;  %11161 = vmatprep.subr.mxu0 %v10279_v15 }
0x1642   :  { %11162 = vmatpush3.msra.mxu0 %v10263_v34 }
0x1643   :  { %v9874_v47 = vpop.f32.mrf.mxu0  ;;  %11163 = vmatprep.subr.mxu0 %v10278_v55 }
0x1644   :  { %v9875_v13 = vadd.f32 %v9874_v47, %v9804_v56  ;;  %11164 = vmatpush3.msra.mxu0 %v10262_v31 }
0x1645   :  { %v9876_v54 = vpop.f32.mrf.mxu0  ;;  %11165 = vmatprep.subr.mxu0 %v10277_v63 }
0x1646   :  { %v9877_v2 = vadd.f32 %v9876_v54, %v9806_v61  ;;  %v9879_v16 = vmax.f32 %v9875_v13, 0.0  ;;  %11166 = vmatpush3.msra.mxu0 %v10261_v51 }
0x1648   :  { %v9880_v14 = vmax.f32 %v9877_v2, 0.0 }
0x164a   :  { %10504 = vmatprep.mubr.f32.mxu1 %v9880_v14 }
0x164b   :  { %10505 = vmatmul.mubr.f32.vlgmr.msra.gmra.mxu1 %v9879_v16 }
0x1684   :  { %v10087_v50 = vpop.f32.mrf.mxu1 }
0x1685   :  { %v10088_v1 = vadd.f32 %v10087_v50, %v10014_v24 }
0x1686   :  { %v10089_v59 = vpop.f32.mrf.mxu1 }
0x1687   :  { %v10090_v4 = vadd.f32 %v10089_v59, %v10018_v53 }
0x16a4   :  { %v11062_v39 = vpop.f32.mrf.mxu1 }
0x16a6   :  { %v11063_v60 = vpop.f32.mrf.mxu1 }
0x16a7   :  { %v11064_v35 = vadd.f32 %v11063_v60, %v11062_v39 }
0x16a9   :  { %v10367_v40 = vadd.f32 %v11064_v35, %v10737_v12 }
0x16c7   :  { %v10158_v9 = vpop.f32.mrf.mxu0 }
0x16c8   :  { %v10159_v58 = vadd.f32 %v10158_v9, %v10088_v1 }
0x16c9   :  { %v10160_v17 = vpop.f32.mrf.mxu0 }
0x16ca   :  { %v10161_v48 = vadd.f32 %v10160_v17, %v10090_v4  ;;  %v10163_v19 = vmax.f32 %v10159_v58, 0.0 }
0x16cc   :  { %v10164_v11 = vmax.f32 %v10161_v48, 0.0 }
0x16ce   :  { %10574 = vmatprep.mubr.f32.mxu0 %v10164_v11 }
0x16cf   :  { %10575 = vmatmul.mubr.f32.vlgmr.msra.gmra.mxu0 %v10163_v19 }
0x16e7   :  { %v11097_v5 = vpop.f32.mrf.mxu0 }
0x16e9   :  { %v11098_v29 = vpop.f32.mrf.mxu0 }
0x16ea   :  { %v11099_v26 = vadd.f32 %v11098_v29, %v11097_v5 }
0x16ec   :  { %v10437_v43 = vadd.f32 %v11099_v26, %v10367_v40 }
0x170b   :  { %v11132_v49 = vpop.f32.mrf.mxu1 }
0x170d   :  { %v11133_v33 = vpop.f32.mrf.mxu1 }
0x170e   :  { %v11134_v45 = vadd.f32 %v11133_v33, %v11132_v49 }
0x1710   :  { %v10507_v0 = vadd.f32 %v11134_v45, %v10437_v43 }
0x178f   :  { %v11167_v36 = vpop.f32.mrf.mxu0 }
0x1791   :  { %v11168_v7 = vpop.f32.mrf.mxu0 }
0x1792   :  { %v11169_v28 = vadd.f32 %v11168_v7, %v11167_v36 }
0x1794   :  { %v10577_v27 = vadd.f32 %v11169_v28, %v10507_v0 }
0x1796   :  { %10582 = vperm.xlu1 %11334, %v10577_v27   ;;  %10586 = vrot.lane.b32.xlu0 %v10577_v27, %s11902_s7 }
0x1808   :  { %v10587_v38 = vpop.permute.xlu0 %10586 }
0x1809   :  { %v10590_v3 = vsel %vm10589_vm4, %v10587_v38, 0.0 }
0x180a   :  { %10591 = vadd.xlane.f32.xlu0 %v10590_v3 }
0x1811   :  { %v10583_v41 = vpop.permute.xlu1 %10582 }
0x1812   :  { %v10585_v62 = vadd.f32 %v10583_v41, %v10577_v27 }
0x1893   :  { %v10592_v25 = vpop.xlane.xlu0 %10591 }
0x1894   :  { %v10594_v8 = vmul.f32 0.125, %v10592_v25 }
0x1896   :  { %v10595_v18 = vsub.f32 %v10585_v62, %v10594_v8 }
0x1898   :  { %10597 = vrot.lane.b32.xlu1 %v10595_v18, %s11902_s7 }
0x190a   :  { %v10598_v44 = vpop.permute.xlu1 %10597 }
0x190b   :  { %10600 = vst.msk [vmem:[#allocation40] sm:$0x3] %vm10589_vm4, %v10598_v44 }
0x190c   :  { %11829 = shalt.err (!%p11826_p12)
}
0x190d   :  { %s13841_s23 = sld [smem:[#allocation79_spill]] }
0x1913   :  { %10610 = dma.vmem_to_hbm [thread:$0]  %s10608_s24, 32, %s13841_s23, [#allocation4]  }
0x1914   :  { %11864 = dma.done.wait [#allocation4], 32  }
0x1915   :  { %11865 = vsyncadd [#allocation4], 4294967264 }
0x1916   :  { %10614 = vsyncpa [#allocation3], 1 }
0x1917   :  { %10615 = vsyncpa [#allocation6], 1 }
0x1918   :  { %10616 = vsyncpa [#allocation9], 1 }
0x1919   :  { %10617 = vsyncpa [#allocation12], 1 }
0x191a   :  { %10618 = vsyncpa [#allocation15], 1 }
0x191b   :  { %10619 = vsyncpa [#allocation18], 1 }
0x191c   :  { %10620 = vsyncpa [#allocation21], 1 }
0x191d   :  { %10621 = vsyncpa [#allocation24], 1 }
0x191e   :  { %10622 = vsyncpa [#allocation27], 1 }
0x191f   :  { %10623 = vsyncpa [#allocation30], 1 }
0x1920   :  { %10624 = vsyncpa [#allocation33], 1 }
0x1921   :  { %10625 = vsyncpa [#allocation36], 1 }
0x1922   :  { %10626 = vsyncpa [#allocation39], 1 }
0x1923   :  { %10627 = vsyncpa [#allocation4], 1 }

</bundles_post_ra>
